<compile_context>
chip_gen: v5e
topology: v5e:2x2
jax: 0.10.0
libtpu: 0.0.40
codegen_flags: <defaults>
</compile_context>

<pallas_src>
import functools

import jax
import jax.numpy as jnp
from jax.experimental import pallas as pl
from jax.experimental.pallas import tpu as pltpu


_VMEM_LIMIT = 32 * 1024 * 1024  # v7x-safe scoped-VMEM budget


def _round_up(x, m):
    return ((x + m - 1) // m) * m


def _pick_tile(size, target, multiple):
    """Largest tile <= target, multiple of `multiple`, dividing `size`.

    `size` must itself be a multiple of `multiple`.
    """
    t = max((min(target, size) // multiple) * multiple, multiple)
    while t > multiple and size % t != 0:
        t -= multiple
    return t


# -----------------------------------------------------------------------------
# Fused (x @ w) + bias [+ ReLU] matmul, tiled over (M, N, K).
# -----------------------------------------------------------------------------
def _fused_matmul_kernel(x_ref, w_ref, b_ref, o_ref, acc_ref, *, apply_relu):
    @pl.when(pl.program_id(2) == 0)
    def _init():
        acc_ref[...] = jnp.zeros_like(acc_ref)

    acc_ref[...] += jnp.dot(x_ref[...], w_ref[...],
                            preferred_element_type=jnp.float32)

    @pl.when(pl.program_id(2) == pl.num_programs(2) - 1)
    def _epilogue():
        y = acc_ref[...] + b_ref[...]
        if apply_relu:
            y = jnp.maximum(y, 0.0)
        o_ref[...] = y.astype(o_ref.dtype)


def fused_matmul(x, w, bias, apply_relu=True, out_dtype=jnp.float32):
    """relu_maybe(x @ w + bias); x: (M, K), w: (K, N), bias: (N,).

    Operands are cast to bf16 for the MXU, accumulation / epilogue in f32.
    M/N/K are zero-padded to 16 / 128 / 128 multiples so every block is
    sublane/lane aligned and output stores are lane-dense; the padding is
    sliced off again before returning.
    """
    M, K = x.shape
    N = w.shape[1]

    Mp = _round_up(M, 16)
    Kp = _round_up(K, 128)
    Np = _round_up(N, 128)

    # K tile: whole (padded) K when small, otherwise ~512 (must divide Kp).
    tk = Kp if Kp <= 1024 else _pick_tile(Kp, 512, 128)
    # N tile: 128 or 256 lanes.
    tn = _pick_tile(Np, 256, 128)
    # M tile: bigger rows when K is small (amortize per-step overhead), smaller
    # when K is large; keep >=2 row blocks when possible (v7x megacore).
    tm_target = 512 if Kp <= 640 else (256 if Kp <= 2304 else 128)
    tm = _pick_tile(Mp, tm_target, 16)
    if Mp // tm < 2 and Mp >= 32:
        tm = _pick_tile(Mp, max(tm // 2, 16), 16)

    xb = x.astype(jnp.bfloat16)
    if (Mp, Kp) != (M, K):
        xb = jnp.pad(xb, ((0, Mp - M), (0, Kp - K)))
    wb = w.astype(jnp.bfloat16)
    if (Kp, Np) != (K, N):
        wb = jnp.pad(wb, ((0, Kp - K), (0, Np - N)))
    bb = bias.astype(jnp.float32)
    if Np != N:
        bb = jnp.pad(bb, (0, Np - N))
    bb = bb.reshape(1, Np)

    kernel = functools.partial(_fused_matmul_kernel, apply_relu=apply_relu)
    out = pl.pallas_call(
        kernel,
        out_shape=jax.ShapeDtypeStruct((Mp, Np), out_dtype),
        grid_spec=pltpu.PrefetchScalarGridSpec(
            num_scalar_prefetch=0,
            grid=(Mp // tm, Np // tn, Kp // tk),
            in_specs=[
                pl.BlockSpec((tm, tk), lambda i, j, k: (i, k)),
                pl.BlockSpec((tk, tn), lambda i, j, k: (k, j)),
                pl.BlockSpec((1, tn), lambda i, j, k: (0, j)),
            ],
            out_specs=pl.BlockSpec((tm, tn), lambda i, j, k: (i, j)),
            scratch_shapes=[pltpu.VMEM((tm, tn), jnp.float32)],
        ),
        compiler_params=pltpu.CompilerParams(
            dimension_semantics=("parallel", "parallel", "arbitrary"),
            vmem_limit_bytes=_VMEM_LIMIT,
        ),
    )(xb, wb, bb)
    if (Mp, Np) != (M, N):
        out = out[:M, :N]
    return out


# -----------------------------------------------------------------------------
# MaxPool2d(2): one gridded kernel over a single input array.
# -----------------------------------------------------------------------------
def _maxpool_kernel(x_ref, o_ref):
    a = x_ref[0]                          # (H, Wo, 2*C): horizontal pairs on lanes
    h, wo, c2 = a.shape
    c = c2 // 2
    a = a.reshape(h // 2, 2, wo, c2)      # split rows into vertical pairs (view)
    a = jnp.maximum(a[:, 0], a[:, 1])     # (Ho, Wo, 2*C)
    o_ref[0] = jnp.maximum(a[:, :, :c], a[:, :, c:])


def maxpool2x2(x):
    """nn.MaxPool2d(2) on an NHWC tensor (H, W even for this architecture)."""
    N, H, W, C = x.shape
    Ho, Wo = H // 2, W // 2
    # Free row-major view: horizontally adjacent pixels land in the lane axis,
    # so the kernel reads ONE array instead of four strided HBM copies.
    xr = x.reshape(N, H, Wo, 2 * C)
    return pl.pallas_call(
        _maxpool_kernel,
        out_shape=jax.ShapeDtypeStruct((N, Ho, Wo, C), x.dtype),
        grid_spec=pltpu.PrefetchScalarGridSpec(
            num_scalar_prefetch=0,
            grid=(N,),
            in_specs=[pl.BlockSpec((1, H, Wo, 2 * C), lambda n: (n, 0, 0, 0))],
            out_specs=pl.BlockSpec((1, Ho, Wo, C), lambda n: (n, 0, 0, 0)),
        ),
        compiler_params=pltpu.CompilerParams(
            dimension_semantics=("parallel",),
            vmem_limit_bytes=_VMEM_LIMIT,
        ),
    )(xr)


# -----------------------------------------------------------------------------
# Fused FC tail: Linear(1024,512)+ReLU -> Linear(512,100)+ReLU -> Linear(100,n)
# -----------------------------------------------------------------------------
def _fc_tail_kernel(x_ref, w2_ref, b2_ref, w3_ref, b3_ref, w4_ref, b4_ref, o_ref):
    h = jnp.dot(x_ref[...], w2_ref[...], preferred_element_type=jnp.float32)
    h = jnp.maximum(h + b2_ref[...], 0.0)
    h = jnp.dot(h.astype(jnp.bfloat16), w3_ref[...],
                preferred_element_type=jnp.float32)
    h = jnp.maximum(h + b3_ref[...], 0.0)
    y = jnp.dot(h.astype(jnp.bfloat16), w4_ref[...],
                preferred_element_type=jnp.float32)
    o_ref[...] = (y + b4_ref[...]).astype(o_ref.dtype)


def fc_tail(x, fc_params):
    """Three small Linear layers fused into one pallas_call (weights ~1.2 MB bf16
    fit VMEM together).  100-/1-wide outputs are zero-padded to 128 lanes."""
    (w2, b2), (w3, b3), (w4, b4) = fc_params
    B = x.shape[0]
    Bp = _round_up(B, 8)
    n3, n4 = w3.shape[1], w4.shape[1]
    n3p, n4p = _round_up(n3, 128), _round_up(n4, 128)

    xb = x.astype(jnp.bfloat16)
    if Bp != B:
        xb = jnp.pad(xb, ((0, Bp - B), (0, 0)))
    w2b = w2.astype(jnp.bfloat16)
    b2r = b2.reshape(1, -1).astype(jnp.float32)
    w3b = jnp.pad(w3, ((0, 0), (0, n3p - n3))).astype(jnp.bfloat16)
    b3r = jnp.pad(b3, (0, n3p - n3)).reshape(1, -1).astype(jnp.float32)
    w4b = jnp.pad(w4, ((0, n3p - w4.shape[0]), (0, n4p - n4))).astype(jnp.bfloat16)
    b4r = jnp.pad(b4, (0, n4p - n4)).reshape(1, -1).astype(jnp.float32)

    out = pl.pallas_call(
        _fc_tail_kernel,
        out_shape=jax.ShapeDtypeStruct((Bp, n4p), jnp.float32),
        compiler_params=pltpu.CompilerParams(vmem_limit_bytes=_VMEM_LIMIT),
    )(xb, w2b, b2r, w3b, b3r, w4b, b4r)
    return out[:B, :n4]


# -----------------------------------------------------------------------------
# Glue: im2col + conv/bn/relu layer
# -----------------------------------------------------------------------------
def im2col(x, stride):
    """x: (N, H, W, C) bf16, 3x3 kernel, padding=1 -> (N*Ho*Wo, 9*C) bf16."""
    N, H, W, C = x.shape
    xp = jnp.pad(x, ((0, 0), (1, 1), (1, 1), (0, 0)))
    Ho = (H + 2 - 3) // stride + 1
    Wo = (W + 2 - 3) // stride + 1
    cols = []
    for kh in range(3):
        for kw in range(3):
            cols.append(xp[:, kh::stride, kw::stride, :][:, :Ho, :Wo, :])
    patches = jnp.stack(cols, axis=3)          # (N, Ho, Wo, 9, C)
    return patches.reshape(N * Ho * Wo, 9 * C), (N, Ho, Wo)


def conv_bn_relu(x, conv_w, conv_b, gamma, beta, mean, var, stride, eps=1e-5):
    """x NHWC bf16; conv_w in PyTorch layout (Cout, Cin, 3, 3) f32."""
    Cin = x.shape[-1]
    Cout = conv_w.shape[0]
    patches, (N, Ho, Wo) = im2col(x.astype(jnp.bfloat16), stride)
    # (Cout, Cin, KH, KW) -> (KH, KW, Cin, Cout) -> (9*Cin, Cout), matches im2col order.
    wmat = jnp.transpose(conv_w, (2, 3, 1, 0)).reshape(9 * Cin, Cout)
    scale = gamma * jax.lax.rsqrt(var + eps)
    w_folded = wmat * scale[None, :]           # fold BN scale into the weights
    bias = beta + scale * (conv_b - mean)      # fold conv bias + BN shift
    y = fused_matmul(patches, w_folded, bias, apply_relu=True,
                     out_dtype=jnp.bfloat16)
    return y.reshape(N, Ho, Wo, Cout)


# -----------------------------------------------------------------------------
# Model definition (architecture mirrors SimpleCNN.conv_layers / fc_layers)
# -----------------------------------------------------------------------------
CONV_ARCH = [
    ("conv", 64, 2), ("conv", 64, 2), ("pool",),
    ("conv", 128, 1), ("conv", 128, 1), ("pool",),
    ("conv", 256, 1), ("conv", 256, 1), ("conv", 256, 1), ("pool",),
    ("conv", 512, 1), ("conv", 512, 1), ("conv", 512, 1),
]


def flattened_size(image_size):
    h, w = image_size
    c = None
    for item in CONV_ARCH:
        if item[0] == "pool":
            h, w = h // 2, w // 2
        else:
            _, cout, stride = item
            h = (h + 2 - 3) // stride + 1
            w = (w + 2 - 3) // stride + 1
            c = cout
    return c * h * w


def init_params(key, input_channels=3, num_outputs=1, image_size=(32, 32)):
    keys = jax.random.split(key, 64)
    ki = 0
    layers = []
    cin = input_channels
    for item in CONV_ARCH:
        if item[0] == "pool":
            layers.append(("pool",))
            continue
        _, cout, stride = item
        w = 0.05 * jax.random.normal(keys[ki], (cout, cin, 3, 3), jnp.float32); ki += 1
        b = 0.05 * jax.random.normal(keys[ki], (cout,), jnp.float32); ki += 1
        gamma = jnp.ones((cout,), jnp.float32)    # BatchNorm2d defaults
        beta = jnp.zeros((cout,), jnp.float32)
        mean = jnp.zeros((cout,), jnp.float32)
        var = jnp.ones((cout,), jnp.float32)
        layers.append(("conv", w, b, gamma, beta, mean, var, stride))
        cin = cout

    flat = flattened_size(image_size)
    fc_dims = [(flat, 1024), (1024, 512), (512, 100), (100, num_outputs)]
    fcs = []
    for (fin, fout) in fc_dims:
        w = jax.random.normal(keys[ki], (fin, fout), jnp.float32) / jnp.sqrt(float(fin)); ki += 1
        b = 0.05 * jax.random.normal(keys[ki], (fout,), jnp.float32); ki += 1
        fcs.append((w, b))
    return {"conv": layers, "fc": fcs, "flat": flat}


def simple_cnn_forward(x_nchw, params):
    """x_nchw: (batch, input_channels, H, W) -> (batch, num_outputs)."""
    # NCHW -> NHWC; keep inter-layer activations in bf16 (channels on lanes).
    x = jnp.transpose(x_nchw, (0, 2, 3, 1)).astype(jnp.bfloat16)
    for item in params["conv"]:
        if item[0] == "pool":
            x = maxpool2x2(x)
        else:
            _, w, b, gamma, beta, mean, var, stride = item
            x = conv_bn_relu(x, w, b, gamma, beta, mean, var, stride)
    # Flatten exactly like torch: NCHW order.
    x = jnp.transpose(x, (0, 3, 1, 2)).reshape(x.shape[0], -1)
    # fc1 through the K-tiled matmul (K can be 36864 at 400x200); the three
    # small remaining Linear layers run as one fused kernel.
    w1, b1 = params["fc"][0]
    x = fused_matmul(x, w1, b1, apply_relu=True, out_dtype=jnp.bfloat16)
    return fc_tail(x, params["fc"][1:])


# -----------------------------------------------------------------------------
# Main
# -----------------------------------------------------------------------------
if __name__ == "__main__":
    key = jax.random.PRNGKey(0)
    kp, kx = jax.random.split(key)

    batch = 2
    input_channels = 3
    num_outputs = 1
    # Small image: a multiple of 32 so the two stride-2 convs + three
    # MaxPool2d(2) layers keep valid (>=1) spatial dims, like the real 400x200.
    image_size = (32, 32)

    params = init_params(kp, input_channels=input_channels,
                         num_outputs=num_outputs, image_size=image_size)
    x = jax.random.normal(kx, (batch, input_channels, *image_size), jnp.float32)

    forward = jax.jit(lambda inp: simple_cnn_forward(inp, params))
    out = jax.block_until_ready(forward(x))
    assert out.shape == (batch, num_outputs), out.shape
    assert bool(jnp.all(jnp.isfinite(out)))
    print("KERNEL_OK")
</pallas_src>

<mosaic_0001>
module attributes {stable_mosaic.version = 11 : i64} {
  func.func @_fused_matmul_kernel(%arg0: i32, %arg1: i32, %arg2: i32, %arg3: memref<256x128xbf16, #tpu.memory_space<vmem>>, %arg4: memref<128x128xbf16, #tpu.memory_space<vmem>>, %arg5: memref<1x128xf32, #tpu.memory_space<vmem>>, %arg6: memref<256x128xbf16, #tpu.memory_space<vmem>>, %arg7: memref<256x128xf32, #tpu.memory_space<vmem>>) attributes {dimension_semantics = [#tpu.dimension_semantics<parallel>, #tpu.dimension_semantics<parallel>, #tpu.dimension_semantics<arbitrary>], iteration_bounds = array<i64: 2, 1, 1>, scalar_prefetch = 0 : i64, scratch_operands = 1 : i64, tpu.core_type = #tpu.core_type<tc>, window_params = [{transform_indices = @transform_0, window_bounds = array<i64: 256, 128>}, {transform_indices = @transform_1, window_bounds = array<i64: 128, 128>}, {transform_indices = @transform_2, window_bounds = array<i64: 1, 128>}, {transform_indices = @transform_3, window_bounds = array<i64: 256, 128>}]} {
    %c0_i32 = arith.constant 0 : i32
    %0 = arith.cmpi eq, %arg2, %c0_i32 : i32
    %1 = arith.extui %0 : i1 to i32
    %c0_i32_0 = arith.constant 0 : i32
    %2 = arith.cmpi ne, %1, %c0_i32_0 : i32
    scf.if %2 {
      %cst_10 = arith.constant 0.000000e+00 : f32
      %12 = vector.broadcast %cst_10 : f32 to vector<256x128xf32>
      %c0_11 = arith.constant 0 : index
      %c0_12 = arith.constant 0 : index
      %13 = vector.load %arg7[%c0_11, %c0_12] : memref<256x128xf32, #tpu.memory_space<vmem>>, vector<256x128xf32>
      tpu.vector_store %arg7[%c0_11, %c0_12], %12 {strides = array<i32>} : memref<256x128xf32, #tpu.memory_space<vmem>>, vector<256x128xf32>,
    } else {
    }
    %c0 = arith.constant 0 : index
    %c0_1 = arith.constant 0 : index
    %3 = vector.load %arg7[%c0, %c0_1] : memref<256x128xf32, #tpu.memory_space<vmem>>, vector<256x128xf32>
    %c0_2 = arith.constant 0 : index
    %c0_3 = arith.constant 0 : index
    %4 = vector.load %arg3[%c0_2, %c0_3] : memref<256x128xbf16, #tpu.memory_space<vmem>>, vector<256x128xbf16>
    %c0_4 = arith.constant 0 : index
    %c0_5 = arith.constant 0 : index
    %5 = vector.load %arg4[%c0_4, %c0_5] : memref<128x128xbf16, #tpu.memory_space<vmem>>, vector<128x128xbf16>
    %cst = arith.constant dense<0.000000e+00> : vector<256x128xf32>
    %6 = tpu.matmul %4, %5, %cst {dimension_numbers = #tpu.dot_dimension_numbers<[1], [0], [0], [1], [0, 0, 1, 1], [], []>} : vector<256x128xbf16>, vector<128x128xbf16>, vector<256x128xf32> -> vector<256x128xf32>
    %7 = arith.addf %3, %6 : vector<256x128xf32>
    %c0_6 = arith.constant 0 : index
    %c0_7 = arith.constant 0 : index
    %8 = vector.load %arg7[%c0_6, %c0_7] : memref<256x128xf32, #tpu.memory_space<vmem>>, vector<256x128xf32>
    tpu.vector_store %arg7[%c0_6, %c0_7], %7 {strides = array<i32>} : memref<256x128xf32, #tpu.memory_space<vmem>>, vector<256x128xf32>,
    %c0_i32_8 = arith.constant 0 : i32
    %9 = arith.cmpi eq, %arg2, %c0_i32_8 : i32
    %10 = arith.extui %9 : i1 to i32
    %c0_i32_9 = arith.constant 0 : i32
    %11 = arith.cmpi ne, %10, %c0_i32_9 : i32
    scf.if %11 {
      %c0_10 = arith.constant 0 : index
      %c0_11 = arith.constant 0 : index
      %12 = vector.load %arg7[%c0_10, %c0_11] : memref<256x128xf32, #tpu.memory_space<vmem>>, vector<256x128xf32>
      %c0_12 = arith.constant 0 : index
      %c0_13 = arith.constant 0 : index
      %13 = vector.load %arg5[%c0_12, %c0_13] : memref<1x128xf32, #tpu.memory_space<vmem>>, vector<1x128xf32>
      %14 = vector.broadcast %13 : vector<1x128xf32> to vector<256x128xf32>
      %15 = arith.addf %12, %14 : vector<256x128xf32>
      %cst_14 = arith.constant 0.000000e+00 : f32
      %16 = vector.broadcast %cst_14 : f32 to vector<256x128xf32>
      %17 = arith.maximumf %15, %16 : vector<256x128xf32>
      %18 = arith.truncf %17 : vector<256x128xf32> to vector<256x128xbf16>
      %c0_15 = arith.constant 0 : index
      %c0_16 = arith.constant 0 : index
      %19 = vector.load %arg6[%c0_15, %c0_16] : memref<256x128xbf16, #tpu.memory_space<vmem>>, vector<256x128xbf16>
      tpu.vector_store %arg6[%c0_15, %c0_16], %18 {strides = array<i32>} : memref<256x128xbf16, #tpu.memory_space<vmem>>, vector<256x128xbf16>,
    } else {
    }
    return
  }
  func.func @transform_0(%arg0: i32, %arg1: i32, %arg2: i32) -> (i32, i32) {
    %c0_i32 = arith.constant 0 : i32
    return %arg0, %arg2 : i32, i32
  }
  func.func @transform_1(%arg0: i32, %arg1: i32, %arg2: i32) -> (i32, i32) {
    %c0_i32 = arith.constant 0 : i32
    return %arg2, %arg1 : i32, i32
  }
  func.func @transform_2(%arg0: i32, %arg1: i32, %arg2: i32) -> (i32, i32) {
    %c0_i32 = arith.constant 0 : i32
    %c0_i32_0 = arith.constant 0 : i32
    return %c0_i32, %arg1 : i32, i32
  }
  func.func @transform_3(%arg0: i32, %arg1: i32, %arg2: i32) -> (i32, i32) {
    %c0_i32 = arith.constant 0 : i32
    return %arg0, %arg1 : i32, i32
  }
}

module attributes {stable_mosaic.version = 11 : i64} {
  func.func @_fused_matmul_kernel(%arg0: i32, %arg1: i32, %arg2: i32, %arg3: memref<64x640xbf16, #tpu.memory_space<vmem>>, %arg4: memref<640x128xbf16, #tpu.memory_space<vmem>>, %arg5: memref<1x128xf32, #tpu.memory_space<vmem>>, %arg6: memref<64x128xbf16, #tpu.memory_space<vmem>>, %arg7: memref<64x128xf32, #tpu.memory_space<vmem>>) attributes {dimension_semantics = [#tpu.dimension_semantics<parallel>, #tpu.dimension_semantics<parallel>, #tpu.dimension_semantics<arbitrary>], iteration_bounds = array<i64: 2, 1, 1>, scalar_prefetch = 0 : i64, scratch_operands = 1 : i64, tpu.core_type = #tpu.core_type<tc>, window_params = [{transform_indices = @transform_0, window_bounds = array<i64: 64, 640>}, {transform_indices = @transform_1, window_bounds = array<i64: 640, 128>}, {transform_indices = @transform_2, window_bounds = array<i64: 1, 128>}, {transform_indices = @transform_3, window_bounds = array<i64: 64, 128>}]} {
    %c0_i32 = arith.constant 0 : i32
    %0 = arith.cmpi eq, %arg2, %c0_i32 : i32
    %1 = arith.extui %0 : i1 to i32
    %c0_i32_0 = arith.constant 0 : i32
    %2 = arith.cmpi ne, %1, %c0_i32_0 : i32
    scf.if %2 {
      %cst_10 = arith.constant 0.000000e+00 : f32
      %12 = vector.broadcast %cst_10 : f32 to vector<64x128xf32>
      %c0_11 = arith.constant 0 : index
      %c0_12 = arith.constant 0 : index
      %13 = vector.load %arg7[%c0_11, %c0_12] : memref<64x128xf32, #tpu.memory_space<vmem>>, vector<64x128xf32>
      tpu.vector_store %arg7[%c0_11, %c0_12], %12 {strides = array<i32>} : memref<64x128xf32, #tpu.memory_space<vmem>>, vector<64x128xf32>,
    } else {
    }
    %c0 = arith.constant 0 : index
    %c0_1 = arith.constant 0 : index
    %3 = vector.load %arg7[%c0, %c0_1] : memref<64x128xf32, #tpu.memory_space<vmem>>, vector<64x128xf32>
    %c0_2 = arith.constant 0 : index
    %c0_3 = arith.constant 0 : index
    %4 = vector.load %arg3[%c0_2, %c0_3] : memref<64x640xbf16, #tpu.memory_space<vmem>>, vector<64x640xbf16>
    %c0_4 = arith.constant 0 : index
    %c0_5 = arith.constant 0 : index
    %5 = vector.load %arg4[%c0_4, %c0_5] : memref<640x128xbf16, #tpu.memory_space<vmem>>, vector<640x128xbf16>
    %cst = arith.constant dense<0.000000e+00> : vector<64x128xf32>
    %6 = tpu.matmul %4, %5, %cst {dimension_numbers = #tpu.dot_dimension_numbers<[1], [0], [0], [1], [0, 0, 1, 1], [], []>} : vector<64x640xbf16>, vector<640x128xbf16>, vector<64x128xf32> -> vector<64x128xf32>
    %7 = arith.addf %3, %6 : vector<64x128xf32>
    %c0_6 = arith.constant 0 : index
    %c0_7 = arith.constant 0 : index
    %8 = vector.load %arg7[%c0_6, %c0_7] : memref<64x128xf32, #tpu.memory_space<vmem>>, vector<64x128xf32>
    tpu.vector_store %arg7[%c0_6, %c0_7], %7 {strides = array<i32>} : memref<64x128xf32, #tpu.memory_space<vmem>>, vector<64x128xf32>,
    %c0_i32_8 = arith.constant 0 : i32
    %9 = arith.cmpi eq, %arg2, %c0_i32_8 : i32
    %10 = arith.extui %9 : i1 to i32
    %c0_i32_9 = arith.constant 0 : i32
    %11 = arith.cmpi ne, %10, %c0_i32_9 : i32
    scf.if %11 {
      %c0_10 = arith.constant 0 : index
      %c0_11 = arith.constant 0 : index
      %12 = vector.load %arg7[%c0_10, %c0_11] : memref<64x128xf32, #tpu.memory_space<vmem>>, vector<64x128xf32>
      %c0_12 = arith.constant 0 : index
      %c0_13 = arith.constant 0 : index
      %13 = vector.load %arg5[%c0_12, %c0_13] : memref<1x128xf32, #tpu.memory_space<vmem>>, vector<1x128xf32>
      %14 = vector.broadcast %13 : vector<1x128xf32> to vector<64x128xf32>
      %15 = arith.addf %12, %14 : vector<64x128xf32>
      %cst_14 = arith.constant 0.000000e+00 : f32
      %16 = vector.broadcast %cst_14 : f32 to vector<64x128xf32>
      %17 = arith.maximumf %15, %16 : vector<64x128xf32>
      %18 = arith.truncf %17 : vector<64x128xf32> to vector<64x128xbf16>
      %c0_15 = arith.constant 0 : index
      %c0_16 = arith.constant 0 : index
      %19 = vector.load %arg6[%c0_15, %c0_16] : memref<64x128xbf16, #tpu.memory_space<vmem>>, vector<64x128xbf16>
      tpu.vector_store %arg6[%c0_15, %c0_16], %18 {strides = array<i32>} : memref<64x128xbf16, #tpu.memory_space<vmem>>, vector<64x128xbf16>,
    } else {
    }
    return
  }
  func.func @transform_0(%arg0: i32, %arg1: i32, %arg2: i32) -> (i32, i32) {
    %c0_i32 = arith.constant 0 : i32
    return %arg0, %arg2 : i32, i32
  }
  func.func @transform_1(%arg0: i32, %arg1: i32, %arg2: i32) -> (i32, i32) {
    %c0_i32 = arith.constant 0 : i32
    return %arg2, %arg1 : i32, i32
  }
  func.func @transform_2(%arg0: i32, %arg1: i32, %arg2: i32) -> (i32, i32) {
    %c0_i32 = arith.constant 0 : i32
    %c0_i32_0 = arith.constant 0 : i32
    return %c0_i32, %arg1 : i32, i32
  }
  func.func @transform_3(%arg0: i32, %arg1: i32, %arg2: i32) -> (i32, i32) {
    %c0_i32 = arith.constant 0 : i32
    return %arg0, %arg1 : i32, i32
  }
}

module attributes {stable_mosaic.version = 11 : i64} {
  func.func @_maxpool_kernel(%arg0: i32, %arg1: memref<1x8x4x128xbf16, #tpu.memory_space<vmem>>, %arg2: memref<1x4x4x64xbf16, #tpu.memory_space<vmem>>) attributes {dimension_semantics = [#tpu.dimension_semantics<parallel>], iteration_bounds = array<i64: 2>, scalar_prefetch = 0 : i64, scratch_operands = 0 : i64, tpu.core_type = #tpu.core_type<tc>, window_params = [{transform_indices = @transform_0, window_bounds = array<i64: 1, 8, 4, 128>}, {transform_indices = @transform_1, window_bounds = array<i64: 1, 4, 4, 64>}]} {
    %c0 = arith.constant 0 : index
    %c0_0 = arith.constant 0 : index
    %c0_1 = arith.constant 0 : index
    %c0_2 = arith.constant 0 : index
    %0 = vector.load %arg1[%c0, %c0_0, %c0_1, %c0_2] : memref<1x8x4x128xbf16, #tpu.memory_space<vmem>>, vector<1x8x4x128xbf16>
    %1 = vector.shape_cast %0 : vector<1x8x4x128xbf16> to vector<8x4x128xbf16>
    %2 = vector.shape_cast %1 : vector<8x4x128xbf16> to vector<4x2x4x128xbf16>
    %3 = vector.extract_strided_slice %2 {offsets = [0, 0, 0, 0], sizes = [4, 1, 4, 128], strides = [1, 1, 1, 1]} : vector<4x2x4x128xbf16> to vector<4x1x4x128xbf16>
    %4 = vector.shape_cast %3 : vector<4x1x4x128xbf16> to vector<4x4x128xbf16>
    %5 = vector.extract_strided_slice %2 {offsets = [0, 1, 0, 0], sizes = [4, 1, 4, 128], strides = [1, 1, 1, 1]} : vector<4x2x4x128xbf16> to vector<4x1x4x128xbf16>
    %6 = vector.shape_cast %5 : vector<4x1x4x128xbf16> to vector<4x4x128xbf16>
    %7 = arith.maximumf %4, %6 : vector<4x4x128xbf16>
    %8 = vector.extract_strided_slice %7 {offsets = [0, 0, 0], sizes = [4, 4, 64], strides = [1, 1, 1]} : vector<4x4x128xbf16> to vector<4x4x64xbf16>
    %9 = vector.extract_strided_slice %7 {offsets = [0, 0, 64], sizes = [4, 4, 64], strides = [1, 1, 1]} : vector<4x4x128xbf16> to vector<4x4x64xbf16>
    %10 = arith.maximumf %8, %9 : vector<4x4x64xbf16>
    %c0_3 = arith.constant 0 : index
    %c0_4 = arith.constant 0 : index
    %c0_5 = arith.constant 0 : index
    %c0_6 = arith.constant 0 : index
    %11 = vector.load %arg2[%c0_3, %c0_4, %c0_5, %c0_6] : memref<1x4x4x64xbf16, #tpu.memory_space<vmem>>, vector<1x4x4x64xbf16>
    %12 = vector.shape_cast %11 : vector<1x4x4x64xbf16> to vector<4x4x64xbf16>
    %13 = vector.shape_cast %10 : vector<4x4x64xbf16> to vector<1x4x4x64xbf16>
    tpu.vector_store %arg2[%c0_3, %c0_4, %c0_5, %c0_6], %13 {strides = array<i32>} : memref<1x4x4x64xbf16, #tpu.memory_space<vmem>>, vector<1x4x4x64xbf16>,
    return
  }
  func.func @transform_0(%arg0: i32) -> (i32, i32, i32, i32) {
    %c0_i32 = arith.constant 0 : i32
    %c0_i32_0 = arith.constant 0 : i32
    %c0_i32_1 = arith.constant 0 : i32
    %c0_i32_2 = arith.constant 0 : i32
    return %arg0, %c0_i32, %c0_i32_0, %c0_i32_1 : i32, i32, i32, i32
  }
  func.func @transform_1(%arg0: i32) -> (i32, i32, i32, i32) {
    %c0_i32 = arith.constant 0 : i32
    %c0_i32_0 = arith.constant 0 : i32
    %c0_i32_1 = arith.constant 0 : i32
    %c0_i32_2 = arith.constant 0 : i32
    return %arg0, %c0_i32, %c0_i32_0, %c0_i32_1 : i32, i32, i32, i32
  }
}

module attributes {stable_mosaic.version = 11 : i64} {
  func.func @_fused_matmul_kernel(%arg0: i32, %arg1: i32, %arg2: i32, %arg3: memref<16x640xbf16, #tpu.memory_space<vmem>>, %arg4: memref<640x128xbf16, #tpu.memory_space<vmem>>, %arg5: memref<1x128xf32, #tpu.memory_space<vmem>>, %arg6: memref<16x128xbf16, #tpu.memory_space<vmem>>, %arg7: memref<16x128xf32, #tpu.memory_space<vmem>>) attributes {dimension_semantics = [#tpu.dimension_semantics<parallel>, #tpu.dimension_semantics<parallel>, #tpu.dimension_semantics<arbitrary>], iteration_bounds = array<i64: 2, 1, 1>, scalar_prefetch = 0 : i64, scratch_operands = 1 : i64, tpu.core_type = #tpu.core_type<tc>, window_params = [{transform_indices = @transform_0, window_bounds = array<i64: 16, 640>}, {transform_indices = @transform_1, window_bounds = array<i64: 640, 128>}, {transform_indices = @transform_2, window_bounds = array<i64: 1, 128>}, {transform_indices = @transform_3, window_bounds = array<i64: 16, 128>}]} {
    %c0_i32 = arith.constant 0 : i32
    %0 = arith.cmpi eq, %arg2, %c0_i32 : i32
    %1 = arith.extui %0 : i1 to i32
    %c0_i32_0 = arith.constant 0 : i32
    %2 = arith.cmpi ne, %1, %c0_i32_0 : i32
    scf.if %2 {
      %cst_10 = arith.constant 0.000000e+00 : f32
      %12 = vector.broadcast %cst_10 : f32 to vector<16x128xf32>
      %c0_11 = arith.constant 0 : index
      %c0_12 = arith.constant 0 : index
      %13 = vector.load %arg7[%c0_11, %c0_12] : memref<16x128xf32, #tpu.memory_space<vmem>>, vector<16x128xf32>
      tpu.vector_store %arg7[%c0_11, %c0_12], %12 {strides = array<i32>} : memref<16x128xf32, #tpu.memory_space<vmem>>, vector<16x128xf32>,
    } else {
    }
    %c0 = arith.constant 0 : index
    %c0_1 = arith.constant 0 : index
    %3 = vector.load %arg7[%c0, %c0_1] : memref<16x128xf32, #tpu.memory_space<vmem>>, vector<16x128xf32>
    %c0_2 = arith.constant 0 : index
    %c0_3 = arith.constant 0 : index
    %4 = vector.load %arg3[%c0_2, %c0_3] : memref<16x640xbf16, #tpu.memory_space<vmem>>, vector<16x640xbf16>
    %c0_4 = arith.constant 0 : index
    %c0_5 = arith.constant 0 : index
    %5 = vector.load %arg4[%c0_4, %c0_5] : memref<640x128xbf16, #tpu.memory_space<vmem>>, vector<640x128xbf16>
    %cst = arith.constant dense<0.000000e+00> : vector<16x128xf32>
    %6 = tpu.matmul %4, %5, %cst {dimension_numbers = #tpu.dot_dimension_numbers<[1], [0], [0], [1], [0, 0, 1, 1], [], []>} : vector<16x640xbf16>, vector<640x128xbf16>, vector<16x128xf32> -> vector<16x128xf32>
    %7 = arith.addf %3, %6 : vector<16x128xf32>
    %c0_6 = arith.constant 0 : index
    %c0_7 = arith.constant 0 : index
    %8 = vector.load %arg7[%c0_6, %c0_7] : memref<16x128xf32, #tpu.memory_space<vmem>>, vector<16x128xf32>
    tpu.vector_store %arg7[%c0_6, %c0_7], %7 {strides = array<i32>} : memref<16x128xf32, #tpu.memory_space<vmem>>, vector<16x128xf32>,
    %c0_i32_8 = arith.constant 0 : i32
    %9 = arith.cmpi eq, %arg2, %c0_i32_8 : i32
    %10 = arith.extui %9 : i1 to i32
    %c0_i32_9 = arith.constant 0 : i32
    %11 = arith.cmpi ne, %10, %c0_i32_9 : i32
    scf.if %11 {
      %c0_10 = arith.constant 0 : index
      %c0_11 = arith.constant 0 : index
      %12 = vector.load %arg7[%c0_10, %c0_11] : memref<16x128xf32, #tpu.memory_space<vmem>>, vector<16x128xf32>
      %c0_12 = arith.constant 0 : index
      %c0_13 = arith.constant 0 : index
      %13 = vector.load %arg5[%c0_12, %c0_13] : memref<1x128xf32, #tpu.memory_space<vmem>>, vector<1x128xf32>
      %14 = vector.broadcast %13 : vector<1x128xf32> to vector<16x128xf32>
      %15 = arith.addf %12, %14 : vector<16x128xf32>
      %cst_14 = arith.constant 0.000000e+00 : f32
      %16 = vector.broadcast %cst_14 : f32 to vector<16x128xf32>
      %17 = arith.maximumf %15, %16 : vector<16x128xf32>
      %18 = arith.truncf %17 : vector<16x128xf32> to vector<16x128xbf16>
      %c0_15 = arith.constant 0 : index
      %c0_16 = arith.constant 0 : index
      %19 = vector.load %arg6[%c0_15, %c0_16] : memref<16x128xbf16, #tpu.memory_space<vmem>>, vector<16x128xbf16>
      tpu.vector_store %arg6[%c0_15, %c0_16], %18 {strides = array<i32>} : memref<16x128xbf16, #tpu.memory_space<vmem>>, vector<16x128xbf16>,
    } else {
    }
    return
  }
  func.func @transform_0(%arg0: i32, %arg1: i32, %arg2: i32) -> (i32, i32) {
    %c0_i32 = arith.constant 0 : i32
    return %arg0, %arg2 : i32, i32
  }
  func.func @transform_1(%arg0: i32, %arg1: i32, %arg2: i32) -> (i32, i32) {
    %c0_i32 = arith.constant 0 : i32
    return %arg2, %arg1 : i32, i32
  }
  func.func @transform_2(%arg0: i32, %arg1: i32, %arg2: i32) -> (i32, i32) {
    %c0_i32 = arith.constant 0 : i32
    %c0_i32_0 = arith.constant 0 : i32
    return %c0_i32, %arg1 : i32, i32
  }
  func.func @transform_3(%arg0: i32, %arg1: i32, %arg2: i32) -> (i32, i32) {
    %c0_i32 = arith.constant 0 : i32
    return %arg0, %arg1 : i32, i32
  }
}

module attributes {stable_mosaic.version = 11 : i64} {
  func.func @_fused_matmul_kernel(%arg0: i32, %arg1: i32, %arg2: i32, %arg3: memref<16x384xbf16, #tpu.memory_space<vmem>>, %arg4: memref<384x128xbf16, #tpu.memory_space<vmem>>, %arg5: memref<1x128xf32, #tpu.memory_space<vmem>>, %arg6: memref<16x128xbf16, #tpu.memory_space<vmem>>, %arg7: memref<16x128xf32, #tpu.memory_space<vmem>>) attributes {dimension_semantics = [#tpu.dimension_semantics<parallel>, #tpu.dimension_semantics<parallel>, #tpu.dimension_semantics<arbitrary>], iteration_bounds = array<i64: 2, 1, 3>, scalar_prefetch = 0 : i64, scratch_operands = 1 : i64, tpu.core_type = #tpu.core_type<tc>, window_params = [{transform_indices = @transform_0, window_bounds = array<i64: 16, 384>}, {transform_indices = @transform_1, window_bounds = array<i64: 384, 128>}, {transform_indices = @transform_2, window_bounds = array<i64: 1, 128>}, {transform_indices = @transform_3, window_bounds = array<i64: 16, 128>}]} {
    %c0_i32 = arith.constant 0 : i32
    %0 = arith.cmpi eq, %arg2, %c0_i32 : i32
    %1 = arith.extui %0 : i1 to i32
    %c0_i32_0 = arith.constant 0 : i32
    %2 = arith.cmpi ne, %1, %c0_i32_0 : i32
    scf.if %2 {
      %cst_9 = arith.constant 0.000000e+00 : f32
      %12 = vector.broadcast %cst_9 : f32 to vector<16x128xf32>
      %c0_10 = arith.constant 0 : index
      %c0_11 = arith.constant 0 : index
      %13 = vector.load %arg7[%c0_10, %c0_11] : memref<16x128xf32, #tpu.memory_space<vmem>>, vector<16x128xf32>
      tpu.vector_store %arg7[%c0_10, %c0_11], %12 {strides = array<i32>} : memref<16x128xf32, #tpu.memory_space<vmem>>, vector<16x128xf32>,
    } else {
    }
    %c0 = arith.constant 0 : index
    %c0_1 = arith.constant 0 : index
    %3 = vector.load %arg7[%c0, %c0_1] : memref<16x128xf32, #tpu.memory_space<vmem>>, vector<16x128xf32>
    %c0_2 = arith.constant 0 : index
    %c0_3 = arith.constant 0 : index
    %4 = vector.load %arg3[%c0_2, %c0_3] : memref<16x384xbf16, #tpu.memory_space<vmem>>, vector<16x384xbf16>
    %c0_4 = arith.constant 0 : index
    %c0_5 = arith.constant 0 : index
    %5 = vector.load %arg4[%c0_4, %c0_5] : memref<384x128xbf16, #tpu.memory_space<vmem>>, vector<384x128xbf16>
    %cst = arith.constant dense<0.000000e+00> : vector<16x128xf32>
    %6 = tpu.matmul %4, %5, %cst {dimension_numbers = #tpu.dot_dimension_numbers<[1], [0], [0], [1], [0, 0, 1, 1], [], []>} : vector<16x384xbf16>, vector<384x128xbf16>, vector<16x128xf32> -> vector<16x128xf32>
    %7 = arith.addf %3, %6 : vector<16x128xf32>
    %c0_6 = arith.constant 0 : index
    %c0_7 = arith.constant 0 : index
    %8 = vector.load %arg7[%c0_6, %c0_7] : memref<16x128xf32, #tpu.memory_space<vmem>>, vector<16x128xf32>
    tpu.vector_store %arg7[%c0_6, %c0_7], %7 {strides = array<i32>} : memref<16x128xf32, #tpu.memory_space<vmem>>, vector<16x128xf32>,
    %c2_i32 = arith.constant 2 : i32
    %9 = arith.cmpi eq, %arg2, %c2_i32 : i32
    %10 = arith.extui %9 : i1 to i32
    %c0_i32_8 = arith.constant 0 : i32
    %11 = arith.cmpi ne, %10, %c0_i32_8 : i32
    scf.if %11 {
      %c0_9 = arith.constant 0 : index
      %c0_10 = arith.constant 0 : index
      %12 = vector.load %arg7[%c0_9, %c0_10] : memref<16x128xf32, #tpu.memory_space<vmem>>, vector<16x128xf32>
      %c0_11 = arith.constant 0 : index
      %c0_12 = arith.constant 0 : index
      %13 = vector.load %arg5[%c0_11, %c0_12] : memref<1x128xf32, #tpu.memory_space<vmem>>, vector<1x128xf32>
      %14 = vector.broadcast %13 : vector<1x128xf32> to vector<16x128xf32>
      %15 = arith.addf %12, %14 : vector<16x128xf32>
      %cst_13 = arith.constant 0.000000e+00 : f32
      %16 = vector.broadcast %cst_13 : f32 to vector<16x128xf32>
      %17 = arith.maximumf %15, %16 : vector<16x128xf32>
      %18 = arith.truncf %17 : vector<16x128xf32> to vector<16x128xbf16>
      %c0_14 = arith.constant 0 : index
      %c0_15 = arith.constant 0 : index
      %19 = vector.load %arg6[%c0_14, %c0_15] : memref<16x128xbf16, #tpu.memory_space<vmem>>, vector<16x128xbf16>
      tpu.vector_store %arg6[%c0_14, %c0_15], %18 {strides = array<i32>} : memref<16x128xbf16, #tpu.memory_space<vmem>>, vector<16x128xbf16>,
    } else {
    }
    return
  }
  func.func @transform_0(%arg0: i32, %arg1: i32, %arg2: i32) -> (i32, i32) {
    %c0_i32 = arith.constant 0 : i32
    return %arg0, %arg2 : i32, i32
  }
  func.func @transform_1(%arg0: i32, %arg1: i32, %arg2: i32) -> (i32, i32) {
    %c0_i32 = arith.constant 0 : i32
    return %arg2, %arg1 : i32, i32
  }
  func.func @transform_2(%arg0: i32, %arg1: i32, %arg2: i32) -> (i32, i32) {
    %c0_i32 = arith.constant 0 : i32
    %c0_i32_0 = arith.constant 0 : i32
    return %c0_i32, %arg1 : i32, i32
  }
  func.func @transform_3(%arg0: i32, %arg1: i32, %arg2: i32) -> (i32, i32) {
    %c0_i32 = arith.constant 0 : i32
    return %arg0, %arg1 : i32, i32
  }
}

module attributes {stable_mosaic.version = 11 : i64} {
  func.func @_maxpool_kernel(%arg0: i32, %arg1: memref<1x4x2x256xbf16, #tpu.memory_space<vmem>>, %arg2: memref<1x2x2x128xbf16, #tpu.memory_space<vmem>>) attributes {dimension_semantics = [#tpu.dimension_semantics<parallel>], iteration_bounds = array<i64: 2>, scalar_prefetch = 0 : i64, scratch_operands = 0 : i64, tpu.core_type = #tpu.core_type<tc>, window_params = [{transform_indices = @transform_0, window_bounds = array<i64: 1, 4, 2, 256>}, {transform_indices = @transform_1, window_bounds = array<i64: 1, 2, 2, 128>}]} {
    %c0 = arith.constant 0 : index
    %c0_0 = arith.constant 0 : index
    %c0_1 = arith.constant 0 : index
    %c0_2 = arith.constant 0 : index
    %0 = vector.load %arg1[%c0, %c0_0, %c0_1, %c0_2] : memref<1x4x2x256xbf16, #tpu.memory_space<vmem>>, vector<1x4x2x256xbf16>
    %1 = vector.shape_cast %0 : vector<1x4x2x256xbf16> to vector<4x2x256xbf16>
    %2 = vector.shape_cast %1 : vector<4x2x256xbf16> to vector<2x2x2x256xbf16>
    %3 = vector.extract_strided_slice %2 {offsets = [0, 0, 0, 0], sizes = [2, 1, 2, 256], strides = [1, 1, 1, 1]} : vector<2x2x2x256xbf16> to vector<2x1x2x256xbf16>
    %4 = vector.shape_cast %3 : vector<2x1x2x256xbf16> to vector<2x2x256xbf16>
    %5 = vector.extract_strided_slice %2 {offsets = [0, 1, 0, 0], sizes = [2, 1, 2, 256], strides = [1, 1, 1, 1]} : vector<2x2x2x256xbf16> to vector<2x1x2x256xbf16>
    %6 = vector.shape_cast %5 : vector<2x1x2x256xbf16> to vector<2x2x256xbf16>
    %7 = arith.maximumf %4, %6 : vector<2x2x256xbf16>
    %8 = vector.extract_strided_slice %7 {offsets = [0, 0, 0], sizes = [2, 2, 128], strides = [1, 1, 1]} : vector<2x2x256xbf16> to vector<2x2x128xbf16>
    %9 = vector.extract_strided_slice %7 {offsets = [0, 0, 128], sizes = [2, 2, 128], strides = [1, 1, 1]} : vector<2x2x256xbf16> to vector<2x2x128xbf16>
    %10 = arith.maximumf %8, %9 : vector<2x2x128xbf16>
    %c0_3 = arith.constant 0 : index
    %c0_4 = arith.constant 0 : index
    %c0_5 = arith.constant 0 : index
    %c0_6 = arith.constant 0 : index
    %11 = vector.load %arg2[%c0_3, %c0_4, %c0_5, %c0_6] : memref<1x2x2x128xbf16, #tpu.memory_space<vmem>>, vector<1x2x2x128xbf16>
    %12 = vector.shape_cast %11 : vector<1x2x2x128xbf16> to vector<2x2x128xbf16>
    %13 = vector.shape_cast %10 : vector<2x2x128xbf16> to vector<1x2x2x128xbf16>
    tpu.vector_store %arg2[%c0_3, %c0_4, %c0_5, %c0_6], %13 {strides = array<i32>} : memref<1x2x2x128xbf16, #tpu.memory_space<vmem>>, vector<1x2x2x128xbf16>,
    return
  }
  func.func @transform_0(%arg0: i32) -> (i32, i32, i32, i32) {
    %c0_i32 = arith.constant 0 : i32
    %c0_i32_0 = arith.constant 0 : i32
    %c0_i32_1 = arith.constant 0 : i32
    %c0_i32_2 = arith.constant 0 : i32
    return %arg0, %c0_i32, %c0_i32_0, %c0_i32_1 : i32, i32, i32, i32
  }
  func.func @transform_1(%arg0: i32) -> (i32, i32, i32, i32) {
    %c0_i32 = arith.constant 0 : i32
    %c0_i32_0 = arith.constant 0 : i32
    %c0_i32_1 = arith.constant 0 : i32
    %c0_i32_2 = arith.constant 0 : i32
    return %arg0, %c0_i32, %c0_i32_0, %c0_i32_1 : i32, i32, i32, i32
  }
}

module attributes {stable_mosaic.version = 11 : i64} {
  func.func @_fused_matmul_kernel(%arg0: i32, %arg1: i32, %arg2: i32, %arg3: memref<16x384xbf16, #tpu.memory_space<vmem>>, %arg4: memref<384x256xbf16, #tpu.memory_space<vmem>>, %arg5: memref<1x256xf32, #tpu.memory_space<vmem>>, %arg6: memref<16x256xbf16, #tpu.memory_space<vmem>>, %arg7: memref<16x256xf32, #tpu.memory_space<vmem>>) attributes {dimension_semantics = [#tpu.dimension_semantics<parallel>, #tpu.dimension_semantics<parallel>, #tpu.dimension_semantics<arbitrary>], iteration_bounds = array<i64: 1, 1, 3>, scalar_prefetch = 0 : i64, scratch_operands = 1 : i64, tpu.core_type = #tpu.core_type<tc>, window_params = [{transform_indices = @transform_0, window_bounds = array<i64: 16, 384>}, {transform_indices = @transform_1, window_bounds = array<i64: 384, 256>}, {transform_indices = @transform_2, window_bounds = array<i64: 1, 256>}, {transform_indices = @transform_3, window_bounds = array<i64: 16, 256>}]} {
    %c0_i32 = arith.constant 0 : i32
    %0 = arith.cmpi eq, %arg2, %c0_i32 : i32
    %1 = arith.extui %0 : i1 to i32
    %c0_i32_0 = arith.constant 0 : i32
    %2 = arith.cmpi ne, %1, %c0_i32_0 : i32
    scf.if %2 {
      %cst_9 = arith.constant 0.000000e+00 : f32
      %12 = vector.broadcast %cst_9 : f32 to vector<16x256xf32>
      %c0_10 = arith.constant 0 : index
      %c0_11 = arith.constant 0 : index
      %13 = vector.load %arg7[%c0_10, %c0_11] : memref<16x256xf32, #tpu.memory_space<vmem>>, vector<16x256xf32>
      tpu.vector_store %arg7[%c0_10, %c0_11], %12 {strides = array<i32>} : memref<16x256xf32, #tpu.memory_space<vmem>>, vector<16x256xf32>,
    } else {
    }
    %c0 = arith.constant 0 : index
    %c0_1 = arith.constant 0 : index
    %3 = vector.load %arg7[%c0, %c0_1] : memref<16x256xf32, #tpu.memory_space<vmem>>, vector<16x256xf32>
    %c0_2 = arith.constant 0 : index
    %c0_3 = arith.constant 0 : index
    %4 = vector.load %arg3[%c0_2, %c0_3] : memref<16x384xbf16, #tpu.memory_space<vmem>>, vector<16x384xbf16>
    %c0_4 = arith.constant 0 : index
    %c0_5 = arith.constant 0 : index
    %5 = vector.load %arg4[%c0_4, %c0_5] : memref<384x256xbf16, #tpu.memory_space<vmem>>, vector<384x256xbf16>
    %cst = arith.constant dense<0.000000e+00> : vector<16x256xf32>
    %6 = tpu.matmul %4, %5, %cst {dimension_numbers = #tpu.dot_dimension_numbers<[1], [0], [0], [1], [0, 0, 1, 1], [], []>} : vector<16x384xbf16>, vector<384x256xbf16>, vector<16x256xf32> -> vector<16x256xf32>
    %7 = arith.addf %3, %6 : vector<16x256xf32>
    %c0_6 = arith.constant 0 : index
    %c0_7 = arith.constant 0 : index
    %8 = vector.load %arg7[%c0_6, %c0_7] : memref<16x256xf32, #tpu.memory_space<vmem>>, vector<16x256xf32>
    tpu.vector_store %arg7[%c0_6, %c0_7], %7 {strides = array<i32>} : memref<16x256xf32, #tpu.memory_space<vmem>>, vector<16x256xf32>,
    %c2_i32 = arith.constant 2 : i32
    %9 = arith.cmpi eq, %arg2, %c2_i32 : i32
    %10 = arith.extui %9 : i1 to i32
    %c0_i32_8 = arith.constant 0 : i32
    %11 = arith.cmpi ne, %10, %c0_i32_8 : i32
    scf.if %11 {
      %c0_9 = arith.constant 0 : index
      %c0_10 = arith.constant 0 : index
      %12 = vector.load %arg7[%c0_9, %c0_10] : memref<16x256xf32, #tpu.memory_space<vmem>>, vector<16x256xf32>
      %c0_11 = arith.constant 0 : index
      %c0_12 = arith.constant 0 : index
      %13 = vector.load %arg5[%c0_11, %c0_12] : memref<1x256xf32, #tpu.memory_space<vmem>>, vector<1x256xf32>
      %14 = vector.broadcast %13 : vector<1x256xf32> to vector<16x256xf32>
      %15 = arith.addf %12, %14 : vector<16x256xf32>
      %cst_13 = arith.constant 0.000000e+00 : f32
      %16 = vector.broadcast %cst_13 : f32 to vector<16x256xf32>
      %17 = arith.maximumf %15, %16 : vector<16x256xf32>
      %18 = arith.truncf %17 : vector<16x256xf32> to vector<16x256xbf16>
      %c0_14 = arith.constant 0 : index
      %c0_15 = arith.constant 0 : index
      %19 = vector.load %arg6[%c0_14, %c0_15] : memref<16x256xbf16, #tpu.memory_space<vmem>>, vector<16x256xbf16>
      tpu.vector_store %arg6[%c0_14, %c0_15], %18 {strides = array<i32>} : memref<16x256xbf16, #tpu.memory_space<vmem>>, vector<16x256xbf16>,
    } else {
    }
    return
  }
  func.func @transform_0(%arg0: i32, %arg1: i32, %arg2: i32) -> (i32, i32) {
    %c0_i32 = arith.constant 0 : i32
    return %arg0, %arg2 : i32, i32
  }
  func.func @transform_1(%arg0: i32, %arg1: i32, %arg2: i32) -> (i32, i32) {
    %c0_i32 = arith.constant 0 : i32
    return %arg2, %arg1 : i32, i32
  }
  func.func @transform_2(%arg0: i32, %arg1: i32, %arg2: i32) -> (i32, i32) {
    %c0_i32 = arith.constant 0 : i32
    %c0_i32_0 = arith.constant 0 : i32
    return %c0_i32, %arg1 : i32, i32
  }
  func.func @transform_3(%arg0: i32, %arg1: i32, %arg2: i32) -> (i32, i32) {
    %c0_i32 = arith.constant 0 : i32
    return %arg0, %arg1 : i32, i32
  }
}

module attributes {stable_mosaic.version = 11 : i64} {
  func.func @_fused_matmul_kernel(%arg0: i32, %arg1: i32, %arg2: i32, %arg3: memref<16x384xbf16, #tpu.memory_space<vmem>>, %arg4: memref<384x256xbf16, #tpu.memory_space<vmem>>, %arg5: memref<1x256xf32, #tpu.memory_space<vmem>>, %arg6: memref<16x256xbf16, #tpu.memory_space<vmem>>, %arg7: memref<16x256xf32, #tpu.memory_space<vmem>>) attributes {dimension_semantics = [#tpu.dimension_semantics<parallel>, #tpu.dimension_semantics<parallel>, #tpu.dimension_semantics<arbitrary>], iteration_bounds = array<i64: 1, 1, 6>, scalar_prefetch = 0 : i64, scratch_operands = 1 : i64, tpu.core_type = #tpu.core_type<tc>, window_params = [{transform_indices = @transform_0, window_bounds = array<i64: 16, 384>}, {transform_indices = @transform_1, window_bounds = array<i64: 384, 256>}, {transform_indices = @transform_2, window_bounds = array<i64: 1, 256>}, {transform_indices = @transform_3, window_bounds = array<i64: 16, 256>}]} {
    %c0_i32 = arith.constant 0 : i32
    %0 = arith.cmpi eq, %arg2, %c0_i32 : i32
    %1 = arith.extui %0 : i1 to i32
    %c0_i32_0 = arith.constant 0 : i32
    %2 = arith.cmpi ne, %1, %c0_i32_0 : i32
    scf.if %2 {
      %cst_9 = arith.constant 0.000000e+00 : f32
      %12 = vector.broadcast %cst_9 : f32 to vector<16x256xf32>
      %c0_10 = arith.constant 0 : index
      %c0_11 = arith.constant 0 : index
      %13 = vector.load %arg7[%c0_10, %c0_11] : memref<16x256xf32, #tpu.memory_space<vmem>>, vector<16x256xf32>
      tpu.vector_store %arg7[%c0_10, %c0_11], %12 {strides = array<i32>} : memref<16x256xf32, #tpu.memory_space<vmem>>, vector<16x256xf32>,
    } else {
    }
    %c0 = arith.constant 0 : index
    %c0_1 = arith.constant 0 : index
    %3 = vector.load %arg7[%c0, %c0_1] : memref<16x256xf32, #tpu.memory_space<vmem>>, vector<16x256xf32>
    %c0_2 = arith.constant 0 : index
    %c0_3 = arith.constant 0 : index
    %4 = vector.load %arg3[%c0_2, %c0_3] : memref<16x384xbf16, #tpu.memory_space<vmem>>, vector<16x384xbf16>
    %c0_4 = arith.constant 0 : index
    %c0_5 = arith.constant 0 : index
    %5 = vector.load %arg4[%c0_4, %c0_5] : memref<384x256xbf16, #tpu.memory_space<vmem>>, vector<384x256xbf16>
    %cst = arith.constant dense<0.000000e+00> : vector<16x256xf32>
    %6 = tpu.matmul %4, %5, %cst {dimension_numbers = #tpu.dot_dimension_numbers<[1], [0], [0], [1], [0, 0, 1, 1], [], []>} : vector<16x384xbf16>, vector<384x256xbf16>, vector<16x256xf32> -> vector<16x256xf32>
    %7 = arith.addf %3, %6 : vector<16x256xf32>
    %c0_6 = arith.constant 0 : index
    %c0_7 = arith.constant 0 : index
    %8 = vector.load %arg7[%c0_6, %c0_7] : memref<16x256xf32, #tpu.memory_space<vmem>>, vector<16x256xf32>
    tpu.vector_store %arg7[%c0_6, %c0_7], %7 {strides = array<i32>} : memref<16x256xf32, #tpu.memory_space<vmem>>, vector<16x256xf32>,
    %c5_i32 = arith.constant 5 : i32
    %9 = arith.cmpi eq, %arg2, %c5_i32 : i32
    %10 = arith.extui %9 : i1 to i32
    %c0_i32_8 = arith.constant 0 : i32
    %11 = arith.cmpi ne, %10, %c0_i32_8 : i32
    scf.if %11 {
      %c0_9 = arith.constant 0 : index
      %c0_10 = arith.constant 0 : index
      %12 = vector.load %arg7[%c0_9, %c0_10] : memref<16x256xf32, #tpu.memory_space<vmem>>, vector<16x256xf32>
      %c0_11 = arith.constant 0 : index
      %c0_12 = arith.constant 0 : index
      %13 = vector.load %arg5[%c0_11, %c0_12] : memref<1x256xf32, #tpu.memory_space<vmem>>, vector<1x256xf32>
      %14 = vector.broadcast %13 : vector<1x256xf32> to vector<16x256xf32>
      %15 = arith.addf %12, %14 : vector<16x256xf32>
      %cst_13 = arith.constant 0.000000e+00 : f32
      %16 = vector.broadcast %cst_13 : f32 to vector<16x256xf32>
      %17 = arith.maximumf %15, %16 : vector<16x256xf32>
      %18 = arith.truncf %17 : vector<16x256xf32> to vector<16x256xbf16>
      %c0_14 = arith.constant 0 : index
      %c0_15 = arith.constant 0 : index
      %19 = vector.load %arg6[%c0_14, %c0_15] : memref<16x256xbf16, #tpu.memory_space<vmem>>, vector<16x256xbf16>
      tpu.vector_store %arg6[%c0_14, %c0_15], %18 {strides = array<i32>} : memref<16x256xbf16, #tpu.memory_space<vmem>>, vector<16x256xbf16>,
    } else {
    }
    return
  }
  func.func @transform_0(%arg0: i32, %arg1: i32, %arg2: i32) -> (i32, i32) {
    %c0_i32 = arith.constant 0 : i32
    return %arg0, %arg2 : i32, i32
  }
  func.func @transform_1(%arg0: i32, %arg1: i32, %arg2: i32) -> (i32, i32) {
    %c0_i32 = arith.constant 0 : i32
    return %arg2, %arg1 : i32, i32
  }
  func.func @transform_2(%arg0: i32, %arg1: i32, %arg2: i32) -> (i32, i32) {
    %c0_i32 = arith.constant 0 : i32
    %c0_i32_0 = arith.constant 0 : i32
    return %c0_i32, %arg1 : i32, i32
  }
  func.func @transform_3(%arg0: i32, %arg1: i32, %arg2: i32) -> (i32, i32) {
    %c0_i32 = arith.constant 0 : i32
    return %arg0, %arg1 : i32, i32
  }
}

module attributes {stable_mosaic.version = 11 : i64} {
  func.func @_maxpool_kernel(%arg0: i32, %arg1: memref<1x2x1x512xbf16, #tpu.memory_space<vmem>>, %arg2: memref<1x1x1x256xbf16, #tpu.memory_space<vmem>>) attributes {dimension_semantics = [#tpu.dimension_semantics<parallel>], iteration_bounds = array<i64: 2>, scalar_prefetch = 0 : i64, scratch_operands = 0 : i64, tpu.core_type = #tpu.core_type<tc>, window_params = [{transform_indices = @transform_0, window_bounds = array<i64: 1, 2, 1, 512>}, {transform_indices = @transform_1, window_bounds = array<i64: 1, 1, 1, 256>}]} {
    %c0 = arith.constant 0 : index
    %c0_0 = arith.constant 0 : index
    %c0_1 = arith.constant 0 : index
    %c0_2 = arith.constant 0 : index
    %0 = vector.load %arg1[%c0, %c0_0, %c0_1, %c0_2] : memref<1x2x1x512xbf16, #tpu.memory_space<vmem>>, vector<1x2x1x512xbf16>
    %1 = vector.shape_cast %0 : vector<1x2x1x512xbf16> to vector<2x1x512xbf16>
    %2 = vector.shape_cast %1 : vector<2x1x512xbf16> to vector<1x2x1x512xbf16>
    %3 = vector.extract_strided_slice %2 {offsets = [0, 0, 0, 0], sizes = [1, 1, 1, 512], strides = [1, 1, 1, 1]} : vector<1x2x1x512xbf16> to vector<1x1x1x512xbf16>
    %4 = vector.shape_cast %3 : vector<1x1x1x512xbf16> to vector<1x1x512xbf16>
    %5 = vector.extract_strided_slice %2 {offsets = [0, 1, 0, 0], sizes = [1, 1, 1, 512], strides = [1, 1, 1, 1]} : vector<1x2x1x512xbf16> to vector<1x1x1x512xbf16>
    %6 = vector.shape_cast %5 : vector<1x1x1x512xbf16> to vector<1x1x512xbf16>
    %7 = arith.maximumf %4, %6 : vector<1x1x512xbf16>
    %8 = vector.extract_strided_slice %7 {offsets = [0, 0, 0], sizes = [1, 1, 256], strides = [1, 1, 1]} : vector<1x1x512xbf16> to vector<1x1x256xbf16>
    %9 = vector.extract_strided_slice %7 {offsets = [0, 0, 256], sizes = [1, 1, 256], strides = [1, 1, 1]} : vector<1x1x512xbf16> to vector<1x1x256xbf16>
    %10 = arith.maximumf %8, %9 : vector<1x1x256xbf16>
    %c0_3 = arith.constant 0 : index
    %c0_4 = arith.constant 0 : index
    %c0_5 = arith.constant 0 : index
    %c0_6 = arith.constant 0 : index
    %11 = vector.load %arg2[%c0_3, %c0_4, %c0_5, %c0_6] : memref<1x1x1x256xbf16, #tpu.memory_space<vmem>>, vector<1x1x1x256xbf16>
    %12 = vector.shape_cast %11 : vector<1x1x1x256xbf16> to vector<1x1x256xbf16>
    %13 = vector.shape_cast %10 : vector<1x1x256xbf16> to vector<1x1x1x256xbf16>
    tpu.vector_store %arg2[%c0_3, %c0_4, %c0_5, %c0_6], %13 {strides = array<i32>} : memref<1x1x1x256xbf16, #tpu.memory_space<vmem>>, vector<1x1x1x256xbf16>,
    return
  }
  func.func @transform_0(%arg0: i32) -> (i32, i32, i32, i32) {
    %c0_i32 = arith.constant 0 : i32
    %c0_i32_0 = arith.constant 0 : i32
    %c0_i32_1 = arith.constant 0 : i32
    %c0_i32_2 = arith.constant 0 : i32
    return %arg0, %c0_i32, %c0_i32_0, %c0_i32_1 : i32, i32, i32, i32
  }
  func.func @transform_1(%arg0: i32) -> (i32, i32, i32, i32) {
    %c0_i32 = arith.constant 0 : i32
    %c0_i32_0 = arith.constant 0 : i32
    %c0_i32_1 = arith.constant 0 : i32
    %c0_i32_2 = arith.constant 0 : i32
    return %arg0, %c0_i32, %c0_i32_0, %c0_i32_1 : i32, i32, i32, i32
  }
}

module attributes {stable_mosaic.version = 11 : i64} {
  func.func @_fused_matmul_kernel(%arg0: i32, %arg1: i32, %arg2: i32, %arg3: memref<16x384xbf16, #tpu.memory_space<vmem>>, %arg4: memref<384x256xbf16, #tpu.memory_space<vmem>>, %arg5: memref<1x256xf32, #tpu.memory_space<vmem>>, %arg6: memref<16x256xbf16, #tpu.memory_space<vmem>>, %arg7: memref<16x256xf32, #tpu.memory_space<vmem>>) attributes {dimension_semantics = [#tpu.dimension_semantics<parallel>, #tpu.dimension_semantics<parallel>, #tpu.dimension_semantics<arbitrary>], iteration_bounds = array<i64: 1, 1, 6>, scalar_prefetch = 0 : i64, scratch_operands = 1 : i64, tpu.core_type = #tpu.core_type<tc>, window_params = [{transform_indices = @transform_0, window_bounds = array<i64: 16, 384>}, {transform_indices = @transform_1, window_bounds = array<i64: 384, 256>}, {transform_indices = @transform_2, window_bounds = array<i64: 1, 256>}, {transform_indices = @transform_3, window_bounds = array<i64: 16, 256>}]} {
    %c0_i32 = arith.constant 0 : i32
    %0 = arith.cmpi eq, %arg2, %c0_i32 : i32
    %1 = arith.extui %0 : i1 to i32
    %c0_i32_0 = arith.constant 0 : i32
    %2 = arith.cmpi ne, %1, %c0_i32_0 : i32
    scf.if %2 {
      %cst_9 = arith.constant 0.000000e+00 : f32
      %12 = vector.broadcast %cst_9 : f32 to vector<16x256xf32>
      %c0_10 = arith.constant 0 : index
      %c0_11 = arith.constant 0 : index
      %13 = vector.load %arg7[%c0_10, %c0_11] : memref<16x256xf32, #tpu.memory_space<vmem>>, vector<16x256xf32>
      tpu.vector_store %arg7[%c0_10, %c0_11], %12 {strides = array<i32>} : memref<16x256xf32, #tpu.memory_space<vmem>>, vector<16x256xf32>,
    } else {
    }
    %c0 = arith.constant 0 : index
    %c0_1 = arith.constant 0 : index
    %3 = vector.load %arg7[%c0, %c0_1] : memref<16x256xf32, #tpu.memory_space<vmem>>, vector<16x256xf32>
    %c0_2 = arith.constant 0 : index
    %c0_3 = arith.constant 0 : index
    %4 = vector.load %arg3[%c0_2, %c0_3] : memref<16x384xbf16, #tpu.memory_space<vmem>>, vector<16x384xbf16>
    %c0_4 = arith.constant 0 : index
    %c0_5 = arith.constant 0 : index
    %5 = vector.load %arg4[%c0_4, %c0_5] : memref<384x256xbf16, #tpu.memory_space<vmem>>, vector<384x256xbf16>
    %cst = arith.constant dense<0.000000e+00> : vector<16x256xf32>
    %6 = tpu.matmul %4, %5, %cst {dimension_numbers = #tpu.dot_dimension_numbers<[1], [0], [0], [1], [0, 0, 1, 1], [], []>} : vector<16x384xbf16>, vector<384x256xbf16>, vector<16x256xf32> -> vector<16x256xf32>
    %7 = arith.addf %3, %6 : vector<16x256xf32>
    %c0_6 = arith.constant 0 : index
    %c0_7 = arith.constant 0 : index
    %8 = vector.load %arg7[%c0_6, %c0_7] : memref<16x256xf32, #tpu.memory_space<vmem>>, vector<16x256xf32>
    tpu.vector_store %arg7[%c0_6, %c0_7], %7 {strides = array<i32>} : memref<16x256xf32, #tpu.memory_space<vmem>>, vector<16x256xf32>,
    %c5_i32 = arith.constant 5 : i32
    %9 = arith.cmpi eq, %arg2, %c5_i32 : i32
    %10 = arith.extui %9 : i1 to i32
    %c0_i32_8 = arith.constant 0 : i32
    %11 = arith.cmpi ne, %10, %c0_i32_8 : i32
    scf.if %11 {
      %c0_9 = arith.constant 0 : index
      %c0_10 = arith.constant 0 : index
      %12 = vector.load %arg7[%c0_9, %c0_10] : memref<16x256xf32, #tpu.memory_space<vmem>>, vector<16x256xf32>
      %c0_11 = arith.constant 0 : index
      %c0_12 = arith.constant 0 : index
      %13 = vector.load %arg5[%c0_11, %c0_12] : memref<1x256xf32, #tpu.memory_space<vmem>>, vector<1x256xf32>
      %14 = vector.broadcast %13 : vector<1x256xf32> to vector<16x256xf32>
      %15 = arith.addf %12, %14 : vector<16x256xf32>
      %cst_13 = arith.constant 0.000000e+00 : f32
      %16 = vector.broadcast %cst_13 : f32 to vector<16x256xf32>
      %17 = arith.maximumf %15, %16 : vector<16x256xf32>
      %18 = arith.truncf %17 : vector<16x256xf32> to vector<16x256xbf16>
      %c0_14 = arith.constant 0 : index
      %c0_15 = arith.constant 0 : index
      %19 = vector.load %arg6[%c0_14, %c0_15] : memref<16x256xbf16, #tpu.memory_space<vmem>>, vector<16x256xbf16>
      tpu.vector_store %arg6[%c0_14, %c0_15], %18 {strides = array<i32>} : memref<16x256xbf16, #tpu.memory_space<vmem>>, vector<16x256xbf16>,
    } else {
    }
    return
  }
  func.func @transform_0(%arg0: i32, %arg1: i32, %arg2: i32) -> (i32, i32) {
    %c0_i32 = arith.constant 0 : i32
    return %arg0, %arg2 : i32, i32
  }
  func.func @transform_1(%arg0: i32, %arg1: i32, %arg2: i32) -> (i32, i32) {
    %c0_i32 = arith.constant 0 : i32
    return %arg2, %arg1 : i32, i32
  }
  func.func @transform_2(%arg0: i32, %arg1: i32, %arg2: i32) -> (i32, i32) {
    %c0_i32 = arith.constant 0 : i32
    %c0_i32_0 = arith.constant 0 : i32
    return %c0_i32, %arg1 : i32, i32
  }
  func.func @transform_3(%arg0: i32, %arg1: i32, %arg2: i32) -> (i32, i32) {
    %c0_i32 = arith.constant 0 : i32
    return %arg0, %arg1 : i32, i32
  }
}

module attributes {stable_mosaic.version = 11 : i64} {
  func.func @_fused_matmul_kernel(%arg0: i32, %arg1: i32, %arg2: i32, %arg3: memref<16x384xbf16, #tpu.memory_space<vmem>>, %arg4: memref<384x256xbf16, #tpu.memory_space<vmem>>, %arg5: memref<1x256xf32, #tpu.memory_space<vmem>>, %arg6: memref<16x256xbf16, #tpu.memory_space<vmem>>, %arg7: memref<16x256xf32, #tpu.memory_space<vmem>>) attributes {dimension_semantics = [#tpu.dimension_semantics<parallel>, #tpu.dimension_semantics<parallel>, #tpu.dimension_semantics<arbitrary>], iteration_bounds = array<i64: 1, 2, 6>, scalar_prefetch = 0 : i64, scratch_operands = 1 : i64, tpu.core_type = #tpu.core_type<tc>, window_params = [{transform_indices = @transform_0, window_bounds = array<i64: 16, 384>}, {transform_indices = @transform_1, window_bounds = array<i64: 384, 256>}, {transform_indices = @transform_2, window_bounds = array<i64: 1, 256>}, {transform_indices = @transform_3, window_bounds = array<i64: 16, 256>}]} {
    %c0_i32 = arith.constant 0 : i32
    %0 = arith.cmpi eq, %arg2, %c0_i32 : i32
    %1 = arith.extui %0 : i1 to i32
    %c0_i32_0 = arith.constant 0 : i32
    %2 = arith.cmpi ne, %1, %c0_i32_0 : i32
    scf.if %2 {
      %cst_9 = arith.constant 0.000000e+00 : f32
      %12 = vector.broadcast %cst_9 : f32 to vector<16x256xf32>
      %c0_10 = arith.constant 0 : index
      %c0_11 = arith.constant 0 : index
      %13 = vector.load %arg7[%c0_10, %c0_11] : memref<16x256xf32, #tpu.memory_space<vmem>>, vector<16x256xf32>
      tpu.vector_store %arg7[%c0_10, %c0_11], %12 {strides = array<i32>} : memref<16x256xf32, #tpu.memory_space<vmem>>, vector<16x256xf32>,
    } else {
    }
    %c0 = arith.constant 0 : index
    %c0_1 = arith.constant 0 : index
    %3 = vector.load %arg7[%c0, %c0_1] : memref<16x256xf32, #tpu.memory_space<vmem>>, vector<16x256xf32>
    %c0_2 = arith.constant 0 : index
    %c0_3 = arith.constant 0 : index
    %4 = vector.load %arg3[%c0_2, %c0_3] : memref<16x384xbf16, #tpu.memory_space<vmem>>, vector<16x384xbf16>
    %c0_4 = arith.constant 0 : index
    %c0_5 = arith.constant 0 : index
    %5 = vector.load %arg4[%c0_4, %c0_5] : memref<384x256xbf16, #tpu.memory_space<vmem>>, vector<384x256xbf16>
    %cst = arith.constant dense<0.000000e+00> : vector<16x256xf32>
    %6 = tpu.matmul %4, %5, %cst {dimension_numbers = #tpu.dot_dimension_numbers<[1], [0], [0], [1], [0, 0, 1, 1], [], []>} : vector<16x384xbf16>, vector<384x256xbf16>, vector<16x256xf32> -> vector<16x256xf32>
    %7 = arith.addf %3, %6 : vector<16x256xf32>
    %c0_6 = arith.constant 0 : index
    %c0_7 = arith.constant 0 : index
    %8 = vector.load %arg7[%c0_6, %c0_7] : memref<16x256xf32, #tpu.memory_space<vmem>>, vector<16x256xf32>
    tpu.vector_store %arg7[%c0_6, %c0_7], %7 {strides = array<i32>} : memref<16x256xf32, #tpu.memory_space<vmem>>, vector<16x256xf32>,
    %c5_i32 = arith.constant 5 : i32
    %9 = arith.cmpi eq, %arg2, %c5_i32 : i32
    %10 = arith.extui %9 : i1 to i32
    %c0_i32_8 = arith.constant 0 : i32
    %11 = arith.cmpi ne, %10, %c0_i32_8 : i32
    scf.if %11 {
      %c0_9 = arith.constant 0 : index
      %c0_10 = arith.constant 0 : index
      %12 = vector.load %arg7[%c0_9, %c0_10] : memref<16x256xf32, #tpu.memory_space<vmem>>, vector<16x256xf32>
      %c0_11 = arith.constant 0 : index
      %c0_12 = arith.constant 0 : index
      %13 = vector.load %arg5[%c0_11, %c0_12] : memref<1x256xf32, #tpu.memory_space<vmem>>, vector<1x256xf32>
      %14 = vector.broadcast %13 : vector<1x256xf32> to vector<16x256xf32>
      %15 = arith.addf %12, %14 : vector<16x256xf32>
      %cst_13 = arith.constant 0.000000e+00 : f32
      %16 = vector.broadcast %cst_13 : f32 to vector<16x256xf32>
      %17 = arith.maximumf %15, %16 : vector<16x256xf32>
      %18 = arith.truncf %17 : vector<16x256xf32> to vector<16x256xbf16>
      %c0_14 = arith.constant 0 : index
      %c0_15 = arith.constant 0 : index
      %19 = vector.load %arg6[%c0_14, %c0_15] : memref<16x256xbf16, #tpu.memory_space<vmem>>, vector<16x256xbf16>
      tpu.vector_store %arg6[%c0_14, %c0_15], %18 {strides = array<i32>} : memref<16x256xbf16, #tpu.memory_space<vmem>>, vector<16x256xbf16>,
    } else {
    }
    return
  }
  func.func @transform_0(%arg0: i32, %arg1: i32, %arg2: i32) -> (i32, i32) {
    %c0_i32 = arith.constant 0 : i32
    return %arg0, %arg2 : i32, i32
  }
  func.func @transform_1(%arg0: i32, %arg1: i32, %arg2: i32) -> (i32, i32) {
    %c0_i32 = arith.constant 0 : i32
    return %arg2, %arg1 : i32, i32
  }
  func.func @transform_2(%arg0: i32, %arg1: i32, %arg2: i32) -> (i32, i32) {
    %c0_i32 = arith.constant 0 : i32
    %c0_i32_0 = arith.constant 0 : i32
    return %c0_i32, %arg1 : i32, i32
  }
  func.func @transform_3(%arg0: i32, %arg1: i32, %arg2: i32) -> (i32, i32) {
    %c0_i32 = arith.constant 0 : i32
    return %arg0, %arg1 : i32, i32
  }
}

module attributes {stable_mosaic.version = 11 : i64} {
  func.func @_fused_matmul_kernel(%arg0: i32, %arg1: i32, %arg2: i32, %arg3: memref<16x512xbf16, #tpu.memory_space<vmem>>, %arg4: memref<512x256xbf16, #tpu.memory_space<vmem>>, %arg5: memref<1x256xf32, #tpu.memory_space<vmem>>, %arg6: memref<16x256xbf16, #tpu.memory_space<vmem>>, %arg7: memref<16x256xf32, #tpu.memory_space<vmem>>) attributes {dimension_semantics = [#tpu.dimension_semantics<parallel>, #tpu.dimension_semantics<parallel>, #tpu.dimension_semantics<arbitrary>], iteration_bounds = array<i64: 1, 2, 9>, scalar_prefetch = 0 : i64, scratch_operands = 1 : i64, tpu.core_type = #tpu.core_type<tc>, window_params = [{transform_indices = @transform_0, window_bounds = array<i64: 16, 512>}, {transform_indices = @transform_1, window_bounds = array<i64: 512, 256>}, {transform_indices = @transform_2, window_bounds = array<i64: 1, 256>}, {transform_indices = @transform_3, window_bounds = array<i64: 16, 256>}]} {
    %c0_i32 = arith.constant 0 : i32
    %0 = arith.cmpi eq, %arg2, %c0_i32 : i32
    %1 = arith.extui %0 : i1 to i32
    %c0_i32_0 = arith.constant 0 : i32
    %2 = arith.cmpi ne, %1, %c0_i32_0 : i32
    scf.if %2 {
      %cst_9 = arith.constant 0.000000e+00 : f32
      %12 = vector.broadcast %cst_9 : f32 to vector<16x256xf32>
      %c0_10 = arith.constant 0 : index
      %c0_11 = arith.constant 0 : index
      %13 = vector.load %arg7[%c0_10, %c0_11] : memref<16x256xf32, #tpu.memory_space<vmem>>, vector<16x256xf32>
      tpu.vector_store %arg7[%c0_10, %c0_11], %12 {strides = array<i32>} : memref<16x256xf32, #tpu.memory_space<vmem>>, vector<16x256xf32>,
    } else {
    }
    %c0 = arith.constant 0 : index
    %c0_1 = arith.constant 0 : index
    %3 = vector.load %arg7[%c0, %c0_1] : memref<16x256xf32, #tpu.memory_space<vmem>>, vector<16x256xf32>
    %c0_2 = arith.constant 0 : index
    %c0_3 = arith.constant 0 : index
    %4 = vector.load %arg3[%c0_2, %c0_3] : memref<16x512xbf16, #tpu.memory_space<vmem>>, vector<16x512xbf16>
    %c0_4 = arith.constant 0 : index
    %c0_5 = arith.constant 0 : index
    %5 = vector.load %arg4[%c0_4, %c0_5] : memref<512x256xbf16, #tpu.memory_space<vmem>>, vector<512x256xbf16>
    %cst = arith.constant dense<0.000000e+00> : vector<16x256xf32>
    %6 = tpu.matmul %4, %5, %cst {dimension_numbers = #tpu.dot_dimension_numbers<[1], [0], [0], [1], [0, 0, 1, 1], [], []>} : vector<16x512xbf16>, vector<512x256xbf16>, vector<16x256xf32> -> vector<16x256xf32>
    %7 = arith.addf %3, %6 : vector<16x256xf32>
    %c0_6 = arith.constant 0 : index
    %c0_7 = arith.constant 0 : index
    %8 = vector.load %arg7[%c0_6, %c0_7] : memref<16x256xf32, #tpu.memory_space<vmem>>, vector<16x256xf32>
    tpu.vector_store %arg7[%c0_6, %c0_7], %7 {strides = array<i32>} : memref<16x256xf32, #tpu.memory_space<vmem>>, vector<16x256xf32>,
    %c8_i32 = arith.constant 8 : i32
    %9 = arith.cmpi eq, %arg2, %c8_i32 : i32
    %10 = arith.extui %9 : i1 to i32
    %c0_i32_8 = arith.constant 0 : i32
    %11 = arith.cmpi ne, %10, %c0_i32_8 : i32
    scf.if %11 {
      %c0_9 = arith.constant 0 : index
      %c0_10 = arith.constant 0 : index
      %12 = vector.load %arg7[%c0_9, %c0_10] : memref<16x256xf32, #tpu.memory_space<vmem>>, vector<16x256xf32>
      %c0_11 = arith.constant 0 : index
      %c0_12 = arith.constant 0 : index
      %13 = vector.load %arg5[%c0_11, %c0_12] : memref<1x256xf32, #tpu.memory_space<vmem>>, vector<1x256xf32>
      %14 = vector.broadcast %13 : vector<1x256xf32> to vector<16x256xf32>
      %15 = arith.addf %12, %14 : vector<16x256xf32>
      %cst_13 = arith.constant 0.000000e+00 : f32
      %16 = vector.broadcast %cst_13 : f32 to vector<16x256xf32>
      %17 = arith.maximumf %15, %16 : vector<16x256xf32>
      %18 = arith.truncf %17 : vector<16x256xf32> to vector<16x256xbf16>
      %c0_14 = arith.constant 0 : index
      %c0_15 = arith.constant 0 : index
      %19 = vector.load %arg6[%c0_14, %c0_15] : memref<16x256xbf16, #tpu.memory_space<vmem>>, vector<16x256xbf16>
      tpu.vector_store %arg6[%c0_14, %c0_15], %18 {strides = array<i32>} : memref<16x256xbf16, #tpu.memory_space<vmem>>, vector<16x256xbf16>,
    } else {
    }
    return
  }
  func.func @transform_0(%arg0: i32, %arg1: i32, %arg2: i32) -> (i32, i32) {
    %c0_i32 = arith.constant 0 : i32
    return %arg0, %arg2 : i32, i32
  }
  func.func @transform_1(%arg0: i32, %arg1: i32, %arg2: i32) -> (i32, i32) {
    %c0_i32 = arith.constant 0 : i32
    return %arg2, %arg1 : i32, i32
  }
  func.func @transform_2(%arg0: i32, %arg1: i32, %arg2: i32) -> (i32, i32) {
    %c0_i32 = arith.constant 0 : i32
    %c0_i32_0 = arith.constant 0 : i32
    return %c0_i32, %arg1 : i32, i32
  }
  func.func @transform_3(%arg0: i32, %arg1: i32, %arg2: i32) -> (i32, i32) {
    %c0_i32 = arith.constant 0 : i32
    return %arg0, %arg1 : i32, i32
  }
}

module attributes {stable_mosaic.version = 11 : i64} {
  func.func @_fused_matmul_kernel(%arg0: i32, %arg1: i32, %arg2: i32, %arg3: memref<16x512xbf16, #tpu.memory_space<vmem>>, %arg4: memref<512x256xbf16, #tpu.memory_space<vmem>>, %arg5: memref<1x256xf32, #tpu.memory_space<vmem>>, %arg6: memref<16x256xbf16, #tpu.memory_space<vmem>>, %arg7: memref<16x256xf32, #tpu.memory_space<vmem>>) attributes {dimension_semantics = [#tpu.dimension_semantics<parallel>, #tpu.dimension_semantics<parallel>, #tpu.dimension_semantics<arbitrary>], iteration_bounds = array<i64: 1, 2, 9>, scalar_prefetch = 0 : i64, scratch_operands = 1 : i64, tpu.core_type = #tpu.core_type<tc>, window_params = [{transform_indices = @transform_0, window_bounds = array<i64: 16, 512>}, {transform_indices = @transform_1, window_bounds = array<i64: 512, 256>}, {transform_indices = @transform_2, window_bounds = array<i64: 1, 256>}, {transform_indices = @transform_3, window_bounds = array<i64: 16, 256>}]} {
    %c0_i32 = arith.constant 0 : i32
    %0 = arith.cmpi eq, %arg2, %c0_i32 : i32
    %1 = arith.extui %0 : i1 to i32
    %c0_i32_0 = arith.constant 0 : i32
    %2 = arith.cmpi ne, %1, %c0_i32_0 : i32
    scf.if %2 {
      %cst_9 = arith.constant 0.000000e+00 : f32
      %12 = vector.broadcast %cst_9 : f32 to vector<16x256xf32>
      %c0_10 = arith.constant 0 : index
      %c0_11 = arith.constant 0 : index
      %13 = vector.load %arg7[%c0_10, %c0_11] : memref<16x256xf32, #tpu.memory_space<vmem>>, vector<16x256xf32>
      tpu.vector_store %arg7[%c0_10, %c0_11], %12 {strides = array<i32>} : memref<16x256xf32, #tpu.memory_space<vmem>>, vector<16x256xf32>,
    } else {
    }
    %c0 = arith.constant 0 : index
    %c0_1 = arith.constant 0 : index
    %3 = vector.load %arg7[%c0, %c0_1] : memref<16x256xf32, #tpu.memory_space<vmem>>, vector<16x256xf32>
    %c0_2 = arith.constant 0 : index
    %c0_3 = arith.constant 0 : index
    %4 = vector.load %arg3[%c0_2, %c0_3] : memref<16x512xbf16, #tpu.memory_space<vmem>>, vector<16x512xbf16>
    %c0_4 = arith.constant 0 : index
    %c0_5 = arith.constant 0 : index
    %5 = vector.load %arg4[%c0_4, %c0_5] : memref<512x256xbf16, #tpu.memory_space<vmem>>, vector<512x256xbf16>
    %cst = arith.constant dense<0.000000e+00> : vector<16x256xf32>
    %6 = tpu.matmul %4, %5, %cst {dimension_numbers = #tpu.dot_dimension_numbers<[1], [0], [0], [1], [0, 0, 1, 1], [], []>} : vector<16x512xbf16>, vector<512x256xbf16>, vector<16x256xf32> -> vector<16x256xf32>
    %7 = arith.addf %3, %6 : vector<16x256xf32>
    %c0_6 = arith.constant 0 : index
    %c0_7 = arith.constant 0 : index
    %8 = vector.load %arg7[%c0_6, %c0_7] : memref<16x256xf32, #tpu.memory_space<vmem>>, vector<16x256xf32>
    tpu.vector_store %arg7[%c0_6, %c0_7], %7 {strides = array<i32>} : memref<16x256xf32, #tpu.memory_space<vmem>>, vector<16x256xf32>,
    %c8_i32 = arith.constant 8 : i32
    %9 = arith.cmpi eq, %arg2, %c8_i32 : i32
    %10 = arith.extui %9 : i1 to i32
    %c0_i32_8 = arith.constant 0 : i32
    %11 = arith.cmpi ne, %10, %c0_i32_8 : i32
    scf.if %11 {
      %c0_9 = arith.constant 0 : index
      %c0_10 = arith.constant 0 : index
      %12 = vector.load %arg7[%c0_9, %c0_10] : memref<16x256xf32, #tpu.memory_space<vmem>>, vector<16x256xf32>
      %c0_11 = arith.constant 0 : index
      %c0_12 = arith.constant 0 : index
      %13 = vector.load %arg5[%c0_11, %c0_12] : memref<1x256xf32, #tpu.memory_space<vmem>>, vector<1x256xf32>
      %14 = vector.broadcast %13 : vector<1x256xf32> to vector<16x256xf32>
      %15 = arith.addf %12, %14 : vector<16x256xf32>
      %cst_13 = arith.constant 0.000000e+00 : f32
      %16 = vector.broadcast %cst_13 : f32 to vector<16x256xf32>
      %17 = arith.maximumf %15, %16 : vector<16x256xf32>
      %18 = arith.truncf %17 : vector<16x256xf32> to vector<16x256xbf16>
      %c0_14 = arith.constant 0 : index
      %c0_15 = arith.constant 0 : index
      %19 = vector.load %arg6[%c0_14, %c0_15] : memref<16x256xbf16, #tpu.memory_space<vmem>>, vector<16x256xbf16>
      tpu.vector_store %arg6[%c0_14, %c0_15], %18 {strides = array<i32>} : memref<16x256xbf16, #tpu.memory_space<vmem>>, vector<16x256xbf16>,
    } else {
    }
    return
  }
  func.func @transform_0(%arg0: i32, %arg1: i32, %arg2: i32) -> (i32, i32) {
    %c0_i32 = arith.constant 0 : i32
    return %arg0, %arg2 : i32, i32
  }
  func.func @transform_1(%arg0: i32, %arg1: i32, %arg2: i32) -> (i32, i32) {
    %c0_i32 = arith.constant 0 : i32
    return %arg2, %arg1 : i32, i32
  }
  func.func @transform_2(%arg0: i32, %arg1: i32, %arg2: i32) -> (i32, i32) {
    %c0_i32 = arith.constant 0 : i32
    %c0_i32_0 = arith.constant 0 : i32
    return %c0_i32, %arg1 : i32, i32
  }
  func.func @transform_3(%arg0: i32, %arg1: i32, %arg2: i32) -> (i32, i32) {
    %c0_i32 = arith.constant 0 : i32
    return %arg0, %arg1 : i32, i32
  }
}

module attributes {stable_mosaic.version = 11 : i64} {
  func.func @_fused_matmul_kernel(%arg0: i32, %arg1: i32, %arg2: i32, %arg3: memref<16x512xbf16, #tpu.memory_space<vmem>>, %arg4: memref<512x256xbf16, #tpu.memory_space<vmem>>, %arg5: memref<1x256xf32, #tpu.memory_space<vmem>>, %arg6: memref<16x256xbf16, #tpu.memory_space<vmem>>, %arg7: memref<16x256xf32, #tpu.memory_space<vmem>>) attributes {dimension_semantics = [#tpu.dimension_semantics<parallel>, #tpu.dimension_semantics<parallel>, #tpu.dimension_semantics<arbitrary>], iteration_bounds = array<i64: 1, 4, 1>, scalar_prefetch = 0 : i64, scratch_operands = 1 : i64, tpu.core_type = #tpu.core_type<tc>, window_params = [{transform_indices = @transform_0, window_bounds = array<i64: 16, 512>}, {transform_indices = @transform_1, window_bounds = array<i64: 512, 256>}, {transform_indices = @transform_2, window_bounds = array<i64: 1, 256>}, {transform_indices = @transform_3, window_bounds = array<i64: 16, 256>}]} {
    %c0_i32 = arith.constant 0 : i32
    %0 = arith.cmpi eq, %arg2, %c0_i32 : i32
    %1 = arith.extui %0 : i1 to i32
    %c0_i32_0 = arith.constant 0 : i32
    %2 = arith.cmpi ne, %1, %c0_i32_0 : i32
    scf.if %2 {
      %cst_10 = arith.constant 0.000000e+00 : f32
      %12 = vector.broadcast %cst_10 : f32 to vector<16x256xf32>
      %c0_11 = arith.constant 0 : index
      %c0_12 = arith.constant 0 : index
      %13 = vector.load %arg7[%c0_11, %c0_12] : memref<16x256xf32, #tpu.memory_space<vmem>>, vector<16x256xf32>
      tpu.vector_store %arg7[%c0_11, %c0_12], %12 {strides = array<i32>} : memref<16x256xf32, #tpu.memory_space<vmem>>, vector<16x256xf32>,
    } else {
    }
    %c0 = arith.constant 0 : index
    %c0_1 = arith.constant 0 : index
    %3 = vector.load %arg7[%c0, %c0_1] : memref<16x256xf32, #tpu.memory_space<vmem>>, vector<16x256xf32>
    %c0_2 = arith.constant 0 : index
    %c0_3 = arith.constant 0 : index
    %4 = vector.load %arg3[%c0_2, %c0_3] : memref<16x512xbf16, #tpu.memory_space<vmem>>, vector<16x512xbf16>
    %c0_4 = arith.constant 0 : index
    %c0_5 = arith.constant 0 : index
    %5 = vector.load %arg4[%c0_4, %c0_5] : memref<512x256xbf16, #tpu.memory_space<vmem>>, vector<512x256xbf16>
    %cst = arith.constant dense<0.000000e+00> : vector<16x256xf32>
    %6 = tpu.matmul %4, %5, %cst {dimension_numbers = #tpu.dot_dimension_numbers<[1], [0], [0], [1], [0, 0, 1, 1], [], []>} : vector<16x512xbf16>, vector<512x256xbf16>, vector<16x256xf32> -> vector<16x256xf32>
    %7 = arith.addf %3, %6 : vector<16x256xf32>
    %c0_6 = arith.constant 0 : index
    %c0_7 = arith.constant 0 : index
    %8 = vector.load %arg7[%c0_6, %c0_7] : memref<16x256xf32, #tpu.memory_space<vmem>>, vector<16x256xf32>
    tpu.vector_store %arg7[%c0_6, %c0_7], %7 {strides = array<i32>} : memref<16x256xf32, #tpu.memory_space<vmem>>, vector<16x256xf32>,
    %c0_i32_8 = arith.constant 0 : i32
    %9 = arith.cmpi eq, %arg2, %c0_i32_8 : i32
    %10 = arith.extui %9 : i1 to i32
    %c0_i32_9 = arith.constant 0 : i32
    %11 = arith.cmpi ne, %10, %c0_i32_9 : i32
    scf.if %11 {
      %c0_10 = arith.constant 0 : index
      %c0_11 = arith.constant 0 : index
      %12 = vector.load %arg7[%c0_10, %c0_11] : memref<16x256xf32, #tpu.memory_space<vmem>>, vector<16x256xf32>
      %c0_12 = arith.constant 0 : index
      %c0_13 = arith.constant 0 : index
      %13 = vector.load %arg5[%c0_12, %c0_13] : memref<1x256xf32, #tpu.memory_space<vmem>>, vector<1x256xf32>
      %14 = vector.broadcast %13 : vector<1x256xf32> to vector<16x256xf32>
      %15 = arith.addf %12, %14 : vector<16x256xf32>
      %cst_14 = arith.constant 0.000000e+00 : f32
      %16 = vector.broadcast %cst_14 : f32 to vector<16x256xf32>
      %17 = arith.maximumf %15, %16 : vector<16x256xf32>
      %18 = arith.truncf %17 : vector<16x256xf32> to vector<16x256xbf16>
      %c0_15 = arith.constant 0 : index
      %c0_16 = arith.constant 0 : index
      %19 = vector.load %arg6[%c0_15, %c0_16] : memref<16x256xbf16, #tpu.memory_space<vmem>>, vector<16x256xbf16>
      tpu.vector_store %arg6[%c0_15, %c0_16], %18 {strides = array<i32>} : memref<16x256xbf16, #tpu.memory_space<vmem>>, vector<16x256xbf16>,
    } else {
    }
    return
  }
  func.func @transform_0(%arg0: i32, %arg1: i32, %arg2: i32) -> (i32, i32) {
    %c0_i32 = arith.constant 0 : i32
    return %arg0, %arg2 : i32, i32
  }
  func.func @transform_1(%arg0: i32, %arg1: i32, %arg2: i32) -> (i32, i32) {
    %c0_i32 = arith.constant 0 : i32
    return %arg2, %arg1 : i32, i32
  }
  func.func @transform_2(%arg0: i32, %arg1: i32, %arg2: i32) -> (i32, i32) {
    %c0_i32 = arith.constant 0 : i32
    %c0_i32_0 = arith.constant 0 : i32
    return %c0_i32, %arg1 : i32, i32
  }
  func.func @transform_3(%arg0: i32, %arg1: i32, %arg2: i32) -> (i32, i32) {
    %c0_i32 = arith.constant 0 : i32
    return %arg0, %arg1 : i32, i32
  }
}

module attributes {stable_mosaic.version = 11 : i64} {
  func.func @_fc_tail_kernel(%arg0: memref<8x1024xbf16, #tpu.memory_space<vmem>>, %arg1: memref<1024x512xbf16, #tpu.memory_space<vmem>>, %arg2: memref<1x512xf32, #tpu.memory_space<vmem>>, %arg3: memref<512x128xbf16, #tpu.memory_space<vmem>>, %arg4: memref<1x128xf32, #tpu.memory_space<vmem>>, %arg5: memref<128x128xbf16, #tpu.memory_space<vmem>>, %arg6: memref<1x128xf32, #tpu.memory_space<vmem>>, %arg7: memref<8x128xf32, #tpu.memory_space<vmem>>) attributes {dimension_semantics = [], scalar_prefetch = 0 : i64, scratch_operands = 0 : i64, tpu.core_type = #tpu.core_type<tc>} {
    %c0 = arith.constant 0 : index
    %c0_0 = arith.constant 0 : index
    %0 = vector.load %arg0[%c0, %c0_0] : memref<8x1024xbf16, #tpu.memory_space<vmem>>, vector<8x1024xbf16>
    %c0_1 = arith.constant 0 : index
    %c0_2 = arith.constant 0 : index
    %1 = vector.load %arg1[%c0_1, %c0_2] : memref<1024x512xbf16, #tpu.memory_space<vmem>>, vector<1024x512xbf16>
    %cst = arith.constant dense<0.000000e+00> : vector<8x512xf32>
    %2 = tpu.matmul %0, %1, %cst {dimension_numbers = #tpu.dot_dimension_numbers<[1], [0], [0], [1], [0, 0, 1, 1], [], []>} : vector<8x1024xbf16>, vector<1024x512xbf16>, vector<8x512xf32> -> vector<8x512xf32>
    %c0_3 = arith.constant 0 : index
    %c0_4 = arith.constant 0 : index
    %3 = vector.load %arg2[%c0_3, %c0_4] : memref<1x512xf32, #tpu.memory_space<vmem>>, vector<1x512xf32>
    %4 = vector.broadcast %3 : vector<1x512xf32> to vector<8x512xf32>
    %5 = arith.addf %2, %4 : vector<8x512xf32>
    %cst_5 = arith.constant 0.000000e+00 : f32
    %6 = vector.broadcast %cst_5 : f32 to vector<8x512xf32>
    %7 = arith.maximumf %5, %6 : vector<8x512xf32>
    %8 = arith.truncf %7 : vector<8x512xf32> to vector<8x512xbf16>
    %c0_6 = arith.constant 0 : index
    %c0_7 = arith.constant 0 : index
    %9 = vector.load %arg3[%c0_6, %c0_7] : memref<512x128xbf16, #tpu.memory_space<vmem>>, vector<512x128xbf16>
    %cst_8 = arith.constant dense<0.000000e+00> : vector<8x128xf32>
    %10 = tpu.matmul %8, %9, %cst_8 {dimension_numbers = #tpu.dot_dimension_numbers<[1], [0], [0], [1], [0, 0, 1, 1], [], []>} : vector<8x512xbf16>, vector<512x128xbf16>, vector<8x128xf32> -> vector<8x128xf32>
    %c0_9 = arith.constant 0 : index
    %c0_10 = arith.constant 0 : index
    %11 = vector.load %arg4[%c0_9, %c0_10] : memref<1x128xf32, #tpu.memory_space<vmem>>, vector<1x128xf32>
    %12 = vector.broadcast %11 : vector<1x128xf32> to vector<8x128xf32>
    %13 = arith.addf %10, %12 : vector<8x128xf32>
    %cst_11 = arith.constant 0.000000e+00 : f32
    %14 = vector.broadcast %cst_11 : f32 to vector<8x128xf32>
    %15 = arith.maximumf %13, %14 : vector<8x128xf32>
    %16 = arith.truncf %15 : vector<8x128xf32> to vector<8x128xbf16>
    %c0_12 = arith.constant 0 : index
    %c0_13 = arith.constant 0 : index
    %17 = vector.load %arg5[%c0_12, %c0_13] : memref<128x128xbf16, #tpu.memory_space<vmem>>, vector<128x128xbf16>
    %cst_14 = arith.constant dense<0.000000e+00> : vector<8x128xf32>
    %18 = tpu.matmul %16, %17, %cst_14 {dimension_numbers = #tpu.dot_dimension_numbers<[1], [0], [0], [1], [0, 0, 1, 1], [], []>} : vector<8x128xbf16>, vector<128x128xbf16>, vector<8x128xf32> -> vector<8x128xf32>
    %c0_15 = arith.constant 0 : index
    %c0_16 = arith.constant 0 : index
    %19 = vector.load %arg6[%c0_15, %c0_16] : memref<1x128xf32, #tpu.memory_space<vmem>>, vector<1x128xf32>
    %20 = vector.broadcast %19 : vector<1x128xf32> to vector<8x128xf32>
    %21 = arith.addf %18, %20 : vector<8x128xf32>
    %c0_17 = arith.constant 0 : index
    %c0_18 = arith.constant 0 : index
    %22 = vector.load %arg7[%c0_17, %c0_18] : memref<8x128xf32, #tpu.memory_space<vmem>>, vector<8x128xf32>
    tpu.vector_store %arg7[%c0_17, %c0_18], %21 {strides = array<i32>} : memref<8x128xf32, #tpu.memory_space<vmem>>, vector<8x128xf32>,
    return
  }
}

</mosaic_0001>

<bundles_post_ra>
// kernel: _lambda_.15
= control target key start
LH: loop header
LB: loop body
LE: loop exit
PB: predicated region body
PF: predicated region fallthrough
CT: control target
= control target key end

     0   :  { %8 = vsyncpa [#allocation4], 0  ;;  %s1326_s12 = smov 0   ;;  %s1328_s13 = smov 0   ;;  %s1467_s0 = inlined_call_operand.vmem [shape: bf16[512,128], index: 0, kind: input, shape index: {}]   ;;  %s1468_s1 = inlined_call_operand.vmem [shape: bf16[128,128], index: 1, kind: input, shape index: {}]   ;;  %s1469_s2 = inlined_call_operand.hbm [shape: f32[1,128], index: 2, kind: input, shape index: {}]   ;;  %s1470_s3 = inlined_call_operand.vmem [shape: bf16[512,128], index: 3, kind: output, shape index: {}]  }
   0x1   :  { %s1330_s14 = smov 0  }
   0x2 LB: > { %s958_s15 = sadd.s32 4294967295, %s1303_s14   ;;  %s33_s16 = sadd.s32 1, %s1299_s13  ;;  %s1303_s14 = sphi %s1330_s14, %s14_s14   ;;  %s1299_s13 = sphi %s1328_s13, %s1472_s13   ;;  %s1295_s12 = sphi %s1326_s12, %s1471_s12  }
   0x3   : > { %p35_p0 = scmp.ge.s32.totalorder %s33_s16, 2  ;;  %p960_p1 = scmp.ge.s32.totalorder %s1303_s14, 1 }
   0x4   : > { %p148_p2 = scmp.lt.s32.totalorder %s1303_s14, 3  ;;  %p1219_p4 = scmp.eq.s32.totalorder %s958_s15, 0 }
   0x5   : > { %s1474_s16 = smov (%p35_p0, %s33_s16), 0  ;;  %s173_s19 = sshll.u32 %s1469_s2, 4  ;;  %s174_s19 = int_to_ptr.hbm [resolvable:$true] %s173_s19 }
   0x6   : > { %p149_p3 = pnand %p960_p1, %p148_p2  ;;  %s1305_s20 = smov [#allocation3]  }
   0x7   : > { %s175_s21 = sshll.u32 %s1305_s20, 4  ;;  %s176_s21 = int_to_ptr.vmem [resolvable:$true] %s175_s21 }
   0x8   : > { %p1215_p5 = pneg %p149_p3  ;;  %200 = sbr.rel (%p149_p3) target bundleno = 243 (0xf3), region = 32 }
   0xa   : > { %p1216_p6 = pnand %p1219_p4, %p1215_p5 }
   0xc   : > { %1218 = dma.hbm_to_vmem [thread:$0]  (!%p1216_p6), %s174_s19, 16, %s176_s21, [#allocation4]  }
   0xd   : > { %1290 = dma.done.wait (%p1219_p4), [#allocation4], 16  }
   0xe   : > { %1292 = vsyncadd (%p1219_p4), [#allocation4], 4294967280  ;;  %v1091_v0 = vld [vmem:[%s1468_s1 + $0x38] sm:$0xff]  ;;  %v1090_v1 = vld [vmem:[%s1468_s1 + $0x30] sm:$0xff]  ;;  %s966_s30 = sshll.u32 %s1295_s12, 5 }
   0xf   : > { %526 = vmatpush.bf16.msra.mxu0 %v1091_v0  ;;  %1187 = vmatpush.bf16.msra.mxu1 %v1091_v0  ;;  %v1089_v2 = vld [vmem:[%s1468_s1 + $0x28] sm:$0xff]  ;;  %v1088_v3 = vld [vmem:[%s1468_s1 + $0x20] sm:$0xff]  ;;  %v1087_v4 = vld [vmem:[%s1468_s1 + $0x18] sm:$0xff]  ;;  %p240_p7 = scmp.lt.s32.totalorder %s966_s30, 63 }
  0x10   : > { %1188 = vmatpush.bf16.msra.mxu2 %v1091_v0  ;;  %1189 = vmatpush.bf16.msra.mxu3 %v1091_v0  ;;  %v1086_v5 = vld [vmem:[%s1468_s1 + $0x10] sm:$0xff]  ;;  %v1085_v6 = vld [vmem:[%s1468_s1 + $0x8] sm:$0xff]  ;;  %v1084_v7 = vld [vmem:[%s1468_s1] sm:$0xff] }
  0x11   : > { %s1476_s30 = smov (!%p240_p7, %s966_s30), 63  ;;  %v1401_v26 = vld [vmem:[#allocation3] ss:$0 sm:$0xff] }
  0x12   : > { %s967_s10 = sshll.u32 %s1476_s30, 2 }
  0x13   : > { %527 = vmatpush.bf16.msra.mxu0 %v1090_v1  ;;  %1190 = vmatpush.bf16.msra.mxu1 %v1090_v1  ;;  %s1383_s18 = scalar_lea.vmem %s1467_s0, %s967_s10  ;;  %s1412_s21 = scalar_lea.vmem %s1470_s3, %s967_s10 }
  0x14   : > { %1191 = vmatpush.bf16.msra.mxu2 %v1090_v1  ;;  %1192 = vmatpush.bf16.msra.mxu3 %v1090_v1  ;;  %v1068_v8 = vld [vmem:[%s1383_s18] sm:$0xff]  ;;  %v1069_v12 = vld [vmem:[%s1383_s18 + $0x8] sm:$0xff]  ;;  %v1070_v16 = vld [vmem:[%s1383_s18 + $0x10] sm:$0xff] }
  0x15   : > { %v1072_v9 = vld [vmem:[%s1383_s18 + $0x20] sm:$0xff]  ;;  %v1073_v13 = vld [vmem:[%s1383_s18 + $0x28] sm:$0xff]  ;;  %v1074_v17 = vld [vmem:[%s1383_s18 + $0x30] sm:$0xff] }
  0x16   : > { %v1076_v10 = vld [vmem:[%s1383_s18 + $0x40] sm:$0xff]  ;;  %v1077_v14 = vld [vmem:[%s1383_s18 + $0x48] sm:$0xff]  ;;  %v1078_v18 = vld [vmem:[%s1383_s18 + $0x50] sm:$0xff] }
  0x17   : > { %528 = vmatpush.bf16.msra.mxu0 %v1089_v2  ;;  %1193 = vmatpush.bf16.msra.mxu1 %v1089_v2  ;;  %v1080_v11 = vld [vmem:[%s1383_s18 + $0x60] sm:$0xff]  ;;  %v1081_v15 = vld [vmem:[%s1383_s18 + $0x68] sm:$0xff]  ;;  %v1082_v19 = vld [vmem:[%s1383_s18 + $0x70] sm:$0xff] }
  0x18   : > { %1194 = vmatpush.bf16.msra.mxu2 %v1089_v2  ;;  %1195 = vmatpush.bf16.msra.mxu3 %v1089_v2  ;;  %v1071_v20 = vld [vmem:[%s1383_s18 + $0x18] sm:$0xff] }
  0x19   : > { %v1075_v21 = vld [vmem:[%s1383_s18 + $0x38] sm:$0xff] }
  0x1a   : > { %v1079_v22 = vld [vmem:[%s1383_s18 + $0x58] sm:$0xff] }
  0x1b   : > { %529 = vmatpush.bf16.msra.mxu0 %v1088_v3  ;;  %1196 = vmatpush.bf16.msra.mxu1 %v1088_v3  ;;  %v1083_v23 = vld [vmem:[%s1383_s18 + $0x78] sm:$0xff] }
  0x1c   : > { %1197 = vmatpush.bf16.msra.mxu2 %v1088_v3  ;;  %1198 = vmatpush.bf16.msra.mxu3 %v1088_v3 }
  0x1f   : > { %530 = vmatpush.bf16.msra.mxu0 %v1087_v4  ;;  %1199 = vmatpush.bf16.msra.mxu1 %v1087_v4 }
  0x20   : > { %1200 = vmatpush.bf16.msra.mxu2 %v1087_v4  ;;  %1201 = vmatpush.bf16.msra.mxu3 %v1087_v4 }
  0x23   : > { %531 = vmatpush.bf16.msra.mxu0 %v1086_v5  ;;  %1202 = vmatpush.bf16.msra.mxu1 %v1086_v5 }
  0x24   : > { %1203 = vmatpush.bf16.msra.mxu2 %v1086_v5  ;;  %1204 = vmatpush.bf16.msra.mxu3 %v1086_v5 }
  0x27   : > { %532 = vmatpush.bf16.msra.mxu0 %v1085_v6  ;;  %1205 = vmatpush.bf16.msra.mxu1 %v1085_v6 }
  0x28   : > { %1206 = vmatpush.bf16.msra.mxu2 %v1085_v6  ;;  %1207 = vmatpush.bf16.msra.mxu3 %v1085_v6 }
  0x2b   : > { %533 = vmatpush.bf16.msra.mxu0 %v1084_v7  ;;  %1208 = vmatpush.bf16.msra.mxu1 %v1084_v7 }
  0x2c   : > { %1209 = vmatpush.bf16.msra.mxu2 %v1084_v7  ;;  %1210 = vmatpush.bf16.msra.mxu3 %v1084_v7 }
  0x2e   : > { %534 = vmatmul.bf16.vlgmr.msra.gmra.mxu0 %v1068_v8  ;;  %554 = vmatmul.bf16.vlgmr.msra.gmra.mxu1 %v1072_v9 }
  0x2f   : > { %574 = vmatmul.bf16.vlgmr.msra.gmra.mxu2 %v1076_v10  ;;  %594 = vmatmul.bf16.vlgmr.msra.gmra.mxu3 %v1080_v11 }
  0x3e   : > { %539 = vmatmul.bf16.gmra.mxu0 %v1069_v12  ;;  %559 = vmatmul.bf16.gmra.mxu1 %v1073_v13 }
  0x3f   : > { %579 = vmatmul.bf16.gmra.mxu2 %v1077_v14  ;;  %599 = vmatmul.bf16.gmra.mxu3 %v1081_v15 }
  0x4e   : > { %544 = vmatmul.bf16.gmra.mxu0 %v1070_v16  ;;  %564 = vmatmul.bf16.gmra.mxu1 %v1074_v17 }
  0x4f   : > { %584 = vmatmul.bf16.gmra.mxu2 %v1078_v18  ;;  %604 = vmatmul.bf16.gmra.mxu3 %v1082_v19 }
  0x5e   : > { %549 = vmatmul.bf16.gmra.mxu0 %v1071_v20  ;;  %569 = vmatmul.bf16.gmra.mxu1 %v1075_v21 }
  0x5f   : > { %589 = vmatmul.bf16.gmra.mxu2 %v1079_v22  ;;  %609 = vmatmul.bf16.gmra.mxu3 %v1083_v23 }
  0xab   : > { %v535_v24 = vpop.f32.mrf.mxu0  ;;  %v555_v25 = vpop.f32.mrf.mxu1 }
  0xac   : > { %v718_v27 = vadd.f32 %v1401_v26, %v535_v24  ;;  %v726_v28 = vadd.f32 %v1401_v26, %v555_v25 }
  0xae   : > { %v750_v35 = vmax.f32 %v718_v27, 0.0  ;;  %v758_v36 = vmax.f32 %v726_v28, 0.0 }
  0xb2   : > { %v575_v29 = vpop.f32.mrf.mxu2  ;;  %v595_v30 = vpop.f32.mrf.mxu3 }
  0xb3   : > { %v537_v31 = vpop.f32.mrf.mxu0  ;;  %v557_v32 = vpop.f32.mrf.mxu1  ;;  %v734_v41 = vadd.f32 %v1401_v26, %v575_v29  ;;  %v742_v42 = vadd.f32 %v1401_v26, %v595_v30 }
  0xb4   : > { %v719_v33 = vadd.f32 %v1401_v26, %v537_v31  ;;  %v727_v34 = vadd.f32 %v1401_v26, %v557_v32 }
  0xb5   : > { %v766_v49 = vmax.f32 %v734_v41, 0.0  ;;  %v774_v50 = vmax.f32 %v742_v42, 0.0 }
  0xb6   : > { %v751_v37 = vmax.f32 %v719_v33, 0.0  ;;  %v759_v38 = vmax.f32 %v727_v34, 0.0 }
  0xb8   : > { %v1095_v39 = vpack.c.bf16 %v751_v37, %v750_v35  ;;  %v1115_v40 = vpack.c.bf16 %v759_v38, %v758_v36 }
  0xba   : > { %1096 = vst [vmem:[%s1412_s21] sm:$0xff] %v1095_v39   ;;  %v577_v43 = vpop.f32.mrf.mxu2  ;;  %v597_v44 = vpop.f32.mrf.mxu3 }
  0xbb   : > { %1175 = vst [vmem:[%s1412_s21 + $0x20] sm:$0xff] %v1115_v40   ;;  %v735_v45 = vadd.f32 %v1401_v26, %v577_v43  ;;  %v743_v46 = vadd.f32 %v1401_v26, %v597_v44  ;;  %v540_v47 = vpop.f32.mrf.mxu0  ;;  %v560_v48 = vpop.f32.mrf.mxu1 }
  0xbc   : > { %v720_v55 = vadd.f32 %v1401_v26, %v540_v47  ;;  %v728_v56 = vadd.f32 %v1401_v26, %v560_v48 }
  0xbd   : > { %v767_v51 = vmax.f32 %v735_v45, 0.0  ;;  %v775_v52 = vmax.f32 %v743_v46, 0.0 }
  0xbe   : > { %v752_v63 = vmax.f32 %v720_v55, 0.0  ;;  %v760_v0 = vmax.f32 %v728_v56, 0.0 }
  0xbf   : > { %v1135_v53 = vpack.c.bf16 %v767_v51, %v766_v49  ;;  %v1155_v54 = vpack.c.bf16 %v775_v52, %v774_v50 }
  0xc1   : > { %1179 = vst [vmem:[%s1412_s21 + $0x40] sm:$0xff] %v1135_v53  }
  0xc2   : > { %1183 = vst [vmem:[%s1412_s21 + $0x60] sm:$0xff] %v1155_v54   ;;  %v580_v57 = vpop.f32.mrf.mxu2  ;;  %v600_v58 = vpop.f32.mrf.mxu3 }
  0xc3   : > { %v542_v59 = vpop.f32.mrf.mxu0  ;;  %v562_v60 = vpop.f32.mrf.mxu1  ;;  %v736_v5 = vadd.f32 %v1401_v26, %v580_v57  ;;  %v744_v6 = vadd.f32 %v1401_v26, %v600_v58 }
  0xc4   : > { %v721_v61 = vadd.f32 %v1401_v26, %v542_v59  ;;  %v729_v62 = vadd.f32 %v1401_v26, %v562_v60 }
  0xc5   : > { %v768_v13 = vmax.f32 %v736_v5, 0.0  ;;  %v776_v14 = vmax.f32 %v744_v6, 0.0 }
  0xc6   : > { %v753_v1 = vmax.f32 %v721_v61, 0.0  ;;  %v761_v2 = vmax.f32 %v729_v62, 0.0 }
  0xc8   : > { %v1100_v3 = vpack.c.bf16 %v753_v1, %v752_v63  ;;  %v1120_v4 = vpack.c.bf16 %v761_v2, %v760_v0 }
  0xca   : > { %1172 = vst [vmem:[%s1412_s21 + $0x8] sm:$0xff] %v1100_v3   ;;  %v582_v7 = vpop.f32.mrf.mxu2  ;;  %v602_v8 = vpop.f32.mrf.mxu3 }
  0xcb   : > { %1176 = vst [vmem:[%s1412_s21 + $0x28] sm:$0xff] %v1120_v4   ;;  %v737_v9 = vadd.f32 %v1401_v26, %v582_v7  ;;  %v745_v10 = vadd.f32 %v1401_v26, %v602_v8  ;;  %v545_v11 = vpop.f32.mrf.mxu0  ;;  %v565_v12 = vpop.f32.mrf.mxu1 }
  0xcc   : > { %v722_v19 = vadd.f32 %v1401_v26, %v545_v11  ;;  %v730_v20 = vadd.f32 %v1401_v26, %v565_v12 }
  0xcd   : > { %v769_v15 = vmax.f32 %v737_v9, 0.0  ;;  %v777_v16 = vmax.f32 %v745_v10, 0.0 }
  0xce   : > { %v754_v28 = vmax.f32 %v722_v19, 0.0  ;;  %v762_v29 = vmax.f32 %v730_v20, 0.0 }
  0xcf   : > { %v1140_v17 = vpack.c.bf16 %v769_v15, %v768_v13  ;;  %v1160_v18 = vpack.c.bf16 %v777_v16, %v776_v14 }
  0xd1   : > { %1180 = vst [vmem:[%s1412_s21 + $0x48] sm:$0xff] %v1140_v17  }
  0xd2   : > { %1184 = vst [vmem:[%s1412_s21 + $0x68] sm:$0xff] %v1160_v18   ;;  %v585_v21 = vpop.f32.mrf.mxu2  ;;  %v605_v22 = vpop.f32.mrf.mxu3 }
  0xd3   : > { %v547_v23 = vpop.f32.mrf.mxu0  ;;  %v567_v24 = vpop.f32.mrf.mxu1  ;;  %v738_v34 = vadd.f32 %v1401_v26, %v585_v21  ;;  %v746_v35 = vadd.f32 %v1401_v26, %v605_v22 }
  0xd4   : > { %v723_v25 = vadd.f32 %v1401_v26, %v547_v23  ;;  %v731_v27 = vadd.f32 %v1401_v26, %v567_v24 }
  0xd5   : > { %v770_v42 = vmax.f32 %v738_v34, 0.0  ;;  %v778_v43 = vmax.f32 %v746_v35, 0.0 }
  0xd6   : > { %v755_v30 = vmax.f32 %v723_v25, 0.0  ;;  %v763_v31 = vmax.f32 %v731_v27, 0.0 }
  0xd8   : > { %v1105_v32 = vpack.c.bf16 %v755_v30, %v754_v28  ;;  %v1125_v33 = vpack.c.bf16 %v763_v31, %v762_v29 }
  0xda   : > { %1173 = vst [vmem:[%s1412_s21 + $0x10] sm:$0xff] %v1105_v32   ;;  %v587_v36 = vpop.f32.mrf.mxu2  ;;  %v607_v37 = vpop.f32.mrf.mxu3 }
  0xdb   : > { %1177 = vst [vmem:[%s1412_s21 + $0x30] sm:$0xff] %v1125_v33   ;;  %v739_v38 = vadd.f32 %v1401_v26, %v587_v36  ;;  %v747_v39 = vadd.f32 %v1401_v26, %v607_v37  ;;  %v550_v40 = vpop.f32.mrf.mxu0  ;;  %v570_v41 = vpop.f32.mrf.mxu1 }
  0xdc   : > { %v724_v48 = vadd.f32 %v1401_v26, %v550_v40  ;;  %v732_v49 = vadd.f32 %v1401_v26, %v570_v41 }
  0xdd   : > { %v771_v44 = vmax.f32 %v739_v38, 0.0  ;;  %v779_v45 = vmax.f32 %v747_v39, 0.0 }
  0xde   : > { %v756_v56 = vmax.f32 %v724_v48, 0.0  ;;  %v764_v57 = vmax.f32 %v732_v49, 0.0 }
  0xdf   : > { %v1145_v46 = vpack.c.bf16 %v771_v44, %v770_v42  ;;  %v1165_v47 = vpack.c.bf16 %v779_v45, %v778_v43 }
  0xe1   : > { %1181 = vst [vmem:[%s1412_s21 + $0x50] sm:$0xff] %v1145_v46  }
  0xe2   : > { %1185 = vst [vmem:[%s1412_s21 + $0x70] sm:$0xff] %v1165_v47   ;;  %v590_v50 = vpop.f32.mrf.mxu2  ;;  %v610_v51 = vpop.f32.mrf.mxu3 }
  0xe3   : > { %v552_v52 = vpop.f32.mrf.mxu0  ;;  %v572_v53 = vpop.f32.mrf.mxu1  ;;  %v740_v62 = vadd.f32 %v1401_v26, %v590_v50  ;;  %v748_v63 = vadd.f32 %v1401_v26, %v610_v51 }
  0xe4   : > { %v725_v54 = vadd.f32 %v1401_v26, %v552_v52  ;;  %v733_v55 = vadd.f32 %v1401_v26, %v572_v53 }
  0xe5   : > { %v772_v4 = vmax.f32 %v740_v62, 0.0  ;;  %v780_v5 = vmax.f32 %v748_v63, 0.0 }
  0xe6   : > { %v757_v58 = vmax.f32 %v725_v54, 0.0  ;;  %v765_v59 = vmax.f32 %v733_v55, 0.0 }
  0xe8   : > { %v1110_v60 = vpack.c.bf16 %v757_v58, %v756_v56  ;;  %v1130_v61 = vpack.c.bf16 %v765_v59, %v764_v57 }
  0xea   : > { %1174 = vst [vmem:[%s1412_s21 + $0x18] sm:$0xff] %v1110_v60   ;;  %v592_v0 = vpop.f32.mrf.mxu2  ;;  %v612_v1 = vpop.f32.mrf.mxu3 }
  0xeb   : > { %1178 = vst [vmem:[%s1412_s21 + $0x38] sm:$0xff] %v1130_v61   ;;  %v741_v2 = vadd.f32 %v1401_v26, %v592_v0  ;;  %v749_v3 = vadd.f32 %v1401_v26, %v612_v1 }
  0xed   : > { %v773_v6 = vmax.f32 %v741_v2, 0.0  ;;  %v781_v7 = vmax.f32 %v749_v3, 0.0 }
  0xef   : > { %v1150_v8 = vpack.c.bf16 %v773_v6, %v772_v4  ;;  %v1170_v9 = vpack.c.bf16 %v781_v7, %v780_v5 }
  0xf1   : > { %1182 = vst [vmem:[%s1412_s21 + $0x58] sm:$0xff] %v1150_v8  }
  0xf2   : > { %1186 = vst [vmem:[%s1412_s21 + $0x78] sm:$0xff] %v1170_v9  }
  0xf3 PF: > { %s14_s14 = sadd.s32 1, %s1303_s14   ;;  %s1471_s12 = smov %s1299_s13 }
  0xf4   : > { %p11_p8 = scmp.ge.s32.totalorder %s14_s14, 4   ;;  %s1472_s13 = smov %s1474_s16 }
  0xf6   :  { %13 = sbr.rel (!%p11_p8) target bundleno = 2 (0x2), region = 79 }
  0xfb   :  { %874 = vsyncpa [#allocation4], 1 }
  0xfc   :  { %876 = vsyncpa [#allocation4 + $0x1], 1 }

// kernel: _lambda_.16
= control target key start
LH: loop header
LB: loop body
LE: loop exit
PB: predicated region body
PF: predicated region fallthrough
CT: control target
= control target key end

     0   :  { %8 = vsyncpa [#allocation4], 0  ;;  %s1712_s0 = inlined_call_operand.vmem [shape: bf16[128,640], index: 0, kind: input, shape index: {}]   ;;  %s1713_s1 = inlined_call_operand.hbm [shape: bf16[640,128], index: 1, kind: input, shape index: {}]   ;;  %s1714_s2 = inlined_call_operand.hbm [shape: f32[1,128], index: 2, kind: input, shape index: {}]   ;;  %s1715_s3 = inlined_call_operand.vmem [shape: bf16[128,128], index: 3, kind: output, shape index: {}]  }
   0x1   :  { %9 = vsyncpa [#allocation6], 0  ;;  %s1576_s12 = smov 0   ;;  %s1578_s13 = smov 0  }
   0x2   :  { %s1580_s14 = smov 0  }
   0x3 LB: > { %s1057_s15 = sadd.s32 4294967295, %s1550_s14   ;;  %s34_s16 = sadd.s32 1, %s1546_s13  ;;  %s1550_s14 = sphi %s1580_s14, %s15_s14   ;;  %s1546_s13 = sphi %s1578_s13, %s1719_s13   ;;  %s1542_s12 = sphi %s1576_s12, %s1718_s12  }
   0x4   : > { %p36_p0 = scmp.ge.s32.totalorder %s34_s16, 2  ;;  %p1059_p1 = scmp.ge.s32.totalorder %s1550_s14, 1 }
   0x5   : > { %p149_p2 = scmp.lt.s32.totalorder %s1550_s14, 3  ;;  %p1601_p4 = scmp.eq.s32.totalorder %s1057_s15, 0 }
   0x6   : > { %s1721_s16 = smov (%p36_p0, %s34_s16), 0  ;;  %s164_s21 = sshll.u32 %s1713_s1, 4  ;;  %s165_s21 = int_to_ptr.hbm [resolvable:$true] %s164_s21 }
   0x7   : > { %p1597_p3 = pnand %p1059_p1, %p149_p2  ;;  %s1552_s22 = smov [#allocation3]  }
   0x8   : > { %s166_s23 = sshll.u32 %s1552_s22, 4  ;;  %s180_s26 = sshll.u32 %s1714_s2, 4  ;;  %s167_s23 = int_to_ptr.vmem [resolvable:$true] %s166_s23  ;;  %s181_s26 = int_to_ptr.hbm [resolvable:$true] %s180_s26 }
   0x9   : > { %p1420_p5 = pneg %p1597_p3  ;;  %s1553_s27 = smov 64  }
   0xa   : > { %s1554_s28 = smov 4   ;;  %s1555_s29 = smov [#allocation5]  }
   0xb   : > { %p1421_p6 = pnand %p1601_p4, %p1420_p5  ;;  %s182_s30 = sshll.u32 %s1555_s29, 4  ;;  %s183_s30 = int_to_ptr.vmem [resolvable:$true] %s182_s30 }
   0xc   : > { %210 = sbr.rel (%p1597_p3) target bundleno = 281 (0x119), region = 32 }
   0xd   : > { %1423 = dma.hbm_to_vmem [thread:$0]  (!%p1421_p6), %s165_s21, 5120, %s167_s23, [#allocation4], %s1553_s27, %s1553_s27, %s1554_s28  }
   0xe   : > { %1426 = dma.hbm_to_vmem [thread:$0]  (!%p1421_p6), %s181_s26, 16, %s183_s30, [#allocation6]  }
  0x11   : > { %1533 = dma.done.wait (%p1601_p4), [#allocation4], 5120  }
  0x12   : > { %1535 = vsyncadd (%p1601_p4), [#allocation4], 4294962176 }
  0x13   : > { %1537 = dma.done.wait (%p1601_p4), [#allocation6], 16  }
  0x14   : > { %1539 = vsyncadd (%p1601_p4), [#allocation6], 4294967280  ;;  %v1339_v0 = vld [vmem:[#allocation3 + $0x38] sm:$0xff]  ;;  %v1338_v2 = vld [vmem:[#allocation3 + $0x30] sm:$0xff]  ;;  %s1066_s4 = sshll.u32 %s1542_s12, 3 }
  0x15   : > { %v1355_v1 = vld [vmem:[#allocation3 + $0xb8] sm:$0xff]  ;;  %1395 = vmatpush.bf16.msra.mxu1 %v1339_v0  ;;  %738 = vmatpush.bf16.msra.mxu0 %v1339_v0  ;;  %v1354_v3 = vld [vmem:[#allocation3 + $0xb0] sm:$0xff]  ;;  %v1337_v6 = vld [vmem:[#allocation3 + $0x28] sm:$0xff]  ;;  %p250_p7 = scmp.lt.s32.totalorder %s1066_s4, 15 }
  0x16   : > { %796 = vmatpush.bf16.msra.mxu2 %v1355_v1  ;;  %v1363_v4 = vld [vmem:[#allocation3 + $0xf8] sm:$0xff]  ;;  %v1362_v5 = vld [vmem:[#allocation3 + $0xf0] sm:$0xff]  ;;  %v1353_v7 = vld [vmem:[#allocation3 + $0xa8] sm:$0xff] }
  0x17   : > { %825 = vmatpush.bf16.msra.mxu3 %v1363_v4  ;;  %v1361_v8 = vld [vmem:[#allocation3 + $0xe8] sm:$0xff]  ;;  %v1336_v9 = vld [vmem:[#allocation3 + $0x20] sm:$0xff]  ;;  %v1335_v12 = vld [vmem:[#allocation3 + $0x18] sm:$0xff]  ;;  %s1723_s4 = smov (!%p250_p7, %s1066_s4), 15 }
  0x18   : > { %v1352_v10 = vld [vmem:[#allocation3 + $0xa0] sm:$0xff]  ;;  %v1351_v13 = vld [vmem:[#allocation3 + $0x98] sm:$0xff]  ;;  %v1334_v15 = vld [vmem:[#allocation3 + $0x10] sm:$0xff]  ;;  %s1411_s5 = smul.u32 20, %s1723_s4  ;;  %s1069_s9 = sshll.u32 %s1723_s4, 2 }
  0x19   : > { %1396 = vmatpush.bf16.msra.mxu1 %v1338_v2  ;;  %739 = vmatpush.bf16.msra.mxu0 %v1338_v2  ;;  %v1360_v11 = vld [vmem:[#allocation3 + $0xe0] sm:$0xff]  ;;  %v1359_v14 = vld [vmem:[#allocation3 + $0xd8] sm:$0xff]  ;;  %v1350_v16 = vld [vmem:[#allocation3 + $0x90] sm:$0xff]  ;;  %s1688_s12 = scalar_lea.vmem %s1715_s3, %s1069_s9 }
  0x1a   : > { %797 = vmatpush.bf16.msra.mxu2 %v1354_v3  ;;  %v1358_v17 = vld [vmem:[#allocation3 + $0xd0] sm:$0xff]  ;;  %v1333_v18 = vld [vmem:[#allocation3 + $0x8] sm:$0xff]  ;;  %s1632_s8 = scalar_lea.vmem %s1712_s0, %s1411_s5  ;;  %v1332_v20 = vld [vmem:[#allocation3] sm:$0xff] }
  0x1b   : > { %826 = vmatpush.bf16.msra.mxu3 %v1362_v5  ;;  %v1349_v19 = vld [vmem:[#allocation3 + $0x88] sm:$0xff]  ;;  %v1112_v21 = vld [vmem:[%s1632_s8 + $0x50] sm:$0xf]  ;;  %v1324_v22 = vld [vmem:[%s1632_s8 + $0x60] sm:$0xf0] }
  0x1c   : > { %v1357_v23 = vld [vmem:[#allocation3 + $0xc8] sm:$0xff]  ;;  %v1347_v24 = vld [vmem:[#allocation3 + $0x78] sm:$0xff]  ;;  %v1072_v25 = vld [vmem:[%s1632_s8] sm:$0xf]  ;;  %v1113_v31 = vor.u32 %v1324_v22, %v1112_v21 }
  0x1d   : > { %1397 = vmatpush.bf16.msra.mxu1 %v1337_v6  ;;  %740 = vmatpush.bf16.msra.mxu0 %v1337_v6  ;;  %v1314_v26 = vld [vmem:[%s1632_s8 + $0x10] sm:$0xf0]  ;;  %v1348_v27 = vld [vmem:[#allocation3 + $0x80] sm:$0xff]  ;;  %v1080_v28 = vld [vmem:[%s1632_s8 + $0x8] sm:$0xf] }
  0x1e   : > { %798 = vmatpush.bf16.msra.mxu2 %v1353_v7  ;;  %v1315_v29 = vld [vmem:[%s1632_s8 + $0x18] sm:$0xf0]  ;;  %v1073_v32 = vor.u32 %v1314_v26, %v1072_v25  ;;  %v1356_v34 = vld [vmem:[#allocation3 + $0xc0] sm:$0xff]  ;;  %v1313_v35 = vld [vmem:[%s1632_s8 + $0xc] sm:$0xf] }
  0x1f   : > { %827 = vmatpush.bf16.msra.mxu3 %v1361_v8  ;;  %v1371_v30 = vld [vmem:[#allocation3 + $0x138] sm:$0xff]  ;;  %v1081_v33 = vor.u32 %v1315_v29, %v1080_v28  ;;  %v1082_v36 = vld [vmem:[%s1632_s8 + $0x1c] sm:$0xf0]  ;;  %v1346_v37 = vld [vmem:[#allocation3 + $0x70] sm:$0xff] }
  0x20   : > { %v1370_v38 = vld [vmem:[#allocation3 + $0x130] sm:$0xff]  ;;  %v1085_v39 = vor.u32 %v1313_v35, %v1082_v36  ;;  %v1345_v40 = vld [vmem:[#allocation3 + $0x68] sm:$0xff]  ;;  %v1344_v42 = vld [vmem:[#allocation3 + $0x60] sm:$0xff] }
  0x21   : > { %1398 = vmatpush.bf16.msra.mxu1 %v1336_v9  ;;  %741 = vmatpush.bf16.msra.mxu0 %v1336_v9  ;;  %v1369_v41 = vld [vmem:[#allocation3 + $0x128] sm:$0xff]  ;;  %v1368_v43 = vld [vmem:[#allocation3 + $0x120] sm:$0xff]  ;;  %v1132_v44 = vld [vmem:[%s1632_s8 + $0x78] sm:$0xf] }
  0x22   : > { %799 = vmatpush.bf16.msra.mxu2 %v1352_v10  ;;  %v1329_v45 = vld [vmem:[%s1632_s8 + $0x88] sm:$0xf0]  ;;  %v1092_v46 = vld [vmem:[%s1632_s8 + $0x28] sm:$0xf]  ;;  %v1319_v47 = vld [vmem:[%s1632_s8 + $0x38] sm:$0xf0] }
  0x23   : > { %828 = vmatpush.bf16.msra.mxu3 %v1360_v11  ;;  %v1343_v48 = vld [vmem:[#allocation3 + $0x58] sm:$0xff]  ;;  %v1100_v49 = vld [vmem:[%s1632_s8 + $0x30] sm:$0xf]  ;;  %v1320_v50 = vld [vmem:[%s1632_s8 + $0x40] sm:$0xf0]  ;;  %v1133_v52 = vor.u32 %v1329_v45, %v1132_v44  ;;  %v1093_v53 = vor.u32 %v1319_v47, %v1092_v46 }
  0x24   : > { %v1367_v51 = vld [vmem:[#allocation3 + $0x118] sm:$0xff]  ;;  %v1101_v54 = vor.u32 %v1320_v50, %v1100_v49  ;;  %v1318_v55 = vld [vmem:[%s1632_s8 + $0x34] sm:$0xf]  ;;  %v1102_v56 = vld [vmem:[%s1632_s8 + $0x44] sm:$0xf0] }
  0x25   : > { %1399 = vmatpush.bf16.msra.mxu1 %v1335_v12  ;;  %742 = vmatpush.bf16.msra.mxu0 %v1335_v12  ;;  %v1342_v57 = vld [vmem:[#allocation3 + $0x50] sm:$0xff]  ;;  %v1105_v59 = vor.u32 %v1318_v55, %v1102_v56  ;;  %v1341_v60 = vld [vmem:[#allocation3 + $0x48] sm:$0xff]  ;;  %v1340_v62 = vld [vmem:[#allocation3 + $0x40] sm:$0xff] }
  0x26   : > { %800 = vmatpush.bf16.msra.mxu2 %v1351_v13  ;;  %v1366_v58 = vld [vmem:[#allocation3 + $0x110] sm:$0xff]  ;;  %v1365_v61 = vld [vmem:[#allocation3 + $0x108] sm:$0xff]  ;;  %v1364_v63 = vld [vmem:[#allocation3 + $0x100] sm:$0xff] }
  0x27   : > { %829 = vmatpush.bf16.msra.mxu3 %v1359_v14  ;;  %v1312_v0 = vld [vmem:[%s1632_s8 + $0x4] sm:$0xf]  ;;  %v1074_v1 = vld [vmem:[%s1632_s8 + $0x14] sm:$0xf0]  ;;  %v1088_v2 = vld [vmem:[%s1632_s8 + $0x10] sm:$0xf] }
  0x28   : > { %v1316_v3 = vld [vmem:[%s1632_s8 + $0x20] sm:$0xf0]  ;;  %v1120_v4 = vld [vmem:[%s1632_s8 + $0x58] sm:$0xf]  ;;  %v1325_v5 = vld [vmem:[%s1632_s8 + $0x68] sm:$0xf0]  ;;  %v1077_v6 = vor.u32 %v1312_v0, %v1074_v1 }
  0x29   : > { %1400 = vmatpush.bf16.msra.mxu1 %v1334_v15  ;;  %743 = vmatpush.bf16.msra.mxu0 %v1334_v15  ;;  %v1089_v7 = vor.u32 %v1316_v3, %v1088_v2  ;;  %v1121_v8 = vor.u32 %v1325_v5, %v1120_v4  ;;  %v1323_v9 = vld [vmem:[%s1632_s8 + $0x5c] sm:$0xf]  ;;  %v1122_v10 = vld [vmem:[%s1632_s8 + $0x6c] sm:$0xf0]  ;;  %v1317_v12 = vld [vmem:[%s1632_s8 + $0x2c] sm:$0xf] }
  0x2a   : > { %801 = vmatpush.bf16.msra.mxu2 %v1350_v16  ;;  %v1125_v11 = vor.u32 %v1323_v9, %v1122_v10  ;;  %v1094_v13 = vld [vmem:[%s1632_s8 + $0x3c] sm:$0xf0]  ;;  %v1108_v14 = vld [vmem:[%s1632_s8 + $0x38] sm:$0xf]  ;;  %v1321_v15 = vld [vmem:[%s1632_s8 + $0x48] sm:$0xf0] }
  0x2b   : > { %830 = vmatpush.bf16.msra.mxu3 %v1358_v17  ;;  %v1140_v16 = vld [vmem:[%s1632_s8 + $0x80] sm:$0xf]  ;;  %v1330_v17 = vld [vmem:[%s1632_s8 + $0x90] sm:$0xf0]  ;;  %v1328_v21 = vld [vmem:[%s1632_s8 + $0x84] sm:$0xf] }
  0x2c   : > { %v1142_v22 = vld [vmem:[%s1632_s8 + $0x94] sm:$0xf0]  ;;  %v1114_v25 = vld [vmem:[%s1632_s8 + $0x64] sm:$0xf0]  ;;  %v1128_v26 = vld [vmem:[%s1632_s8 + $0x60] sm:$0xf] }
  0x2d   : > { %1401 = vmatpush.bf16.msra.mxu1 %v1333_v18  ;;  %744 = vmatpush.bf16.msra.mxu0 %v1333_v18  ;;  %v1097_v18 = vor.u32 %v1317_v12, %v1094_v13  ;;  %v1148_v28 = vld [vmem:[%s1632_s8 + $0x88] sm:$0xf]  ;;  %v1331_v29 = vld [vmem:[%s1632_s8 + $0x98] sm:$0xf0] }
  0x2e   : > { %802 = vmatpush.bf16.msra.mxu2 %v1349_v19  ;;  %v1109_v19 = vor.u32 %v1321_v15, %v1108_v14 }
  0x2f   : > { %831 = vmatpush.bf16.msra.mxu3 %v1357_v23  ;;  %v1145_v23 = vor.u32 %v1328_v21, %v1142_v22 }
  0x31   : > { %1402 = vmatpush.bf16.msra.mxu1 %v1332_v20  ;;  %745 = vmatpush.bf16.msra.mxu0 %v1332_v20  ;;  %v1141_v20 = vor.u32 %v1330_v17, %v1140_v16 }
  0x32   : > { %803 = vmatpush.bf16.msra.mxu2 %v1348_v27  ;;  %v1326_v27 = vld [vmem:[%s1632_s8 + $0x70] sm:$0xf0] }
  0x33   : > { %832 = vmatpush.bf16.msra.mxu3 %v1356_v34  ;;  %v1134_v34 = vld [vmem:[%s1632_s8 + $0x8c] sm:$0xf0] }
  0x34   : > { %756 = vmatmul.bf16.vlgmr.msra.gmra.mxu1 %v1113_v31  ;;  %746 = vmatmul.bf16.vlgmr.msra.gmra.mxu0 %v1073_v32  ;;  %v1129_v31 = vor.u32 %v1326_v27, %v1128_v26  ;;  %v1149_v32 = vor.u32 %v1331_v29, %v1148_v28 }
  0x35   : > { %767 = vmatpush.bf16.msrb.mxu1 %v1347_v24  ;;  %854 = vmatpush.bf16.msrb.mxu0 %v1371_v30  ;;  %v1322_v24 = vld [vmem:[%s1632_s8 + $0x54] sm:$0xf] }
  0x36   : > { %1403 = vmatpush.bf16.msrb.mxu2 %v1371_v30  ;;  %833 = vmatmul.bf16.vlgmr.msra.gmra.mxu3 %v1085_v39  ;;  %v1117_v30 = vor.u32 %v1322_v24, %v1114_v25 }
  0x37   : > { %804 = vmatmul.bf16.vlgmr.msra.gmra.mxu2 %v1081_v33  ;;  %v1327_v33 = vld [vmem:[%s1632_s8 + $0x7c] sm:$0xf] }
  0x38   : > { %v1137_v35 = vor.u32 %v1327_v33, %v1134_v34 }
  0x39   : > { %768 = vmatpush.bf16.msrb.mxu1 %v1346_v37  ;;  %855 = vmatpush.bf16.msrb.mxu0 %v1370_v38 }
  0x3a   : > { %1404 = vmatpush.bf16.msrb.mxu2 %v1370_v38 }
  0x3d   : > { %769 = vmatpush.bf16.msrb.mxu1 %v1345_v40  ;;  %856 = vmatpush.bf16.msrb.mxu0 %v1369_v41 }
  0x3e   : > { %1405 = vmatpush.bf16.msrb.mxu2 %v1369_v41 }
  0x41   : > { %770 = vmatpush.bf16.msrb.mxu1 %v1344_v42  ;;  %857 = vmatpush.bf16.msrb.mxu0 %v1368_v43 }
  0x42   : > { %1406 = vmatpush.bf16.msrb.mxu2 %v1368_v43 }
  0x44   : > { %761 = vmatmul.bf16.gmra.mxu1 %v1133_v52  ;;  %751 = vmatmul.bf16.gmra.mxu0 %v1093_v53 }
  0x45   : > { %771 = vmatpush.bf16.msrb.mxu1 %v1343_v48  ;;  %858 = vmatpush.bf16.msrb.mxu0 %v1367_v51 }
  0x46   : > { %1407 = vmatpush.bf16.msrb.mxu2 %v1367_v51  ;;  %838 = vmatmul.bf16.gmra.mxu3 %v1105_v59 }
  0x47   : > { %809 = vmatmul.bf16.gmra.mxu2 %v1101_v54 }
  0x49   : > { %772 = vmatpush.bf16.msrb.mxu1 %v1342_v57  ;;  %859 = vmatpush.bf16.msrb.mxu0 %v1366_v58 }
  0x4a   : > { %1408 = vmatpush.bf16.msrb.mxu2 %v1366_v58 }
  0x4d   : > { %773 = vmatpush.bf16.msrb.mxu1 %v1341_v60  ;;  %860 = vmatpush.bf16.msrb.mxu0 %v1365_v61  ;;  %v1680_v60 = vld [vmem:[#allocation5] ss:$0 sm:$0xff] }
  0x4e   : > { %1409 = vmatpush.bf16.msrb.mxu2 %v1365_v61 }
  0x51   : > { %774 = vmatpush.bf16.msrb.mxu1 %v1340_v62  ;;  %861 = vmatpush.bf16.msrb.mxu0 %v1364_v63 }
  0x52   : > { %1410 = vmatpush.bf16.msrb.mxu2 %v1364_v63 }
  0x54   : > { %775 = vmatmul.bf16.vlgmr.msrb.gmra.mxu1 %v1077_v6  ;;  %862 = vmatmul.bf16.vlgmr.msrb.gmra.mxu0 %v1089_v7 }
  0x56   : > { %843 = vmatmul.bf16.gmra.mxu3 %v1125_v11 }
  0x57   : > { %814 = vmatmul.bf16.gmra.mxu2 %v1121_v8 }
  0x64   : > { %780 = vmatmul.bf16.gmra.mxu1 %v1097_v18  ;;  %867 = vmatmul.bf16.gmra.mxu0 %v1109_v19 }
  0x66   : > { %848 = vmatmul.bf16.gmra.mxu3 %v1145_v23 }
  0x67   : > { %819 = vmatmul.bf16.gmra.mxu2 %v1141_v20 }
  0x74   : > { %785 = vmatmul.bf16.gmra.mxu1 %v1117_v30  ;;  %872 = vmatmul.bf16.gmra.mxu0 %v1129_v31 }
  0x77   : > { %877 = vmatmul.bf16.vlgmr.msrb.gmra.mxu2 %v1149_v32 }
  0x84   : > { %790 = vmatmul.bf16.gmra.mxu1 %v1137_v35 }
  0xb1   : > { %v757_v36 = vpop.f32.mrf.mxu1  ;;  %v747_v37 = vpop.f32.mrf.mxu0 }
  0xb9   : > { %v1674_v39 = vpop.f32.mrf.mxu1  ;;  %v749_v40 = vpop.f32.mrf.mxu0 }
  0xba   : > { %v805_v38 = vpop.f32.mrf.mxu2  ;;  %v834_v44 = vpop.f32.mrf.mxu3 }
  0xc1   : > { %v1676_v42 = vpop.f32.mrf.mxu1  ;;  %v752_v43 = vpop.f32.mrf.mxu0 }
  0xc2   : > { %v807_v41 = vpop.f32.mrf.mxu2  ;;  %v836_v48 = vpop.f32.mrf.mxu3 }
  0xc9   : > { %v1678_v46 = vpop.f32.mrf.mxu1  ;;  %v754_v47 = vpop.f32.mrf.mxu0 }
  0xca   : > { %v810_v45 = vpop.f32.mrf.mxu2  ;;  %v839_v58 = vpop.f32.mrf.mxu3 }
  0xd1   : > { %v776_v49 = vpop.f32.mrf.mxu1  ;;  %v863_v50 = vpop.f32.mrf.mxu0 }
  0xd2   : > { %v777_v51 = vadd.f32 %v776_v49, %v747_v37  ;;  %v812_v52 = vpop.f32.mrf.mxu2  ;;  %v841_v9 = vpop.f32.mrf.mxu3 }
  0xd4   : > { %v806_v53 = vadd.f32 %v805_v38, %v777_v51 }
  0xd6   : > { %v835_v54 = vadd.f32 %v834_v44, %v806_v53 }
  0xd8   : > { %v864_v59 = vadd.f32 %v863_v50, %v835_v54 }
  0xd9   : > { %v778_v55 = vpop.f32.mrf.mxu1  ;;  %v865_v56 = vpop.f32.mrf.mxu0 }
  0xda   : > { %v779_v57 = vadd.f32 %v778_v55, %v749_v40  ;;  %v815_v62 = vpop.f32.mrf.mxu2  ;;  %v914_v0 = vadd.f32 %v1680_v60, %v864_v59  ;;  %v844_v19 = vpop.f32.mrf.mxu3 }
  0xdc   : > { %v808_v61 = vadd.f32 %v807_v41, %v779_v57  ;;  %v922_v6 = vmax.f32 %v914_v0, 0.0 }
  0xde   : > { %v837_v63 = vadd.f32 %v836_v48, %v808_v61 }
  0xe0   : > { %v866_v1 = vadd.f32 %v865_v56, %v837_v63 }
  0xe1   : > { %v781_v2 = vpop.f32.mrf.mxu1  ;;  %v868_v3 = vpop.f32.mrf.mxu0 }
  0xe2   : > { %v915_v4 = vadd.f32 %v1680_v60, %v866_v1  ;;  %v782_v5 = vadd.f32 %v781_v2, %v752_v43  ;;  %v817_v11 = vpop.f32.mrf.mxu2  ;;  %v846_v32 = vpop.f32.mrf.mxu3 }
  0xe4   : > { %v923_v7 = vmax.f32 %v915_v4, 0.0  ;;  %v811_v8 = vadd.f32 %v810_v45, %v782_v5 }
  0xe6   : > { %v1375_v10 = vpack.c.bf16 %v923_v7, %v922_v6  ;;  %v840_v12 = vadd.f32 %v839_v58, %v811_v8 }
  0xe8   : > { %1376 = vst [vmem:[%s1688_s12] sm:$0xff] %v1375_v10   ;;  %v869_v16 = vadd.f32 %v868_v3, %v840_v12 }
  0xe9   : > { %v783_v13 = vpop.f32.mrf.mxu1  ;;  %v870_v14 = vpop.f32.mrf.mxu0 }
  0xea   : > { %v784_v15 = vadd.f32 %v783_v13, %v754_v47  ;;  %v916_v20 = vadd.f32 %v1680_v60, %v869_v16  ;;  %v820_v22 = vpop.f32.mrf.mxu2  ;;  %v849_v48 = vpop.f32.mrf.mxu3 }
  0xec   : > { %v813_v17 = vadd.f32 %v812_v52, %v784_v15  ;;  %v924_v27 = vmax.f32 %v916_v20, 0.0 }
  0xee   : > { %v842_v18 = vadd.f32 %v841_v9, %v813_v17 }
  0xf0   : > { %v871_v21 = vadd.f32 %v870_v14, %v842_v18 }
  0xf1   : > { %v786_v23 = vpop.f32.mrf.mxu1  ;;  %v873_v26 = vpop.f32.mrf.mxu0 }
  0xf2   : > { %v917_v24 = vadd.f32 %v1680_v60, %v871_v21  ;;  %v787_v25 = vadd.f32 %v786_v23, %v757_v36  ;;  %v822_v35 = vpop.f32.mrf.mxu2  ;;  %v851_v58 = vpop.f32.mrf.mxu3 }
  0xf4   : > { %v925_v28 = vmax.f32 %v917_v24, 0.0  ;;  %v816_v29 = vadd.f32 %v815_v62, %v787_v25 }
  0xf6   : > { %v1380_v30 = vpack.c.bf16 %v925_v28, %v924_v27  ;;  %v845_v31 = vadd.f32 %v844_v19, %v816_v29 }
  0xf8   : > { %1392 = vst [vmem:[%s1688_s12 + $0x8] sm:$0xff] %v1380_v30   ;;  %v874_v37 = vadd.f32 %v873_v26, %v845_v31 }
  0xf9   : > { %v788_v33 = vpop.f32.mrf.mxu1  ;;  %v875_v40 = vpop.f32.mrf.mxu0 }
  0xfa   : > { %v789_v34 = vadd.f32 %v788_v33, %v1674_v39  ;;  %v918_v43 = vadd.f32 %v1680_v60, %v874_v37  ;;  %v878_v52 = vpop.f32.mrf.mxu2 }
  0xfc   : > { %v818_v38 = vadd.f32 %v817_v11, %v789_v34  ;;  %v926_v49 = vmax.f32 %v918_v43, 0.0 }
  0xfe   : > { %v847_v41 = vadd.f32 %v846_v32, %v818_v38 }
 0x100   : > { %v876_v36 = vadd.f32 %v875_v40, %v847_v41 }
 0x101   : > { %v791_v44 = vpop.f32.mrf.mxu1 }
 0x102   : > { %v919_v45 = vadd.f32 %v1680_v60, %v876_v36  ;;  %v792_v47 = vadd.f32 %v791_v44, %v1676_v42  ;;  %v880_v61 = vpop.f32.mrf.mxu2 }
 0x104   : > { %v927_v50 = vmax.f32 %v919_v45, 0.0  ;;  %v821_v51 = vadd.f32 %v820_v22, %v792_v47 }
 0x106   : > { %v1385_v39 = vpack.c.bf16 %v927_v50, %v926_v49  ;;  %v850_v53 = vadd.f32 %v849_v48, %v821_v51 }
 0x108   : > { %1393 = vst [vmem:[%s1688_s12 + $0x10] sm:$0xff] %v1385_v39   ;;  %v879_v56 = vadd.f32 %v878_v52, %v850_v53 }
 0x109   : > { %v793_v54 = vpop.f32.mrf.mxu1 }
 0x10a   : > { %v794_v55 = vadd.f32 %v793_v54, %v1678_v46  ;;  %v920_v62 = vadd.f32 %v1680_v60, %v879_v56 }
 0x10c   : > { %v823_v57 = vadd.f32 %v822_v35, %v794_v55  ;;  %v928_v0 = vmax.f32 %v920_v62, 0.0 }
 0x10e   : > { %v852_v59 = vadd.f32 %v851_v58, %v823_v57 }
 0x110   : > { %v881_v42 = vadd.f32 %v880_v61, %v852_v59 }
 0x112   : > { %v921_v63 = vadd.f32 %v1680_v60, %v881_v42 }
 0x114   : > { %v929_v1 = vmax.f32 %v921_v63, 0.0 }
 0x116   : > { %v1390_v2 = vpack.c.bf16 %v929_v1, %v928_v0 }
 0x118   : > { %1394 = vst [vmem:[%s1688_s12 + $0x18] sm:$0xff] %v1390_v2  }
 0x119 PF: > { %s15_s14 = sadd.s32 1, %s1550_s14   ;;  %s1718_s12 = smov %s1546_s13 }
 0x11a   : > { %p12_p8 = scmp.ge.s32.totalorder %s15_s14, 4   ;;  %s1719_s13 = smov %s1721_s16 }
 0x11c   :  { %14 = sbr.rel (!%p12_p8) target bundleno = 3 (0x3), region = 81 }
 0x121   :  { %974 = vsyncpa [#allocation4], 1 }
 0x122   :  { %976 = vsyncpa [#allocation4 + $0x1], 1 }
 0x123   :  { %977 = vsyncpa [#allocation6], 1 }

// kernel: _lambda_.17
= control target key start
LH: loop header
LB: loop body
LE: loop exit
PB: predicated region body
PF: predicated region fallthrough
CT: control target
= control target key end

     0   :  { %s280_s6 = smov 0   ;;  %s301_s0 = inlined_call_operand.vmem [shape: bf16[2,8,4,128], index: 0, kind: input, shape index: {}]   ;;  %s302_s1 = inlined_call_operand.vmem [shape: bf16[2,4,4,64], index: 1, kind: output, shape index: {}]  }
   0x1 LB: > { %s229_s7 = sadd.s32 4294967295, %s267_s6   ;;  %p233_p0 = scmp.ge.s32.totalorder %s267_s6, 1  ;;  %s267_s6 = sphi %s280_s6, %s11_s6  }
   0x2   : > { %p87_p1 = scmp.lt.s32.totalorder %s267_s6, 3 }
   0x4   : > { %p88_p2 = pnand %p233_p0, %p87_p1 }
   0x5   : > { %p107_p3 = scmp.lt.s32.totalorder (!%p88_p2), %s229_s7, 1  ;;  %s269_s12 = smov (!%p88_p2), 64  }
   0x6   : > { %91 = sbr.rel (%p88_p2) target bundleno = 153 (0x99), region = 24 }
   0xb   : > { %s304_s7 = smov (!%p107_p3, %s229_s7), 1  ;;  %vm169_vm0 = vcmask 517120  }
   0xc   : > { %s240_s8 = sshll.u32 %s304_s7, 4  ;;  %s241_s13 = sshll.u32 %s304_s7, 3 }
   0xd   : > { %s111_s11 = scalar_lea.vmem %s301_s0, %s240_s8  ;;  %s116_s16 = scalar_lea.vmem %s302_s1, %s241_s13 }
   0xe   : > { %v117_v0 = vld [vmem:[%s111_s11] sm:$0x3]  ;;  %v118_v1 = vld [vmem:[%s111_s11 + $0x2] sm:$0x3]  ;;  %v119_v2 = vld [vmem:[%s111_s11 + $0x4] sm:$0x3] }
   0xf   : > { %v120_v3 = vld [vmem:[%s111_s11 + $0x6] sm:$0x3]  ;;  %v125_v4 = vunpack.c.l.bf16 %v117_v0  ;;  %v126_v5 = vunpack.c.l.bf16 %v119_v2  ;;  %v129_v6 = vunpack.c.l.bf16 %v118_v1  ;;  %v121_v7 = vld [vmem:[%s111_s11 + $0x8] sm:$0x3]  ;;  %v122_v8 = vld [vmem:[%s111_s11 + $0xa] sm:$0x3] }
  0x10   : > { %v130_v9 = vunpack.c.l.bf16 %v120_v3  ;;  %v123_v10 = vld [vmem:[%s111_s11 + $0xc] sm:$0x3]  ;;  %v124_v11 = vld [vmem:[%s111_s11 + $0xe] sm:$0x3]  ;;  %v127_v12 = vunpack.c.l.bf16 %v121_v7  ;;  %v131_v13 = vunpack.c.l.bf16 %v122_v8 }
  0x11   : > { %v133_v14 = vmax.f32 %v125_v4, %v129_v6  ;;  %v128_v15 = vunpack.c.l.bf16 %v123_v10  ;;  %v132_v16 = vunpack.c.l.bf16 %v124_v11 }
  0x12   : > { %v134_v17 = vmax.f32 %v126_v5, %v130_v9  ;;  %v135_v18 = vmax.f32 %v127_v12, %v131_v13 }
  0x13   : > { %v136_v19 = vmax.f32 %v128_v15, %v132_v16 }
  0x14   : > { %v251_v20 = vpack.i.bf16 %v134_v17, %v133_v14 }
  0x15   : > { %v256_v21 = vpack.i.bf16 %v136_v19, %v135_v18 }
  0x16   : > { %252 = vrot.lane.b32.xlu0 %v251_v20, %s269_s12 }
  0x1e   : > { %257 = vrot.lane.b32.xlu0 %v256_v21, %s269_s12 }
  0x88   : > { %v253_v22 = vpop.permute.xlu0 %252 }
  0x89   : > { %v255_v23 = vunpack.i.h.bf16 %v253_v22  ;;  %v254_v24 = vunpack.i.l.bf16 %v253_v22 }
  0x8b   : > { %v162_v25 = vmax.f32 %v134_v17, %v255_v23  ;;  %v161_v26 = vmax.f32 %v133_v14, %v254_v24 }
  0x8d   : > { %v166_v27 = vpack.c.bf16 %v162_v25, %v162_v25  ;;  %v165_v28 = vpack.c.bf16 %v161_v26, %v161_v26 }
  0x8f   : > { %171 = vst.msk [vmem:[%s116_s16 + $0x2] sm:$0x3] %vm169_vm0, %v166_v27 }
  0x90   : > { %170 = vst.msk [vmem:[%s116_s16] sm:$0x3] %vm169_vm0, %v165_v28  ;;  %v258_v29 = vpop.permute.xlu0 %257 }
  0x91   : > { %v260_v30 = vunpack.i.h.bf16 %v258_v29  ;;  %v259_v31 = vunpack.i.l.bf16 %v258_v29 }
  0x93   : > { %v164_v32 = vmax.f32 %v136_v19, %v260_v30  ;;  %v163_v33 = vmax.f32 %v135_v18, %v259_v31 }
  0x95   : > { %v168_v34 = vpack.c.bf16 %v164_v32, %v164_v32  ;;  %v167_v35 = vpack.c.bf16 %v163_v33, %v163_v33 }
  0x97   : > { %173 = vst.msk [vmem:[%s116_s16 + $0x6] sm:$0x3] %vm169_vm0, %v168_v34 }
  0x98   : > { %172 = vst.msk [vmem:[%s116_s16 + $0x4] sm:$0x3] %vm169_vm0, %v167_v35 }
  0x99 PF: > { %s11_s6 = sadd.s32 1, %s267_s6  }
  0x9a   : > { %p8_p4 = scmp.ge.s32.totalorder %s11_s6, 4  }
  0x9c   :  { %10 = sbr.rel (!%p8_p4) target bundleno = 1 (0x1), region = 54 }

// kernel: _lambda_.18
= control target key start
LH: loop header
LB: loop body
LE: loop exit
PB: predicated region body
PF: predicated region fallthrough
CT: control target
= control target key end

     0   :  { %8 = vsyncpa [#allocation4], 0  ;;  %s1323_s0 = inlined_call_operand.vmem [shape: bf16[32,640], index: 0, kind: input, shape index: {}]   ;;  %s1324_s1 = inlined_call_operand.hbm [shape: bf16[640,128], index: 1, kind: input, shape index: {}]   ;;  %s1325_s2 = inlined_call_operand.hbm [shape: f32[1,128], index: 2, kind: input, shape index: {}]   ;;  %s1326_s3 = inlined_call_operand.vmem [shape: bf16[32,128], index: 3, kind: output, shape index: {}]  }
   0x1   :  { %9 = vsyncpa [#allocation6], 0  ;;  %s1242_s12 = smov 0   ;;  %s1244_s13 = smov 0  }
   0x2   :  { %s1246_s14 = smov 0  }
   0x3 LB: > { %s832_s15 = sadd.s32 4294967295, %s1216_s14   ;;  %s34_s16 = sadd.s32 1, %s1212_s13  ;;  %s1216_s14 = sphi %s1246_s14, %s15_s14   ;;  %s1212_s13 = sphi %s1244_s13, %s1330_s13   ;;  %s1208_s12 = sphi %s1242_s12, %s1329_s12  }
   0x4   : > { %p36_p0 = scmp.ge.s32.totalorder %s34_s16, 2  ;;  %p834_p1 = scmp.ge.s32.totalorder %s1216_s14, 1 }
   0x5   : > { %p149_p2 = scmp.lt.s32.totalorder %s1216_s14, 3  ;;  %p1267_p4 = scmp.eq.s32.totalorder %s832_s15, 0 }
   0x6   : > { %s1332_s16 = smov (%p36_p0, %s34_s16), 0  ;;  %s164_s21 = sshll.u32 %s1324_s1, 4  ;;  %s165_s21 = int_to_ptr.hbm [resolvable:$true] %s164_s21 }
   0x7   : > { %p1263_p3 = pnand %p834_p1, %p149_p2  ;;  %s1218_s22 = smov [#allocation3]  }
   0x8   : > { %s166_s23 = sshll.u32 %s1218_s22, 4  ;;  %s180_s26 = sshll.u32 %s1325_s2, 4  ;;  %s167_s23 = int_to_ptr.vmem [resolvable:$true] %s166_s23  ;;  %s181_s26 = int_to_ptr.hbm [resolvable:$true] %s180_s26 }
   0x9   : > { %p1086_p5 = pneg %p1263_p3  ;;  %s1219_s27 = smov 64  }
   0xa   : > { %s1220_s28 = smov 4   ;;  %s1221_s29 = smov [#allocation5]  }
   0xb   : > { %p1087_p6 = pnand %p1267_p4, %p1086_p5  ;;  %s182_s30 = sshll.u32 %s1221_s29, 4  ;;  %s183_s30 = int_to_ptr.vmem [resolvable:$true] %s182_s30 }
   0xc   : > { %210 = sbr.rel (%p1263_p3) target bundleno = 227 (0xe3), region = 32 }
   0xd   : > { %1089 = dma.hbm_to_vmem [thread:$0]  (!%p1087_p6), %s165_s21, 5120, %s167_s23, [#allocation4], %s1219_s27, %s1219_s27, %s1220_s28  }
   0xe   : > { %1092 = dma.hbm_to_vmem [thread:$0]  (!%p1087_p6), %s181_s26, 16, %s183_s30, [#allocation6]  }
  0x11   : > { %1199 = dma.done.wait (%p1267_p4), [#allocation4], 5120  }
  0x12   : > { %1201 = vsyncadd (%p1267_p4), [#allocation4], 4294962176 }
  0x13   : > { %1203 = dma.done.wait (%p1267_p4), [#allocation6], 16  }
  0x14   : > { %1205 = vsyncadd (%p1267_p4), [#allocation6], 4294967280  ;;  %v1039_v0 = vld [vmem:[#allocation3 + $0x38] sm:$0xff]  ;;  %v1038_v4 = vld [vmem:[#allocation3 + $0x30] sm:$0xff]  ;;  %s841_s4 = sshll.u32 %s1208_s12, 1 }
  0x15   : > { %v1055_v1 = vld [vmem:[#allocation3 + $0xb8] sm:$0xff]  ;;  %630 = vmatpush.bf16.msra.mxu0 %v1039_v0  ;;  %v1054_v5 = vld [vmem:[#allocation3 + $0xb0] sm:$0xff]  ;;  %v1037_v8 = vld [vmem:[#allocation3 + $0x28] sm:$0xff]  ;;  %p250_p7 = scmp.lt.s32.totalorder %s841_s4, 3 }
  0x16   : > { %v1063_v2 = vld [vmem:[#allocation3 + $0xf8] sm:$0xff]  ;;  %658 = vmatpush.bf16.msra.mxu2 %v1055_v1  ;;  %v1062_v6 = vld [vmem:[#allocation3 + $0xf0] sm:$0xff]  ;;  %v1053_v9 = vld [vmem:[#allocation3 + $0xa8] sm:$0xff] }
  0x17   : > { %v1047_v3 = vld [vmem:[#allocation3 + $0x78] sm:$0xff]  ;;  %672 = vmatpush.bf16.msra.mxu3 %v1063_v2  ;;  %v1046_v7 = vld [vmem:[#allocation3 + $0x70] sm:$0xff]  ;;  %v1061_v10 = vld [vmem:[#allocation3 + $0xe8] sm:$0xff]  ;;  %s1334_s4 = smov (!%p250_p7, %s841_s4), 3 }
  0x18   : > { %644 = vmatpush.bf16.msra.mxu1 %v1047_v3  ;;  %v1045_v11 = vld [vmem:[#allocation3 + $0x68] sm:$0xff]  ;;  %v1036_v12 = vld [vmem:[#allocation3 + $0x20] sm:$0xff]  ;;  %v1035_v16 = vld [vmem:[#allocation3 + $0x18] sm:$0xff]  ;;  %s1077_s5 = smul.u32 20, %s1334_s4  ;;  %s844_s9 = sshll.u32 %s1334_s4, 2 }
  0x19   : > { %631 = vmatpush.bf16.msra.mxu0 %v1038_v4  ;;  %v1052_v13 = vld [vmem:[#allocation3 + $0xa0] sm:$0xff]  ;;  %v1051_v17 = vld [vmem:[#allocation3 + $0x98] sm:$0xff]  ;;  %v1034_v20 = vld [vmem:[#allocation3 + $0x10] sm:$0xff]  ;;  %s268_s12 = scalar_lea.vmem %s1326_s3, %s844_s9 }
  0x1a   : > { %659 = vmatpush.bf16.msra.mxu2 %v1054_v5  ;;  %v1060_v14 = vld [vmem:[#allocation3 + $0xe0] sm:$0xff]  ;;  %v1059_v18 = vld [vmem:[#allocation3 + $0xd8] sm:$0xff]  ;;  %v1050_v21 = vld [vmem:[#allocation3 + $0x90] sm:$0xff]  ;;  %s1298_s8 = scalar_lea.vmem %s1323_s0, %s1077_s5 }
  0x1b   : > { %673 = vmatpush.bf16.msra.mxu3 %v1062_v6  ;;  %v1044_v15 = vld [vmem:[#allocation3 + $0x60] sm:$0xff]  ;;  %v1043_v19 = vld [vmem:[#allocation3 + $0x58] sm:$0xff]  ;;  %v1058_v22 = vld [vmem:[#allocation3 + $0xd0] sm:$0xff] }
  0x1c   : > { %645 = vmatpush.bf16.msra.mxu1 %v1046_v7  ;;  %v1042_v23 = vld [vmem:[#allocation3 + $0x50] sm:$0xff]  ;;  %v1033_v24 = vld [vmem:[#allocation3 + $0x8] sm:$0xff]  ;;  %v1032_v28 = vld [vmem:[#allocation3] sm:$0xff] }
  0x1d   : > { %632 = vmatpush.bf16.msra.mxu0 %v1037_v8  ;;  %v1049_v25 = vld [vmem:[#allocation3 + $0x88] sm:$0xff]  ;;  %v1048_v29 = vld [vmem:[#allocation3 + $0x80] sm:$0xff]  ;;  %v1071_v30 = vld [vmem:[#allocation3 + $0x138] sm:$0xff] }
  0x1e   : > { %660 = vmatpush.bf16.msra.mxu2 %v1053_v9  ;;  %v1057_v26 = vld [vmem:[#allocation3 + $0xc8] sm:$0xff]  ;;  %v1030_v32 = vld [vmem:[%s1298_s8 + $0x18] sm:$0xf0]  ;;  %v847_v33 = vld [vmem:[%s1298_s8] sm:$0xf] }
  0x1f   : > { %674 = vmatpush.bf16.msra.mxu3 %v1061_v10  ;;  %v1041_v27 = vld [vmem:[#allocation3 + $0x48] sm:$0xff]  ;;  %v1029_v34 = vld [vmem:[%s1298_s8 + $0x10] sm:$0xf0]  ;;  %v1056_v35 = vld [vmem:[#allocation3 + $0xc0] sm:$0xff] }
  0x20   : > { %646 = vmatpush.bf16.msra.mxu1 %v1045_v11  ;;  %v855_v31 = vld [vmem:[%s1298_s8 + $0x8] sm:$0xf]  ;;  %v1028_v36 = vld [vmem:[%s1298_s8 + $0xc] sm:$0xf]  ;;  %v857_v37 = vld [vmem:[%s1298_s8 + $0x1c] sm:$0xf0]  ;;  %v848_v42 = vor.u32 %v1029_v34, %v847_v33 }
  0x21   : > { %633 = vmatpush.bf16.msra.mxu0 %v1036_v12  ;;  %v1040_v38 = vld [vmem:[#allocation3 + $0x40] sm:$0xff]  ;;  %v849_v40 = vld [vmem:[%s1298_s8 + $0x14] sm:$0xf0]  ;;  %v856_v41 = vor.u32 %v1030_v32, %v855_v31  ;;  %v860_v43 = vor.u32 %v1028_v36, %v857_v37  ;;  %v1070_v44 = vld [vmem:[#allocation3 + $0x130] sm:$0xff] }
  0x22   : > { %661 = vmatpush.bf16.msra.mxu2 %v1052_v13  ;;  %v1027_v39 = vld [vmem:[%s1298_s8 + $0x4] sm:$0xf]  ;;  %v1069_v46 = vld [vmem:[#allocation3 + $0x128] sm:$0xff]  ;;  %v1067_v48 = vld [vmem:[#allocation3 + $0x118] sm:$0xff] }
  0x23   : > { %675 = vmatpush.bf16.msra.mxu3 %v1060_v14  ;;  %v852_v45 = vor.u32 %v1027_v39, %v849_v40  ;;  %v1068_v47 = vld [vmem:[#allocation3 + $0x120] sm:$0xff]  ;;  %v1066_v49 = vld [vmem:[#allocation3 + $0x110] sm:$0xff]  ;;  %v1065_v50 = vld [vmem:[#allocation3 + $0x108] sm:$0xff] }
  0x24   : > { %647 = vmatpush.bf16.msra.mxu1 %v1044_v15  ;;  %v1064_v51 = vld [vmem:[#allocation3 + $0x100] sm:$0xff]  ;;  %v863_v52 = vld [vmem:[%s1298_s8 + $0x10] sm:$0xf] }
  0x25   : > { %634 = vmatpush.bf16.msra.mxu0 %v1035_v16  ;;  %v1031_v53 = vld [vmem:[%s1298_s8 + $0x20] sm:$0xf0]  ;;  %v1125_v6 = vld [vmem:[#allocation5] ss:$0 sm:$0xff] }
  0x26   : > { %662 = vmatpush.bf16.msra.mxu2 %v1051_v17  ;;  %v864_v54 = vor.u32 %v1031_v53, %v863_v52 }
  0x27   : > { %676 = vmatpush.bf16.msra.mxu3 %v1059_v18 }
  0x28   : > { %648 = vmatpush.bf16.msra.mxu1 %v1043_v19 }
  0x29   : > { %635 = vmatpush.bf16.msra.mxu0 %v1034_v20 }
  0x2a   : > { %663 = vmatpush.bf16.msra.mxu2 %v1050_v21 }
  0x2b   : > { %677 = vmatpush.bf16.msra.mxu3 %v1058_v22 }
  0x2c   : > { %649 = vmatpush.bf16.msra.mxu1 %v1042_v23 }
  0x2d   : > { %636 = vmatpush.bf16.msra.mxu0 %v1033_v24 }
  0x2e   : > { %664 = vmatpush.bf16.msra.mxu2 %v1049_v25 }
  0x2f   : > { %678 = vmatpush.bf16.msra.mxu3 %v1057_v26 }
  0x30   : > { %650 = vmatpush.bf16.msra.mxu1 %v1041_v27 }
  0x31   : > { %637 = vmatpush.bf16.msra.mxu0 %v1032_v28 }
  0x32   : > { %665 = vmatpush.bf16.msra.mxu2 %v1048_v29 }
  0x33   : > { %679 = vmatpush.bf16.msra.mxu3 %v1056_v35 }
  0x34   : > { %651 = vmatpush.bf16.msra.mxu1 %v1040_v38  ;;  %638 = vmatmul.bf16.vlgmr.msra.gmra.mxu0 %v848_v42 }
  0x35   : > { %686 = vmatpush.bf16.msrb.mxu0 %v1071_v30  ;;  %666 = vmatmul.bf16.vlgmr.msra.gmra.mxu2 %v856_v41 }
  0x36   : > { %680 = vmatmul.bf16.vlgmr.msra.gmra.mxu3 %v860_v43 }
  0x37   : > { %652 = vmatmul.bf16.vlgmr.msra.gmra.mxu1 %v852_v45 }
  0x39   : > { %687 = vmatpush.bf16.msrb.mxu0 %v1070_v44 }
  0x3d   : > { %688 = vmatpush.bf16.msrb.mxu0 %v1069_v46 }
  0x41   : > { %689 = vmatpush.bf16.msrb.mxu0 %v1068_v47 }
  0x45   : > { %690 = vmatpush.bf16.msrb.mxu0 %v1067_v48 }
  0x49   : > { %691 = vmatpush.bf16.msrb.mxu0 %v1066_v49 }
  0x4d   : > { %692 = vmatpush.bf16.msrb.mxu0 %v1065_v50 }
  0x51   : > { %693 = vmatpush.bf16.msrb.mxu0 %v1064_v51 }
  0x54   : > { %694 = vmatmul.bf16.vlgmr.msrb.gmra.mxu0 %v864_v54 }
  0xb1   : > { %v639_v55 = vpop.f32.mrf.mxu0 }
  0xb4   : > { %v653_v56 = vpop.f32.mrf.mxu1 }
  0xb5   : > { %v654_v60 = vadd.f32 %v653_v56, %v639_v55 }
  0xb8   : > { %v667_v57 = vpop.f32.mrf.mxu2 }
  0xb9   : > { %v641_v58 = vpop.f32.mrf.mxu0  ;;  %v681_v59 = vpop.f32.mrf.mxu3  ;;  %v668_v62 = vadd.f32 %v667_v57, %v654_v60 }
  0xbb   : > { %v682_v2 = vadd.f32 %v681_v59, %v668_v62 }
  0xbc   : > { %v655_v61 = vpop.f32.mrf.mxu1 }
  0xbd   : > { %v656_v63 = vadd.f32 %v655_v61, %v641_v58 }
  0xc0   : > { %v669_v0 = vpop.f32.mrf.mxu2 }
  0xc1   : > { %v670_v3 = vadd.f32 %v669_v0, %v656_v63  ;;  %v683_v4 = vpop.f32.mrf.mxu3 }
  0xc3   : > { %v684_v7 = vadd.f32 %v683_v4, %v670_v3 }
  0xd1   : > { %v695_v1 = vpop.f32.mrf.mxu0 }
  0xd2   : > { %v696_v5 = vadd.f32 %v695_v1, %v682_v2 }
  0xd4   : > { %v713_v9 = vadd.f32 %v1125_v6, %v696_v5 }
  0xd6   : > { %v715_v12 = vmax.f32 %v713_v9, 0.0 }
  0xd9   : > { %v697_v8 = vpop.f32.mrf.mxu0 }
  0xda   : > { %v698_v10 = vadd.f32 %v697_v8, %v684_v7 }
  0xdc   : > { %v714_v11 = vadd.f32 %v1125_v6, %v698_v10 }
  0xde   : > { %v716_v13 = vmax.f32 %v714_v11, 0.0 }
  0xe0   : > { %v1075_v14 = vpack.c.bf16 %v716_v13, %v715_v12 }
  0xe2   : > { %1076 = vst [vmem:[%s268_s12] sm:$0xff] %v1075_v14  }
  0xe3 PF: > { %s15_s14 = sadd.s32 1, %s1216_s14   ;;  %s1329_s12 = smov %s1212_s13 }
  0xe4   : > { %p12_p8 = scmp.ge.s32.totalorder %s15_s14, 4   ;;  %s1330_s13 = smov %s1332_s16 }
  0xe6   :  { %14 = sbr.rel (!%p12_p8) target bundleno = 3 (0x3), region = 81 }
  0xeb   :  { %749 = vsyncpa [#allocation4], 1 }
  0xec   :  { %751 = vsyncpa [#allocation4 + $0x1], 1 }
  0xed   :  { %752 = vsyncpa [#allocation6], 1 }

// kernel: _lambda_.19
= control target key start
LH: loop header
LB: loop body
LE: loop exit
PB: predicated region body
PF: predicated region fallthrough
CT: control target
= control target key end

     0   :  { %s1366_s0 = inlined_call_operand.vmem [shape: bf16[32,1152], index: 0, kind: input, shape index: {}]   ;;  %s1367_s1 = inlined_call_operand.hbm [shape: bf16[1152,128], index: 1, kind: input, shape index: {}]   ;;  %s1368_s2 = inlined_call_operand.hbm [shape: f32[1,128], index: 2, kind: input, shape index: {}]   ;;  %s1369_s3 = inlined_call_operand.vmem [shape: bf16[32,128], index: 3, kind: output, shape index: {}]  }
   0x1   :  { %1371 = sst [smem:[#allocation11_spill]] %s1366_s0 }
   0x2   :  { %1372 = sst [smem:[#allocation12_spill]] %s1368_s2 }
   0x3   :  { %8 = vsyncpa [#allocation5], 0 }
   0x4   :  { %10 = vsyncpa [#allocation5 + $0x1], 0 }
   0x5   :  { %11 = vsyncpa [#allocation7], 0  ;;  %s1157_s12 = smov 0   ;;  %s1159_s13 = smov 0  }
   0x6   :  { %s1161_s14 = smov 0   ;;  %s1163_s15 = smov 0  }
   0x7   :  { %s1165_s16 = smov 0   ;;  %s1167_s17 = smov 0  }
   0x8   :  { %s1169_s18 = smov 0   ;;  %s1171_s19 = smov 0  }
   0x9   :  { %s1173_s20 = smov 0   ;;  %s1175_s21 = smov 0  }
   0xa LB: > { %s723_s22 = sadd.s32 4294967295, %s1131_s21   ;;  %s29_s23 = sadd.s32 1, %s1123_s19  ;;  %s1131_s21 = sphi %s1175_s21, %s17_s21   ;;  %s1127_s20 = sphi %s1173_s20, %s1390_s20   ;;  %s1123_s19 = sphi %s1171_s19, %s1389_s19   ;;  %s1119_s18 = sphi %s1169_s18, %s1388_s18   ;;  %s1115_s17 = sphi %s1167_s17, %s1387_s17   ;;  %s1111_s16 = sphi %s1165_s16, %s1386_s16   ;;  %s1107_s15 = sphi %s1163_s15, %s1385_s15   ;;  %s1103_s14 = sphi %s1161_s14, %s1384_s14   ;;  %s1099_s13 = sphi %s1159_s13, %s1383_s13   ;;  %s1095_s12 = sphi %s1157_s12, %s1382_s12  }
   0xb   : > { %p30_p0 = scmp.ge.s32.totalorder %s29_s23, 3  ;;  %s36_s24 = sadd.s32 1, %s1127_s20 }
   0xc   : > { %s45_s25 = sadd.s32 1, %s1111_s16  ;;  %p52_p1 = scmp.ne.s32.totalorder %s1111_s16, %s1107_s15 }
   0xd   : > { %s1392_s23 = smov (%p30_p0, %s29_s23), 0  ;;  %s1394_s24 = smov (!%p30_p0, %s36_s24), %s1127_s20 }
   0xe   : > { %s41_s26 = ssub.s32 %s1123_s19, %s1392_s23  ;;  %p53_p2 = scmp.eq.s32.totalorder %s1131_s21, 0 }
   0xf   : > { %p38_p3 = scmp.ge.s32.totalorder %s1394_s24, 2  ;;  %p71_p4 = scmp.eq.s32.totalorder %s41_s26, 0 }
  0x10   : > { %p1219_p5 = por %p53_p2, %p52_p1  ;;  %s73_s28 = sadd.s32 1, %s1103_s14 }
  0x11   : > { %s1396_s24 = smov (%p38_p3, %s1394_s24), 0  ;;  %p80_p6 = scmp.ne.s32.totalorder %s1103_s14, %s1099_s13 }
  0x12   : > { %1374 = sst [smem:[#allocation10_spill]] %s1396_s24  ;;  %s40_s30 = ssub.s32 %s1127_s20, %s1396_s24 }
  0x13   : > { %s1227_s29 = scalar_select %p71_p4, %s1103_s14, %s73_s28  }
  0x14   : > { %s42_s4 = sor.u32 %s41_s26, %s40_s30  ;;  %p86_p7 = scmp.ne.s32.totalorder %s1099_s13, %s1095_s12 }
  0x15   : > { %p43_p8 = scmp.eq.s32.totalorder %s42_s4, 0  ;;  %p1235_p9 = por %p80_p6, %p53_p2 }
  0x16   : > { %p1239_p10 = scmp.eq.s32.totalorder %s723_s22, 0  ;;  %p725_p11 = scmp.ge.s32.totalorder %s1131_s21, 1 }
  0x17   : > { %s1245_s7 = scalar_select %p43_p8, %s1111_s16, %s45_s25  }
  0x18   : > { %p1249_p12 = por %p1239_p10, %p86_p7  ;;  %p151_p13 = scmp.lt.s32.totalorder %s1131_s21, 7 }
  0x19   : > { %s1379_s2 = sld [smem:[#allocation12_spill]]  ;;  %s1133_s22 = smov [#allocation6]  }
  0x1a   : > { %p1254_p0 = pnand %p725_p11, %p151_p13  ;;  %s166_s25 = sshll.u32 %s1133_s22, 4  ;;  %s167_s25 = int_to_ptr.vmem [resolvable:$true] %s166_s25 }
  0x1b   : > { %p727_p3 = scmp.ge.s32.totalorder %s1131_s21, 6 }
  0x1c   : > { %p896_p1 = pneg %p1254_p0 }
  0x1d   : > { %173 = sbr.rel (%p727_p3) target bundleno = 53 (0x35), region = 20 }
  0x1e   : > { %p897_p2 = pnand %p896_p1, %p1239_p10 }
  0x1f   : > { %s164_s12 = sshll.u32 %s1379_s2, 4  ;;  %s165_s12 = int_to_ptr.hbm [resolvable:$true] %s164_s12 }
  0x20   : > { %899 = dma.hbm_to_vmem [thread:$0]  (!%p897_p2), %s165_s12, 16, %s167_s25, [#allocation7]  }
  0x22   : > { %176 = sbr.rel (!%p1219_p5) target bundleno = 47 (0x2f), region = 24  ;;  %s178_s26 = sand.u32 (%p1219_p5), 1, %s1111_s16  }
  0x23   : > { %s182_s28 = smul.u32 (%p1219_p5), 3, %s1123_s19  ;;  %s1380_s0 = sld [smem:[#allocation11_spill]] (%p1219_p5) }
  0x24   : > { %s885_s30 = smul.u32 (%p1219_p5), 24, %s178_s26 }
  0x25   : > { %s886_s4 = smul.u32 (%p1219_p5), 18, %s1127_s20 }
  0x26   : > { %s180_s12 = scalar_lea.vmem (%p1219_p5), [#allocation3], %s885_s30 }
  0x27   : > { %s184_s10 = sadd.s32 %s886_s4, %s182_s28 }
  0x28   : > { %s730_s11 = sshll.u32 %s184_s10, 2 }
  0x29   : > { %s186_s24 = scalar_lea.vmem %s1380_s0, %s730_s11 }
  0x2a   : > { %v201_v0 = vld [vmem:[%s186_s24] sm:$0xff]  ;;  %v731_v2 = vld [vmem:[%s186_s24 + $0x8] sm:$0xf]  ;;  %v733_v3 = vld [vmem:[%s186_s24 + $0x2c] sm:$0xf] }
  0x2b   : > { %v203_v1 = vld [vmem:[%s186_s24 + $0x24] sm:$0xff]  ;;  %202 = vst [vmem:[%s180_s12] sm:$0xff] %v201_v0 }
  0x2c   : > { %204 = vst [vmem:[%s180_s12 + $0xc] sm:$0xff] %v203_v1 }
  0x2d   : > { %732 = vst [vmem:[%s180_s12 + $0x8] sm:$0xf] %v731_v2 }
  0x2e   : > { %734 = vst [vmem:[%s180_s12 + $0x14] sm:$0xf] %v733_v3 }
  0x2f PF: > { %s223_s27 = sand.u32 1, %s1103_s14   ;;  %s852_s25 = smul.u32 192, %s1123_s19 }
  0x30   : > { %s887_s26 = smul.u32 192, %s223_s27  ;;  %s224_s24 = scalar_lea.sflag [#allocation5], %s223_s27 }
  0x31   : > { %s233_s2 = scalar_lea.hbm %s1367_s1, %s852_s25  ;;  %s1134_s22 = smov 64  }
  0x32   : > { %s234_s10 = sshll.u32 %s233_s2, 4  ;;  %s227_s11 = scalar_lea.vmem [#allocation4], %s887_s26  ;;  %s235_s10 = int_to_ptr.hbm [resolvable:$true] %s234_s10 }
  0x33   : > { %s236_s30 = sshll.u32 %s227_s11, 4  ;;  %s1135_s0 = smov 4   ;;  %s237_s30 = int_to_ptr.vmem [resolvable:$true] %s236_s30 }
  0x34   : > { %892 = dma.hbm_to_vmem [thread:$0]  (%p1235_p9), %s235_s10, 3072, %s237_s30, %s224_s24, %s1134_s22, %s1134_s22, %s1135_s0  }
  0x35 PF: > { %248 = sbr.rel (%p1254_p0) target bundleno = 264 (0x108), region = 54  ;;  %s251_s12 = sand.u32 (!%p1254_p0), 1, %s1107_s15  }
  0x36   : > { %s257_s28 = sand.u32 (!%p1254_p0), 1, %s1099_s13   ;;  %s888_s25 = smul.u32 (!%p1254_p0), 24, %s251_s12 }
  0x37   : > { %s889_s4 = smul.u32 (!%p1254_p0), 192, %s257_s28  ;;  %s258_s26 = scalar_lea.sflag (!%p1254_p0), [#allocation5], %s257_s28 }
  0x38   : > { %s1285_s2 = scalar_lea.vmem (!%p1254_p0), [#allocation3], %s888_s25 }
  0x39   : > { %s1287_s11 = scalar_lea.vmem (!%p1254_p0), [#allocation4], %s889_s4 }
  0x3a   : > { %1086 = dma.done.wait (%p1249_p12), %s258_s26, 3072  }
  0x3b   : > { %1088 = vsyncadd (%p1249_p12), %s258_s26, 4294964224 }
  0x3c   : > { %1090 = dma.done.wait (%p1239_p10), [#allocation7], 16  }
  0x3d   : > { %1092 = vsyncadd (%p1239_p10), [#allocation7], 4294967280  ;;  %s738_s0 = sshll.u32 %s1119_s18, 1  ;;  %p740_p5 = scmp.ne.s32.totalorder %s1115_s17, 0 }
  0x3e   : > { %p301_p4 = scmp.lt.s32.totalorder %s738_s0, 3 }
  0x3f   : > { %312 = sbr.rel (%p740_p5) target bundleno = 71 (0x47), region = 70 }
  0x40   : > { %s1398_s0 = smov (!%p301_p4, %s738_s0), 3 }
  0x41   : > { %s739_s15 = sshll.u32 %s1398_s0, 2 }
  0x42   : > { %s1301_s27 = scalar_lea.vmem %s1369_s3, %s739_s15 }
  0x44   : > { %v1136_v4 = vmov 0.0  }
  0x45   : > { %313 = vst [vmem:[#allocation2] sm:$0xff] %v1136_v4 }
  0x46   : > { %314 = vst [vmem:[#allocation2 + $0x8] sm:$0xff] %v1136_v4 }
  0x47 PF: > { %v863_v5 = vld [vmem:[%s1287_s11 + $0x38] sm:$0xff]  ;;  %v862_v8 = vld [vmem:[%s1287_s11 + $0x30] sm:$0xff]  ;;  %v861_v11 = vld [vmem:[%s1287_s11 + $0x28] sm:$0xff]  ;;  %p849_p6 = scmp.ne.s32.totalorder %s1115_s17, 2 }
  0x48   : > { %v871_v6 = vld [vmem:[%s1287_s11 + $0x78] sm:$0xff]  ;;  %529 = vmatpush.bf16.msra.mxu0 %v863_v5  ;;  %v870_v9 = vld [vmem:[%s1287_s11 + $0x70] sm:$0xff]  ;;  %v869_v12 = vld [vmem:[%s1287_s11 + $0x68] sm:$0xff] }
  0x49   : > { %v879_v7 = vld [vmem:[%s1287_s11 + $0xb8] sm:$0xff]  ;;  %543 = vmatpush.bf16.msra.mxu1 %v871_v6  ;;  %v878_v10 = vld [vmem:[%s1287_s11 + $0xb0] sm:$0xff]  ;;  %v877_v13 = vld [vmem:[%s1287_s11 + $0xa8] sm:$0xff] }
  0x4a   : > { %557 = vmatpush.bf16.msra.mxu2 %v879_v7  ;;  %v860_v14 = vld [vmem:[%s1287_s11 + $0x20] sm:$0xff]  ;;  %v859_v17 = vld [vmem:[%s1287_s11 + $0x18] sm:$0xff]  ;;  %v858_v20 = vld [vmem:[%s1287_s11 + $0x10] sm:$0xff] }
  0x4b   : > { %v868_v15 = vld [vmem:[%s1287_s11 + $0x60] sm:$0xff]  ;;  %v867_v18 = vld [vmem:[%s1287_s11 + $0x58] sm:$0xff]  ;;  %v866_v21 = vld [vmem:[%s1287_s11 + $0x50] sm:$0xff] }
  0x4c   : > { %530 = vmatpush.bf16.msra.mxu0 %v862_v8  ;;  %v876_v16 = vld [vmem:[%s1287_s11 + $0xa0] sm:$0xff]  ;;  %v875_v19 = vld [vmem:[%s1287_s11 + $0x98] sm:$0xff]  ;;  %v874_v22 = vld [vmem:[%s1287_s11 + $0x90] sm:$0xff] }
  0x4d   : > { %544 = vmatpush.bf16.msra.mxu1 %v870_v9  ;;  %v857_v23 = vld [vmem:[%s1287_s11 + $0x8] sm:$0xff]  ;;  %v856_v26 = vld [vmem:[%s1287_s11] sm:$0xff]  ;;  %v854_v29 = vld [vmem:[%s1285_s2 + $0x8] sm:$0xf0] }
  0x4e   : > { %558 = vmatpush.bf16.msra.mxu2 %v878_v10  ;;  %v865_v24 = vld [vmem:[%s1287_s11 + $0x48] sm:$0xff]  ;;  %v864_v27 = vld [vmem:[%s1287_s11 + $0x40] sm:$0xff]  ;;  %v751_v33 = vld [vmem:[%s1285_s2 + $0x8] sm:$0xf] }
  0x4f   : > { %v873_v25 = vld [vmem:[%s1287_s11 + $0x88] sm:$0xff]  ;;  %v745_v31 = vld [vmem:[%s1285_s2 + $0xc] sm:$0xf0]  ;;  %v855_v34 = vld [vmem:[%s1285_s2 + $0x10] sm:$0xf0] }
  0x50   : > { %531 = vmatpush.bf16.msra.mxu0 %v861_v11  ;;  %v743_v28 = vld [vmem:[%s1285_s2] sm:$0xf]  ;;  %v853_v30 = vld [vmem:[%s1285_s2 + $0x4] sm:$0xf]  ;;  %v872_v32 = vld [vmem:[%s1287_s11 + $0x80] sm:$0xff]  ;;  %v752_v37 = vor.u32 %v855_v34, %v751_v33 }
  0x51   : > { %545 = vmatpush.bf16.msra.mxu1 %v869_v12  ;;  %v744_v35 = vor.u32 %v854_v29, %v743_v28  ;;  %v748_v36 = vor.u32 %v853_v30, %v745_v31  ;;  %v315_v41 = vld [vmem:[#allocation2] sm:$0xff]  ;;  %v316_v48 = vld [vmem:[#allocation2 + $0x8] sm:$0xff] }
  0x52   : > { %559 = vmatpush.bf16.msra.mxu2 %v877_v13 }
  0x54   : > { %532 = vmatpush.bf16.msra.mxu0 %v860_v14 }
  0x55   : > { %546 = vmatpush.bf16.msra.mxu1 %v868_v15 }
  0x56   : > { %560 = vmatpush.bf16.msra.mxu2 %v876_v16 }
  0x58   : > { %533 = vmatpush.bf16.msra.mxu0 %v859_v17 }
  0x59   : > { %547 = vmatpush.bf16.msra.mxu1 %v867_v18 }
  0x5a   : > { %561 = vmatpush.bf16.msra.mxu2 %v875_v19 }
  0x5c   : > { %534 = vmatpush.bf16.msra.mxu0 %v858_v20 }
  0x5d   : > { %548 = vmatpush.bf16.msra.mxu1 %v866_v21 }
  0x5e   : > { %562 = vmatpush.bf16.msra.mxu2 %v874_v22 }
  0x60   : > { %535 = vmatpush.bf16.msra.mxu0 %v857_v23 }
  0x61   : > { %549 = vmatpush.bf16.msra.mxu1 %v865_v24 }
  0x62   : > { %563 = vmatpush.bf16.msra.mxu2 %v873_v25 }
  0x64   : > { %536 = vmatpush.bf16.msra.mxu0 %v856_v26 }
  0x65   : > { %550 = vmatpush.bf16.msra.mxu1 %v864_v27 }
  0x66   : > { %564 = vmatpush.bf16.msra.mxu2 %v872_v32 }
  0x67   : > { %537 = vmatmul.bf16.vlgmr.msra.gmra.mxu0 %v744_v35 }
  0x68   : > { %551 = vmatmul.bf16.vlgmr.msra.gmra.mxu1 %v748_v36 }
  0x69   : > { %565 = vmatmul.bf16.vlgmr.msra.gmra.mxu2 %v752_v37 }
  0xe4   : > { %v538_v38 = vpop.f32.mrf.mxu0 }
  0xe5   : > { %v552_v39 = vpop.f32.mrf.mxu1 }
  0xe6   : > { %v553_v40 = vadd.f32 %v552_v39, %v538_v38 }
  0xec   : > { %v566_v42 = vpop.f32.mrf.mxu2  ;;  %v540_v45 = vpop.f32.mrf.mxu0 }
  0xed   : > { %v567_v43 = vadd.f32 %v566_v42, %v553_v40  ;;  %v554_v46 = vpop.f32.mrf.mxu1 }
  0xee   : > { %v555_v47 = vadd.f32 %v554_v46, %v540_v45 }
  0xef   : > { %v571_v44 = vadd.f32 %v567_v43, %v315_v41 }
  0xf1   : > { %573 = vst [vmem:[#allocation2] sm:$0xff] %v571_v44 }
  0xf4   : > { %v568_v49 = vpop.f32.mrf.mxu2 }
  0xf5   : > { %v569_v50 = vadd.f32 %v568_v49, %v555_v47  ;;  %578 = sbr.rel (%p849_p6) target bundleno = 264 (0x108), region = 74 }
  0xf7   : > { %v572_v51 = vadd.f32 %v569_v50, %v316_v48 }
  0xf9   : > { %574 = vst [vmem:[#allocation2 + $0x8] sm:$0xff] %v572_v51 }
  0xfa   : > { %v579_v52 = vld [vmem:[#allocation2] sm:$0xff] }
  0xfb   : > { %v986_v54 = vld [vmem:[#allocation6] ss:$0 sm:$0xff] }
  0xfc   : > { %v585_v55 = vadd.f32 %v986_v54, %v579_v52 }
  0xfe   : > { %v587_v57 = vmax.f32 %v585_v55, 0.0 }
 0x100   : > { %v580_v53 = vld [vmem:[#allocation2 + $0x8] sm:$0xff] }
 0x101   : > { %v586_v56 = vadd.f32 %v986_v54, %v580_v53 }
 0x103   : > { %v588_v58 = vmax.f32 %v586_v56, 0.0 }
 0x105   : > { %v883_v59 = vpack.c.bf16 %v588_v58, %v587_v57 }
 0x107   : > { %884 = vst [vmem:[%s1301_s27] sm:$0xff] %v883_v59  }
 0x108 PF: > { %s17_s21 = sadd.s32 1, %s1131_s21   ;;  %s1381_s6 = sld [smem:[#allocation10_spill]] }
 0x109   : > { %p14_p7 = scmp.ge.s32.totalorder %s17_s21, 8   ;;  %s1382_s12 = smov %s1099_s13 }
 0x10a   : > { %s1383_s13 = smov %s1103_s14  ;;  %s1384_s14 = smov %s1227_s29 }
 0x10b   : > { %s1385_s15 = smov %s1111_s16  ;;  %s1386_s16 = smov %s1245_s7 }
 0x10c   : > { %s1387_s17 = smov %s1123_s19  ;;  %s1388_s18 = smov %s1127_s20 }
 0x10d   : > { %s1389_s19 = smov %s1392_s23  ;;  %16 = sbr.rel (!%p14_p7) target bundleno = 10 (0xa), region = 125 }
 0x10e   : > { %s1390_s20 = smov %s1381_s6 }
 0x112   :  { %621 = vsyncpa [#allocation5], 1 }
 0x113   :  { %623 = vsyncpa [#allocation5 + $0x1], 1 }
 0x114   :  { %624 = vsyncpa [#allocation7], 1 }

// kernel: _lambda_.20
= control target key start
LH: loop header
LB: loop body
LE: loop exit
PB: predicated region body
PF: predicated region fallthrough
CT: control target
= control target key end

     0   :  { %s241_s6 = smov 0   ;;  %s258_s0 = inlined_call_operand.vmem [shape: bf16[2,4,2,256], index: 0, kind: input, shape index: {}]   ;;  %s259_s1 = inlined_call_operand.vmem [shape: bf16[2,2,2,128], index: 1, kind: output, shape index: {}]  }
   0x1 LB: > { %s206_s7 = sadd.s32 4294967295, %s229_s6   ;;  %p210_p0 = scmp.ge.s32.totalorder %s229_s6, 1  ;;  %s229_s6 = sphi %s241_s6, %s11_s6  }
   0x2   : > { %p86_p1 = scmp.lt.s32.totalorder %s229_s6, 3 }
   0x4   : > { %p87_p2 = pnand %p210_p0, %p86_p1 }
   0x5   : > { %p104_p3 = scmp.lt.s32.totalorder (!%p87_p2), %s206_s7, 1 }
   0x6   : > { %90 = sbr.rel (%p87_p2) target bundleno = 39 (0x27), region = 24 }
   0xb   : > { %s261_s7 = smov (!%p104_p3, %s206_s7), 1 }
   0xc   : > { %s211_s8 = sshll.u32 %s261_s7, 3  ;;  %s212_s12 = sshll.u32 %s261_s7, 1 }
   0xd   : > { %s107_s11 = scalar_lea.vmem %s258_s0, %s211_s8  ;;  %s111_s15 = scalar_lea.vmem %s259_s1, %s212_s12 }
   0xe   : > { %v112_v0 = vld [vmem:[%s107_s11] sm:$0x3]  ;;  %v113_v1 = vld [vmem:[%s107_s11 + $0x2] sm:$0x3]  ;;  %v114_v2 = vld [vmem:[%s107_s11 + $0x4] sm:$0x3] }
   0xf   : > { %v116_v3 = vunpack.c.l.bf16 %v112_v0  ;;  %v118_v4 = vunpack.c.l.bf16 %v113_v1  ;;  %v115_v5 = vld [vmem:[%s107_s11 + $0x6] sm:$0x3]  ;;  %v117_v6 = vunpack.c.l.bf16 %v114_v2 }
  0x10   : > { %v119_v7 = vunpack.c.l.bf16 %v115_v5 }
  0x11   : > { %v120_v8 = vmax.f32 %v116_v3, %v118_v4 }
  0x12   : > { %v121_v9 = vmax.f32 %v117_v6, %v119_v7 }
  0x13   : > { %124 = vst [vmem:[#allocation1] ss:$4 sm:$0xff] %v120_v8 }
  0x14   : > { %128 = vst [vmem:[#allocation1 + $0x20] ss:$4 sm:$0xff] %v121_v9 }
  0x1a   : > { %v125_v10 = vld.sshfl [vmem:[#allocation1] sm:$0xff pattern:$0x73625140]  ;;  %v126_v11 = vld.sshfl [vmem:[#allocation1 + $0x8] sm:$0xff pattern:$0x73625140] }
  0x1b   : > { %v135_v12 = vpack.c.bf16 %v126_v11, %v125_v10  ;;  %v129_v13 = vld.sshfl [vmem:[#allocation1 + $0x20] sm:$0xff pattern:$0x73625140]  ;;  %v130_v14 = vld.sshfl [vmem:[#allocation1 + $0x28] sm:$0xff pattern:$0x73625140] }
  0x1c   : > { %v136_v15 = vpack.c.bf16 %v130_v14, %v129_v13 }
  0x1d   : > { %v141_v16 = vrot.slane %v135_v12, 4 }
  0x1e   : > { %v142_v17 = vrot.slane %v136_v15, 4 }
  0x1f   : > { %v145_v18 = vunpack.c.l.bf16 %v141_v16 }
  0x20   : > { %v146_v19 = vunpack.c.l.bf16 %v142_v17 }
  0x21   : > { %v147_v20 = vmax.f32 %v125_v10, %v145_v18 }
  0x22   : > { %v148_v21 = vmax.f32 %v129_v13, %v146_v19 }
  0x23   : > { %v149_v22 = vpack.c.bf16 %v147_v20, %v147_v20 }
  0x24   : > { %v150_v23 = vpack.c.bf16 %v148_v21, %v148_v21 }
  0x25   : > { %151 = vst [vmem:[%s111_s15] sm:$0x1] %v149_v22 }
  0x26   : > { %152 = vst [vmem:[%s111_s15 + $0x1] sm:$0x1] %v150_v23 }
  0x27 PF: > { %s11_s6 = sadd.s32 1, %s229_s6  }
  0x28   : > { %p8_p4 = scmp.ge.s32.totalorder %s11_s6, 4  }
  0x2a   :  { %10 = sbr.rel (!%p8_p4) target bundleno = 1 (0x1), region = 55 }

// kernel: _lambda_.21
= control target key start
LH: loop header
LB: loop body
LE: loop exit
PB: predicated region body
PF: predicated region fallthrough
CT: control target
= control target key end

     0   :  { %8 = vsyncpa [#allocation5], 0  ;;  %s1304_s12 = smov 0   ;;  %s1306_s13 = smov 0   ;;  %s1519_s0 = inlined_call_operand.vmem [shape: bf16[16,1152], index: 0, kind: input, shape index: {}]   ;;  %s1520_s1 = inlined_call_operand.vmem [shape: bf16[1152,256], index: 1, kind: input, shape index: {}]   ;;  %s1521_s2 = inlined_call_operand.hbm [shape: f32[1,256], index: 2, kind: input, shape index: {}]   ;;  %s1522_s3 = inlined_call_operand.vmem [shape: bf16[16,256], index: 3, kind: output, shape index: {}]  }
   0x1   :  { %s1308_s14 = smov 0   ;;  %s1310_s15 = smov 0  }
   0x2   :  { %s1312_s16 = smov 0  }
   0x3 LB: > { %s878_s17 = sadd.s32 4294967295, %s1280_s16   ;;  %s26_s18 = sadd.s32 1, %s1276_s15  ;;  %s1280_s16 = sphi %s1312_s16, %s14_s16   ;;  %s1276_s15 = sphi %s1310_s15, %s1529_s15   ;;  %s1272_s14 = sphi %s1308_s14, %s1528_s14   ;;  %s1268_s13 = sphi %s1306_s13, %s1527_s13   ;;  %s1264_s12 = sphi %s1304_s12, %s1526_s12  }
   0x4   : > { %p27_p0 = scmp.ge.s32.totalorder %s26_s18, 3  ;;  %s42_s19 = sadd.s32 1, %s1268_s13 }
   0x5   : > { %p49_p1 = scmp.ne.s32.totalorder %s1268_s13, %s1264_s12  ;;  %p50_p2 = scmp.eq.s32.totalorder %s1280_s16, 0 }
   0x6   : > { %s1531_s18 = smov (%p27_p0, %s26_s18), 0  ;;  %p879_p4 = scmp.ge.s32.totalorder %s1280_s16, 1 }
   0x7   : > { %p1337_p3 = por %p50_p2, %p49_p1  ;;  %s38_s21 = ssub.s32 %s1276_s15, %s1531_s18 }
   0x8   : > { %p148_p5 = scmp.lt.s32.totalorder %s1280_s16, 4  ;;  %p40_p6 = scmp.eq.s32.totalorder %s38_s21, 0 }
   0x9   : > { %p1349_p8 = scmp.eq.s32.totalorder %s878_s17, 0  ;;  %s162_s27 = sshll.u32 %s1521_s2, 4  ;;  %s163_s27 = int_to_ptr.hbm [resolvable:$true] %s162_s27 }
   0xa   : > { %p1345_p7 = pnand %p879_p4, %p148_p5  ;;  %s1282_s28 = smov [#allocation4]  }
   0xb   : > { %s1354_s24 = scalar_select %p40_p6, %s1268_s13, %s42_s19  }
   0xc   : > { %p1160_p9 = pneg %p1345_p7  ;;  %s164_s29 = sshll.u32 %s1282_s28, 4  ;;  %s165_s29 = int_to_ptr.vmem [resolvable:$true] %s164_s29 }
   0xd   : > { %p881_p11 = scmp.ge.s32.totalorder %s1280_s16, 3 }
   0xe   : > { %p1161_p10 = pnand %p1349_p8, %p1160_p9 }
   0xf   : > { %171 = sbr.rel (%p881_p11) target bundleno = 29 (0x1d), region = 20 }
  0x10   : > { %1163 = dma.hbm_to_vmem [thread:$0]  (!%p1161_p10), %s163_s27, 32, %s165_s29, [#allocation5]  }
  0x14   : > { %174 = sbr.rel (!%p1337_p3) target bundleno = 29 (0x1d), region = 24  ;;  %s176_s30 = sand.u32 (%p1337_p3), 1, %s1268_s13  }
  0x15   : > { %s1101_s4 = smul.u32 (%p1337_p3), 12, %s1276_s15 }
  0x16   : > { %s1154_s5 = smul.u32 (%p1337_p3), 24, %s176_s30 }
  0x17   : > { %s184_s8 = scalar_lea.vmem (%p1337_p3), %s1519_s0, %s1101_s4 }
  0x18   : > { %v199_v0 = vld [vmem:[%s184_s8] sm:$0xff] (%p1337_p3)  ;;  %v883_v2 = vld [vmem:[%s184_s8 + $0x8] sm:$0xf] (%p1337_p3)  ;;  %s178_s9 = scalar_lea.vmem (%p1337_p3), [#allocation3], %s1154_s5  ;;  %v885_v3 = vld [vmem:[%s184_s8 + $0x2c] sm:$0xf] (%p1337_p3) }
  0x19   : > { %v201_v1 = vld [vmem:[%s184_s8 + $0x24] sm:$0xff]  ;;  %200 = vst [vmem:[%s178_s9] sm:$0xff] %v199_v0 }
  0x1a   : > { %202 = vst [vmem:[%s178_s9 + $0xc] sm:$0xff] %v201_v1 }
  0x1b   : > { %884 = vst [vmem:[%s178_s9 + $0x8] sm:$0xf] %v883_v2 }
  0x1c   : > { %886 = vst [vmem:[%s178_s9 + $0x14] sm:$0xf] %v885_v3 }
  0x1d PF: > { %238 = sbr.rel (%p1345_p7) target bundleno = 268 (0x10c), region = 54  ;;  %s241_s10 = sand.u32 (!%p1345_p7), 1, %s1264_s12  }
  0x1e   : > { %s1155_s11 = smul.u32 (!%p1345_p7), 24, %s241_s10 }
  0x20   : > { %s1374_s17 = scalar_lea.vmem (!%p1345_p7), [#allocation3], %s1155_s11 }
  0x22   : > { %1259 = dma.done.wait (%p1349_p8), [#allocation5], 32  }
  0x23   : > { %1261 = vsyncadd (%p1349_p8), [#allocation5], 4294967264  ;;  %s286_s19 = smul.u32 48, %s1272_s14  ;;  %p891_p13 = scmp.ne.s32.totalorder %s1272_s14, 0 }
  0x25   : > { %p288_p12 = scmp.lt.s32.totalorder %s286_s19, 143  ;;  %314 = sbr.rel (%p891_p13) target bundleno = 47 (0x2f), region = 66 }
  0x27   : > { %s1533_s19 = smov (!%p288_p12, %s286_s19), 143 }
  0x28   : > { %s1102_s20 = sshll.u32 %s1533_s19, 3 }
  0x29   : > { %s1384_s22 = scalar_lea.vmem %s1520_s1, %s1102_s20 }
  0x2a   : > { %v1283_v4 = vmov 0.0  }
  0x2b   : > { %315 = vst [vmem:[#allocation2 + $0x10] sm:$0xff] %v1283_v4 }
  0x2c   : > { %316 = vst [vmem:[#allocation2] sm:$0xff] %v1283_v4 }
  0x2d   : > { %317 = vst [vmem:[#allocation2 + $0x18] sm:$0xff] %v1283_v4 }
  0x2e   : > { %318 = vst [vmem:[#allocation2 + $0x8] sm:$0xff] %v1283_v4 }
  0x2f PF: > { %v962_v5 = vld [vmem:[%s1384_s22 + $0x70] sm:$0xf]  ;;  %v1121_v6 = vld [vmem:[%s1384_s22 + $0x74] sm:$0xf0]  ;;  %v954_v14 = vld [vmem:[%s1384_s22 + $0x60] sm:$0xf] }
  0x30   : > { %v1026_v7 = vld [vmem:[%s1384_s22 + $0xf0] sm:$0xf]  ;;  %v963_v8 = vor.u32 %v1121_v6, %v962_v5  ;;  %v1137_v9 = vld [vmem:[%s1384_s22 + $0xf4] sm:$0xf0]  ;;  %v1119_v15 = vld [vmem:[%s1384_s22 + $0x64] sm:$0xf0] }
  0x31   : > { %v1090_v10 = vld [vmem:[%s1384_s22 + $0x170] sm:$0xf]  ;;  %v1153_v11 = vld [vmem:[%s1384_s22 + $0x174] sm:$0xf0]  ;;  %v1027_v12 = vor.u32 %v1137_v9, %v1026_v7  ;;  %v1018_v16 = vld [vmem:[%s1384_s22 + $0xe0] sm:$0xf]  ;;  %v955_v17 = vor.u32 %v1119_v15, %v954_v14 }
  0x32   : > { %v1091_v13 = vor.u32 %v1153_v11, %v1090_v10  ;;  %631 = vmatpush.bf16.msra.mxu0 %v963_v8  ;;  %v1135_v18 = vld [vmem:[%s1384_s22 + $0xe4] sm:$0xf0]  ;;  %v1082_v19 = vld [vmem:[%s1384_s22 + $0x160] sm:$0xf]  ;;  %v946_v23 = vld [vmem:[%s1384_s22 + $0x50] sm:$0xf] }
  0x33   : > { %v1151_v20 = vld [vmem:[%s1384_s22 + $0x164] sm:$0xf0]  ;;  %645 = vmatpush.bf16.msra.mxu1 %v1027_v12  ;;  %v1019_v21 = vor.u32 %v1135_v18, %v1018_v16  ;;  %v1117_v24 = vld [vmem:[%s1384_s22 + $0x54] sm:$0xf0]  ;;  %v1010_v25 = vld [vmem:[%s1384_s22 + $0xd0] sm:$0xf] }
  0x34   : > { %659 = vmatpush.bf16.msra.mxu2 %v1091_v13  ;;  %v1083_v22 = vor.u32 %v1151_v20, %v1082_v19  ;;  %v1133_v26 = vld [vmem:[%s1384_s22 + $0xd4] sm:$0xf0]  ;;  %v1074_v27 = vld [vmem:[%s1384_s22 + $0x150] sm:$0xf]  ;;  %v947_v29 = vor.u32 %v1117_v24, %v946_v23  ;;  %v938_v30 = vld [vmem:[%s1384_s22 + $0x40] sm:$0xf] }
  0x35   : > { %v1149_v28 = vld [vmem:[%s1384_s22 + $0x154] sm:$0xf0]  ;;  %v1115_v31 = vld [vmem:[%s1384_s22 + $0x44] sm:$0xf0]  ;;  %v1011_v32 = vor.u32 %v1133_v26, %v1010_v25  ;;  %v1002_v34 = vld [vmem:[%s1384_s22 + $0xc0] sm:$0xf] }
  0x36   : > { %632 = vmatpush.bf16.msra.mxu0 %v955_v17  ;;  %v1075_v33 = vor.u32 %v1149_v28, %v1074_v27  ;;  %v1120_v35 = vld [vmem:[%s1384_s22 + $0x74] sm:$0xf]  ;;  %v964_v36 = vld [vmem:[%s1384_s22 + $0x78] sm:$0xf0]  ;;  %v1131_v37 = vld [vmem:[%s1384_s22 + $0xc4] sm:$0xf0]  ;;  %v939_v42 = vor.u32 %v1115_v31, %v938_v30 }
  0x37   : > { %646 = vmatpush.bf16.msra.mxu1 %v1019_v21  ;;  %v1066_v38 = vld [vmem:[%s1384_s22 + $0x140] sm:$0xf]  ;;  %v1147_v39 = vld [vmem:[%s1384_s22 + $0x144] sm:$0xf0]  ;;  %v967_v40 = vor.u32 %v1120_v35, %v964_v36  ;;  %v1118_v41 = vld [vmem:[%s1384_s22 + $0x64] sm:$0xf]  ;;  %v1003_v46 = vor.u32 %v1131_v37, %v1002_v34 }
  0x38   : > { %660 = vmatpush.bf16.msra.mxu2 %v1083_v22  ;;  %v930_v43 = vld [vmem:[%s1384_s22 + $0x30] sm:$0xf]  ;;  %v1113_v44 = vld [vmem:[%s1384_s22 + $0x34] sm:$0xf0]  ;;  %v956_v45 = vld [vmem:[%s1384_s22 + $0x68] sm:$0xf0]  ;;  %v1067_v47 = vor.u32 %v1147_v39, %v1066_v38 }
  0x39   : > { %673 = vmatpush.bf16.msra.mxu3 %v967_v40  ;;  %v994_v48 = vld [vmem:[%s1384_s22 + $0xb0] sm:$0xf]  ;;  %v1129_v49 = vld [vmem:[%s1384_s22 + $0xb4] sm:$0xf0]  ;;  %v959_v51 = vor.u32 %v1118_v41, %v956_v45  ;;  %v1116_v53 = vld [vmem:[%s1384_s22 + $0x54] sm:$0xf]  ;;  %v931_v55 = vor.u32 %v1113_v44, %v930_v43 }
  0x3a   : > { %633 = vmatpush.bf16.msra.mxu0 %v947_v29  ;;  %v1058_v50 = vld [vmem:[%s1384_s22 + $0x130] sm:$0xf]  ;;  %v1145_v52 = vld [vmem:[%s1384_s22 + $0x134] sm:$0xf0]  ;;  %v948_v54 = vld [vmem:[%s1384_s22 + $0x58] sm:$0xf0]  ;;  %v995_v59 = vor.u32 %v1129_v49, %v994_v48 }
  0x3b   : > { %647 = vmatpush.bf16.msra.mxu1 %v1011_v32  ;;  %v922_v56 = vld [vmem:[%s1384_s22 + $0x20] sm:$0xf]  ;;  %v1111_v57 = vld [vmem:[%s1384_s22 + $0x24] sm:$0xf0]  ;;  %v951_v58 = vor.u32 %v1116_v53, %v948_v54  ;;  %v1059_v60 = vor.u32 %v1145_v52, %v1058_v50  ;;  %v1114_v62 = vld [vmem:[%s1384_s22 + $0x44] sm:$0xf] }
  0x3c   : > { %661 = vmatpush.bf16.msra.mxu2 %v1075_v33  ;;  %v986_v61 = vld [vmem:[%s1384_s22 + $0xa0] sm:$0xf]  ;;  %v940_v63 = vld [vmem:[%s1384_s22 + $0x48] sm:$0xf0]  ;;  %v1127_v0 = vld [vmem:[%s1384_s22 + $0xa4] sm:$0xf0]  ;;  %v923_v3 = vor.u32 %v1111_v57, %v922_v56 }
  0x3d   : > { %674 = vmatpush.bf16.msra.mxu3 %v959_v51  ;;  %v1050_v1 = vld [vmem:[%s1384_s22 + $0x120] sm:$0xf]  ;;  %v1143_v2 = vld [vmem:[%s1384_s22 + $0x124] sm:$0xf0]  ;;  %v914_v4 = vld [vmem:[%s1384_s22 + $0x10] sm:$0xf]  ;;  %v943_v6 = vor.u32 %v1114_v62, %v940_v63  ;;  %v987_v7 = vor.u32 %v1127_v0, %v986_v61 }
  0x3e   : > { %634 = vmatpush.bf16.msra.mxu0 %v939_v42  ;;  %v1109_v5 = vld [vmem:[%s1384_s22 + $0x14] sm:$0xf0]  ;;  %v1051_v8 = vor.u32 %v1143_v2, %v1050_v1  ;;  %v978_v9 = vld [vmem:[%s1384_s22 + $0x90] sm:$0xf]  ;;  %v1112_v10 = vld [vmem:[%s1384_s22 + $0x34] sm:$0xf] }
  0x3f   : > { %648 = vmatpush.bf16.msra.mxu1 %v1003_v46  ;;  %v932_v11 = vld [vmem:[%s1384_s22 + $0x38] sm:$0xf0]  ;;  %v1125_v12 = vld [vmem:[%s1384_s22 + $0x94] sm:$0xf0]  ;;  %v1042_v13 = vld [vmem:[%s1384_s22 + $0x110] sm:$0xf]  ;;  %v915_v15 = vor.u32 %v1109_v5, %v914_v4 }
  0x40   : > { %662 = vmatpush.bf16.msra.mxu2 %v1067_v47  ;;  %v1141_v14 = vld [vmem:[%s1384_s22 + $0x114] sm:$0xf0]  ;;  %v906_v16 = vld [vmem:[%s1384_s22] sm:$0xf]  ;;  %v1107_v17 = vld [vmem:[%s1384_s22 + $0x4] sm:$0xf0]  ;;  %v935_v19 = vor.u32 %v1112_v10, %v932_v11  ;;  %v979_v20 = vor.u32 %v1125_v12, %v978_v9 }
  0x41   : > { %675 = vmatpush.bf16.msra.mxu3 %v951_v58  ;;  %v970_v18 = vld [vmem:[%s1384_s22 + $0x80] sm:$0xf]  ;;  %v1043_v21 = vor.u32 %v1141_v14, %v1042_v13  ;;  %v1123_v22 = vld [vmem:[%s1384_s22 + $0x84] sm:$0xf0]  ;;  %v1110_v23 = vld [vmem:[%s1384_s22 + $0x24] sm:$0xf]  ;;  %v907_v31 = vor.u32 %v1107_v17, %v906_v16 }
  0x42   : > { %635 = vmatpush.bf16.msra.mxu0 %v931_v55  ;;  %v924_v24 = vld [vmem:[%s1384_s22 + $0x28] sm:$0xf0]  ;;  %v1034_v25 = vld [vmem:[%s1384_s22 + $0x100] sm:$0xf]  ;;  %v1139_v26 = vld [vmem:[%s1384_s22 + $0x104] sm:$0xf0]  ;;  %v971_v36 = vor.u32 %v1123_v22, %v970_v18 }
  0x43   : > { %649 = vmatpush.bf16.msra.mxu1 %v995_v59  ;;  %v1136_v27 = vld [vmem:[%s1384_s22 + $0xf4] sm:$0xf]  ;;  %v1028_v28 = vld [vmem:[%s1384_s22 + $0xf8] sm:$0xf0]  ;;  %v902_v32 = vld [vmem:[%s1374_s17 + $0x8] sm:$0xf]  ;;  %v927_v33 = vor.u32 %v1110_v23, %v924_v24  ;;  %v1035_v37 = vor.u32 %v1139_v26, %v1034_v25 }
  0x44   : > { %663 = vmatpush.bf16.msra.mxu2 %v1059_v60  ;;  %v1152_v29 = vld [vmem:[%s1384_s22 + $0x174] sm:$0xf]  ;;  %v1092_v30 = vld [vmem:[%s1384_s22 + $0x178] sm:$0xf0]  ;;  %v894_v34 = vld [vmem:[%s1374_s17] sm:$0xf]  ;;  %v1031_v41 = vor.u32 %v1136_v27, %v1028_v28 }
  0x45   : > { %676 = vmatpush.bf16.msra.mxu3 %v943_v6  ;;  %v1104_v35 = vld [vmem:[%s1374_s17 + $0x8] sm:$0xf0]  ;;  %v1105_v38 = vld [vmem:[%s1374_s17 + $0x10] sm:$0xf0]  ;;  %v1103_v39 = vld [vmem:[%s1374_s17 + $0x4] sm:$0xf]  ;;  %v1095_v42 = vor.u32 %v1152_v29, %v1092_v30 }
  0x46   : > { %636 = vmatpush.bf16.msra.mxu0 %v923_v3  ;;  %v896_v40 = vld [vmem:[%s1374_s17 + $0xc] sm:$0xf0]  ;;  %v1134_v43 = vld [vmem:[%s1384_s22 + $0xe4] sm:$0xf]  ;;  %v1108_v44 = vld [vmem:[%s1384_s22 + $0x14] sm:$0xf]  ;;  %v895_v49 = vor.u32 %v1104_v35, %v894_v34  ;;  %v1463_v50 = vor.u32 %v1105_v38, %v902_v32 }
  0x47   : > { %650 = vmatpush.bf16.msra.mxu1 %v987_v7  ;;  %v916_v45 = vld [vmem:[%s1384_s22 + $0x18] sm:$0xf0]  ;;  %v1020_v46 = vld [vmem:[%s1384_s22 + $0xe8] sm:$0xf0]  ;;  %v1150_v47 = vld [vmem:[%s1384_s22 + $0x164] sm:$0xf]  ;;  %v1465_v51 = vor.u32 %v1103_v39, %v896_v40 }
  0x48   : > { %664 = vmatpush.bf16.msra.mxu2 %v1051_v8  ;;  %v1084_v48 = vld [vmem:[%s1384_s22 + $0x168] sm:$0xf0]  ;;  %v919_v52 = vor.u32 %v1108_v44, %v916_v45  ;;  %v1023_v53 = vor.u32 %v1134_v43, %v1020_v46  ;;  %v1132_v55 = vld [vmem:[%s1384_s22 + $0xd4] sm:$0xf]  ;;  %v1106_v56 = vld [vmem:[%s1384_s22 + $0x4] sm:$0xf] }
  0x49   : > { %677 = vmatpush.bf16.msra.mxu3 %v935_v19  ;;  %v1087_v54 = vor.u32 %v1150_v47, %v1084_v48  ;;  %v908_v57 = vld [vmem:[%s1384_s22 + $0x8] sm:$0xf0]  ;;  %v1012_v58 = vld [vmem:[%s1384_s22 + $0xd8] sm:$0xf0]  ;;  %v1148_v59 = vld [vmem:[%s1384_s22 + $0x154] sm:$0xf] }
  0x4a   : > { %637 = vmatpush.bf16.msra.mxu0 %v915_v15  ;;  %v1076_v60 = vld [vmem:[%s1384_s22 + $0x158] sm:$0xf0]  ;;  %v911_v61 = vor.u32 %v1106_v56, %v908_v57  ;;  %v1015_v62 = vor.u32 %v1132_v55, %v1012_v58  ;;  %v1130_v0 = vld [vmem:[%s1384_s22 + $0xc4] sm:$0xf]  ;;  %v1004_v1 = vld [vmem:[%s1384_s22 + $0xc8] sm:$0xf0] }
  0x4b   : > { %651 = vmatpush.bf16.msra.mxu1 %v979_v20  ;;  %v1079_v63 = vor.u32 %v1148_v59, %v1076_v60  ;;  %v1146_v2 = vld [vmem:[%s1384_s22 + $0x144] sm:$0xf]  ;;  %v1068_v3 = vld [vmem:[%s1384_s22 + $0x148] sm:$0xf0]  ;;  %v1007_v4 = vor.u32 %v1130_v0, %v1004_v1  ;;  %v1128_v6 = vld [vmem:[%s1384_s22 + $0xb4] sm:$0xf] }
  0x4c   : > { %665 = vmatpush.bf16.msra.mxu2 %v1043_v21  ;;  %v1071_v5 = vor.u32 %v1146_v2, %v1068_v3  ;;  %v996_v7 = vld [vmem:[%s1384_s22 + $0xb8] sm:$0xf0]  ;;  %v1144_v8 = vld [vmem:[%s1384_s22 + $0x134] sm:$0xf]  ;;  %v1126_v12 = vld [vmem:[%s1384_s22 + $0xa4] sm:$0xf] }
  0x4d   : > { %678 = vmatpush.bf16.msra.mxu3 %v927_v33  ;;  %v1060_v9 = vld [vmem:[%s1384_s22 + $0x138] sm:$0xf0]  ;;  %v999_v10 = vor.u32 %v1128_v6, %v996_v7  ;;  %v988_v13 = vld [vmem:[%s1384_s22 + $0xa8] sm:$0xf0]  ;;  %v1142_v14 = vld [vmem:[%s1384_s22 + $0x124] sm:$0xf] }
  0x4e   : > { %638 = vmatpush.bf16.msra.mxu0 %v907_v31  ;;  %v1063_v11 = vor.u32 %v1144_v8, %v1060_v9  ;;  %v1052_v15 = vld [vmem:[%s1384_s22 + $0x128] sm:$0xf0]  ;;  %v991_v16 = vor.u32 %v1126_v12, %v988_v13  ;;  %v1124_v18 = vld [vmem:[%s1384_s22 + $0x94] sm:$0xf]  ;;  %v980_v19 = vld [vmem:[%s1384_s22 + $0x98] sm:$0xf0] }
  0x4f   : > { %652 = vmatpush.bf16.msra.mxu1 %v971_v36  ;;  %v1055_v17 = vor.u32 %v1142_v14, %v1052_v15  ;;  %v1140_v20 = vld [vmem:[%s1384_s22 + $0x114] sm:$0xf]  ;;  %v1044_v21 = vld [vmem:[%s1384_s22 + $0x118] sm:$0xf0]  ;;  %v983_v22 = vor.u32 %v1124_v18, %v980_v19  ;;  %v1122_v24 = vld [vmem:[%s1384_s22 + $0x84] sm:$0xf] }
  0x50   : > { %666 = vmatpush.bf16.msra.mxu2 %v1035_v37  ;;  %v1047_v23 = vor.u32 %v1140_v20, %v1044_v21  ;;  %v972_v25 = vld [vmem:[%s1384_s22 + $0x88] sm:$0xf0]  ;;  %v1138_v26 = vld [vmem:[%s1384_s22 + $0x104] sm:$0xf]  ;;  %v319_v33 = vld [vmem:[#allocation2 + $0x10] sm:$0xff]  ;;  %p1096_p0 = scmp.ne.s32.totalorder %s1272_s14, 2 }
  0x51   : > { %639 = vmatmul.bf16.vlgmr.msra.gmra.mxu0 %v895_v49  ;;  %679 = vmatpush.bf16.msra.mxu3 %v919_v52  ;;  %v1036_v27 = vld [vmem:[%s1384_s22 + $0x108] sm:$0xf0]  ;;  %v975_v28 = vor.u32 %v1122_v24, %v972_v25  ;;  %v321_v40 = vld [vmem:[#allocation2 + $0x18] sm:$0xff]  ;;  %v320_v48 = vld [vmem:[#allocation2] sm:$0xff] }
  0x52   : > { %687 = vmatpush.bf16.msrb.mxu0 %v1031_v41  ;;  %653 = vmatmul.bf16.vlgmr.msra.gmra.mxu1 %v1465_v51  ;;  %v1039_v29 = vor.u32 %v1138_v26, %v1036_v27 }
  0x53   : > { %701 = vmatpush.bf16.msrb.mxu1 %v1095_v42  ;;  %667 = vmatmul.bf16.vlgmr.msra.gmra.mxu2 %v1463_v50 }
  0x55   : > { %680 = vmatpush.bf16.msra.mxu3 %v911_v61 }
  0x56   : > { %688 = vmatpush.bf16.msrb.mxu0 %v1023_v53 }
  0x57   : > { %702 = vmatpush.bf16.msrb.mxu1 %v1087_v54  ;;  %v322_v54 = vld [vmem:[#allocation2 + $0x8] sm:$0xff] }
  0x58   : > { %681 = vmatmul.bf16.vlgmr.msra.gmra.mxu3 %v895_v49 }
  0x5a   : > { %689 = vmatpush.bf16.msrb.mxu0 %v1015_v62 }
  0x5b   : > { %703 = vmatpush.bf16.msrb.mxu1 %v1079_v63 }
  0x5e   : > { %690 = vmatpush.bf16.msrb.mxu0 %v1007_v4 }
  0x5f   : > { %704 = vmatpush.bf16.msrb.mxu1 %v1071_v5 }
  0x62   : > { %691 = vmatpush.bf16.msrb.mxu0 %v999_v10 }
  0x63   : > { %705 = vmatpush.bf16.msrb.mxu1 %v1063_v11 }
  0x66   : > { %692 = vmatpush.bf16.msrb.mxu0 %v991_v16 }
  0x67   : > { %706 = vmatpush.bf16.msrb.mxu1 %v1055_v17 }
  0x6a   : > { %693 = vmatpush.bf16.msrb.mxu0 %v983_v22 }
  0x6b   : > { %707 = vmatpush.bf16.msrb.mxu1 %v1047_v23 }
  0x6e   : > { %694 = vmatpush.bf16.msrb.mxu0 %v975_v28 }
  0x6f   : > { %708 = vmatpush.bf16.msrb.mxu1 %v1039_v29 }
  0x71   : > { %695 = vmatmul.bf16.vlgmr.msrb.gmra.mxu0 %v1465_v51 }
  0x72   : > { %709 = vmatmul.bf16.vlgmr.msrb.gmra.mxu1 %v1463_v50 }
  0xce   : > { %v640_v30 = vpop.f32.mrf.mxu0 }
  0xcf   : > { %v654_v31 = vpop.f32.mrf.mxu1 }
  0xd0   : > { %v655_v32 = vadd.f32 %v654_v31, %v640_v30 }
  0xd6   : > { %v668_v34 = vpop.f32.mrf.mxu2  ;;  %v642_v36 = vpop.f32.mrf.mxu0 }
  0xd7   : > { %v669_v35 = vadd.f32 %v668_v34, %v655_v32  ;;  %v656_v37 = vpop.f32.mrf.mxu1 }
  0xd8   : > { %v657_v39 = vadd.f32 %v656_v37, %v642_v36 }
  0xd9   : > { %v715_v38 = vadd.f32 %v669_v35, %v319_v33 }
  0xdb   : > { %719 = vst [vmem:[#allocation2 + $0x10] sm:$0xff] %v715_v38  ;;  %v682_v44 = vpop.f32.mrf.mxu3 }
  0xde   : > { %v670_v41 = vpop.f32.mrf.mxu2 }
  0xdf   : > { %v671_v42 = vadd.f32 %v670_v41, %v657_v39 }
  0xe1   : > { %v717_v43 = vadd.f32 %v671_v42, %v321_v40 }
  0xe3   : > { %721 = vst [vmem:[#allocation2 + $0x18] sm:$0xff] %v717_v43  ;;  %v684_v51 = vpop.f32.mrf.mxu3 }
  0xee   : > { %v696_v45 = vpop.f32.mrf.mxu0 }
  0xef   : > { %v710_v46 = vpop.f32.mrf.mxu1  ;;  %v697_v47 = vadd.f32 %v696_v45, %v682_v44 }
  0xf1   : > { %v711_v49 = vadd.f32 %v710_v46, %v697_v47 }
  0xf3   : > { %v716_v50 = vadd.f32 %v711_v49, %v320_v48 }
  0xf5   : > { %720 = vst [vmem:[#allocation2] sm:$0xff] %v716_v50 }
  0xf6   : > { %v698_v52 = vpop.f32.mrf.mxu0 }
  0xf7   : > { %v699_v53 = vadd.f32 %v698_v52, %v684_v51  ;;  %v712_v55 = vpop.f32.mrf.mxu1 }
  0xf9   : > { %v713_v56 = vadd.f32 %v712_v55, %v699_v53  ;;  %726 = sbr.rel (%p1096_p0) target bundleno = 268 (0x10c), region = 70 }
  0xfb   : > { %v718_v57 = vadd.f32 %v713_v56, %v322_v54 }
  0xfd   : > { %722 = vst [vmem:[#allocation2 + $0x8] sm:$0xff] %v718_v57 }
  0xfe   : > { %v727_v58 = vld [vmem:[#allocation2 + $0x10] sm:$0xff]  ;;  %v728_v59 = vld [vmem:[#allocation2] sm:$0xff]  ;;  %v729_v63 = vld [vmem:[#allocation2 + $0x18] sm:$0xff] }
  0xff   : > { %v731_v60 = vld [vmem:[#allocation4] sm:$0x3] }
 0x100   : > { %v733_v61 = vperm.slane %v731_v60, 0  ;;  %v734_v62 = vperm.slane %v731_v60, 1 }
 0x102   : > { %v737_v1 = vadd.f32 %v733_v61, %v727_v58  ;;  %v738_v2 = vadd.f32 %v734_v62, %v728_v59  ;;  %v739_v3 = vadd.f32 %v733_v61, %v729_v63 }
 0x104   : > { %v730_v0 = vld [vmem:[#allocation2 + $0x8] sm:$0xff]  ;;  %v741_v5 = vmax.f32 %v737_v1, 0.0  ;;  %v742_v6 = vmax.f32 %v738_v2, 0.0  ;;  %v743_v7 = vmax.f32 %v739_v3, 0.0 }
 0x105   : > { %v740_v4 = vadd.f32 %v734_v62, %v730_v0 }
 0x106   : > { %v745_v9 = vpack.c.bf16 %v742_v6, %v741_v5 }
 0x107   : > { %v744_v8 = vmax.f32 %v740_v4, 0.0 }
 0x108   : > { %747 = vst [vmem:[%s1522_s3] sm:$0xff] %v745_v9 }
 0x109   : > { %v746_v10 = vpack.c.bf16 %v744_v8, %v743_v7 }
 0x10b   : > { %748 = vst [vmem:[%s1522_s3 + $0x8] sm:$0xff] %v746_v10 }
 0x10c PF: > { %s14_s16 = sadd.s32 1, %s1280_s16   ;;  %s1526_s12 = smov %s1268_s13 }
 0x10d   : > { %p11_p1 = scmp.ge.s32.totalorder %s14_s16, 5   ;;  %s1527_s13 = smov %s1354_s24 }
 0x10e   : > { %s1528_s14 = smov %s1276_s15  ;;  %s1529_s15 = smov %s1531_s18 }
 0x10f   :  { %13 = sbr.rel (!%p11_p1) target bundleno = 3 (0x3), region = 116 }
 0x114   :  { %782 = vsyncpa [#allocation5], 1 }
 0x115   :  { %784 = vsyncpa [#allocation5 + $0x1], 1 }

// kernel: _lambda_.24
= control target key start
LH: loop header
LB: loop body
LE: loop exit
PB: predicated region body
PF: predicated region fallthrough
CT: control target
= control target key end

     0   :  { %s244_s6 = smov 0   ;;  %s263_s0 = inlined_call_operand.vmem [shape: bf16[2,2,1,512], index: 0, kind: input, shape index: {}]   ;;  %s264_s1 = inlined_call_operand.vmem [shape: bf16[2,1,1,256], index: 1, kind: output, shape index: {}]  }
   0x1 LB: > { %s205_s7 = sadd.s32 4294967295, %s232_s6   ;;  %p209_p0 = scmp.ge.s32.totalorder %s232_s6, 1  ;;  %s232_s6 = sphi %s244_s6, %s11_s6  }
   0x2   : > { %p86_p1 = scmp.lt.s32.totalorder %s232_s6, 3 }
   0x4   : > { %p87_p2 = pnand %p209_p0, %p86_p1 }
   0x5   : > { %p104_p3 = scmp.lt.s32.totalorder (!%p87_p2), %s205_s7, 1 }
   0x6   : > { %90 = sbr.rel (%p87_p2) target bundleno = 30 (0x1e), region = 24 }
   0xb   : > { %s266_s7 = smov (!%p104_p3, %s205_s7), 1  ;;  %vm137_vm0 = vcmask 1040384   ;;  %vm143_vm1 = vsmask.f32 256  ;;  %vm145_vm2 = vcmask 1041409  }
   0xc   : > { %s210_s8 = sshll.u32 %s266_s7, 3  ;;  %vm146_vm3 = vsmask.f32 1280  ;;  %s211_s12 = sshll.u32 %s266_s7, 1  ;;  %vm144_vm4 = vmand %vm137_vm0, %vm143_vm1 }
   0xd   : > { %s107_s11 = scalar_lea.vmem %s263_s0, %s210_s8  ;;  %s111_s15 = scalar_lea.vmem %s264_s1, %s211_s12  ;;  %vm147_vm5 = vmand %vm145_vm2, %vm146_vm3 }
   0xe   : > { %v215_v0 = vld [vmem:[%s107_s11] sm:$0xff]   ;;  %vm148_vm6 = vmor %vm147_vm5, %vm144_vm4 }
   0xf   : > { %v216_v1 = vunpack.c.l.bf16 %v215_v0  ;;  %v217_v2 = vunpack.c.h.bf16 %v215_v0  ;;  %v149_v12 = vld [vmem:[%s111_s15] sm:$0x3] }
  0x11   : > { %v116_v3 = vmax.f32 %v216_v1, %v217_v2 }
  0x13   : > { %v118_v4 = vperm.slane %v116_v3, 0  ;;  %v119_v5 = vperm.slane %v116_v3, 2  ;;  %v120_v6 = vperm.slane %v116_v3, 4  ;;  %v121_v7 = vperm.slane %v116_v3, 6 }
  0x15   : > { %v132_v8 = vmax.f32 %v118_v4, %v120_v6  ;;  %v133_v9 = vmax.f32 %v119_v5, %v121_v7 }
  0x17   : > { %v134_v10 = vpack.c.bf16 %v133_v9, %v132_v8 }
  0x19   : > { %v136_v11 = vrot.slane %v134_v10, 3 }
  0x1b   : > { %v140_v13 = vsel %vm137_vm0, %v134_v10, %v136_v11 }
  0x1c   : > { %v150_v14 = vsel %vm148_vm6, %v140_v13, %v149_v12 }
  0x1d   : > { %151 = vst [vmem:[%s111_s15] sm:$0x3] %v150_v14 }
  0x1e PF: > { %s11_s6 = sadd.s32 1, %s232_s6  }
  0x1f   : > { %p8_p4 = scmp.ge.s32.totalorder %s11_s6, 4  }
  0x21   :  { %10 = sbr.rel (!%p8_p4) target bundleno = 1 (0x1), region = 54 }

// kernel: _lambda_.23
= control target key start
LH: loop header
LB: loop body
LE: loop exit
PB: predicated region body
PF: predicated region fallthrough
CT: control target
= control target key end

     0   :  { %s1251_s12 = smov 0   ;;  %s1253_s13 = smov 0   ;;  %s1441_s0 = inlined_call_operand.vmem [shape: bf16[16,2304], index: 0, kind: input, shape index: {}]   ;;  %s1442_s1 = inlined_call_operand.vmem [shape: bf16[2304,256], index: 1, kind: input, shape index: {}]   ;;  %s1443_s2 = inlined_call_operand.vmem [shape: f32[1,256], index: 2, kind: input, shape index: {}]   ;;  %s1444_s3 = inlined_call_operand.vmem [shape: bf16[16,256], index: 3, kind: output, shape index: {}]  }
   0x1   :  { %s1255_s14 = smov 0   ;;  %s1257_s15 = smov 0  }
   0x2   :  { %s1259_s16 = smov 0  }
   0x3 LB: > { %s25_s17 = sadd.s32 1, %s1224_s15  ;;  %p48_p1 = scmp.ne.s32.totalorder %s1216_s13, %s1212_s12  ;;  %s1228_s16 = sphi %s1259_s16, %s13_s16   ;;  %s1224_s15 = sphi %s1257_s15, %s1448_s15   ;;  %s1220_s14 = sphi %s1255_s14, %s1447_s14   ;;  %s1216_s13 = sphi %s1253_s13, %s1446_s13   ;;  %s1212_s12 = sphi %s1251_s12, %s1445_s12  }
   0x4   : > { %p26_p0 = scmp.ge.s32.totalorder %s25_s17, 6  ;;  %p49_p2 = scmp.eq.s32.totalorder %s1228_s16, 0 }
   0x5   : > { %s41_s19 = sadd.s32 1, %s1216_s13  ;;  %p875_p5 = scmp.ge.s32.totalorder %s1228_s16, 6 }
   0x6   : > { %s1450_s17 = smov (%p26_p0, %s25_s17), 0  ;;  %p50_p3 = por %p49_p2, %p48_p1 }
   0x7   : > { %s37_s18 = ssub.s32 %s1224_s15, %s1450_s17  ;;  %164 = sbr.rel (%p875_p5) target bundleno = 21 (0x15), region = 20 }
   0x8   : > { %p39_p4 = scmp.eq.s32.totalorder %s37_s18, 0 }
   0xa   : > { %s1286_s20 = scalar_select %p39_p4, %s1216_s13, %s41_s19  }
   0xc   : > { %167 = sbr.rel (!%p50_p3) target bundleno = 21 (0x15), region = 24  ;;  %s169_s21 = sand.u32 (%p50_p3), 1, %s1216_s13  }
   0xd   : > { %s1094_s22 = smul.u32 (%p50_p3), 12, %s1224_s15 }
   0xe   : > { %s1147_s23 = smul.u32 (%p50_p3), 24, %s169_s21 }
   0xf   : > { %s177_s26 = scalar_lea.vmem (%p50_p3), %s1441_s0, %s1094_s22 }
  0x10   : > { %v192_v0 = vld [vmem:[%s177_s26] sm:$0xff] (%p50_p3)  ;;  %v194_v1 = vld [vmem:[%s177_s26 + $0x48] sm:$0xff] (%p50_p3)  ;;  %s171_s27 = scalar_lea.vmem (%p50_p3), [#allocation3], %s1147_s23  ;;  %v879_v3 = vld [vmem:[%s177_s26 + $0x50] sm:$0xf] (%p50_p3) }
  0x11   : > { %v877_v2 = vld [vmem:[%s177_s26 + $0x8] sm:$0xf]  ;;  %193 = vst [vmem:[%s171_s27] sm:$0xff] %v192_v0 }
  0x12   : > { %195 = vst [vmem:[%s171_s27 + $0xc] sm:$0xff] %v194_v1 }
  0x13   : > { %878 = vst [vmem:[%s171_s27 + $0x8] sm:$0xf] %v877_v2 }
  0x14   : > { %880 = vst [vmem:[%s171_s27 + $0x14] sm:$0xf] %v879_v3 }
  0x15 PF: > { %p881_p6 = scmp.ge.s32.totalorder %s1228_s16, 1  ;;  %p227_p7 = scmp.lt.s32.totalorder %s1228_s16, 7 }
  0x17   : > { %p228_p8 = pnand %p881_p6, %p227_p7 }
  0x18   : > { %s234_s28 = sand.u32 (!%p228_p8), 1, %s1212_s12   ;;  %s278_s29 = smul.u32 (!%p228_p8), 48, %s1220_s14 }
  0x19   : > { %231 = sbr.rel (%p228_p8) target bundleno = 261 (0x105), region = 54  ;;  %p884_p10 = scmp.ne.s32.totalorder (!%p228_p8), %s1220_s14, 0 }
  0x1a   : > { %s1148_s30 = smul.u32 (!%p228_p8), 24, %s234_s28  ;;  %p280_p9 = scmp.lt.s32.totalorder (!%p228_p8), %s278_s29, 287 }
  0x1c   : > { %s1303_s8 = scalar_lea.vmem (!%p228_p8), [#allocation3], %s1148_s30 }
  0x1e   : > { %s1452_s29 = smov (!%p280_p9, %s278_s29), 287  ;;  %310 = sbr.rel (%p884_p10) target bundleno = 40 (0x28), region = 62 }
  0x1f   : > { %s1095_s4 = sshll.u32 %s1452_s29, 3 }
  0x20   : > { %s1301_s7 = scalar_lea.vmem %s1442_s1, %s1095_s4 }
  0x23   : > { %v1230_v4 = vmov 0.0  }
  0x24   : > { %311 = vst [vmem:[#allocation2 + $0x10] sm:$0xff] %v1230_v4 }
  0x25   : > { %312 = vst [vmem:[#allocation2] sm:$0xff] %v1230_v4 }
  0x26   : > { %313 = vst [vmem:[#allocation2 + $0x18] sm:$0xff] %v1230_v4 }
  0x27   : > { %314 = vst [vmem:[#allocation2 + $0x8] sm:$0xff] %v1230_v4 }
  0x28 PF: > { %v955_v5 = vld [vmem:[%s1301_s7 + $0x70] sm:$0xf]  ;;  %v1114_v6 = vld [vmem:[%s1301_s7 + $0x74] sm:$0xf0]  ;;  %v947_v14 = vld [vmem:[%s1301_s7 + $0x60] sm:$0xf] }
  0x29   : > { %v1019_v7 = vld [vmem:[%s1301_s7 + $0xf0] sm:$0xf]  ;;  %v956_v8 = vor.u32 %v1114_v6, %v955_v5  ;;  %v1130_v9 = vld [vmem:[%s1301_s7 + $0xf4] sm:$0xf0]  ;;  %v1112_v15 = vld [vmem:[%s1301_s7 + $0x64] sm:$0xf0] }
  0x2a   : > { %v1083_v10 = vld [vmem:[%s1301_s7 + $0x170] sm:$0xf]  ;;  %v1146_v11 = vld [vmem:[%s1301_s7 + $0x174] sm:$0xf0]  ;;  %v1020_v12 = vor.u32 %v1130_v9, %v1019_v7  ;;  %v1011_v16 = vld [vmem:[%s1301_s7 + $0xe0] sm:$0xf]  ;;  %v948_v17 = vor.u32 %v1112_v15, %v947_v14 }
  0x2b   : > { %v1084_v13 = vor.u32 %v1146_v11, %v1083_v10  ;;  %627 = vmatpush.bf16.msra.mxu0 %v956_v8  ;;  %v1128_v18 = vld [vmem:[%s1301_s7 + $0xe4] sm:$0xf0]  ;;  %v1075_v19 = vld [vmem:[%s1301_s7 + $0x160] sm:$0xf]  ;;  %v939_v23 = vld [vmem:[%s1301_s7 + $0x50] sm:$0xf] }
  0x2c   : > { %v1144_v20 = vld [vmem:[%s1301_s7 + $0x164] sm:$0xf0]  ;;  %641 = vmatpush.bf16.msra.mxu1 %v1020_v12  ;;  %v1012_v21 = vor.u32 %v1128_v18, %v1011_v16  ;;  %v1110_v24 = vld [vmem:[%s1301_s7 + $0x54] sm:$0xf0]  ;;  %v1003_v25 = vld [vmem:[%s1301_s7 + $0xd0] sm:$0xf] }
  0x2d   : > { %655 = vmatpush.bf16.msra.mxu2 %v1084_v13  ;;  %v1076_v22 = vor.u32 %v1144_v20, %v1075_v19  ;;  %v1126_v26 = vld [vmem:[%s1301_s7 + $0xd4] sm:$0xf0]  ;;  %v1067_v27 = vld [vmem:[%s1301_s7 + $0x150] sm:$0xf]  ;;  %v940_v29 = vor.u32 %v1110_v24, %v939_v23  ;;  %v931_v30 = vld [vmem:[%s1301_s7 + $0x40] sm:$0xf] }
  0x2e   : > { %v1142_v28 = vld [vmem:[%s1301_s7 + $0x154] sm:$0xf0]  ;;  %v1108_v31 = vld [vmem:[%s1301_s7 + $0x44] sm:$0xf0]  ;;  %v1004_v32 = vor.u32 %v1126_v26, %v1003_v25  ;;  %v995_v34 = vld [vmem:[%s1301_s7 + $0xc0] sm:$0xf] }
  0x2f   : > { %628 = vmatpush.bf16.msra.mxu0 %v948_v17  ;;  %v1068_v33 = vor.u32 %v1142_v28, %v1067_v27  ;;  %v1113_v35 = vld [vmem:[%s1301_s7 + $0x74] sm:$0xf]  ;;  %v957_v36 = vld [vmem:[%s1301_s7 + $0x78] sm:$0xf0]  ;;  %v1124_v37 = vld [vmem:[%s1301_s7 + $0xc4] sm:$0xf0]  ;;  %v932_v42 = vor.u32 %v1108_v31, %v931_v30 }
  0x30   : > { %642 = vmatpush.bf16.msra.mxu1 %v1012_v21  ;;  %v1059_v38 = vld [vmem:[%s1301_s7 + $0x140] sm:$0xf]  ;;  %v1140_v39 = vld [vmem:[%s1301_s7 + $0x144] sm:$0xf0]  ;;  %v960_v40 = vor.u32 %v1113_v35, %v957_v36  ;;  %v1111_v41 = vld [vmem:[%s1301_s7 + $0x64] sm:$0xf]  ;;  %v996_v46 = vor.u32 %v1124_v37, %v995_v34 }
  0x31   : > { %656 = vmatpush.bf16.msra.mxu2 %v1076_v22  ;;  %v923_v43 = vld [vmem:[%s1301_s7 + $0x30] sm:$0xf]  ;;  %v1106_v44 = vld [vmem:[%s1301_s7 + $0x34] sm:$0xf0]  ;;  %v949_v45 = vld [vmem:[%s1301_s7 + $0x68] sm:$0xf0]  ;;  %v1060_v47 = vor.u32 %v1140_v39, %v1059_v38 }
  0x32   : > { %669 = vmatpush.bf16.msra.mxu3 %v960_v40  ;;  %v987_v48 = vld [vmem:[%s1301_s7 + $0xb0] sm:$0xf]  ;;  %v1122_v49 = vld [vmem:[%s1301_s7 + $0xb4] sm:$0xf0]  ;;  %v952_v51 = vor.u32 %v1111_v41, %v949_v45  ;;  %v1109_v53 = vld [vmem:[%s1301_s7 + $0x54] sm:$0xf]  ;;  %v924_v55 = vor.u32 %v1106_v44, %v923_v43 }
  0x33   : > { %629 = vmatpush.bf16.msra.mxu0 %v940_v29  ;;  %v1051_v50 = vld [vmem:[%s1301_s7 + $0x130] sm:$0xf]  ;;  %v1138_v52 = vld [vmem:[%s1301_s7 + $0x134] sm:$0xf0]  ;;  %v941_v54 = vld [vmem:[%s1301_s7 + $0x58] sm:$0xf0]  ;;  %v988_v59 = vor.u32 %v1122_v49, %v987_v48 }
  0x34   : > { %643 = vmatpush.bf16.msra.mxu1 %v1004_v32  ;;  %v915_v56 = vld [vmem:[%s1301_s7 + $0x20] sm:$0xf]  ;;  %v1104_v57 = vld [vmem:[%s1301_s7 + $0x24] sm:$0xf0]  ;;  %v944_v58 = vor.u32 %v1109_v53, %v941_v54  ;;  %v1052_v60 = vor.u32 %v1138_v52, %v1051_v50  ;;  %v1107_v62 = vld [vmem:[%s1301_s7 + $0x44] sm:$0xf] }
  0x35   : > { %657 = vmatpush.bf16.msra.mxu2 %v1068_v33  ;;  %v979_v61 = vld [vmem:[%s1301_s7 + $0xa0] sm:$0xf]  ;;  %v933_v63 = vld [vmem:[%s1301_s7 + $0x48] sm:$0xf0]  ;;  %v1120_v0 = vld [vmem:[%s1301_s7 + $0xa4] sm:$0xf0]  ;;  %v916_v3 = vor.u32 %v1104_v57, %v915_v56 }
  0x36   : > { %670 = vmatpush.bf16.msra.mxu3 %v952_v51  ;;  %v1043_v1 = vld [vmem:[%s1301_s7 + $0x120] sm:$0xf]  ;;  %v1136_v2 = vld [vmem:[%s1301_s7 + $0x124] sm:$0xf0]  ;;  %v907_v4 = vld [vmem:[%s1301_s7 + $0x10] sm:$0xf]  ;;  %v936_v6 = vor.u32 %v1107_v62, %v933_v63  ;;  %v980_v7 = vor.u32 %v1120_v0, %v979_v61 }
  0x37   : > { %630 = vmatpush.bf16.msra.mxu0 %v932_v42  ;;  %v1102_v5 = vld [vmem:[%s1301_s7 + $0x14] sm:$0xf0]  ;;  %v1044_v8 = vor.u32 %v1136_v2, %v1043_v1  ;;  %v971_v9 = vld [vmem:[%s1301_s7 + $0x90] sm:$0xf]  ;;  %v1105_v10 = vld [vmem:[%s1301_s7 + $0x34] sm:$0xf] }
  0x38   : > { %644 = vmatpush.bf16.msra.mxu1 %v996_v46  ;;  %v925_v11 = vld [vmem:[%s1301_s7 + $0x38] sm:$0xf0]  ;;  %v1118_v12 = vld [vmem:[%s1301_s7 + $0x94] sm:$0xf0]  ;;  %v1035_v13 = vld [vmem:[%s1301_s7 + $0x110] sm:$0xf]  ;;  %v908_v15 = vor.u32 %v1102_v5, %v907_v4 }
  0x39   : > { %658 = vmatpush.bf16.msra.mxu2 %v1060_v47  ;;  %v1134_v14 = vld [vmem:[%s1301_s7 + $0x114] sm:$0xf0]  ;;  %v899_v16 = vld [vmem:[%s1301_s7] sm:$0xf]  ;;  %v1100_v17 = vld [vmem:[%s1301_s7 + $0x4] sm:$0xf0]  ;;  %v928_v19 = vor.u32 %v1105_v10, %v925_v11  ;;  %v972_v20 = vor.u32 %v1118_v12, %v971_v9 }
  0x3a   : > { %671 = vmatpush.bf16.msra.mxu3 %v944_v58  ;;  %v963_v18 = vld [vmem:[%s1301_s7 + $0x80] sm:$0xf]  ;;  %v1036_v21 = vor.u32 %v1134_v14, %v1035_v13  ;;  %v1116_v22 = vld [vmem:[%s1301_s7 + $0x84] sm:$0xf0]  ;;  %v1103_v23 = vld [vmem:[%s1301_s7 + $0x24] sm:$0xf]  ;;  %v900_v31 = vor.u32 %v1100_v17, %v899_v16 }
  0x3b   : > { %631 = vmatpush.bf16.msra.mxu0 %v924_v55  ;;  %v917_v24 = vld [vmem:[%s1301_s7 + $0x28] sm:$0xf0]  ;;  %v1027_v25 = vld [vmem:[%s1301_s7 + $0x100] sm:$0xf]  ;;  %v1132_v26 = vld [vmem:[%s1301_s7 + $0x104] sm:$0xf0]  ;;  %v964_v36 = vor.u32 %v1116_v22, %v963_v18 }
  0x3c   : > { %645 = vmatpush.bf16.msra.mxu1 %v988_v59  ;;  %v1129_v27 = vld [vmem:[%s1301_s7 + $0xf4] sm:$0xf]  ;;  %v1021_v28 = vld [vmem:[%s1301_s7 + $0xf8] sm:$0xf0]  ;;  %v895_v32 = vld [vmem:[%s1303_s8 + $0x8] sm:$0xf]  ;;  %v920_v33 = vor.u32 %v1103_v23, %v917_v24  ;;  %v1028_v37 = vor.u32 %v1132_v26, %v1027_v25 }
  0x3d   : > { %659 = vmatpush.bf16.msra.mxu2 %v1052_v60  ;;  %v1145_v29 = vld [vmem:[%s1301_s7 + $0x174] sm:$0xf]  ;;  %v1085_v30 = vld [vmem:[%s1301_s7 + $0x178] sm:$0xf0]  ;;  %v887_v34 = vld [vmem:[%s1303_s8] sm:$0xf]  ;;  %v1024_v41 = vor.u32 %v1129_v27, %v1021_v28 }
  0x3e   : > { %672 = vmatpush.bf16.msra.mxu3 %v936_v6  ;;  %v1097_v35 = vld [vmem:[%s1303_s8 + $0x8] sm:$0xf0]  ;;  %v1098_v38 = vld [vmem:[%s1303_s8 + $0x10] sm:$0xf0]  ;;  %v1096_v39 = vld [vmem:[%s1303_s8 + $0x4] sm:$0xf]  ;;  %v1088_v42 = vor.u32 %v1145_v29, %v1085_v30 }
  0x3f   : > { %632 = vmatpush.bf16.msra.mxu0 %v916_v3  ;;  %v889_v40 = vld [vmem:[%s1303_s8 + $0xc] sm:$0xf0]  ;;  %v1127_v43 = vld [vmem:[%s1301_s7 + $0xe4] sm:$0xf]  ;;  %v1101_v44 = vld [vmem:[%s1301_s7 + $0x14] sm:$0xf]  ;;  %v888_v49 = vor.u32 %v1097_v35, %v887_v34  ;;  %v1382_v50 = vor.u32 %v1098_v38, %v895_v32 }
  0x40   : > { %646 = vmatpush.bf16.msra.mxu1 %v980_v7  ;;  %v909_v45 = vld [vmem:[%s1301_s7 + $0x18] sm:$0xf0]  ;;  %v1013_v46 = vld [vmem:[%s1301_s7 + $0xe8] sm:$0xf0]  ;;  %v1143_v47 = vld [vmem:[%s1301_s7 + $0x164] sm:$0xf]  ;;  %v1384_v51 = vor.u32 %v1096_v39, %v889_v40 }
  0x41   : > { %660 = vmatpush.bf16.msra.mxu2 %v1044_v8  ;;  %v1077_v48 = vld [vmem:[%s1301_s7 + $0x168] sm:$0xf0]  ;;  %v912_v52 = vor.u32 %v1101_v44, %v909_v45  ;;  %v1016_v53 = vor.u32 %v1127_v43, %v1013_v46  ;;  %v1125_v55 = vld [vmem:[%s1301_s7 + $0xd4] sm:$0xf]  ;;  %v1099_v56 = vld [vmem:[%s1301_s7 + $0x4] sm:$0xf] }
  0x42   : > { %673 = vmatpush.bf16.msra.mxu3 %v928_v19  ;;  %v1080_v54 = vor.u32 %v1143_v47, %v1077_v48  ;;  %v901_v57 = vld [vmem:[%s1301_s7 + $0x8] sm:$0xf0]  ;;  %v1005_v58 = vld [vmem:[%s1301_s7 + $0xd8] sm:$0xf0]  ;;  %v1141_v59 = vld [vmem:[%s1301_s7 + $0x154] sm:$0xf] }
  0x43   : > { %633 = vmatpush.bf16.msra.mxu0 %v908_v15  ;;  %v1069_v60 = vld [vmem:[%s1301_s7 + $0x158] sm:$0xf0]  ;;  %v904_v61 = vor.u32 %v1099_v56, %v901_v57  ;;  %v1008_v62 = vor.u32 %v1125_v55, %v1005_v58  ;;  %v1123_v0 = vld [vmem:[%s1301_s7 + $0xc4] sm:$0xf]  ;;  %v997_v1 = vld [vmem:[%s1301_s7 + $0xc8] sm:$0xf0] }
  0x44   : > { %647 = vmatpush.bf16.msra.mxu1 %v972_v20  ;;  %v1072_v63 = vor.u32 %v1141_v59, %v1069_v60  ;;  %v1139_v2 = vld [vmem:[%s1301_s7 + $0x144] sm:$0xf]  ;;  %v1061_v3 = vld [vmem:[%s1301_s7 + $0x148] sm:$0xf0]  ;;  %v1000_v4 = vor.u32 %v1123_v0, %v997_v1  ;;  %v1121_v6 = vld [vmem:[%s1301_s7 + $0xb4] sm:$0xf] }
  0x45   : > { %661 = vmatpush.bf16.msra.mxu2 %v1036_v21  ;;  %v1064_v5 = vor.u32 %v1139_v2, %v1061_v3  ;;  %v989_v7 = vld [vmem:[%s1301_s7 + $0xb8] sm:$0xf0]  ;;  %v1137_v8 = vld [vmem:[%s1301_s7 + $0x134] sm:$0xf]  ;;  %v1119_v12 = vld [vmem:[%s1301_s7 + $0xa4] sm:$0xf] }
  0x46   : > { %674 = vmatpush.bf16.msra.mxu3 %v920_v33  ;;  %v1053_v9 = vld [vmem:[%s1301_s7 + $0x138] sm:$0xf0]  ;;  %v992_v10 = vor.u32 %v1121_v6, %v989_v7  ;;  %v981_v13 = vld [vmem:[%s1301_s7 + $0xa8] sm:$0xf0]  ;;  %v1135_v14 = vld [vmem:[%s1301_s7 + $0x124] sm:$0xf] }
  0x47   : > { %634 = vmatpush.bf16.msra.mxu0 %v900_v31  ;;  %v1056_v11 = vor.u32 %v1137_v8, %v1053_v9  ;;  %v1045_v15 = vld [vmem:[%s1301_s7 + $0x128] sm:$0xf0]  ;;  %v984_v16 = vor.u32 %v1119_v12, %v981_v13  ;;  %v1117_v18 = vld [vmem:[%s1301_s7 + $0x94] sm:$0xf]  ;;  %v973_v19 = vld [vmem:[%s1301_s7 + $0x98] sm:$0xf0] }
  0x48   : > { %648 = vmatpush.bf16.msra.mxu1 %v964_v36  ;;  %v1048_v17 = vor.u32 %v1135_v14, %v1045_v15  ;;  %v1133_v20 = vld [vmem:[%s1301_s7 + $0x114] sm:$0xf]  ;;  %v1037_v21 = vld [vmem:[%s1301_s7 + $0x118] sm:$0xf0]  ;;  %v976_v22 = vor.u32 %v1117_v18, %v973_v19  ;;  %v1115_v24 = vld [vmem:[%s1301_s7 + $0x84] sm:$0xf] }
  0x49   : > { %662 = vmatpush.bf16.msra.mxu2 %v1028_v37  ;;  %v1040_v23 = vor.u32 %v1133_v20, %v1037_v21  ;;  %v965_v25 = vld [vmem:[%s1301_s7 + $0x88] sm:$0xf0]  ;;  %v1131_v26 = vld [vmem:[%s1301_s7 + $0x104] sm:$0xf]  ;;  %v315_v33 = vld [vmem:[#allocation2 + $0x10] sm:$0xff]  ;;  %p1089_p11 = scmp.ne.s32.totalorder %s1220_s14, 5 }
  0x4a   : > { %635 = vmatmul.bf16.vlgmr.msra.gmra.mxu0 %v888_v49  ;;  %675 = vmatpush.bf16.msra.mxu3 %v912_v52  ;;  %v1029_v27 = vld [vmem:[%s1301_s7 + $0x108] sm:$0xf0]  ;;  %v968_v28 = vor.u32 %v1115_v24, %v965_v25  ;;  %v317_v40 = vld [vmem:[#allocation2 + $0x18] sm:$0xff]  ;;  %v316_v48 = vld [vmem:[#allocation2] sm:$0xff] }
  0x4b   : > { %683 = vmatpush.bf16.msrb.mxu0 %v1024_v41  ;;  %649 = vmatmul.bf16.vlgmr.msra.gmra.mxu1 %v1384_v51  ;;  %v1032_v29 = vor.u32 %v1131_v26, %v1029_v27 }
  0x4c   : > { %697 = vmatpush.bf16.msrb.mxu1 %v1088_v42  ;;  %663 = vmatmul.bf16.vlgmr.msra.gmra.mxu2 %v1382_v50 }
  0x4e   : > { %676 = vmatpush.bf16.msra.mxu3 %v904_v61 }
  0x4f   : > { %684 = vmatpush.bf16.msrb.mxu0 %v1016_v53 }
  0x50   : > { %698 = vmatpush.bf16.msrb.mxu1 %v1080_v54  ;;  %v318_v54 = vld [vmem:[#allocation2 + $0x8] sm:$0xff] }
  0x51   : > { %677 = vmatmul.bf16.vlgmr.msra.gmra.mxu3 %v888_v49 }
  0x53   : > { %685 = vmatpush.bf16.msrb.mxu0 %v1008_v62 }
  0x54   : > { %699 = vmatpush.bf16.msrb.mxu1 %v1072_v63 }
  0x57   : > { %686 = vmatpush.bf16.msrb.mxu0 %v1000_v4 }
  0x58   : > { %700 = vmatpush.bf16.msrb.mxu1 %v1064_v5 }
  0x5b   : > { %687 = vmatpush.bf16.msrb.mxu0 %v992_v10 }
  0x5c   : > { %701 = vmatpush.bf16.msrb.mxu1 %v1056_v11 }
  0x5f   : > { %688 = vmatpush.bf16.msrb.mxu0 %v984_v16 }
  0x60   : > { %702 = vmatpush.bf16.msrb.mxu1 %v1048_v17 }
  0x63   : > { %689 = vmatpush.bf16.msrb.mxu0 %v976_v22 }
  0x64   : > { %703 = vmatpush.bf16.msrb.mxu1 %v1040_v23 }
  0x67   : > { %690 = vmatpush.bf16.msrb.mxu0 %v968_v28 }
  0x68   : > { %704 = vmatpush.bf16.msrb.mxu1 %v1032_v29 }
  0x6a   : > { %691 = vmatmul.bf16.vlgmr.msrb.gmra.mxu0 %v1384_v51 }
  0x6b   : > { %705 = vmatmul.bf16.vlgmr.msrb.gmra.mxu1 %v1382_v50 }
  0xc7   : > { %v636_v30 = vpop.f32.mrf.mxu0 }
  0xc8   : > { %v650_v31 = vpop.f32.mrf.mxu1 }
  0xc9   : > { %v651_v32 = vadd.f32 %v650_v31, %v636_v30 }
  0xcf   : > { %v664_v34 = vpop.f32.mrf.mxu2  ;;  %v638_v36 = vpop.f32.mrf.mxu0 }
  0xd0   : > { %v665_v35 = vadd.f32 %v664_v34, %v651_v32  ;;  %v652_v37 = vpop.f32.mrf.mxu1 }
  0xd1   : > { %v653_v39 = vadd.f32 %v652_v37, %v638_v36 }
  0xd2   : > { %v711_v38 = vadd.f32 %v665_v35, %v315_v33 }
  0xd4   : > { %715 = vst [vmem:[#allocation2 + $0x10] sm:$0xff] %v711_v38  ;;  %v678_v44 = vpop.f32.mrf.mxu3 }
  0xd7   : > { %v666_v41 = vpop.f32.mrf.mxu2 }
  0xd8   : > { %v667_v42 = vadd.f32 %v666_v41, %v653_v39 }
  0xda   : > { %v713_v43 = vadd.f32 %v667_v42, %v317_v40 }
  0xdc   : > { %717 = vst [vmem:[#allocation2 + $0x18] sm:$0xff] %v713_v43  ;;  %v680_v51 = vpop.f32.mrf.mxu3 }
  0xe7   : > { %v692_v45 = vpop.f32.mrf.mxu0 }
  0xe8   : > { %v706_v46 = vpop.f32.mrf.mxu1  ;;  %v693_v47 = vadd.f32 %v692_v45, %v678_v44 }
  0xea   : > { %v707_v49 = vadd.f32 %v706_v46, %v693_v47 }
  0xec   : > { %v712_v50 = vadd.f32 %v707_v49, %v316_v48 }
  0xee   : > { %716 = vst [vmem:[#allocation2] sm:$0xff] %v712_v50 }
  0xef   : > { %v694_v52 = vpop.f32.mrf.mxu0 }
  0xf0   : > { %v695_v53 = vadd.f32 %v694_v52, %v680_v51  ;;  %v708_v55 = vpop.f32.mrf.mxu1 }
  0xf2   : > { %v709_v56 = vadd.f32 %v708_v55, %v695_v53  ;;  %722 = sbr.rel (%p1089_p11) target bundleno = 261 (0x105), region = 66 }
  0xf4   : > { %v714_v57 = vadd.f32 %v709_v56, %v318_v54 }
  0xf6   : > { %718 = vst [vmem:[#allocation2 + $0x8] sm:$0xff] %v714_v57 }
  0xf7   : > { %v723_v58 = vld [vmem:[#allocation2 + $0x10] sm:$0xff]  ;;  %v724_v59 = vld [vmem:[#allocation2] sm:$0xff]  ;;  %v725_v63 = vld [vmem:[#allocation2 + $0x18] sm:$0xff] }
  0xf8   : > { %v727_v60 = vld [vmem:[%s1443_s2] sm:$0x3] }
  0xf9   : > { %v729_v61 = vperm.slane %v727_v60, 0  ;;  %v730_v62 = vperm.slane %v727_v60, 1 }
  0xfb   : > { %v733_v1 = vadd.f32 %v729_v61, %v723_v58  ;;  %v734_v2 = vadd.f32 %v730_v62, %v724_v59  ;;  %v735_v3 = vadd.f32 %v729_v61, %v725_v63 }
  0xfd   : > { %v726_v0 = vld [vmem:[#allocation2 + $0x8] sm:$0xff]  ;;  %v737_v5 = vmax.f32 %v733_v1, 0.0  ;;  %v738_v6 = vmax.f32 %v734_v2, 0.0  ;;  %v739_v7 = vmax.f32 %v735_v3, 0.0 }
  0xfe   : > { %v736_v4 = vadd.f32 %v730_v62, %v726_v0 }
  0xff   : > { %v741_v9 = vpack.c.bf16 %v738_v6, %v737_v5 }
 0x100   : > { %v740_v8 = vmax.f32 %v736_v4, 0.0 }
 0x101   : > { %743 = vst [vmem:[%s1444_s3] sm:$0xff] %v741_v9 }
 0x102   : > { %v742_v10 = vpack.c.bf16 %v740_v8, %v739_v7 }
 0x104   : > { %744 = vst [vmem:[%s1444_s3 + $0x8] sm:$0xff] %v742_v10 }
 0x105 PF: > { %s13_s16 = sadd.s32 1, %s1228_s16   ;;  %s1445_s12 = smov %s1216_s13 }
 0x106   : > { %p10_p12 = scmp.ge.s32.totalorder %s13_s16, 8   ;;  %s1446_s13 = smov %s1286_s20 }
 0x107   : > { %s1447_s14 = smov %s1224_s15  ;;  %s1448_s15 = smov %s1450_s17 }
 0x108   :  { %12 = sbr.rel (!%p10_p12) target bundleno = 3 (0x3), region = 113 }

// kernel: _lambda_.22
= control target key start
LH: loop header
LB: loop body
LE: loop exit
PB: predicated region body
PF: predicated region fallthrough
CT: control target
= control target key end

     0   :  { %8 = vsyncpa [#allocation5], 0  ;;  %s1611_s0 = inlined_call_operand.vmem [shape: bf16[16,2304], index: 0, kind: input, shape index: {}]   ;;  %s1612_s1 = inlined_call_operand.hbm [shape: bf16[2304,256], index: 1, kind: input, shape index: {}]   ;;  %s1613_s2 = inlined_call_operand.hbm [shape: f32[1,256], index: 2, kind: input, shape index: {}]   ;;  %s1614_s3 = inlined_call_operand.vmem [shape: bf16[16,256], index: 3, kind: output, shape index: {}]  }
   0x1   :  { %10 = vsyncpa [#allocation5 + $0x1], 0 }
   0x2   :  { %11 = vsyncpa [#allocation7], 0  ;;  %s1376_s12 = smov 0   ;;  %s1378_s13 = smov 0  }
   0x3   :  { %s1380_s14 = smov 0   ;;  %s1382_s15 = smov 0  }
   0x4   :  { %s1384_s16 = smov 0   ;;  %s1386_s17 = smov 0  }
   0x5 LB: > { %s892_s18 = sadd.s32 4294967295, %s1350_s17   ;;  %s29_s19 = sadd.s32 1, %s1346_s16  ;;  %s1350_s17 = sphi %s1386_s17, %s17_s17   ;;  %s1346_s16 = sphi %s1384_s16, %s1623_s16   ;;  %s1342_s15 = sphi %s1382_s15, %s1622_s15   ;;  %s1338_s14 = sphi %s1380_s14, %s1621_s14   ;;  %s1334_s13 = sphi %s1378_s13, %s1620_s13   ;;  %s1330_s12 = sphi %s1376_s12, %s1619_s12  }
   0x6   : > { %p30_p0 = scmp.ge.s32.totalorder %s29_s19, 6  ;;  %s45_s20 = sadd.s32 1, %s1338_s14 }
   0x7   : > { %p52_p1 = scmp.ne.s32.totalorder %s1338_s14, %s1334_s13  ;;  %p53_p2 = scmp.eq.s32.totalorder %s1350_s17, 0 }
   0x8   : > { %s1625_s19 = smov (%p30_p0, %s29_s19), 0  ;;  %p86_p4 = scmp.ne.s32.totalorder %s1334_s13, %s1330_s12 }
   0x9   : > { %p1412_p3 = por %p53_p2, %p52_p1  ;;  %s41_s22 = ssub.s32 %s1346_s16, %s1625_s19 }
   0xa   : > { %p1419_p5 = scmp.eq.s32.totalorder %s892_s18, 0  ;;  %p43_p6 = scmp.eq.s32.totalorder %s41_s22, 0 }
   0xb   : > { %p893_p7 = scmp.ge.s32.totalorder %s1350_s17, 1  ;;  %p151_p9 = scmp.lt.s32.totalorder %s1350_s17, 7 }
   0xc   : > { %p1426_p8 = por %p1419_p5, %p86_p4  ;;  %s165_s29 = sshll.u32 %s1613_s2, 4  ;;  %s166_s29 = int_to_ptr.hbm [resolvable:$true] %s165_s29 }
   0xd   : > { %s1432_s25 = scalar_select %p43_p6, %s1338_s14, %s45_s20  }
   0xe   : > { %p1434_p10 = pnand %p893_p7, %p151_p9  ;;  %s1352_s30 = smov [#allocation6]  }
   0xf   : > { %s167_s4 = sshll.u32 %s1352_s30, 4  ;;  %p895_p13 = scmp.ge.s32.totalorder %s1350_s17, 6  ;;  %s168_s4 = int_to_ptr.vmem [resolvable:$true] %s167_s4 }
  0x10   : > { %p1180_p11 = pneg %p1434_p10 }
  0x11   : > { %174 = sbr.rel (%p895_p13) target bundleno = 37 (0x25), region = 20 }
  0x12   : > { %p1181_p12 = pnand %p1180_p11, %p1419_p5 }
  0x14   : > { %1183 = dma.hbm_to_vmem [thread:$0]  (!%p1181_p12), %s166_s29, 32, %s168_s4, [#allocation7]  }
  0x16   : > { %177 = sbr.rel (!%p1412_p3) target bundleno = 31 (0x1f), region = 24  ;;  %s179_s5 = sand.u32 (%p1412_p3), 1, %s1338_s14  }
  0x17   : > { %s1115_s6 = smul.u32 (%p1412_p3), 12, %s1346_s16 }
  0x18   : > { %s1170_s7 = smul.u32 (%p1412_p3), 24, %s179_s5 }
  0x19   : > { %s187_s10 = scalar_lea.vmem (%p1412_p3), %s1611_s0, %s1115_s6 }
  0x1a   : > { %v202_v0 = vld [vmem:[%s187_s10] sm:$0xff] (%p1412_p3)  ;;  %v204_v1 = vld [vmem:[%s187_s10 + $0x48] sm:$0xff] (%p1412_p3)  ;;  %s181_s11 = scalar_lea.vmem (%p1412_p3), [#allocation3], %s1170_s7  ;;  %v899_v3 = vld [vmem:[%s187_s10 + $0x50] sm:$0xf] (%p1412_p3) }
  0x1b   : > { %v897_v2 = vld [vmem:[%s187_s10 + $0x8] sm:$0xf]  ;;  %203 = vst [vmem:[%s181_s11] sm:$0xff] %v202_v0 }
  0x1c   : > { %205 = vst [vmem:[%s181_s11 + $0xc] sm:$0xff] %v204_v1 }
  0x1d   : > { %898 = vst [vmem:[%s181_s11 + $0x8] sm:$0xf] %v897_v2 }
  0x1e   : > { %900 = vst [vmem:[%s181_s11 + $0x14] sm:$0xf] %v899_v3 }
  0x1f PF: > { %s224_s12 = sand.u32 1, %s1338_s14   ;;  %s1169_s18 = smul.u32 384, %s1346_s16 }
  0x20   : > { %s1171_s20 = smul.u32 384, %s224_s12  ;;  %s225_s5 = scalar_lea.sflag [#allocation5], %s224_s12 }
  0x21   : > { %s236_s28 = scalar_lea.hbm %s1612_s1, %s1169_s18  ;;  %s1353_s6 = smov 128  }
  0x22   : > { %s237_s29 = sshll.u32 %s236_s28, 4  ;;  %s228_s30 = scalar_lea.vmem [#allocation4], %s1171_s20  ;;  %s238_s29 = int_to_ptr.hbm [resolvable:$true] %s237_s29 }
  0x23   : > { %s239_s4 = sshll.u32 %s228_s30, 4  ;;  %s1354_s7 = smov 8   ;;  %s240_s4 = int_to_ptr.vmem [resolvable:$true] %s239_s4 }
  0x24   : > { %1176 = dma.hbm_to_vmem [thread:$0]  (%p1412_p3), %s238_s29, 6144, %s240_s4, %s225_s5, %s1353_s6, %s1353_s6, %s1354_s7  }
  0x25 PF: > { %251 = sbr.rel (%p1434_p10) target bundleno = 278 (0x116), region = 54  ;;  %s254_s8 = sand.u32 (!%p1434_p10), 1, %s1334_s13  }
  0x26   : > { %s1172_s9 = smul.u32 (!%p1434_p10), 24, %s254_s8  ;;  %s261_s18 = scalar_lea.sflag (!%p1434_p10), [#allocation5], %s254_s8 }
  0x27   : > { %s1173_s10 = smul.u32 (!%p1434_p10), 384, %s254_s8 }
  0x28   : > { %s1463_s11 = scalar_lea.vmem (!%p1434_p10), [#allocation3], %s1172_s9 }
  0x29   : > { %s1465_s20 = scalar_lea.vmem (!%p1434_p10), [#allocation4], %s1173_s10 }
  0x2a   : > { %1321 = dma.done.wait (%p1426_p8), %s261_s18, 6144  }
  0x2b   : > { %1323 = vsyncadd (%p1426_p8), %s261_s18, 4294961152 }
  0x2c   : > { %1325 = dma.done.wait (%p1419_p5), [#allocation7], 32  }
  0x2d   : > { %1327 = vsyncadd (%p1419_p5), [#allocation7], 4294967264  ;;  %p905_p0 = scmp.ne.s32.totalorder %s1342_s15, 0 }
  0x2f   : > { %322 = sbr.rel (%p905_p0) target bundleno = 57 (0x39), region = 70 }
  0x34   : > { %v1355_v4 = vmov 0.0  }
  0x35   : > { %323 = vst [vmem:[#allocation2 + $0x10] sm:$0xff] %v1355_v4 }
  0x36   : > { %324 = vst [vmem:[#allocation2] sm:$0xff] %v1355_v4 }
  0x37   : > { %325 = vst [vmem:[#allocation2 + $0x18] sm:$0xff] %v1355_v4 }
  0x38   : > { %326 = vst [vmem:[#allocation2 + $0x8] sm:$0xff] %v1355_v4 }
  0x39 PF: > { %v976_v5 = vld [vmem:[%s1465_s20 + $0x70] sm:$0xf]  ;;  %v1136_v6 = vld [vmem:[%s1465_s20 + $0x74] sm:$0xf0]  ;;  %v968_v14 = vld [vmem:[%s1465_s20 + $0x60] sm:$0xf] }
  0x3a   : > { %v1040_v7 = vld [vmem:[%s1465_s20 + $0xf0] sm:$0xf]  ;;  %v977_v8 = vor.u32 %v1136_v6, %v976_v5  ;;  %v1152_v9 = vld [vmem:[%s1465_s20 + $0xf4] sm:$0xf0]  ;;  %v1134_v15 = vld [vmem:[%s1465_s20 + $0x64] sm:$0xf0] }
  0x3b   : > { %v1104_v10 = vld [vmem:[%s1465_s20 + $0x170] sm:$0xf]  ;;  %v1168_v11 = vld [vmem:[%s1465_s20 + $0x174] sm:$0xf0]  ;;  %v1041_v12 = vor.u32 %v1152_v9, %v1040_v7  ;;  %v1032_v16 = vld [vmem:[%s1465_s20 + $0xe0] sm:$0xf]  ;;  %v969_v17 = vor.u32 %v1134_v15, %v968_v14 }
  0x3c   : > { %v1105_v13 = vor.u32 %v1168_v11, %v1104_v10  ;;  %639 = vmatpush.bf16.msra.mxu0 %v977_v8  ;;  %v1150_v18 = vld [vmem:[%s1465_s20 + $0xe4] sm:$0xf0]  ;;  %v1096_v19 = vld [vmem:[%s1465_s20 + $0x160] sm:$0xf]  ;;  %v960_v23 = vld [vmem:[%s1465_s20 + $0x50] sm:$0xf] }
  0x3d   : > { %v1166_v20 = vld [vmem:[%s1465_s20 + $0x164] sm:$0xf0]  ;;  %653 = vmatpush.bf16.msra.mxu1 %v1041_v12  ;;  %v1033_v21 = vor.u32 %v1150_v18, %v1032_v16  ;;  %v1132_v24 = vld [vmem:[%s1465_s20 + $0x54] sm:$0xf0]  ;;  %v1024_v25 = vld [vmem:[%s1465_s20 + $0xd0] sm:$0xf] }
  0x3e   : > { %667 = vmatpush.bf16.msra.mxu2 %v1105_v13  ;;  %v1097_v22 = vor.u32 %v1166_v20, %v1096_v19  ;;  %v1148_v26 = vld [vmem:[%s1465_s20 + $0xd4] sm:$0xf0]  ;;  %v1088_v27 = vld [vmem:[%s1465_s20 + $0x150] sm:$0xf]  ;;  %v961_v29 = vor.u32 %v1132_v24, %v960_v23  ;;  %v952_v30 = vld [vmem:[%s1465_s20 + $0x40] sm:$0xf] }
  0x3f   : > { %v1164_v28 = vld [vmem:[%s1465_s20 + $0x154] sm:$0xf0]  ;;  %v1130_v31 = vld [vmem:[%s1465_s20 + $0x44] sm:$0xf0]  ;;  %v1025_v32 = vor.u32 %v1148_v26, %v1024_v25  ;;  %v1016_v34 = vld [vmem:[%s1465_s20 + $0xc0] sm:$0xf] }
  0x40   : > { %640 = vmatpush.bf16.msra.mxu0 %v969_v17  ;;  %v1089_v33 = vor.u32 %v1164_v28, %v1088_v27  ;;  %v1135_v35 = vld [vmem:[%s1465_s20 + $0x74] sm:$0xf]  ;;  %v978_v36 = vld [vmem:[%s1465_s20 + $0x78] sm:$0xf0]  ;;  %v1146_v37 = vld [vmem:[%s1465_s20 + $0xc4] sm:$0xf0]  ;;  %v953_v42 = vor.u32 %v1130_v31, %v952_v30 }
  0x41   : > { %654 = vmatpush.bf16.msra.mxu1 %v1033_v21  ;;  %v1080_v38 = vld [vmem:[%s1465_s20 + $0x140] sm:$0xf]  ;;  %v1162_v39 = vld [vmem:[%s1465_s20 + $0x144] sm:$0xf0]  ;;  %v981_v40 = vor.u32 %v1135_v35, %v978_v36  ;;  %v1133_v41 = vld [vmem:[%s1465_s20 + $0x64] sm:$0xf]  ;;  %v1017_v46 = vor.u32 %v1146_v37, %v1016_v34 }
  0x42   : > { %668 = vmatpush.bf16.msra.mxu2 %v1097_v22  ;;  %v944_v43 = vld [vmem:[%s1465_s20 + $0x30] sm:$0xf]  ;;  %v1128_v44 = vld [vmem:[%s1465_s20 + $0x34] sm:$0xf0]  ;;  %v970_v45 = vld [vmem:[%s1465_s20 + $0x68] sm:$0xf0]  ;;  %v1081_v47 = vor.u32 %v1162_v39, %v1080_v38 }
  0x43   : > { %681 = vmatpush.bf16.msra.mxu3 %v981_v40  ;;  %v1008_v48 = vld [vmem:[%s1465_s20 + $0xb0] sm:$0xf]  ;;  %v1144_v49 = vld [vmem:[%s1465_s20 + $0xb4] sm:$0xf0]  ;;  %v973_v51 = vor.u32 %v1133_v41, %v970_v45  ;;  %v1131_v53 = vld [vmem:[%s1465_s20 + $0x54] sm:$0xf]  ;;  %v945_v55 = vor.u32 %v1128_v44, %v944_v43 }
  0x44   : > { %641 = vmatpush.bf16.msra.mxu0 %v961_v29  ;;  %v1072_v50 = vld [vmem:[%s1465_s20 + $0x130] sm:$0xf]  ;;  %v1160_v52 = vld [vmem:[%s1465_s20 + $0x134] sm:$0xf0]  ;;  %v962_v54 = vld [vmem:[%s1465_s20 + $0x58] sm:$0xf0]  ;;  %v1009_v59 = vor.u32 %v1144_v49, %v1008_v48 }
  0x45   : > { %655 = vmatpush.bf16.msra.mxu1 %v1025_v32  ;;  %v936_v56 = vld [vmem:[%s1465_s20 + $0x20] sm:$0xf]  ;;  %v1126_v57 = vld [vmem:[%s1465_s20 + $0x24] sm:$0xf0]  ;;  %v965_v58 = vor.u32 %v1131_v53, %v962_v54  ;;  %v1073_v60 = vor.u32 %v1160_v52, %v1072_v50  ;;  %v1129_v62 = vld [vmem:[%s1465_s20 + $0x44] sm:$0xf] }
  0x46   : > { %669 = vmatpush.bf16.msra.mxu2 %v1089_v33  ;;  %v1000_v61 = vld [vmem:[%s1465_s20 + $0xa0] sm:$0xf]  ;;  %v954_v63 = vld [vmem:[%s1465_s20 + $0x48] sm:$0xf0]  ;;  %v1142_v0 = vld [vmem:[%s1465_s20 + $0xa4] sm:$0xf0]  ;;  %v937_v3 = vor.u32 %v1126_v57, %v936_v56 }
  0x47   : > { %682 = vmatpush.bf16.msra.mxu3 %v973_v51  ;;  %v1064_v1 = vld [vmem:[%s1465_s20 + $0x120] sm:$0xf]  ;;  %v1158_v2 = vld [vmem:[%s1465_s20 + $0x124] sm:$0xf0]  ;;  %v928_v4 = vld [vmem:[%s1465_s20 + $0x10] sm:$0xf]  ;;  %v957_v6 = vor.u32 %v1129_v62, %v954_v63  ;;  %v1001_v7 = vor.u32 %v1142_v0, %v1000_v61 }
  0x48   : > { %642 = vmatpush.bf16.msra.mxu0 %v953_v42  ;;  %v1124_v5 = vld [vmem:[%s1465_s20 + $0x14] sm:$0xf0]  ;;  %v1065_v8 = vor.u32 %v1158_v2, %v1064_v1  ;;  %v992_v9 = vld [vmem:[%s1465_s20 + $0x90] sm:$0xf]  ;;  %v1127_v10 = vld [vmem:[%s1465_s20 + $0x34] sm:$0xf] }
  0x49   : > { %656 = vmatpush.bf16.msra.mxu1 %v1017_v46  ;;  %v946_v11 = vld [vmem:[%s1465_s20 + $0x38] sm:$0xf0]  ;;  %v1140_v12 = vld [vmem:[%s1465_s20 + $0x94] sm:$0xf0]  ;;  %v1056_v13 = vld [vmem:[%s1465_s20 + $0x110] sm:$0xf]  ;;  %v929_v15 = vor.u32 %v1124_v5, %v928_v4 }
  0x4a   : > { %670 = vmatpush.bf16.msra.mxu2 %v1081_v47  ;;  %v1156_v14 = vld [vmem:[%s1465_s20 + $0x114] sm:$0xf0]  ;;  %v920_v16 = vld [vmem:[%s1465_s20] sm:$0xf]  ;;  %v1122_v17 = vld [vmem:[%s1465_s20 + $0x4] sm:$0xf0]  ;;  %v949_v19 = vor.u32 %v1127_v10, %v946_v11  ;;  %v993_v20 = vor.u32 %v1140_v12, %v992_v9 }
  0x4b   : > { %683 = vmatpush.bf16.msra.mxu3 %v965_v58  ;;  %v984_v18 = vld [vmem:[%s1465_s20 + $0x80] sm:$0xf]  ;;  %v1057_v21 = vor.u32 %v1156_v14, %v1056_v13  ;;  %v1138_v22 = vld [vmem:[%s1465_s20 + $0x84] sm:$0xf0]  ;;  %v1125_v23 = vld [vmem:[%s1465_s20 + $0x24] sm:$0xf]  ;;  %v921_v31 = vor.u32 %v1122_v17, %v920_v16 }
  0x4c   : > { %643 = vmatpush.bf16.msra.mxu0 %v945_v55  ;;  %v938_v24 = vld [vmem:[%s1465_s20 + $0x28] sm:$0xf0]  ;;  %v1048_v25 = vld [vmem:[%s1465_s20 + $0x100] sm:$0xf]  ;;  %v1154_v26 = vld [vmem:[%s1465_s20 + $0x104] sm:$0xf0]  ;;  %v985_v36 = vor.u32 %v1138_v22, %v984_v18 }
  0x4d   : > { %657 = vmatpush.bf16.msra.mxu1 %v1009_v59  ;;  %v1151_v27 = vld [vmem:[%s1465_s20 + $0xf4] sm:$0xf]  ;;  %v1042_v28 = vld [vmem:[%s1465_s20 + $0xf8] sm:$0xf0]  ;;  %v916_v32 = vld [vmem:[%s1463_s11 + $0x8] sm:$0xf]  ;;  %v941_v33 = vor.u32 %v1125_v23, %v938_v24  ;;  %v1049_v37 = vor.u32 %v1154_v26, %v1048_v25 }
  0x4e   : > { %671 = vmatpush.bf16.msra.mxu2 %v1073_v60  ;;  %v1167_v29 = vld [vmem:[%s1465_s20 + $0x174] sm:$0xf]  ;;  %v1106_v30 = vld [vmem:[%s1465_s20 + $0x178] sm:$0xf0]  ;;  %v908_v34 = vld [vmem:[%s1463_s11] sm:$0xf]  ;;  %v1045_v41 = vor.u32 %v1151_v27, %v1042_v28 }
  0x4f   : > { %684 = vmatpush.bf16.msra.mxu3 %v957_v6  ;;  %v1119_v35 = vld [vmem:[%s1463_s11 + $0x8] sm:$0xf0]  ;;  %v1120_v38 = vld [vmem:[%s1463_s11 + $0x10] sm:$0xf0]  ;;  %v1118_v39 = vld [vmem:[%s1463_s11 + $0x4] sm:$0xf]  ;;  %v1109_v42 = vor.u32 %v1167_v29, %v1106_v30 }
  0x50   : > { %644 = vmatpush.bf16.msra.mxu0 %v937_v3  ;;  %v910_v40 = vld [vmem:[%s1463_s11 + $0xc] sm:$0xf0]  ;;  %v1149_v43 = vld [vmem:[%s1465_s20 + $0xe4] sm:$0xf]  ;;  %v1123_v44 = vld [vmem:[%s1465_s20 + $0x14] sm:$0xf]  ;;  %v909_v49 = vor.u32 %v1119_v35, %v908_v34  ;;  %v1552_v50 = vor.u32 %v1120_v38, %v916_v32 }
  0x51   : > { %658 = vmatpush.bf16.msra.mxu1 %v1001_v7  ;;  %v930_v45 = vld [vmem:[%s1465_s20 + $0x18] sm:$0xf0]  ;;  %v1034_v46 = vld [vmem:[%s1465_s20 + $0xe8] sm:$0xf0]  ;;  %v1165_v47 = vld [vmem:[%s1465_s20 + $0x164] sm:$0xf]  ;;  %v1554_v51 = vor.u32 %v1118_v39, %v910_v40 }
  0x52   : > { %672 = vmatpush.bf16.msra.mxu2 %v1065_v8  ;;  %v1098_v48 = vld [vmem:[%s1465_s20 + $0x168] sm:$0xf0]  ;;  %v933_v52 = vor.u32 %v1123_v44, %v930_v45  ;;  %v1037_v53 = vor.u32 %v1149_v43, %v1034_v46  ;;  %v1147_v55 = vld [vmem:[%s1465_s20 + $0xd4] sm:$0xf]  ;;  %v1121_v56 = vld [vmem:[%s1465_s20 + $0x4] sm:$0xf] }
  0x53   : > { %685 = vmatpush.bf16.msra.mxu3 %v949_v19  ;;  %v1101_v54 = vor.u32 %v1165_v47, %v1098_v48  ;;  %v922_v57 = vld [vmem:[%s1465_s20 + $0x8] sm:$0xf0]  ;;  %v1026_v58 = vld [vmem:[%s1465_s20 + $0xd8] sm:$0xf0]  ;;  %v1163_v59 = vld [vmem:[%s1465_s20 + $0x154] sm:$0xf] }
  0x54   : > { %645 = vmatpush.bf16.msra.mxu0 %v929_v15  ;;  %v1090_v60 = vld [vmem:[%s1465_s20 + $0x158] sm:$0xf0]  ;;  %v925_v61 = vor.u32 %v1121_v56, %v922_v57  ;;  %v1029_v62 = vor.u32 %v1147_v55, %v1026_v58  ;;  %v1145_v0 = vld [vmem:[%s1465_s20 + $0xc4] sm:$0xf]  ;;  %v1018_v1 = vld [vmem:[%s1465_s20 + $0xc8] sm:$0xf0] }
  0x55   : > { %659 = vmatpush.bf16.msra.mxu1 %v993_v20  ;;  %v1093_v63 = vor.u32 %v1163_v59, %v1090_v60  ;;  %v1161_v2 = vld [vmem:[%s1465_s20 + $0x144] sm:$0xf]  ;;  %v1082_v3 = vld [vmem:[%s1465_s20 + $0x148] sm:$0xf0]  ;;  %v1021_v4 = vor.u32 %v1145_v0, %v1018_v1  ;;  %v1143_v6 = vld [vmem:[%s1465_s20 + $0xb4] sm:$0xf] }
  0x56   : > { %673 = vmatpush.bf16.msra.mxu2 %v1057_v21  ;;  %v1085_v5 = vor.u32 %v1161_v2, %v1082_v3  ;;  %v1010_v7 = vld [vmem:[%s1465_s20 + $0xb8] sm:$0xf0]  ;;  %v1159_v8 = vld [vmem:[%s1465_s20 + $0x134] sm:$0xf]  ;;  %v1141_v12 = vld [vmem:[%s1465_s20 + $0xa4] sm:$0xf] }
  0x57   : > { %686 = vmatpush.bf16.msra.mxu3 %v941_v33  ;;  %v1074_v9 = vld [vmem:[%s1465_s20 + $0x138] sm:$0xf0]  ;;  %v1013_v10 = vor.u32 %v1143_v6, %v1010_v7  ;;  %v1002_v13 = vld [vmem:[%s1465_s20 + $0xa8] sm:$0xf0]  ;;  %v1157_v14 = vld [vmem:[%s1465_s20 + $0x124] sm:$0xf] }
  0x58   : > { %646 = vmatpush.bf16.msra.mxu0 %v921_v31  ;;  %v1077_v11 = vor.u32 %v1159_v8, %v1074_v9  ;;  %v1066_v15 = vld [vmem:[%s1465_s20 + $0x128] sm:$0xf0]  ;;  %v1005_v16 = vor.u32 %v1141_v12, %v1002_v13  ;;  %v1139_v18 = vld [vmem:[%s1465_s20 + $0x94] sm:$0xf]  ;;  %v994_v19 = vld [vmem:[%s1465_s20 + $0x98] sm:$0xf0] }
  0x59   : > { %660 = vmatpush.bf16.msra.mxu1 %v985_v36  ;;  %v1069_v17 = vor.u32 %v1157_v14, %v1066_v15  ;;  %v1155_v20 = vld [vmem:[%s1465_s20 + $0x114] sm:$0xf]  ;;  %v1058_v21 = vld [vmem:[%s1465_s20 + $0x118] sm:$0xf0]  ;;  %v997_v22 = vor.u32 %v1139_v18, %v994_v19  ;;  %v1137_v24 = vld [vmem:[%s1465_s20 + $0x84] sm:$0xf] }
  0x5a   : > { %674 = vmatpush.bf16.msra.mxu2 %v1049_v37  ;;  %v1061_v23 = vor.u32 %v1155_v20, %v1058_v21  ;;  %v986_v25 = vld [vmem:[%s1465_s20 + $0x88] sm:$0xf0]  ;;  %v1153_v26 = vld [vmem:[%s1465_s20 + $0x104] sm:$0xf]  ;;  %v328_v48 = vld [vmem:[#allocation2] sm:$0xff]  ;;  %p1110_p1 = scmp.ne.s32.totalorder %s1342_s15, 5 }
  0x5b   : > { %647 = vmatmul.bf16.vlgmr.msra.gmra.mxu0 %v909_v49  ;;  %687 = vmatpush.bf16.msra.mxu3 %v933_v52  ;;  %v1050_v27 = vld [vmem:[%s1465_s20 + $0x108] sm:$0xf0]  ;;  %v989_v28 = vor.u32 %v1137_v24, %v986_v25  ;;  %v327_v33 = vld [vmem:[#allocation2 + $0x10] sm:$0xff] }
  0x5c   : > { %695 = vmatpush.bf16.msrb.mxu0 %v1045_v41  ;;  %661 = vmatmul.bf16.vlgmr.msra.gmra.mxu1 %v1554_v51  ;;  %v1053_v29 = vor.u32 %v1153_v26, %v1050_v27  ;;  %v329_v40 = vld [vmem:[#allocation2 + $0x18] sm:$0xff] }
  0x5d   : > { %709 = vmatpush.bf16.msrb.mxu1 %v1109_v42  ;;  %675 = vmatmul.bf16.vlgmr.msra.gmra.mxu2 %v1552_v50 }
  0x5f   : > { %688 = vmatpush.bf16.msra.mxu3 %v925_v61 }
  0x60   : > { %696 = vmatpush.bf16.msrb.mxu0 %v1037_v53 }
  0x61   : > { %710 = vmatpush.bf16.msrb.mxu1 %v1101_v54  ;;  %v330_v54 = vld [vmem:[#allocation2 + $0x8] sm:$0xff] }
  0x62   : > { %689 = vmatmul.bf16.vlgmr.msra.gmra.mxu3 %v909_v49 }
  0x64   : > { %697 = vmatpush.bf16.msrb.mxu0 %v1029_v62 }
  0x65   : > { %711 = vmatpush.bf16.msrb.mxu1 %v1093_v63 }
  0x68   : > { %698 = vmatpush.bf16.msrb.mxu0 %v1021_v4 }
  0x69   : > { %712 = vmatpush.bf16.msrb.mxu1 %v1085_v5 }
  0x6c   : > { %699 = vmatpush.bf16.msrb.mxu0 %v1013_v10 }
  0x6d   : > { %713 = vmatpush.bf16.msrb.mxu1 %v1077_v11 }
  0x70   : > { %700 = vmatpush.bf16.msrb.mxu0 %v1005_v16 }
  0x71   : > { %714 = vmatpush.bf16.msrb.mxu1 %v1069_v17 }
  0x74   : > { %701 = vmatpush.bf16.msrb.mxu0 %v997_v22 }
  0x75   : > { %715 = vmatpush.bf16.msrb.mxu1 %v1061_v23 }
  0x78   : > { %702 = vmatpush.bf16.msrb.mxu0 %v989_v28 }
  0x79   : > { %716 = vmatpush.bf16.msrb.mxu1 %v1053_v29 }
  0x7b   : > { %703 = vmatmul.bf16.vlgmr.msrb.gmra.mxu0 %v1554_v51 }
  0x7c   : > { %717 = vmatmul.bf16.vlgmr.msrb.gmra.mxu1 %v1552_v50 }
  0xd8   : > { %v648_v30 = vpop.f32.mrf.mxu0 }
  0xd9   : > { %v662_v31 = vpop.f32.mrf.mxu1 }
  0xda   : > { %v663_v32 = vadd.f32 %v662_v31, %v648_v30 }
  0xe0   : > { %v676_v34 = vpop.f32.mrf.mxu2  ;;  %v650_v36 = vpop.f32.mrf.mxu0 }
  0xe1   : > { %v677_v35 = vadd.f32 %v676_v34, %v663_v32  ;;  %v664_v37 = vpop.f32.mrf.mxu1 }
  0xe2   : > { %v665_v39 = vadd.f32 %v664_v37, %v650_v36 }
  0xe3   : > { %v723_v38 = vadd.f32 %v677_v35, %v327_v33 }
  0xe5   : > { %727 = vst [vmem:[#allocation2 + $0x10] sm:$0xff] %v723_v38  ;;  %v690_v44 = vpop.f32.mrf.mxu3 }
  0xe8   : > { %v678_v41 = vpop.f32.mrf.mxu2 }
  0xe9   : > { %v679_v42 = vadd.f32 %v678_v41, %v665_v39 }
  0xeb   : > { %v725_v43 = vadd.f32 %v679_v42, %v329_v40 }
  0xed   : > { %729 = vst [vmem:[#allocation2 + $0x18] sm:$0xff] %v725_v43  ;;  %v692_v51 = vpop.f32.mrf.mxu3 }
  0xf8   : > { %v704_v45 = vpop.f32.mrf.mxu0 }
  0xf9   : > { %v718_v46 = vpop.f32.mrf.mxu1  ;;  %v705_v47 = vadd.f32 %v704_v45, %v690_v44 }
  0xfb   : > { %v719_v49 = vadd.f32 %v718_v46, %v705_v47 }
  0xfd   : > { %v724_v50 = vadd.f32 %v719_v49, %v328_v48 }
  0xff   : > { %728 = vst [vmem:[#allocation2] sm:$0xff] %v724_v50 }
 0x100   : > { %v706_v52 = vpop.f32.mrf.mxu0 }
 0x101   : > { %v707_v53 = vadd.f32 %v706_v52, %v692_v51  ;;  %v720_v55 = vpop.f32.mrf.mxu1 }
 0x103   : > { %v721_v56 = vadd.f32 %v720_v55, %v707_v53  ;;  %734 = sbr.rel (%p1110_p1) target bundleno = 278 (0x116), region = 74 }
 0x105   : > { %v726_v57 = vadd.f32 %v721_v56, %v330_v54 }
 0x107   : > { %730 = vst [vmem:[#allocation2 + $0x8] sm:$0xff] %v726_v57 }
 0x108   : > { %v735_v58 = vld [vmem:[#allocation2 + $0x10] sm:$0xff]  ;;  %v736_v59 = vld [vmem:[#allocation2] sm:$0xff]  ;;  %v737_v63 = vld [vmem:[#allocation2 + $0x18] sm:$0xff] }
 0x109   : > { %v739_v60 = vld [vmem:[#allocation6] sm:$0x3] }
 0x10a   : > { %v741_v61 = vperm.slane %v739_v60, 0  ;;  %v742_v62 = vperm.slane %v739_v60, 1 }
 0x10c   : > { %v745_v1 = vadd.f32 %v741_v61, %v735_v58  ;;  %v746_v2 = vadd.f32 %v742_v62, %v736_v59  ;;  %v747_v3 = vadd.f32 %v741_v61, %v737_v63 }
 0x10e   : > { %v738_v0 = vld [vmem:[#allocation2 + $0x8] sm:$0xff]  ;;  %v749_v5 = vmax.f32 %v745_v1, 0.0  ;;  %v750_v6 = vmax.f32 %v746_v2, 0.0  ;;  %v751_v7 = vmax.f32 %v747_v3, 0.0 }
 0x10f   : > { %v748_v4 = vadd.f32 %v742_v62, %v738_v0 }
 0x110   : > { %v753_v9 = vpack.c.bf16 %v750_v6, %v749_v5 }
 0x111   : > { %v752_v8 = vmax.f32 %v748_v4, 0.0 }
 0x112   : > { %755 = vst [vmem:[%s1614_s3] sm:$0xff] %v753_v9 }
 0x113   : > { %v754_v10 = vpack.c.bf16 %v752_v8, %v751_v7 }
 0x115   : > { %756 = vst [vmem:[%s1614_s3 + $0x8] sm:$0xff] %v754_v10 }
 0x116 PF: > { %s17_s17 = sadd.s32 1, %s1350_s17   ;;  %s1619_s12 = smov %s1334_s13 }
 0x117   : > { %p14_p2 = scmp.ge.s32.totalorder %s17_s17, 8   ;;  %s1620_s13 = smov %s1338_s14 }
 0x118   : > { %s1621_s14 = smov %s1432_s25  ;;  %s1622_s15 = smov %s1346_s16 }
 0x119   : > { %s1623_s16 = smov %s1625_s19  ;;  %16 = sbr.rel (!%p14_p2) target bundleno = 5 (0x5), region = 125 }
 0x11e   :  { %790 = vsyncpa [#allocation5], 1 }
 0x11f   :  { %792 = vsyncpa [#allocation5 + $0x1], 1 }
 0x120   :  { %793 = vsyncpa [#allocation7], 1 }

// kernel: _lambda_.25
= control target key start
LH: loop header
LB: loop body
LE: loop exit
PB: predicated region body
PF: predicated region fallthrough
CT: control target
= control target key end

     0   :  { %s2087_s0 = inlined_call_operand.vmem [shape: bf16[16,2304], index: 0, kind: input, shape index: {}]   ;;  %s2088_s1 = inlined_call_operand.vmem [shape: bf16[2304,512], index: 1, kind: input, shape index: {}]   ;;  %s2089_s2 = inlined_call_operand.hbm [shape: f32[1,512], index: 2, kind: input, shape index: {}]   ;;  %s2090_s3 = inlined_call_operand.vmem [shape: bf16[16,512], index: 3, kind: output, shape index: {}]  }
   0x1   :  { %2093 = sst [smem:[#allocation11_spill]] %s2087_s0 }
   0x2   :  { %8 = vsyncpa [#allocation6], 0 }
   0x3   :  { %10 = vsyncpa [#allocation6 + $0x1], 0  ;;  %s1669_s12 = smov 0   ;;  %s1671_s13 = smov 0  }
   0x4   :  { %s1673_s14 = smov 0   ;;  %s1675_s15 = smov 0  }
   0x5   :  { %s1677_s16 = smov 0   ;;  %s1679_s17 = smov 0  }
   0x6   :  { %s1681_s18 = smov 0   ;;  %s1683_s19 = smov 0  }
   0x7   :  { %s1685_s20 = smov 0   ;;  %s1687_s21 = smov 0  }
   0x8   :  { %s1689_s22 = smov 0   ;;  %s1691_s23 = smov 0  }
   0x9 LB: > { %s1135_s24 = sadd.s32 4294967295, %s1646_s23   ;;  %s28_s25 = sadd.s32 1, %s1638_s21  ;;  %s1646_s23 = sphi %s1691_s23, %s16_s23   ;;  %s1642_s22 = sphi %s1689_s22, %s2114_s22   ;;  %s1638_s21 = sphi %s1687_s21, %s2113_s21   ;;  %s1634_s20 = sphi %s1685_s20, %s2112_s20   ;;  %s1630_s19 = sphi %s1683_s19, %s2111_s19   ;;  %s1626_s18 = sphi %s1681_s18, %s2110_s18   ;;  %s1622_s17 = sphi %s1679_s17, %s2109_s17   ;;  %s1618_s16 = sphi %s1677_s16, %s2108_s16   ;;  %s1614_s15 = sphi %s1675_s15, %s2107_s15   ;;  %s1610_s14 = sphi %s1673_s14, %s2106_s14   ;;  %s1606_s13 = sphi %s1671_s13, %s2105_s13   ;;  %s1602_s12 = sphi %s1669_s12, %s2104_s12  }
   0xa   : > { %p29_p0 = scmp.ge.s32.totalorder %s28_s25, 6  ;;  %s31_s26 = sadd.s32 1, %s1642_s22 }
   0xb   : > { %s44_s27 = sadd.s32 1, %s1626_s18  ;;  %p51_p1 = scmp.ne.s32.totalorder %s1626_s18, %s1622_s17 }
   0xc   : > { %s2116_s25 = smov (%p29_p0, %s28_s25), 0  ;;  %s2118_s26 = smov (!%p29_p0, %s31_s26), %s1642_s22 }
   0xd   : > { %2094 = sst [smem:[#allocation9_spill]] %s2116_s25  ;;  %s40_s28 = ssub.s32 %s1638_s21, %s2116_s25 }
   0xe   : > { %p52_p2 = scmp.eq.s32.totalorder %s1646_s23, 0  ;;  %p33_p3 = scmp.ge.s32.totalorder %s2118_s26, 2 }
   0xf   : > { %p42_p4 = scmp.eq.s32.totalorder %s40_s28, 0  ;;  %s72_s30 = sadd.s32 1, %s1618_s16 }
  0x10   : > { %p1743_p5 = por %p52_p2, %p51_p1  ;;  %s2120_s26 = smov (%p33_p3, %s2118_s26), 0 }
  0x11   : > { %2096 = sst [smem:[#allocation10_spill]] %s2120_s26  ;;  %s68_s5 = ssub.s32 %s1642_s22, %s2120_s26 }
  0x12   : > { %s1751_s4 = scalar_select %p42_p4, %s1626_s18, %s44_s27  }
  0x13   : > { %p79_p6 = scmp.ne.s32.totalorder %s1618_s16, %s1614_s15  ;;  %s69_s6 = sor.u32 %s68_s5, %s40_s28 }
  0x14   : > { %p96_p7 = scmp.eq.s32.totalorder %s68_s5, 0  ;;  %p70_p8 = scmp.eq.s32.totalorder %s69_s6, 0 }
  0x15   : > { %p1759_p9 = por %p79_p6, %p52_p2  ;;  %s98_s8 = sadd.s32 1, %s1610_s14 }
  0x16   : > { %p105_p10 = scmp.ne.s32.totalorder %s1610_s14, %s1606_s13  ;;  %p111_p12 = scmp.ne.s32.totalorder %s1606_s13, %s1602_s12 }
  0x17   : > { %s1767_s9 = scalar_select %p70_p8, %s1618_s16, %s72_s30  }
  0x18   : > { %s1770_s10 = scalar_select %p96_p7, %s1610_s14, %s98_s8  }
  0x19   : > { %p1774_p11 = por %p105_p10, %p52_p2  ;;  %p112_p13 = scmp.eq.s32.totalorder %s1135_s24, 0 }
  0x1a   : > { %p137_p0 = scmp.eq.s32.totalorder %s1135_s24, 11  ;;  %p1138_p4 = scmp.ge.s32.totalorder %s1646_s23, 12 }
  0x1b   : > { %p1780_p1 = por %p112_p13, %p111_p12 }
  0x1c   : > { %p1784_p3 = por %p137_p0, %p105_p10  ;;  %159 = sbr.rel (%p1138_p4) target bundleno = 107 (0x6b), region = 16 }
  0x21   : > { %162 = sbr.rel (!%p1743_p5) target bundleno = 46 (0x2e), region = 20  ;;  %s164_s30 = sand.u32 (%p1743_p5), 1, %s1626_s18  }
  0x22   : > { %s1363_s12 = smul.u32 (%p1743_p5), 12, %s1638_s21  ;;  %s2101_s0 = sld [smem:[#allocation11_spill]] (%p1743_p5) }
  0x23   : > { %s1417_s5 = smul.u32 (%p1743_p5), 24, %s164_s30 }
  0x25   : > { %s166_s26 = scalar_lea.vmem (%p1743_p5), [#allocation3], %s1417_s5 }
  0x28   : > { %s172_s8 = scalar_lea.vmem %s2101_s0, %s1363_s12 }
  0x29   : > { %v187_v0 = vld [vmem:[%s172_s8] sm:$0xff]  ;;  %v189_v1 = vld [vmem:[%s172_s8 + $0x48] sm:$0xff]  ;;  %v1142_v3 = vld [vmem:[%s172_s8 + $0x50] sm:$0xf] }
  0x2a   : > { %v1140_v2 = vld [vmem:[%s172_s8 + $0x8] sm:$0xf]  ;;  %188 = vst [vmem:[%s166_s26] sm:$0xff] %v187_v0 }
  0x2b   : > { %190 = vst [vmem:[%s166_s26 + $0xc] sm:$0xff] %v189_v1 }
  0x2c   : > { %1141 = vst [vmem:[%s166_s26 + $0x8] sm:$0xf] %v1140_v2 }
  0x2d   : > { %1143 = vst [vmem:[%s166_s26 + $0x14] sm:$0xf] %v1142_v3 }
  0x2e PF: > { %208 = sbr.rel (!%p1759_p9) target bundleno = 102 (0x66), region = 46  ;;  %s210_s29 = sand.u32 (%p1759_p9), 1, %s1618_s16  }
  0x2f   : > { %s1418_s30 = smul.u32 (%p1759_p9), 384, %s210_s29  ;;  %s1144_s24 = sshll.u32 (%p1759_p9), %s1642_s22, 1 }
  0x30   : > { %s1364_s12 = smul.u32 (%p1759_p9), 192, %s1638_s21 }
  0x31   : > { %s1809_s26 = scalar_lea.vmem (%p1759_p9), [#allocation4], %s1418_s30 }
  0x32   : > { %s216_s6 = sadd.s32 (%p1759_p9), %s1364_s12, %s1144_s24 }
  0x33   : > { %s1146_s0 = sshll.u32 %s216_s6, 2 }
  0x34   : > { %s1804_s8 = scalar_lea.vmem %s2088_s1, %s1146_s0 }
  0x35   : > { %v341_v4 = vld [vmem:[%s1804_s8] sm:$0xff]  ;;  %v343_v5 = vld [vmem:[%s1804_s8 + $0x10] sm:$0xff] }
  0x36   : > { %v345_v6 = vld [vmem:[%s1804_s8 + $0x20] sm:$0xff]  ;;  %342 = vst [vmem:[%s1809_s26] sm:$0xff] %v341_v4  ;;  %v347_v7 = vld [vmem:[%s1804_s8 + $0x30] sm:$0xff] }
  0x37   : > { %344 = vst [vmem:[%s1809_s26 + $0x8] sm:$0xff] %v343_v5  ;;  %v349_v8 = vld [vmem:[%s1804_s8 + $0x40] sm:$0xff]  ;;  %v351_v9 = vld [vmem:[%s1804_s8 + $0x50] sm:$0xff] }
  0x38   : > { %346 = vst [vmem:[%s1809_s26 + $0x10] sm:$0xff] %v345_v6  ;;  %v353_v10 = vld [vmem:[%s1804_s8 + $0x60] sm:$0xff]  ;;  %v355_v11 = vld [vmem:[%s1804_s8 + $0x70] sm:$0xff] }
  0x39   : > { %348 = vst [vmem:[%s1809_s26 + $0x18] sm:$0xff] %v347_v7  ;;  %v357_v12 = vld [vmem:[%s1804_s8 + $0x80] sm:$0xff]  ;;  %v359_v13 = vld [vmem:[%s1804_s8 + $0x90] sm:$0xff] }
  0x3a   : > { %350 = vst [vmem:[%s1809_s26 + $0x20] sm:$0xff] %v349_v8  ;;  %v361_v14 = vld [vmem:[%s1804_s8 + $0xa0] sm:$0xff]  ;;  %v363_v15 = vld [vmem:[%s1804_s8 + $0xb0] sm:$0xff] }
  0x3b   : > { %352 = vst [vmem:[%s1809_s26 + $0x28] sm:$0xff] %v351_v9  ;;  %v365_v16 = vld [vmem:[%s1804_s8 + $0xc0] sm:$0xff]  ;;  %v367_v17 = vld [vmem:[%s1804_s8 + $0xd0] sm:$0xff] }
  0x3c   : > { %354 = vst [vmem:[%s1809_s26 + $0x30] sm:$0xff] %v353_v10  ;;  %v369_v18 = vld [vmem:[%s1804_s8 + $0xe0] sm:$0xff]  ;;  %v371_v19 = vld [vmem:[%s1804_s8 + $0xf0] sm:$0xff] }
  0x3d   : > { %356 = vst [vmem:[%s1809_s26 + $0x38] sm:$0xff] %v355_v11  ;;  %v373_v20 = vld [vmem:[%s1804_s8 + $0x100] sm:$0xff]  ;;  %v375_v21 = vld [vmem:[%s1804_s8 + $0x110] sm:$0xff] }
  0x3e   : > { %358 = vst [vmem:[%s1809_s26 + $0x40] sm:$0xff] %v357_v12  ;;  %v377_v22 = vld [vmem:[%s1804_s8 + $0x120] sm:$0xff]  ;;  %v379_v23 = vld [vmem:[%s1804_s8 + $0x130] sm:$0xff] }
  0x3f   : > { %360 = vst [vmem:[%s1809_s26 + $0x48] sm:$0xff] %v359_v13  ;;  %v381_v24 = vld [vmem:[%s1804_s8 + $0x140] sm:$0xff]  ;;  %v383_v25 = vld [vmem:[%s1804_s8 + $0x150] sm:$0xff] }
  0x40   : > { %362 = vst [vmem:[%s1809_s26 + $0x50] sm:$0xff] %v361_v14  ;;  %v385_v26 = vld [vmem:[%s1804_s8 + $0x160] sm:$0xff]  ;;  %v387_v27 = vld [vmem:[%s1804_s8 + $0x170] sm:$0xff] }
  0x41   : > { %364 = vst [vmem:[%s1809_s26 + $0x58] sm:$0xff] %v363_v15  ;;  %v389_v28 = vld [vmem:[%s1804_s8 + $0x180] sm:$0xff]  ;;  %v391_v29 = vld [vmem:[%s1804_s8 + $0x190] sm:$0xff] }
  0x42   : > { %366 = vst [vmem:[%s1809_s26 + $0x60] sm:$0xff] %v365_v16  ;;  %v393_v30 = vld [vmem:[%s1804_s8 + $0x1a0] sm:$0xff]  ;;  %v395_v31 = vld [vmem:[%s1804_s8 + $0x1b0] sm:$0xff] }
  0x43   : > { %368 = vst [vmem:[%s1809_s26 + $0x68] sm:$0xff] %v367_v17  ;;  %v397_v32 = vld [vmem:[%s1804_s8 + $0x1c0] sm:$0xff]  ;;  %v399_v33 = vld [vmem:[%s1804_s8 + $0x1d0] sm:$0xff] }
  0x44   : > { %370 = vst [vmem:[%s1809_s26 + $0x70] sm:$0xff] %v369_v18  ;;  %v401_v34 = vld [vmem:[%s1804_s8 + $0x1e0] sm:$0xff]  ;;  %v403_v35 = vld [vmem:[%s1804_s8 + $0x1f0] sm:$0xff] }
  0x45   : > { %372 = vst [vmem:[%s1809_s26 + $0x78] sm:$0xff] %v371_v19  ;;  %v405_v36 = vld [vmem:[%s1804_s8 + $0x200] sm:$0xff]  ;;  %v407_v37 = vld [vmem:[%s1804_s8 + $0x210] sm:$0xff] }
  0x46   : > { %374 = vst [vmem:[%s1809_s26 + $0x80] sm:$0xff] %v373_v20  ;;  %v409_v38 = vld [vmem:[%s1804_s8 + $0x220] sm:$0xff]  ;;  %v411_v39 = vld [vmem:[%s1804_s8 + $0x230] sm:$0xff] }
  0x47   : > { %376 = vst [vmem:[%s1809_s26 + $0x88] sm:$0xff] %v375_v21  ;;  %v413_v40 = vld [vmem:[%s1804_s8 + $0x240] sm:$0xff]  ;;  %v415_v41 = vld [vmem:[%s1804_s8 + $0x250] sm:$0xff] }
  0x48   : > { %378 = vst [vmem:[%s1809_s26 + $0x90] sm:$0xff] %v377_v22  ;;  %v417_v42 = vld [vmem:[%s1804_s8 + $0x260] sm:$0xff]  ;;  %v419_v43 = vld [vmem:[%s1804_s8 + $0x270] sm:$0xff] }
  0x49   : > { %380 = vst [vmem:[%s1809_s26 + $0x98] sm:$0xff] %v379_v23  ;;  %v421_v44 = vld [vmem:[%s1804_s8 + $0x280] sm:$0xff]  ;;  %v423_v45 = vld [vmem:[%s1804_s8 + $0x290] sm:$0xff] }
  0x4a   : > { %382 = vst [vmem:[%s1809_s26 + $0xa0] sm:$0xff] %v381_v24  ;;  %v425_v46 = vld [vmem:[%s1804_s8 + $0x2a0] sm:$0xff]  ;;  %v427_v47 = vld [vmem:[%s1804_s8 + $0x2b0] sm:$0xff] }
  0x4b   : > { %384 = vst [vmem:[%s1809_s26 + $0xa8] sm:$0xff] %v383_v25  ;;  %v429_v48 = vld [vmem:[%s1804_s8 + $0x2c0] sm:$0xff]  ;;  %v431_v49 = vld [vmem:[%s1804_s8 + $0x2d0] sm:$0xff] }
  0x4c   : > { %386 = vst [vmem:[%s1809_s26 + $0xb0] sm:$0xff] %v385_v26  ;;  %v433_v50 = vld [vmem:[%s1804_s8 + $0x2e0] sm:$0xff]  ;;  %v435_v51 = vld [vmem:[%s1804_s8 + $0x2f0] sm:$0xff] }
  0x4d   : > { %388 = vst [vmem:[%s1809_s26 + $0xb8] sm:$0xff] %v387_v27 }
  0x4e   : > { %390 = vst [vmem:[%s1809_s26 + $0xc0] sm:$0xff] %v389_v28 }
  0x4f   : > { %392 = vst [vmem:[%s1809_s26 + $0xc8] sm:$0xff] %v391_v29 }
  0x50   : > { %394 = vst [vmem:[%s1809_s26 + $0xd0] sm:$0xff] %v393_v30 }
  0x51   : > { %396 = vst [vmem:[%s1809_s26 + $0xd8] sm:$0xff] %v395_v31 }
  0x52   : > { %398 = vst [vmem:[%s1809_s26 + $0xe0] sm:$0xff] %v397_v32 }
  0x53   : > { %400 = vst [vmem:[%s1809_s26 + $0xe8] sm:$0xff] %v399_v33 }
  0x54   : > { %402 = vst [vmem:[%s1809_s26 + $0xf0] sm:$0xff] %v401_v34 }
  0x55   : > { %404 = vst [vmem:[%s1809_s26 + $0xf8] sm:$0xff] %v403_v35 }
  0x56   : > { %406 = vst [vmem:[%s1809_s26 + $0x100] sm:$0xff] %v405_v36 }
  0x57   : > { %408 = vst [vmem:[%s1809_s26 + $0x108] sm:$0xff] %v407_v37 }
  0x58   : > { %410 = vst [vmem:[%s1809_s26 + $0x110] sm:$0xff] %v409_v38 }
  0x59   : > { %412 = vst [vmem:[%s1809_s26 + $0x118] sm:$0xff] %v411_v39 }
  0x5a   : > { %414 = vst [vmem:[%s1809_s26 + $0x120] sm:$0xff] %v413_v40 }
  0x5b   : > { %416 = vst [vmem:[%s1809_s26 + $0x128] sm:$0xff] %v415_v41 }
  0x5c   : > { %418 = vst [vmem:[%s1809_s26 + $0x130] sm:$0xff] %v417_v42 }
  0x5d   : > { %420 = vst [vmem:[%s1809_s26 + $0x138] sm:$0xff] %v419_v43 }
  0x5e   : > { %422 = vst [vmem:[%s1809_s26 + $0x140] sm:$0xff] %v421_v44 }
  0x5f   : > { %424 = vst [vmem:[%s1809_s26 + $0x148] sm:$0xff] %v423_v45 }
  0x60   : > { %426 = vst [vmem:[%s1809_s26 + $0x150] sm:$0xff] %v425_v46 }
  0x61   : > { %428 = vst [vmem:[%s1809_s26 + $0x158] sm:$0xff] %v427_v47 }
  0x62   : > { %430 = vst [vmem:[%s1809_s26 + $0x160] sm:$0xff] %v429_v48 }
  0x63   : > { %432 = vst [vmem:[%s1809_s26 + $0x168] sm:$0xff] %v431_v49 }
  0x64   : > { %434 = vst [vmem:[%s1809_s26 + $0x170] sm:$0xff] %v433_v50 }
  0x65   : > { %436 = vst [vmem:[%s1809_s26 + $0x178] sm:$0xff] %v435_v51 }
  0x66 PF: > { %s443_s0 = sand.u32 1, %s1610_s14   ;;  %s1148_s25 = sshll.u32 %s1642_s22, 1 }
  0x67   : > { %s1147_s7 = sshll.u32 %s443_s0, 1  ;;  %s451_s24 = scalar_lea.hbm %s2089_s2, %s1148_s25 }
  0x68   : > { %s453_s12 = sshll.u32 %s451_s24, 4  ;;  %s447_s6 = scalar_lea.vmem [#allocation5], %s1147_s7  ;;  %s454_s12 = int_to_ptr.hbm [resolvable:$true] %s453_s12 }
  0x69   : > { %s455_s5 = sshll.u32 %s447_s6, 4  ;;  %s444_s8 = scalar_lea.sflag [#allocation6], %s443_s0  ;;  %s456_s5 = int_to_ptr.vmem [resolvable:$true] %s455_s5 }
  0x6a   : > { %1421 = dma.hbm_to_vmem [thread:$0]  (%p1774_p11), %s454_s12, 32, %s456_s5, %s444_s8  }
  0x6b PF: > { %p1149_p2 = scmp.ge.s32.totalorder %s1646_s23, 1  ;;  %p460_p5 = scmp.lt.s32.totalorder %s1646_s23, 13 }
  0x6d   : > { %p461_p6 = pnand %p1149_p2, %p460_p5 }
  0x6e   : > { %s467_s26 = sand.u32 (!%p461_p6), 1, %s1622_s17   ;;  %s474_s25 = sand.u32 (!%p461_p6), 1, %s1614_s15  }
  0x6f   : > { %464 = sbr.rel (%p461_p6) target bundleno = 358 (0x166), region = 88  ;;  %s480_s29 = sand.u32 (!%p461_p6), 1, %s1606_s13  }
  0x70   : > { %s1419_s7 = smul.u32 (!%p461_p6), 24, %s467_s26  ;;  %s1150_s24 = sshll.u32 (!%p461_p6), %s480_s29, 1 }
  0x71   : > { %s1420_s30 = smul.u32 (!%p461_p6), 384, %s474_s25  ;;  %s481_s12 = scalar_lea.sflag (!%p461_p6), [#allocation6], %s480_s29 }
  0x72   : > { %s1916_s0 = scalar_lea.vmem (!%p461_p6), [#allocation3], %s1419_s7  ;;  %s1920_s6 = scalar_lea.vmem (!%p461_p6), [#allocation5], %s1150_s24 }
  0x73   : > { %s1918_s11 = scalar_lea.vmem (!%p461_p6), [#allocation4], %s1420_s30 }
  0x74   : > { %1597 = dma.done.wait (%p1780_p1), %s481_s12, 32  }
  0x75   : > { %1599 = vsyncadd (%p1780_p1), %s481_s12, 4294967264  ;;  %s1151_s5 = sshll.u32 %s480_s29, 4  ;;  %p1152_p7 = scmp.ne.s32.totalorder %s1630_s19, 0 }
  0x76   : > { %s1926_s8 = scalar_lea.vmem [#allocation7], %s1151_s5 }
  0x77   : > { %525 = sbr.rel (%p1152_p7) target bundleno = 129 (0x81), region = 104 }
  0x7c   : > { %v1648_v52 = vmov 0.0  }
  0x7d   : > { %526 = vst [vmem:[#allocation2 + $0x10] sm:$0xff] %v1648_v52 }
  0x7e   : > { %527 = vst [vmem:[#allocation2] sm:$0xff] %v1648_v52 }
  0x7f   : > { %528 = vst [vmem:[#allocation2 + $0x18] sm:$0xff] %v1648_v52 }
  0x80   : > { %529 = vst [vmem:[#allocation2 + $0x8] sm:$0xff] %v1648_v52 }
  0x81 PF: > { %v1223_v53 = vld [vmem:[%s1918_s11 + $0x70] sm:$0xf]  ;;  %v1383_v54 = vld [vmem:[%s1918_s11 + $0x74] sm:$0xf0]  ;;  %v1215_v62 = vld [vmem:[%s1918_s11 + $0x60] sm:$0xf] }
  0x82   : > { %v1287_v55 = vld [vmem:[%s1918_s11 + $0xf0] sm:$0xf]  ;;  %v1224_v56 = vor.u32 %v1383_v54, %v1223_v53  ;;  %v1399_v57 = vld [vmem:[%s1918_s11 + $0xf4] sm:$0xf0]  ;;  %v1381_v63 = vld [vmem:[%s1918_s11 + $0x64] sm:$0xf0] }
  0x83   : > { %v1351_v58 = vld [vmem:[%s1918_s11 + $0x170] sm:$0xf]  ;;  %v1415_v59 = vld [vmem:[%s1918_s11 + $0x174] sm:$0xf0]  ;;  %v1288_v60 = vor.u32 %v1399_v57, %v1287_v55  ;;  %v1279_v0 = vld [vmem:[%s1918_s11 + $0xe0] sm:$0xf]  ;;  %v1216_v1 = vor.u32 %v1381_v63, %v1215_v62 }
  0x84   : > { %v1352_v61 = vor.u32 %v1415_v59, %v1351_v58  ;;  %842 = vmatpush.bf16.msra.mxu0 %v1224_v56  ;;  %v1397_v2 = vld [vmem:[%s1918_s11 + $0xe4] sm:$0xf0]  ;;  %v1343_v3 = vld [vmem:[%s1918_s11 + $0x160] sm:$0xf]  ;;  %v1207_v7 = vld [vmem:[%s1918_s11 + $0x50] sm:$0xf] }
  0x85   : > { %v1413_v4 = vld [vmem:[%s1918_s11 + $0x164] sm:$0xf0]  ;;  %856 = vmatpush.bf16.msra.mxu1 %v1288_v60  ;;  %v1280_v5 = vor.u32 %v1397_v2, %v1279_v0  ;;  %v1379_v8 = vld [vmem:[%s1918_s11 + $0x54] sm:$0xf0]  ;;  %v1271_v9 = vld [vmem:[%s1918_s11 + $0xd0] sm:$0xf] }
  0x86   : > { %870 = vmatpush.bf16.msra.mxu2 %v1352_v61  ;;  %v1344_v6 = vor.u32 %v1413_v4, %v1343_v3  ;;  %v1395_v10 = vld [vmem:[%s1918_s11 + $0xd4] sm:$0xf0]  ;;  %v1335_v11 = vld [vmem:[%s1918_s11 + $0x150] sm:$0xf]  ;;  %v1208_v13 = vor.u32 %v1379_v8, %v1207_v7  ;;  %v1199_v14 = vld [vmem:[%s1918_s11 + $0x40] sm:$0xf] }
  0x87   : > { %v1411_v12 = vld [vmem:[%s1918_s11 + $0x154] sm:$0xf0]  ;;  %v1377_v15 = vld [vmem:[%s1918_s11 + $0x44] sm:$0xf0]  ;;  %v1272_v16 = vor.u32 %v1395_v10, %v1271_v9  ;;  %v1263_v18 = vld [vmem:[%s1918_s11 + $0xc0] sm:$0xf] }
  0x88   : > { %843 = vmatpush.bf16.msra.mxu0 %v1216_v1  ;;  %v1336_v17 = vor.u32 %v1411_v12, %v1335_v11  ;;  %v1382_v19 = vld [vmem:[%s1918_s11 + $0x74] sm:$0xf]  ;;  %v1225_v20 = vld [vmem:[%s1918_s11 + $0x78] sm:$0xf0]  ;;  %v1393_v21 = vld [vmem:[%s1918_s11 + $0xc4] sm:$0xf0]  ;;  %v1200_v26 = vor.u32 %v1377_v15, %v1199_v14 }
  0x89   : > { %857 = vmatpush.bf16.msra.mxu1 %v1280_v5  ;;  %v1327_v22 = vld [vmem:[%s1918_s11 + $0x140] sm:$0xf]  ;;  %v1409_v23 = vld [vmem:[%s1918_s11 + $0x144] sm:$0xf0]  ;;  %v1228_v24 = vor.u32 %v1382_v19, %v1225_v20  ;;  %v1380_v25 = vld [vmem:[%s1918_s11 + $0x64] sm:$0xf]  ;;  %v1264_v30 = vor.u32 %v1393_v21, %v1263_v18 }
  0x8a   : > { %871 = vmatpush.bf16.msra.mxu2 %v1344_v6  ;;  %v1191_v27 = vld [vmem:[%s1918_s11 + $0x30] sm:$0xf]  ;;  %v1375_v28 = vld [vmem:[%s1918_s11 + $0x34] sm:$0xf0]  ;;  %v1217_v29 = vld [vmem:[%s1918_s11 + $0x68] sm:$0xf0]  ;;  %v1328_v31 = vor.u32 %v1409_v23, %v1327_v22 }
  0x8b   : > { %884 = vmatpush.bf16.msra.mxu3 %v1228_v24  ;;  %v1255_v32 = vld [vmem:[%s1918_s11 + $0xb0] sm:$0xf]  ;;  %v1391_v33 = vld [vmem:[%s1918_s11 + $0xb4] sm:$0xf0]  ;;  %v1220_v35 = vor.u32 %v1380_v25, %v1217_v29  ;;  %v1378_v37 = vld [vmem:[%s1918_s11 + $0x54] sm:$0xf]  ;;  %v1192_v39 = vor.u32 %v1375_v28, %v1191_v27 }
  0x8c   : > { %844 = vmatpush.bf16.msra.mxu0 %v1208_v13  ;;  %v1319_v34 = vld [vmem:[%s1918_s11 + $0x130] sm:$0xf]  ;;  %v1407_v36 = vld [vmem:[%s1918_s11 + $0x134] sm:$0xf0]  ;;  %v1209_v38 = vld [vmem:[%s1918_s11 + $0x58] sm:$0xf0]  ;;  %v1256_v43 = vor.u32 %v1391_v33, %v1255_v32 }
  0x8d   : > { %858 = vmatpush.bf16.msra.mxu1 %v1272_v16  ;;  %v1183_v40 = vld [vmem:[%s1918_s11 + $0x20] sm:$0xf]  ;;  %v1373_v41 = vld [vmem:[%s1918_s11 + $0x24] sm:$0xf0]  ;;  %v1212_v42 = vor.u32 %v1378_v37, %v1209_v38  ;;  %v1320_v44 = vor.u32 %v1407_v36, %v1319_v34  ;;  %v1376_v46 = vld [vmem:[%s1918_s11 + $0x44] sm:$0xf] }
  0x8e   : > { %872 = vmatpush.bf16.msra.mxu2 %v1336_v17  ;;  %v1247_v45 = vld [vmem:[%s1918_s11 + $0xa0] sm:$0xf]  ;;  %v1201_v47 = vld [vmem:[%s1918_s11 + $0x48] sm:$0xf0]  ;;  %v1389_v48 = vld [vmem:[%s1918_s11 + $0xa4] sm:$0xf0]  ;;  %v1184_v51 = vor.u32 %v1373_v41, %v1183_v40 }
  0x8f   : > { %885 = vmatpush.bf16.msra.mxu3 %v1220_v35  ;;  %v1311_v49 = vld [vmem:[%s1918_s11 + $0x120] sm:$0xf]  ;;  %v1405_v50 = vld [vmem:[%s1918_s11 + $0x124] sm:$0xf0]  ;;  %v1175_v52 = vld [vmem:[%s1918_s11 + $0x10] sm:$0xf]  ;;  %v1204_v54 = vor.u32 %v1376_v46, %v1201_v47  ;;  %v1248_v55 = vor.u32 %v1389_v48, %v1247_v45 }
  0x90   : > { %845 = vmatpush.bf16.msra.mxu0 %v1200_v26  ;;  %v1371_v53 = vld [vmem:[%s1918_s11 + $0x14] sm:$0xf0]  ;;  %v1312_v56 = vor.u32 %v1405_v50, %v1311_v49  ;;  %v1239_v57 = vld [vmem:[%s1918_s11 + $0x90] sm:$0xf]  ;;  %v1374_v58 = vld [vmem:[%s1918_s11 + $0x34] sm:$0xf] }
  0x91   : > { %859 = vmatpush.bf16.msra.mxu1 %v1264_v30  ;;  %v1193_v59 = vld [vmem:[%s1918_s11 + $0x38] sm:$0xf0]  ;;  %v1387_v60 = vld [vmem:[%s1918_s11 + $0x94] sm:$0xf0]  ;;  %v1303_v61 = vld [vmem:[%s1918_s11 + $0x110] sm:$0xf]  ;;  %v1176_v63 = vor.u32 %v1371_v53, %v1175_v52 }
  0x92   : > { %873 = vmatpush.bf16.msra.mxu2 %v1328_v31  ;;  %v1403_v62 = vld [vmem:[%s1918_s11 + $0x114] sm:$0xf0]  ;;  %v1167_v0 = vld [vmem:[%s1918_s11] sm:$0xf]  ;;  %v1369_v1 = vld [vmem:[%s1918_s11 + $0x4] sm:$0xf0]  ;;  %v1196_v3 = vor.u32 %v1374_v58, %v1193_v59  ;;  %v1240_v4 = vor.u32 %v1387_v60, %v1239_v57 }
  0x93   : > { %886 = vmatpush.bf16.msra.mxu3 %v1212_v42  ;;  %v1231_v2 = vld [vmem:[%s1918_s11 + $0x80] sm:$0xf]  ;;  %v1304_v5 = vor.u32 %v1403_v62, %v1303_v61  ;;  %v1385_v6 = vld [vmem:[%s1918_s11 + $0x84] sm:$0xf0]  ;;  %v1372_v7 = vld [vmem:[%s1918_s11 + $0x24] sm:$0xf]  ;;  %v1168_v15 = vor.u32 %v1369_v1, %v1167_v0 }
  0x94   : > { %846 = vmatpush.bf16.msra.mxu0 %v1192_v39  ;;  %v1185_v8 = vld [vmem:[%s1918_s11 + $0x28] sm:$0xf0]  ;;  %v1295_v9 = vld [vmem:[%s1918_s11 + $0x100] sm:$0xf]  ;;  %v1401_v10 = vld [vmem:[%s1918_s11 + $0x104] sm:$0xf0]  ;;  %v1232_v20 = vor.u32 %v1385_v6, %v1231_v2 }
  0x95   : > { %860 = vmatpush.bf16.msra.mxu1 %v1256_v43  ;;  %v1398_v11 = vld [vmem:[%s1918_s11 + $0xf4] sm:$0xf]  ;;  %v1289_v12 = vld [vmem:[%s1918_s11 + $0xf8] sm:$0xf0]  ;;  %v1163_v16 = vld [vmem:[%s1916_s0 + $0x8] sm:$0xf]  ;;  %v1188_v17 = vor.u32 %v1372_v7, %v1185_v8  ;;  %v1296_v21 = vor.u32 %v1401_v10, %v1295_v9 }
  0x96   : > { %874 = vmatpush.bf16.msra.mxu2 %v1320_v44  ;;  %v1414_v13 = vld [vmem:[%s1918_s11 + $0x174] sm:$0xf]  ;;  %v1353_v14 = vld [vmem:[%s1918_s11 + $0x178] sm:$0xf0]  ;;  %v1155_v18 = vld [vmem:[%s1916_s0] sm:$0xf]  ;;  %v1292_v25 = vor.u32 %v1398_v11, %v1289_v12 }
  0x97   : > { %887 = vmatpush.bf16.msra.mxu3 %v1204_v54  ;;  %v1366_v19 = vld [vmem:[%s1916_s0 + $0x8] sm:$0xf0]  ;;  %v1367_v22 = vld [vmem:[%s1916_s0 + $0x10] sm:$0xf0]  ;;  %v1365_v23 = vld [vmem:[%s1916_s0 + $0x4] sm:$0xf]  ;;  %v1356_v26 = vor.u32 %v1414_v13, %v1353_v14 }
  0x98   : > { %847 = vmatpush.bf16.msra.mxu0 %v1184_v51  ;;  %v1157_v24 = vld [vmem:[%s1916_s0 + $0xc] sm:$0xf0]  ;;  %v1396_v27 = vld [vmem:[%s1918_s11 + $0xe4] sm:$0xf]  ;;  %v1370_v28 = vld [vmem:[%s1918_s11 + $0x14] sm:$0xf]  ;;  %v1156_v33 = vor.u32 %v1366_v19, %v1155_v18  ;;  %v2005_v34 = vor.u32 %v1367_v22, %v1163_v16 }
  0x99   : > { %861 = vmatpush.bf16.msra.mxu1 %v1248_v55  ;;  %v1177_v29 = vld [vmem:[%s1918_s11 + $0x18] sm:$0xf0]  ;;  %v1281_v30 = vld [vmem:[%s1918_s11 + $0xe8] sm:$0xf0]  ;;  %v1412_v31 = vld [vmem:[%s1918_s11 + $0x164] sm:$0xf]  ;;  %v2007_v35 = vor.u32 %v1365_v23, %v1157_v24 }
  0x9a   : > { %875 = vmatpush.bf16.msra.mxu2 %v1312_v56  ;;  %v1345_v32 = vld [vmem:[%s1918_s11 + $0x168] sm:$0xf0]  ;;  %v1180_v36 = vor.u32 %v1370_v28, %v1177_v29  ;;  %v1284_v37 = vor.u32 %v1396_v27, %v1281_v30  ;;  %v1394_v39 = vld [vmem:[%s1918_s11 + $0xd4] sm:$0xf]  ;;  %v1368_v40 = vld [vmem:[%s1918_s11 + $0x4] sm:$0xf] }
  0x9b   : > { %888 = vmatpush.bf16.msra.mxu3 %v1196_v3  ;;  %v1348_v38 = vor.u32 %v1412_v31, %v1345_v32  ;;  %v1169_v41 = vld [vmem:[%s1918_s11 + $0x8] sm:$0xf0]  ;;  %v1273_v42 = vld [vmem:[%s1918_s11 + $0xd8] sm:$0xf0]  ;;  %v1410_v43 = vld [vmem:[%s1918_s11 + $0x154] sm:$0xf] }
  0x9c   : > { %848 = vmatpush.bf16.msra.mxu0 %v1176_v63  ;;  %v1337_v44 = vld [vmem:[%s1918_s11 + $0x158] sm:$0xf0]  ;;  %v1172_v45 = vor.u32 %v1368_v40, %v1169_v41  ;;  %v1276_v46 = vor.u32 %v1394_v39, %v1273_v42  ;;  %v1392_v48 = vld [vmem:[%s1918_s11 + $0xc4] sm:$0xf]  ;;  %v1265_v49 = vld [vmem:[%s1918_s11 + $0xc8] sm:$0xf0] }
  0x9d   : > { %862 = vmatpush.bf16.msra.mxu1 %v1240_v4  ;;  %v1340_v47 = vor.u32 %v1410_v43, %v1337_v44  ;;  %v1408_v50 = vld [vmem:[%s1918_s11 + $0x144] sm:$0xf]  ;;  %v1329_v51 = vld [vmem:[%s1918_s11 + $0x148] sm:$0xf0]  ;;  %v1268_v52 = vor.u32 %v1392_v48, %v1265_v49  ;;  %v1390_v54 = vld [vmem:[%s1918_s11 + $0xb4] sm:$0xf] }
  0x9e   : > { %876 = vmatpush.bf16.msra.mxu2 %v1304_v5  ;;  %v1332_v53 = vor.u32 %v1408_v50, %v1329_v51  ;;  %v1257_v55 = vld [vmem:[%s1918_s11 + $0xb8] sm:$0xf0]  ;;  %v1406_v56 = vld [vmem:[%s1918_s11 + $0x134] sm:$0xf]  ;;  %v1388_v60 = vld [vmem:[%s1918_s11 + $0xa4] sm:$0xf] }
  0x9f   : > { %889 = vmatpush.bf16.msra.mxu3 %v1188_v17  ;;  %v1321_v57 = vld [vmem:[%s1918_s11 + $0x138] sm:$0xf0]  ;;  %v1260_v58 = vor.u32 %v1390_v54, %v1257_v55  ;;  %v1249_v61 = vld [vmem:[%s1918_s11 + $0xa8] sm:$0xf0]  ;;  %v1404_v62 = vld [vmem:[%s1918_s11 + $0x124] sm:$0xf] }
  0xa0   : > { %849 = vmatpush.bf16.msra.mxu0 %v1168_v15  ;;  %v1324_v59 = vor.u32 %v1406_v56, %v1321_v57  ;;  %v1313_v63 = vld [vmem:[%s1918_s11 + $0x128] sm:$0xf0]  ;;  %v1252_v0 = vor.u32 %v1388_v60, %v1249_v61  ;;  %v1386_v2 = vld [vmem:[%s1918_s11 + $0x94] sm:$0xf]  ;;  %v1241_v3 = vld [vmem:[%s1918_s11 + $0x98] sm:$0xf0] }
  0xa1   : > { %863 = vmatpush.bf16.msra.mxu1 %v1232_v20  ;;  %v1316_v1 = vor.u32 %v1404_v62, %v1313_v63  ;;  %v1402_v4 = vld [vmem:[%s1918_s11 + $0x114] sm:$0xf]  ;;  %v1305_v5 = vld [vmem:[%s1918_s11 + $0x118] sm:$0xf0]  ;;  %v1244_v6 = vor.u32 %v1386_v2, %v1241_v3  ;;  %v1384_v8 = vld [vmem:[%s1918_s11 + $0x84] sm:$0xf] }
  0xa2   : > { %877 = vmatpush.bf16.msra.mxu2 %v1296_v21  ;;  %v1308_v7 = vor.u32 %v1402_v4, %v1305_v5  ;;  %v1233_v9 = vld [vmem:[%s1918_s11 + $0x88] sm:$0xf0]  ;;  %v1400_v10 = vld [vmem:[%s1918_s11 + $0x104] sm:$0xf]  ;;  %v531_v32 = vld [vmem:[#allocation2] sm:$0xff]  ;;  %p1357_p8 = scmp.ne.s32.totalorder %s1630_s19, 5 }
  0xa3   : > { %850 = vmatmul.bf16.vlgmr.msra.gmra.mxu0 %v1156_v33  ;;  %890 = vmatpush.bf16.msra.mxu3 %v1180_v36  ;;  %v1297_v11 = vld [vmem:[%s1918_s11 + $0x108] sm:$0xf0]  ;;  %v1236_v12 = vor.u32 %v1384_v8, %v1233_v9  ;;  %v530_v17 = vld [vmem:[#allocation2 + $0x10] sm:$0xff] }
  0xa4   : > { %898 = vmatpush.bf16.msrb.mxu0 %v1292_v25  ;;  %864 = vmatmul.bf16.vlgmr.msra.gmra.mxu1 %v2007_v35  ;;  %v1300_v13 = vor.u32 %v1400_v10, %v1297_v11  ;;  %v532_v24 = vld [vmem:[#allocation2 + $0x18] sm:$0xff] }
  0xa5   : > { %912 = vmatpush.bf16.msrb.mxu1 %v1356_v26  ;;  %878 = vmatmul.bf16.vlgmr.msra.gmra.mxu2 %v2005_v34 }
  0xa7   : > { %891 = vmatpush.bf16.msra.mxu3 %v1172_v45 }
  0xa8   : > { %899 = vmatpush.bf16.msrb.mxu0 %v1284_v37 }
  0xa9   : > { %913 = vmatpush.bf16.msrb.mxu1 %v1348_v38  ;;  %v533_v38 = vld [vmem:[#allocation2 + $0x8] sm:$0xff] }
  0xaa   : > { %892 = vmatmul.bf16.vlgmr.msra.gmra.mxu3 %v1156_v33 }
  0xac   : > { %900 = vmatpush.bf16.msrb.mxu0 %v1276_v46 }
  0xad   : > { %914 = vmatpush.bf16.msrb.mxu1 %v1340_v47 }
  0xb0   : > { %901 = vmatpush.bf16.msrb.mxu0 %v1268_v52 }
  0xb1   : > { %915 = vmatpush.bf16.msrb.mxu1 %v1332_v53 }
  0xb4   : > { %902 = vmatpush.bf16.msrb.mxu0 %v1260_v58 }
  0xb5   : > { %916 = vmatpush.bf16.msrb.mxu1 %v1324_v59 }
  0xb8   : > { %903 = vmatpush.bf16.msrb.mxu0 %v1252_v0 }
  0xb9   : > { %917 = vmatpush.bf16.msrb.mxu1 %v1316_v1 }
  0xbc   : > { %904 = vmatpush.bf16.msrb.mxu0 %v1244_v6 }
  0xbd   : > { %918 = vmatpush.bf16.msrb.mxu1 %v1308_v7 }
  0xc0   : > { %905 = vmatpush.bf16.msrb.mxu0 %v1236_v12 }
  0xc1   : > { %919 = vmatpush.bf16.msrb.mxu1 %v1300_v13 }
  0xc3   : > { %906 = vmatmul.bf16.vlgmr.msrb.gmra.mxu0 %v2007_v35 }
  0xc4   : > { %920 = vmatmul.bf16.vlgmr.msrb.gmra.mxu1 %v2005_v34 }
 0x120   : > { %v851_v14 = vpop.f32.mrf.mxu0 }
 0x121   : > { %v865_v15 = vpop.f32.mrf.mxu1 }
 0x122   : > { %v866_v16 = vadd.f32 %v865_v15, %v851_v14 }
 0x128   : > { %v879_v18 = vpop.f32.mrf.mxu2  ;;  %v853_v20 = vpop.f32.mrf.mxu0 }
 0x129   : > { %v880_v19 = vadd.f32 %v879_v18, %v866_v16  ;;  %v867_v21 = vpop.f32.mrf.mxu1 }
 0x12a   : > { %v868_v23 = vadd.f32 %v867_v21, %v853_v20 }
 0x12b   : > { %v926_v22 = vadd.f32 %v880_v19, %v530_v17 }
 0x12d   : > { %930 = vst [vmem:[#allocation2 + $0x10] sm:$0xff] %v926_v22  ;;  %v893_v28 = vpop.f32.mrf.mxu3 }
 0x130   : > { %v881_v25 = vpop.f32.mrf.mxu2 }
 0x131   : > { %v882_v26 = vadd.f32 %v881_v25, %v868_v23 }
 0x133   : > { %v928_v27 = vadd.f32 %v882_v26, %v532_v24 }
 0x135   : > { %932 = vst [vmem:[#allocation2 + $0x18] sm:$0xff] %v928_v27  ;;  %v895_v35 = vpop.f32.mrf.mxu3 }
 0x140   : > { %v907_v29 = vpop.f32.mrf.mxu0 }
 0x141   : > { %v921_v30 = vpop.f32.mrf.mxu1  ;;  %v908_v31 = vadd.f32 %v907_v29, %v893_v28 }
 0x143   : > { %v922_v33 = vadd.f32 %v921_v30, %v908_v31 }
 0x145   : > { %v927_v34 = vadd.f32 %v922_v33, %v531_v32 }
 0x147   : > { %931 = vst [vmem:[#allocation2] sm:$0xff] %v927_v34 }
 0x148   : > { %v909_v36 = vpop.f32.mrf.mxu0 }
 0x149   : > { %v910_v37 = vadd.f32 %v909_v36, %v895_v35  ;;  %v923_v39 = vpop.f32.mrf.mxu1 }
 0x14b   : > { %v924_v40 = vadd.f32 %v923_v39, %v910_v37  ;;  %937 = sbr.rel (%p1357_p8) target bundleno = 350 (0x15e), region = 108 }
 0x14d   : > { %v929_v41 = vadd.f32 %v924_v40, %v533_v38 }
 0x14f   : > { %933 = vst [vmem:[#allocation2 + $0x8] sm:$0xff] %v929_v41 }
 0x150   : > { %v938_v42 = vld [vmem:[#allocation2 + $0x10] sm:$0xff]  ;;  %v939_v43 = vld [vmem:[#allocation2] sm:$0xff]  ;;  %v940_v47 = vld [vmem:[#allocation2 + $0x18] sm:$0xff] }
 0x151   : > { %v942_v44 = vld [vmem:[%s1920_s6] sm:$0x3] }
 0x152   : > { %v944_v45 = vperm.slane %v942_v44, 0  ;;  %v945_v46 = vperm.slane %v942_v44, 1 }
 0x154   : > { %v948_v49 = vadd.f32 %v944_v45, %v938_v42  ;;  %v949_v50 = vadd.f32 %v945_v46, %v939_v43  ;;  %v950_v51 = vadd.f32 %v944_v45, %v940_v47 }
 0x156   : > { %v941_v48 = vld [vmem:[#allocation2 + $0x8] sm:$0xff]  ;;  %v952_v53 = vmax.f32 %v948_v49, 0.0  ;;  %v953_v54 = vmax.f32 %v949_v50, 0.0  ;;  %v954_v55 = vmax.f32 %v950_v51, 0.0 }
 0x157   : > { %v951_v52 = vadd.f32 %v945_v46, %v941_v48 }
 0x158   : > { %v956_v57 = vpack.c.bf16 %v953_v54, %v952_v53 }
 0x159   : > { %v955_v56 = vmax.f32 %v951_v52, 0.0 }
 0x15a   : > { %958 = vst [vmem:[%s1926_s8] sm:$0xff] %v956_v57 }
 0x15b   : > { %v957_v58 = vpack.c.bf16 %v955_v56, %v954_v55 }
 0x15d   : > { %959 = vst [vmem:[%s1926_s8 + $0x8] sm:$0xff] %v957_v58 }
 0x15e PF: > { %966 = sbr.rel (!%p1784_p3) target bundleno = 358 (0x166), region = 112  ;;  %s1416_s15 = sshll.u32 (%p1784_p3), %s1634_s20, 3 }
 0x15f   : > { %s972_s27 = scalar_lea.vmem (%p1784_p3), %s2090_s3, %s1416_s15 }
 0x161   : > { %v1003_v59 = vld [vmem:[%s1926_s8] sm:$0xff] (%p1784_p3) }
 0x162   : > { %1004 = vst [vmem:[%s972_s27] sm:$0xff] (%p1784_p3), %v1003_v59 }
 0x164   : > { %v1005_v60 = vld [vmem:[%s1926_s8 + $0x8] sm:$0xff] }
 0x165   : > { %1006 = vst [vmem:[%s972_s27 + $0x10] sm:$0xff] %v1005_v60 }
 0x166 PF: > { %s16_s23 = sadd.s32 1, %s1646_s23   ;;  %s2102_s28 = sld [smem:[#allocation9_spill]] }
 0x167   : > { %p13_p9 = scmp.ge.s32.totalorder %s16_s23, 14   ;;  %s2103_s26 = sld [smem:[#allocation10_spill]] }
 0x168   : > { %s2104_s12 = smov %s1606_s13  ;;  %s2105_s13 = smov %s1610_s14 }
 0x169   : > { %s2106_s14 = smov %s1770_s10  ;;  %s2107_s15 = smov %s1618_s16 }
 0x16a   : > { %s2108_s16 = smov %s1767_s9  ;;  %s2109_s17 = smov %s1626_s18 }
 0x16b   : > { %s2110_s18 = smov %s1751_s4  ;;  %s2111_s19 = smov %s1638_s21 }
 0x16c   : > { %s2112_s20 = smov %s1642_s22  ;;  %s2113_s21 = smov %s2102_s28 }
 0x16d   : > { %s2114_s22 = smov %s2103_s26  ;;  %15 = sbr.rel (!%p13_p9) target bundleno = 9 (0x9), region = 204 }
 0x172   :  { %1022 = vsyncpa [#allocation6], 1 }
 0x173   :  { %1024 = vsyncpa [#allocation6 + $0x1], 1 }

// kernel: _lambda_.27
= control target key start
LH: loop header
LB: loop body
LE: loop exit
PB: predicated region body
PF: predicated region fallthrough
CT: control target
= control target key end

     0   :  { %s2309_s0 = inlined_call_operand.vmem [shape: bf16[16,4608], index: 0, kind: input, shape index: {}]   ;;  %s2310_s1 = inlined_call_operand.vmem [shape: bf16[4608,512], index: 1, kind: input, shape index: {}]   ;;  %s2311_s2 = inlined_call_operand.vmem [shape: f32[1,512], index: 2, kind: input, shape index: {}]   ;;  %s2312_s3 = inlined_call_operand.vmem [shape: bf16[16,512], index: 3, kind: output, shape index: {}]  }
   0x1   :  { %2314 = sst [smem:[#allocation7_spill]] %s2309_s0 }
   0x2   :  { %2315 = sst [smem:[#allocation8_spill]] %s2310_s1 }
   0x3   :  { %s1843_s12 = smov 0   ;;  %s1845_s13 = smov 0  }
   0x4   :  { %s1847_s14 = smov 0   ;;  %s1849_s15 = smov 0  }
   0x5   :  { %s1851_s16 = smov 0   ;;  %s1853_s17 = smov 0  }
   0x6   :  { %s1855_s18 = smov 0   ;;  %s1857_s19 = smov 0  }
   0x7   :  { %s1859_s20 = smov 0   ;;  %s1861_s21 = smov 0  }
   0x8   :  { %s1863_s22 = smov 0  }
   0x9 LB: > { %s1278_s23 = sadd.s32 4294967295, %s1820_s22   ;;  %s25_s24 = sadd.s32 1, %s1812_s20  ;;  %s1820_s22 = sphi %s1863_s22, %s13_s22   ;;  %s1816_s21 = sphi %s1861_s21, %s2332_s21   ;;  %s1812_s20 = sphi %s1859_s20, %s2331_s20   ;;  %s1808_s19 = sphi %s1857_s19, %s2330_s19   ;;  %s1804_s18 = sphi %s1855_s18, %s2329_s18   ;;  %s1800_s17 = sphi %s1853_s17, %s2328_s17   ;;  %s1796_s16 = sphi %s1851_s16, %s2327_s16   ;;  %s1792_s15 = sphi %s1849_s15, %s2326_s15   ;;  %s1788_s14 = sphi %s1847_s14, %s2325_s14   ;;  %s1784_s13 = sphi %s1845_s13, %s2324_s13   ;;  %s1780_s12 = sphi %s1843_s12, %s2323_s12  }
   0xa   : > { %p26_p0 = scmp.ge.s32.totalorder %s25_s24, 9  ;;  %s28_s25 = sadd.s32 1, %s1816_s21 }
   0xb   : > { %s41_s26 = sadd.s32 1, %s1800_s17  ;;  %p48_p1 = scmp.ne.s32.totalorder %s1800_s17, %s1796_s16 }
   0xc   : > { %s2334_s24 = smov (%p26_p0, %s25_s24), 0  ;;  %s2336_s25 = smov (!%p26_p0, %s28_s25), %s1816_s21 }
   0xd   : > { %s37_s27 = ssub.s32 %s1812_s20, %s2334_s24  ;;  %p49_p2 = scmp.eq.s32.totalorder %s1820_s22, 0 }
   0xe   : > { %p30_p3 = scmp.ge.s32.totalorder %s2336_s25, 2  ;;  %p39_p4 = scmp.eq.s32.totalorder %s37_s27, 0 }
   0xf   : > { %p1910_p5 = por %p49_p2, %p48_p1  ;;  %s69_s29 = sadd.s32 1, %s1792_s15 }
  0x10   : > { %s2338_s25 = smov (%p30_p3, %s2336_s25), 0  ;;  %p76_p6 = scmp.ne.s32.totalorder %s1792_s15, %s1788_s14 }
  0x11   : > { %2317 = sst [smem:[#allocation6_spill]] %s2338_s25  ;;  %s65_s4 = ssub.s32 %s1816_s21, %s2338_s25 }
  0x12   : > { %s1918_s30 = scalar_select %p39_p4, %s1800_s17, %s41_s26  }
  0x13   : > { %s66_s5 = sor.u32 %s65_s4, %s37_s27  ;;  %p121_p7 = scmp.eq.s32.totalorder %s65_s4, 0 }
  0x14   : > { %p67_p8 = scmp.eq.s32.totalorder %s66_s5, 0  ;;  %p1924_p9 = por %p76_p6, %p49_p2 }
  0x15   : > { %s123_s7 = sadd.s32 1, %s1784_s13  ;;  %p133_p10 = scmp.ne.s32.totalorder %s1784_s13, %s1780_s12 }
  0x16   : > { %s1932_s8 = scalar_select %p67_p8, %s1792_s15, %s69_s29  }
  0x17   : > { %s1935_s9 = scalar_select %p121_p7, %s1784_s13, %s123_s7  }
  0x18   : > { %p134_p11 = scmp.eq.s32.totalorder %s1278_s23, 17  ;;  %p1281_p13 = scmp.ge.s32.totalorder %s1820_s22, 18 }
  0x1a   : > { %p1937_p12 = por %p134_p11, %p133_p10  ;;  %156 = sbr.rel (%p1281_p13) target bundleno = 119 (0x77), region = 16 }
  0x1f   : > { %159 = sbr.rel (!%p1910_p5) target bundleno = 45 (0x2d), region = 20  ;;  %s161_s11 = sand.u32 (%p1910_p5), 1, %s1800_s17  }
  0x20   : > { %s1574_s26 = sshll.u32 (%p1910_p5), %s1812_s20, 4  ;;  %s1282_s27 = sshll.u32 (%p1910_p5), %s161_s11, 5 }
  0x21   : > { %s2320_s0 = sld [smem:[#allocation7_spill]] (%p1910_p5)  ;;  %s163_s23 = scalar_lea.vmem (%p1910_p5), [#allocation3], %s1282_s27 }
  0x27   : > { %s169_s5 = scalar_lea.vmem %s2320_s0, %s1574_s26 }
  0x28   : > { %v182_v0 = vld [vmem:[%s169_s5] sm:$0xff]  ;;  %v184_v1 = vld [vmem:[%s169_s5 + $0x8] sm:$0xff]  ;;  %v186_v2 = vld [vmem:[%s169_s5 + $0x90] sm:$0xff] }
  0x29   : > { %183 = vst [vmem:[%s163_s23] sm:$0xff] %v182_v0  ;;  %v188_v3 = vld [vmem:[%s169_s5 + $0x98] sm:$0xff] }
  0x2a   : > { %185 = vst [vmem:[%s163_s23 + $0x8] sm:$0xff] %v184_v1 }
  0x2b   : > { %187 = vst [vmem:[%s163_s23 + $0x10] sm:$0xff] %v186_v2 }
  0x2c   : > { %189 = vst [vmem:[%s163_s23 + $0x18] sm:$0xff] %v188_v3 }
  0x2d PF: > { %195 = sbr.rel (!%p1924_p9) target bundleno = 119 (0x77), region = 43  ;;  %s197_s28 = sand.u32 (%p1924_p9), 1, %s1792_s15  }
  0x2e   : > { %s1287_s7 = sshll.u32 (%p1924_p9), %s1816_s21, 1  ;;  %s1285_s11 = sshll.u32 (%p1924_p9), %s197_s28, 9 }
  0x2f   : > { %s1575_s26 = sshll.u32 (%p1924_p9), %s1812_s20, 8  ;;  %s2321_s1 = sld [smem:[#allocation8_spill]] (%p1924_p9) }
  0x30   : > { %s203_s29 = sadd.s32 (%p1924_p9), %s1575_s26, %s1287_s7  ;;  %s1962_s6 = scalar_lea.vmem (%p1924_p9), [#allocation4], %s1285_s11 }
  0x31   : > { %s1289_s4 = sshll.u32 (%p1924_p9), %s203_s29, 2 }
  0x35   : > { %s1957_s5 = scalar_lea.vmem %s2321_s1, %s1289_s4 }
  0x36   : > { %v360_v4 = vld [vmem:[%s1957_s5] sm:$0xff]  ;;  %v362_v5 = vld [vmem:[%s1957_s5 + $0x10] sm:$0xff] }
  0x37   : > { %v364_v6 = vld [vmem:[%s1957_s5 + $0x20] sm:$0xff]  ;;  %361 = vst [vmem:[%s1962_s6] sm:$0xff] %v360_v4  ;;  %v366_v7 = vld [vmem:[%s1957_s5 + $0x30] sm:$0xff] }
  0x38   : > { %363 = vst [vmem:[%s1962_s6 + $0x8] sm:$0xff] %v362_v5  ;;  %v368_v8 = vld [vmem:[%s1957_s5 + $0x40] sm:$0xff]  ;;  %v370_v9 = vld [vmem:[%s1957_s5 + $0x50] sm:$0xff] }
  0x39   : > { %365 = vst [vmem:[%s1962_s6 + $0x10] sm:$0xff] %v364_v6  ;;  %v372_v10 = vld [vmem:[%s1957_s5 + $0x60] sm:$0xff]  ;;  %v374_v11 = vld [vmem:[%s1957_s5 + $0x70] sm:$0xff] }
  0x3a   : > { %367 = vst [vmem:[%s1962_s6 + $0x18] sm:$0xff] %v366_v7  ;;  %v376_v12 = vld [vmem:[%s1957_s5 + $0x80] sm:$0xff]  ;;  %v378_v13 = vld [vmem:[%s1957_s5 + $0x90] sm:$0xff] }
  0x3b   : > { %369 = vst [vmem:[%s1962_s6 + $0x20] sm:$0xff] %v368_v8  ;;  %v380_v14 = vld [vmem:[%s1957_s5 + $0xa0] sm:$0xff]  ;;  %v382_v15 = vld [vmem:[%s1957_s5 + $0xb0] sm:$0xff] }
  0x3c   : > { %371 = vst [vmem:[%s1962_s6 + $0x28] sm:$0xff] %v370_v9  ;;  %v384_v16 = vld [vmem:[%s1957_s5 + $0xc0] sm:$0xff]  ;;  %v386_v17 = vld [vmem:[%s1957_s5 + $0xd0] sm:$0xff] }
  0x3d   : > { %373 = vst [vmem:[%s1962_s6 + $0x30] sm:$0xff] %v372_v10  ;;  %v388_v18 = vld [vmem:[%s1957_s5 + $0xe0] sm:$0xff]  ;;  %v390_v19 = vld [vmem:[%s1957_s5 + $0xf0] sm:$0xff] }
  0x3e   : > { %375 = vst [vmem:[%s1962_s6 + $0x38] sm:$0xff] %v374_v11  ;;  %v392_v20 = vld [vmem:[%s1957_s5 + $0x100] sm:$0xff]  ;;  %v394_v21 = vld [vmem:[%s1957_s5 + $0x110] sm:$0xff] }
  0x3f   : > { %377 = vst [vmem:[%s1962_s6 + $0x40] sm:$0xff] %v376_v12  ;;  %v396_v22 = vld [vmem:[%s1957_s5 + $0x120] sm:$0xff]  ;;  %v398_v23 = vld [vmem:[%s1957_s5 + $0x130] sm:$0xff] }
  0x40   : > { %379 = vst [vmem:[%s1962_s6 + $0x48] sm:$0xff] %v378_v13  ;;  %v400_v24 = vld [vmem:[%s1957_s5 + $0x140] sm:$0xff]  ;;  %v402_v25 = vld [vmem:[%s1957_s5 + $0x150] sm:$0xff] }
  0x41   : > { %381 = vst [vmem:[%s1962_s6 + $0x50] sm:$0xff] %v380_v14  ;;  %v404_v26 = vld [vmem:[%s1957_s5 + $0x160] sm:$0xff]  ;;  %v406_v27 = vld [vmem:[%s1957_s5 + $0x170] sm:$0xff] }
  0x42   : > { %383 = vst [vmem:[%s1962_s6 + $0x58] sm:$0xff] %v382_v15  ;;  %v408_v28 = vld [vmem:[%s1957_s5 + $0x180] sm:$0xff]  ;;  %v410_v29 = vld [vmem:[%s1957_s5 + $0x190] sm:$0xff] }
  0x43   : > { %385 = vst [vmem:[%s1962_s6 + $0x60] sm:$0xff] %v384_v16  ;;  %v412_v30 = vld [vmem:[%s1957_s5 + $0x1a0] sm:$0xff]  ;;  %v414_v31 = vld [vmem:[%s1957_s5 + $0x1b0] sm:$0xff] }
  0x44   : > { %387 = vst [vmem:[%s1962_s6 + $0x68] sm:$0xff] %v386_v17  ;;  %v416_v32 = vld [vmem:[%s1957_s5 + $0x1c0] sm:$0xff]  ;;  %v418_v33 = vld [vmem:[%s1957_s5 + $0x1d0] sm:$0xff] }
  0x45   : > { %389 = vst [vmem:[%s1962_s6 + $0x70] sm:$0xff] %v388_v18  ;;  %v420_v34 = vld [vmem:[%s1957_s5 + $0x1e0] sm:$0xff]  ;;  %v422_v35 = vld [vmem:[%s1957_s5 + $0x1f0] sm:$0xff] }
  0x46   : > { %391 = vst [vmem:[%s1962_s6 + $0x78] sm:$0xff] %v390_v19  ;;  %v424_v36 = vld [vmem:[%s1957_s5 + $0x200] sm:$0xff]  ;;  %v426_v37 = vld [vmem:[%s1957_s5 + $0x210] sm:$0xff] }
  0x47   : > { %393 = vst [vmem:[%s1962_s6 + $0x80] sm:$0xff] %v392_v20  ;;  %v428_v38 = vld [vmem:[%s1957_s5 + $0x220] sm:$0xff]  ;;  %v430_v39 = vld [vmem:[%s1957_s5 + $0x230] sm:$0xff] }
  0x48   : > { %395 = vst [vmem:[%s1962_s6 + $0x88] sm:$0xff] %v394_v21  ;;  %v432_v40 = vld [vmem:[%s1957_s5 + $0x240] sm:$0xff]  ;;  %v434_v41 = vld [vmem:[%s1957_s5 + $0x250] sm:$0xff] }
  0x49   : > { %397 = vst [vmem:[%s1962_s6 + $0x90] sm:$0xff] %v396_v22  ;;  %v436_v42 = vld [vmem:[%s1957_s5 + $0x260] sm:$0xff]  ;;  %v438_v43 = vld [vmem:[%s1957_s5 + $0x270] sm:$0xff] }
  0x4a   : > { %399 = vst [vmem:[%s1962_s6 + $0x98] sm:$0xff] %v398_v23  ;;  %v440_v44 = vld [vmem:[%s1957_s5 + $0x280] sm:$0xff]  ;;  %v442_v45 = vld [vmem:[%s1957_s5 + $0x290] sm:$0xff] }
  0x4b   : > { %401 = vst [vmem:[%s1962_s6 + $0xa0] sm:$0xff] %v400_v24  ;;  %v444_v46 = vld [vmem:[%s1957_s5 + $0x2a0] sm:$0xff]  ;;  %v446_v47 = vld [vmem:[%s1957_s5 + $0x2b0] sm:$0xff] }
  0x4c   : > { %403 = vst [vmem:[%s1962_s6 + $0xa8] sm:$0xff] %v402_v25  ;;  %v448_v48 = vld [vmem:[%s1957_s5 + $0x2c0] sm:$0xff]  ;;  %v450_v49 = vld [vmem:[%s1957_s5 + $0x2d0] sm:$0xff] }
  0x4d   : > { %405 = vst [vmem:[%s1962_s6 + $0xb0] sm:$0xff] %v404_v26  ;;  %v452_v50 = vld [vmem:[%s1957_s5 + $0x2e0] sm:$0xff]  ;;  %v454_v51 = vld [vmem:[%s1957_s5 + $0x2f0] sm:$0xff] }
  0x4e   : > { %407 = vst [vmem:[%s1962_s6 + $0xb8] sm:$0xff] %v406_v27  ;;  %v456_v52 = vld [vmem:[%s1957_s5 + $0x300] sm:$0xff]  ;;  %v458_v53 = vld [vmem:[%s1957_s5 + $0x310] sm:$0xff] }
  0x4f   : > { %409 = vst [vmem:[%s1962_s6 + $0xc0] sm:$0xff] %v408_v28  ;;  %v460_v54 = vld [vmem:[%s1957_s5 + $0x320] sm:$0xff]  ;;  %v462_v55 = vld [vmem:[%s1957_s5 + $0x330] sm:$0xff] }
  0x50   : > { %411 = vst [vmem:[%s1962_s6 + $0xc8] sm:$0xff] %v410_v29  ;;  %v464_v56 = vld [vmem:[%s1957_s5 + $0x340] sm:$0xff]  ;;  %v466_v57 = vld [vmem:[%s1957_s5 + $0x350] sm:$0xff] }
  0x51   : > { %413 = vst [vmem:[%s1962_s6 + $0xd0] sm:$0xff] %v412_v30  ;;  %v468_v58 = vld [vmem:[%s1957_s5 + $0x360] sm:$0xff]  ;;  %v470_v59 = vld [vmem:[%s1957_s5 + $0x370] sm:$0xff] }
  0x52   : > { %415 = vst [vmem:[%s1962_s6 + $0xd8] sm:$0xff] %v414_v31  ;;  %v472_v60 = vld [vmem:[%s1957_s5 + $0x380] sm:$0xff]  ;;  %v474_v61 = vld [vmem:[%s1957_s5 + $0x390] sm:$0xff] }
  0x53   : > { %417 = vst [vmem:[%s1962_s6 + $0xe0] sm:$0xff] %v416_v32  ;;  %v476_v62 = vld [vmem:[%s1957_s5 + $0x3a0] sm:$0xff]  ;;  %v478_v63 = vld [vmem:[%s1957_s5 + $0x3b0] sm:$0xff] }
  0x54   : > { %419 = vst [vmem:[%s1962_s6 + $0xe8] sm:$0xff] %v418_v33  ;;  %v480_v0 = vld [vmem:[%s1957_s5 + $0x3c0] sm:$0xff]  ;;  %v482_v1 = vld [vmem:[%s1957_s5 + $0x3d0] sm:$0xff] }
  0x55   : > { %421 = vst [vmem:[%s1962_s6 + $0xf0] sm:$0xff] %v420_v34  ;;  %v484_v2 = vld [vmem:[%s1957_s5 + $0x3e0] sm:$0xff]  ;;  %v486_v3 = vld [vmem:[%s1957_s5 + $0x3f0] sm:$0xff] }
  0x56   : > { %423 = vst [vmem:[%s1962_s6 + $0xf8] sm:$0xff] %v422_v35 }
  0x57   : > { %425 = vst [vmem:[%s1962_s6 + $0x100] sm:$0xff] %v424_v36 }
  0x58   : > { %427 = vst [vmem:[%s1962_s6 + $0x108] sm:$0xff] %v426_v37 }
  0x59   : > { %429 = vst [vmem:[%s1962_s6 + $0x110] sm:$0xff] %v428_v38 }
  0x5a   : > { %431 = vst [vmem:[%s1962_s6 + $0x118] sm:$0xff] %v430_v39 }
  0x5b   : > { %433 = vst [vmem:[%s1962_s6 + $0x120] sm:$0xff] %v432_v40 }
  0x5c   : > { %435 = vst [vmem:[%s1962_s6 + $0x128] sm:$0xff] %v434_v41 }
  0x5d   : > { %437 = vst [vmem:[%s1962_s6 + $0x130] sm:$0xff] %v436_v42 }
  0x5e   : > { %439 = vst [vmem:[%s1962_s6 + $0x138] sm:$0xff] %v438_v43 }
  0x5f   : > { %441 = vst [vmem:[%s1962_s6 + $0x140] sm:$0xff] %v440_v44 }
  0x60   : > { %443 = vst [vmem:[%s1962_s6 + $0x148] sm:$0xff] %v442_v45 }
  0x61   : > { %445 = vst [vmem:[%s1962_s6 + $0x150] sm:$0xff] %v444_v46 }
  0x62   : > { %447 = vst [vmem:[%s1962_s6 + $0x158] sm:$0xff] %v446_v47 }
  0x63   : > { %449 = vst [vmem:[%s1962_s6 + $0x160] sm:$0xff] %v448_v48 }
  0x64   : > { %451 = vst [vmem:[%s1962_s6 + $0x168] sm:$0xff] %v450_v49 }
  0x65   : > { %453 = vst [vmem:[%s1962_s6 + $0x170] sm:$0xff] %v452_v50 }
  0x66   : > { %455 = vst [vmem:[%s1962_s6 + $0x178] sm:$0xff] %v454_v51 }
  0x67   : > { %457 = vst [vmem:[%s1962_s6 + $0x180] sm:$0xff] %v456_v52 }
  0x68   : > { %459 = vst [vmem:[%s1962_s6 + $0x188] sm:$0xff] %v458_v53 }
  0x69   : > { %461 = vst [vmem:[%s1962_s6 + $0x190] sm:$0xff] %v460_v54 }
  0x6a   : > { %463 = vst [vmem:[%s1962_s6 + $0x198] sm:$0xff] %v462_v55 }
  0x6b   : > { %465 = vst [vmem:[%s1962_s6 + $0x1a0] sm:$0xff] %v464_v56 }
  0x6c   : > { %467 = vst [vmem:[%s1962_s6 + $0x1a8] sm:$0xff] %v466_v57 }
  0x6d   : > { %469 = vst [vmem:[%s1962_s6 + $0x1b0] sm:$0xff] %v468_v58 }
  0x6e   : > { %471 = vst [vmem:[%s1962_s6 + $0x1b8] sm:$0xff] %v470_v59 }
  0x6f   : > { %473 = vst [vmem:[%s1962_s6 + $0x1c0] sm:$0xff] %v472_v60 }
  0x70   : > { %475 = vst [vmem:[%s1962_s6 + $0x1c8] sm:$0xff] %v474_v61 }
  0x71   : > { %477 = vst [vmem:[%s1962_s6 + $0x1d0] sm:$0xff] %v476_v62 }
  0x72   : > { %479 = vst [vmem:[%s1962_s6 + $0x1d8] sm:$0xff] %v478_v63 }
  0x73   : > { %481 = vst [vmem:[%s1962_s6 + $0x1e0] sm:$0xff] %v480_v0 }
  0x74   : > { %483 = vst [vmem:[%s1962_s6 + $0x1e8] sm:$0xff] %v482_v1 }
  0x75   : > { %485 = vst [vmem:[%s1962_s6 + $0x1f0] sm:$0xff] %v484_v2 }
  0x76   : > { %487 = vst [vmem:[%s1962_s6 + $0x1f8] sm:$0xff] %v486_v3 }
  0x77 PF: > { %p1290_p0 = scmp.ge.s32.totalorder %s1820_s22, 1  ;;  %p500_p1 = scmp.lt.s32.totalorder %s1820_s22, 19 }
  0x79   : > { %p501_p2 = pnand %p1290_p0, %p500_p1 }
  0x7a   : > { %s507_s0 = sand.u32 (!%p501_p2), 1, %s1796_s16   ;;  %s514_s23 = sand.u32 (!%p501_p2), 1, %s1788_s14  }
  0x7b   : > { %504 = sbr.rel (%p501_p2) target bundleno = 377 (0x179), region = 85  ;;  %s1291_s28 = sshll.u32 (!%p501_p2), %s507_s0, 5 }
  0x7c   : > { %s1292_s7 = sshll.u32 (!%p501_p2), %s514_s23, 9  ;;  %s541_s11 = sand.u32 (!%p501_p2), 1, %s1780_s12  }
  0x7d   : > { %s1294_s26 = sshll.u32 (!%p501_p2), %s1808_s19, 1  ;;  %s1293_s29 = sshll.u32 (!%p501_p2), %s541_s11, 4 }
  0x7e   : > { %p549_p3 = scmp.lt.s32.totalorder (!%p501_p2), %s1294_s26, 3  ;;  %s2101_s6 = scalar_lea.vmem (!%p501_p2), [#allocation3], %s1291_s28 }
  0x7f   : > { %s2103_s1 = scalar_lea.vmem (!%p501_p2), [#allocation4], %s1292_s7  ;;  %s2105_s25 = scalar_lea.vmem (!%p501_p2), [#allocation5], %s1293_s29 }
  0x80   : > { %s2340_s26 = smov (!%p549_p3, %s1294_s26), 3  ;;  %p1295_p4 = scmp.ne.s32.totalorder %s1804_s18, 0 }
  0x81   : > { %s551_s5 = scalar_lea.vmem %s2311_s2, %s2340_s26 }
  0x82   : > { %558 = sbr.rel (%p1295_p4) target bundleno = 140 (0x8c), region = 97 }
  0x87   : > { %v1822_v4 = vmov 0.0  }
  0x88   : > { %559 = vst [vmem:[#allocation2 + $0x10] sm:$0xff] %v1822_v4 }
  0x89   : > { %560 = vst [vmem:[#allocation2] sm:$0xff] %v1822_v4 }
  0x8a   : > { %561 = vst [vmem:[#allocation2 + $0x18] sm:$0xff] %v1822_v4 }
  0x8b   : > { %562 = vst [vmem:[#allocation2 + $0x8] sm:$0xff] %v1822_v4 }
  0x8c PF: > { %v1370_v5 = vld [vmem:[%s2103_s1 + $0x70] sm:$0xf]  ;;  %v1595_v6 = vld [vmem:[%s2103_s1 + $0x74] sm:$0xf0]  ;;  %v1362_v16 = vld [vmem:[%s2103_s1 + $0x60] sm:$0xf] }
  0x8d   : > { %v1434_v7 = vld [vmem:[%s2103_s1 + $0xf0] sm:$0xf]  ;;  %v1371_v8 = vor.u32 %v1595_v6, %v1370_v5  ;;  %v1611_v9 = vld [vmem:[%s2103_s1 + $0xf4] sm:$0xf0]  ;;  %v1593_v18 = vld [vmem:[%s2103_s1 + $0x64] sm:$0xf0] }
  0x8e   : > { %v1498_v10 = vld [vmem:[%s2103_s1 + $0x170] sm:$0xf]  ;;  %v1627_v11 = vld [vmem:[%s2103_s1 + $0x174] sm:$0xf0]  ;;  %v1435_v12 = vor.u32 %v1611_v9, %v1434_v7  ;;  %v1426_v19 = vld [vmem:[%s2103_s1 + $0xe0] sm:$0xf]  ;;  %v1363_v21 = vor.u32 %v1593_v18, %v1362_v16 }
  0x8f   : > { %v1499_v13 = vor.u32 %v1627_v11, %v1498_v10  ;;  %v1562_v14 = vld [vmem:[%s2103_s1 + $0x1f0] sm:$0xf]  ;;  %v1643_v15 = vld [vmem:[%s2103_s1 + $0x1f4] sm:$0xf0]  ;;  %975 = vmatpush.bf16.msra.mxu0 %v1371_v8  ;;  %v1609_v20 = vld [vmem:[%s2103_s1 + $0xe4] sm:$0xf0] }
  0x90   : > { %v1563_v17 = vor.u32 %v1643_v15, %v1562_v14  ;;  %989 = vmatpush.bf16.msra.mxu1 %v1435_v12  ;;  %v1427_v22 = vor.u32 %v1609_v20, %v1426_v19  ;;  %v1490_v23 = vld [vmem:[%s2103_s1 + $0x160] sm:$0xf]  ;;  %v1625_v24 = vld [vmem:[%s2103_s1 + $0x164] sm:$0xf0]  ;;  %v1354_v28 = vld [vmem:[%s2103_s1 + $0x50] sm:$0xf] }
  0x91   : > { %1003 = vmatpush.bf16.msra.mxu2 %v1499_v13  ;;  %v1554_v25 = vld [vmem:[%s2103_s1 + $0x1e0] sm:$0xf]  ;;  %v1491_v26 = vor.u32 %v1625_v24, %v1490_v23  ;;  %v1641_v27 = vld [vmem:[%s2103_s1 + $0x1e4] sm:$0xf0]  ;;  %v1591_v29 = vld [vmem:[%s2103_s1 + $0x54] sm:$0xf0] }
  0x92   : > { %1017 = vmatpush.bf16.msra.mxu3 %v1563_v17  ;;  %v1555_v30 = vor.u32 %v1641_v27, %v1554_v25  ;;  %v1418_v31 = vld [vmem:[%s2103_s1 + $0xd0] sm:$0xf]  ;;  %v1607_v32 = vld [vmem:[%s2103_s1 + $0xd4] sm:$0xf0]  ;;  %v1355_v34 = vor.u32 %v1591_v29, %v1354_v28  ;;  %v1346_v40 = vld [vmem:[%s2103_s1 + $0x40] sm:$0xf] }
  0x93   : > { %v1482_v33 = vld [vmem:[%s2103_s1 + $0x150] sm:$0xf]  ;;  %976 = vmatpush.bf16.msra.mxu0 %v1363_v21  ;;  %v1623_v35 = vld [vmem:[%s2103_s1 + $0x154] sm:$0xf0]  ;;  %v1419_v38 = vor.u32 %v1607_v32, %v1418_v31  ;;  %v1589_v41 = vld [vmem:[%s2103_s1 + $0x44] sm:$0xf0] }
  0x94   : > { %v1546_v36 = vld [vmem:[%s2103_s1 + $0x1d0] sm:$0xf]  ;;  %v1639_v37 = vld [vmem:[%s2103_s1 + $0x1d4] sm:$0xf0]  ;;  %990 = vmatpush.bf16.msra.mxu1 %v1427_v22  ;;  %v1483_v39 = vor.u32 %v1623_v35, %v1482_v33  ;;  %v1410_v42 = vld [vmem:[%s2103_s1 + $0xc0] sm:$0xf]  ;;  %v1347_v49 = vor.u32 %v1589_v41, %v1346_v40 }
  0x95   : > { %1004 = vmatpush.bf16.msra.mxu2 %v1491_v26  ;;  %v1547_v43 = vor.u32 %v1639_v37, %v1546_v36  ;;  %v1605_v44 = vld [vmem:[%s2103_s1 + $0xc4] sm:$0xf0]  ;;  %v1474_v45 = vld [vmem:[%s2103_s1 + $0x140] sm:$0xf]  ;;  %v1338_v52 = vld [vmem:[%s2103_s1 + $0x30] sm:$0xf] }
  0x96   : > { %1018 = vmatpush.bf16.msra.mxu3 %v1555_v30  ;;  %v1621_v46 = vld [vmem:[%s2103_s1 + $0x144] sm:$0xf0]  ;;  %v1538_v47 = vld [vmem:[%s2103_s1 + $0x1c0] sm:$0xf]  ;;  %v1411_v50 = vor.u32 %v1605_v44, %v1410_v42  ;;  %v1587_v53 = vld [vmem:[%s2103_s1 + $0x34] sm:$0xf0] }
  0x97   : > { %v1637_v48 = vld [vmem:[%s2103_s1 + $0x1c4] sm:$0xf0]  ;;  %977 = vmatpush.bf16.msra.mxu0 %v1355_v34  ;;  %v1475_v51 = vor.u32 %v1621_v46, %v1474_v45  ;;  %v1402_v54 = vld [vmem:[%s2103_s1 + $0xb0] sm:$0xf]  ;;  %v1603_v56 = vld [vmem:[%s2103_s1 + $0xb4] sm:$0xf0]  ;;  %v1339_v61 = vor.u32 %v1587_v53, %v1338_v52 }
  0x98   : > { %991 = vmatpush.bf16.msra.mxu1 %v1419_v38  ;;  %v1539_v55 = vor.u32 %v1637_v48, %v1538_v47  ;;  %v1466_v57 = vld [vmem:[%s2103_s1 + $0x130] sm:$0xf]  ;;  %v1619_v58 = vld [vmem:[%s2103_s1 + $0x134] sm:$0xf0]  ;;  %v1403_v62 = vor.u32 %v1603_v56, %v1402_v54  ;;  %v1330_v0 = vld [vmem:[%s2103_s1 + $0x20] sm:$0xf] }
  0x99   : > { %1005 = vmatpush.bf16.msra.mxu2 %v1483_v39  ;;  %v1530_v59 = vld [vmem:[%s2103_s1 + $0x1b0] sm:$0xf]  ;;  %v1635_v60 = vld [vmem:[%s2103_s1 + $0x1b4] sm:$0xf0]  ;;  %v1467_v63 = vor.u32 %v1619_v58, %v1466_v57  ;;  %v1585_v1 = vld [vmem:[%s2103_s1 + $0x24] sm:$0xf0] }
  0x9a   : > { %1019 = vmatpush.bf16.msra.mxu3 %v1547_v43  ;;  %v1394_v2 = vld [vmem:[%s2103_s1 + $0xa0] sm:$0xf]  ;;  %v1531_v3 = vor.u32 %v1635_v60, %v1530_v59  ;;  %v1601_v4 = vld [vmem:[%s2103_s1 + $0xa4] sm:$0xf0]  ;;  %v1331_v9 = vor.u32 %v1585_v1, %v1330_v0  ;;  %v1322_v12 = vld [vmem:[%s2103_s1 + $0x10] sm:$0xf] }
  0x9b   : > { %978 = vmatpush.bf16.msra.mxu0 %v1347_v49  ;;  %v1458_v5 = vld [vmem:[%s2103_s1 + $0x120] sm:$0xf]  ;;  %v1617_v6 = vld [vmem:[%s2103_s1 + $0x124] sm:$0xf0]  ;;  %v1395_v10 = vor.u32 %v1601_v4, %v1394_v2  ;;  %v1583_v13 = vld [vmem:[%s2103_s1 + $0x14] sm:$0xf0] }
  0x9c   : > { %992 = vmatpush.bf16.msra.mxu1 %v1411_v50  ;;  %v1522_v7 = vld [vmem:[%s2103_s1 + $0x1a0] sm:$0xf]  ;;  %v1633_v8 = vld [vmem:[%s2103_s1 + $0x1a4] sm:$0xf0]  ;;  %v1459_v11 = vor.u32 %v1617_v6, %v1458_v5  ;;  %v1386_v14 = vld [vmem:[%s2103_s1 + $0x90] sm:$0xf]  ;;  %v1323_v22 = vor.u32 %v1583_v13, %v1322_v12 }
  0x9d   : > { %1006 = vmatpush.bf16.msra.mxu2 %v1475_v51  ;;  %v1523_v15 = vor.u32 %v1633_v8, %v1522_v7  ;;  %v1599_v16 = vld [vmem:[%s2103_s1 + $0x94] sm:$0xf0]  ;;  %v1450_v17 = vld [vmem:[%s2103_s1 + $0x110] sm:$0xf]  ;;  %v1314_v21 = vld [vmem:[%s2103_s1] sm:$0xf] }
  0x9e   : > { %1020 = vmatpush.bf16.msra.mxu3 %v1539_v55  ;;  %v1615_v18 = vld [vmem:[%s2103_s1 + $0x114] sm:$0xf0]  ;;  %v1514_v19 = vld [vmem:[%s2103_s1 + $0x190] sm:$0xf]  ;;  %v1581_v23 = vld [vmem:[%s2103_s1 + $0x4] sm:$0xf0]  ;;  %v1387_v26 = vor.u32 %v1599_v16, %v1386_v14 }
  0x9f   : > { %979 = vmatpush.bf16.msra.mxu0 %v1339_v61  ;;  %v1631_v20 = vld [vmem:[%s2103_s1 + $0x194] sm:$0xf0]  ;;  %v1378_v24 = vld [vmem:[%s2103_s1 + $0x80] sm:$0xf]  ;;  %v1597_v25 = vld [vmem:[%s2103_s1 + $0x84] sm:$0xf0]  ;;  %v1451_v27 = vor.u32 %v1615_v18, %v1450_v17  ;;  %v1315_v38 = vor.u32 %v1581_v23, %v1314_v21 }
  0xa0   : > { %993 = vmatpush.bf16.msra.mxu1 %v1403_v62  ;;  %v1442_v28 = vld [vmem:[%s2103_s1 + $0x100] sm:$0xf]  ;;  %v1613_v29 = vld [vmem:[%s2103_s1 + $0x104] sm:$0xf0]  ;;  %v1515_v31 = vor.u32 %v1631_v20, %v1514_v19  ;;  %v1594_v33 = vld [vmem:[%s2103_s1 + $0x74] sm:$0xf]  ;;  %v1379_v42 = vor.u32 %v1597_v25, %v1378_v24 }
  0xa1   : > { %1007 = vmatpush.bf16.msra.mxu2 %v1467_v63  ;;  %v1506_v30 = vld [vmem:[%s2103_s1 + $0x180] sm:$0xf]  ;;  %v1629_v32 = vld [vmem:[%s2103_s1 + $0x184] sm:$0xf0]  ;;  %v1372_v34 = vld [vmem:[%s2103_s1 + $0x78] sm:$0xf0]  ;;  %v1443_v43 = vor.u32 %v1613_v29, %v1442_v28 }
  0xa2   : > { %1021 = vmatpush.bf16.msra.mxu3 %v1531_v3  ;;  %v1610_v35 = vld [vmem:[%s2103_s1 + $0xf4] sm:$0xf]  ;;  %v1436_v36 = vld [vmem:[%s2103_s1 + $0xf8] sm:$0xf0]  ;;  %v1592_v44 = vld [vmem:[%s2103_s1 + $0x64] sm:$0xf]  ;;  %v1507_v48 = vor.u32 %v1629_v32, %v1506_v30  ;;  %v1375_v49 = vor.u32 %v1594_v33, %v1372_v34 }
  0xa3   : > { %980 = vmatpush.bf16.msra.mxu0 %v1331_v9  ;;  %v1626_v37 = vld [vmem:[%s2103_s1 + $0x174] sm:$0xf]  ;;  %v1500_v39 = vld [vmem:[%s2103_s1 + $0x178] sm:$0xf0]  ;;  %v1364_v45 = vld [vmem:[%s2103_s1 + $0x68] sm:$0xf0]  ;;  %v1439_v54 = vor.u32 %v1610_v35, %v1436_v36 }
  0xa4   : > { %994 = vmatpush.bf16.msra.mxu1 %v1395_v10  ;;  %v1642_v40 = vld [vmem:[%s2103_s1 + $0x1f4] sm:$0xf]  ;;  %v1564_v41 = vld [vmem:[%s2103_s1 + $0x1f8] sm:$0xf0]  ;;  %v1306_v46 = vld [vmem:[%s2101_s6 + $0x8] sm:$0xf]  ;;  %v1503_v55 = vor.u32 %v1626_v37, %v1500_v39  ;;  %v1367_v4 = vor.u32 %v1592_v44, %v1364_v45 }
  0xa5   : > { %1008 = vmatpush.bf16.msra.mxu2 %v1459_v11  ;;  %v1579_v47 = vld [vmem:[%s2101_s6 + $0x14] sm:$0xf0]  ;;  %v1608_v50 = vld [vmem:[%s2103_s1 + $0xe4] sm:$0xf]  ;;  %v1428_v51 = vld [vmem:[%s2103_s1 + $0xe8] sm:$0xf0]  ;;  %v1567_v59 = vor.u32 %v1642_v40, %v1564_v41 }
  0xa6   : > { %1022 = vmatpush.bf16.msra.mxu3 %v1523_v15  ;;  %v1624_v52 = vld [vmem:[%s2103_s1 + $0x164] sm:$0xf]  ;;  %v1492_v53 = vld [vmem:[%s2103_s1 + $0x168] sm:$0xf0]  ;;  %v1308_v57 = vld [vmem:[%s2101_s6 + $0x18] sm:$0xf0]  ;;  %v2191_v60 = vor.u32 %v1579_v47, %v1306_v46  ;;  %v1431_v6 = vor.u32 %v1608_v50, %v1428_v51 }
  0xa7   : > { %981 = vmatpush.bf16.msra.mxu0 %v1323_v22  ;;  %v1577_v56 = vld [vmem:[%s2101_s6 + $0xc] sm:$0xf]  ;;  %v1298_v58 = vld [vmem:[%s2101_s6] sm:$0xf]  ;;  %v1578_v61 = vld [vmem:[%s2101_s6 + $0xc] sm:$0xf0]  ;;  %v1495_v7 = vor.u32 %v1624_v52, %v1492_v53 }
  0xa8   : > { %995 = vmatpush.bf16.msra.mxu1 %v1387_v26  ;;  %v1576_v62 = vld [vmem:[%s2101_s6 + $0x4] sm:$0xf]  ;;  %v1300_v63 = vld [vmem:[%s2101_s6 + $0x10] sm:$0xf0]  ;;  %v1556_v1 = vld [vmem:[%s2103_s1 + $0x1e8] sm:$0xf0]  ;;  %v2198_v2 = vor.u32 %v1577_v56, %v1308_v57  ;;  %v2200_v3 = vor.u32 %v1578_v61, %v1298_v58 }
  0xa9   : > { %1009 = vmatpush.bf16.msra.mxu2 %v1451_v27  ;;  %v1640_v0 = vld [vmem:[%s2103_s1 + $0x1e4] sm:$0xf]  ;;  %v2202_v5 = vor.u32 %v1576_v62, %v1300_v63  ;;  %v1590_v8 = vld [vmem:[%s2103_s1 + $0x54] sm:$0xf]  ;;  %v1356_v9 = vld [vmem:[%s2103_s1 + $0x58] sm:$0xf0] }
  0xaa   : > { %1023 = vmatpush.bf16.msra.mxu3 %v1515_v31  ;;  %v1606_v10 = vld [vmem:[%s2103_s1 + $0xd4] sm:$0xf]  ;;  %v1559_v11 = vor.u32 %v1640_v0, %v1556_v1  ;;  %v1420_v12 = vld [vmem:[%s2103_s1 + $0xd8] sm:$0xf0]  ;;  %v1359_v17 = vor.u32 %v1590_v8, %v1356_v9  ;;  %v1588_v20 = vld [vmem:[%s2103_s1 + $0x44] sm:$0xf] }
  0xab   : > { %982 = vmatpush.bf16.msra.mxu0 %v1315_v38  ;;  %v1622_v13 = vld [vmem:[%s2103_s1 + $0x154] sm:$0xf]  ;;  %v1484_v14 = vld [vmem:[%s2103_s1 + $0x158] sm:$0xf0]  ;;  %v1423_v18 = vor.u32 %v1606_v10, %v1420_v12  ;;  %v1348_v21 = vld [vmem:[%s2103_s1 + $0x48] sm:$0xf0] }
  0xac   : > { %996 = vmatpush.bf16.msra.mxu1 %v1379_v42  ;;  %v1638_v15 = vld [vmem:[%s2103_s1 + $0x1d4] sm:$0xf]  ;;  %v1548_v16 = vld [vmem:[%s2103_s1 + $0x1d8] sm:$0xf0]  ;;  %v1487_v19 = vor.u32 %v1622_v13, %v1484_v14  ;;  %v1604_v22 = vld [vmem:[%s2103_s1 + $0xc4] sm:$0xf]  ;;  %v1351_v29 = vor.u32 %v1588_v20, %v1348_v21 }
  0xad   : > { %1010 = vmatpush.bf16.msra.mxu2 %v1443_v43  ;;  %v1551_v23 = vor.u32 %v1638_v15, %v1548_v16  ;;  %v1412_v24 = vld [vmem:[%s2103_s1 + $0xc8] sm:$0xf0]  ;;  %v1620_v25 = vld [vmem:[%s2103_s1 + $0x144] sm:$0xf]  ;;  %v1586_v32 = vld [vmem:[%s2103_s1 + $0x34] sm:$0xf] }
  0xae   : > { %1024 = vmatpush.bf16.msra.mxu3 %v1507_v48  ;;  %983 = vmatmul.bf16.vlgmr.msra.gmra.mxu0 %v2200_v3  ;;  %v1476_v26 = vld [vmem:[%s2103_s1 + $0x148] sm:$0xf0]  ;;  %v1636_v27 = vld [vmem:[%s2103_s1 + $0x1c4] sm:$0xf]  ;;  %v1415_v30 = vor.u32 %v1604_v22, %v1412_v24  ;;  %v1340_v33 = vld [vmem:[%s2103_s1 + $0x38] sm:$0xf0] }
  0xaf   : > { %1031 = vmatpush.bf16.msrb.mxu0 %v1375_v49  ;;  %997 = vmatmul.bf16.vlgmr.msra.gmra.mxu1 %v2202_v5  ;;  %v1540_v28 = vld [vmem:[%s2103_s1 + $0x1c8] sm:$0xf0]  ;;  %v1479_v31 = vor.u32 %v1620_v25, %v1476_v26  ;;  %v1602_v34 = vld [vmem:[%s2103_s1 + $0xb4] sm:$0xf]  ;;  %v1404_v36 = vld [vmem:[%s2103_s1 + $0xb8] sm:$0xf0]  ;;  %v1343_v41 = vor.u32 %v1586_v32, %v1340_v33 }
  0xb0   : > { %1045 = vmatpush.bf16.msrb.mxu1 %v1439_v54  ;;  %1011 = vmatmul.bf16.vlgmr.msra.gmra.mxu2 %v2191_v60  ;;  %v1543_v35 = vor.u32 %v1636_v27, %v1540_v28  ;;  %v1618_v37 = vld [vmem:[%s2103_s1 + $0x134] sm:$0xf]  ;;  %v1468_v38 = vld [vmem:[%s2103_s1 + $0x138] sm:$0xf0]  ;;  %v1407_v42 = vor.u32 %v1602_v34, %v1404_v36  ;;  %v1584_v44 = vld [vmem:[%s2103_s1 + $0x24] sm:$0xf] }
  0xb1   : > { %1059 = vmatpush.bf16.msrb.mxu2 %v1503_v55  ;;  %1025 = vmatmul.bf16.vlgmr.msra.gmra.mxu3 %v2198_v2  ;;  %v1634_v39 = vld [vmem:[%s2103_s1 + $0x1b4] sm:$0xf]  ;;  %v1532_v40 = vld [vmem:[%s2103_s1 + $0x1b8] sm:$0xf0]  ;;  %v1471_v43 = vor.u32 %v1618_v37, %v1468_v38  ;;  %v1332_v45 = vld [vmem:[%s2103_s1 + $0x28] sm:$0xf0] }
  0xb2   : > { %1073 = vmatpush.bf16.msrb.mxu3 %v1567_v59  ;;  %v1600_v46 = vld [vmem:[%s2103_s1 + $0xa4] sm:$0xf]  ;;  %v1535_v47 = vor.u32 %v1634_v39, %v1532_v40  ;;  %v1396_v48 = vld [vmem:[%s2103_s1 + $0xa8] sm:$0xf0]  ;;  %v1335_v53 = vor.u32 %v1584_v44, %v1332_v45  ;;  %v1582_v56 = vld [vmem:[%s2103_s1 + $0x14] sm:$0xf] }
  0xb3   : > { %1032 = vmatpush.bf16.msrb.mxu0 %v1367_v4  ;;  %v1616_v49 = vld [vmem:[%s2103_s1 + $0x124] sm:$0xf]  ;;  %v1460_v50 = vld [vmem:[%s2103_s1 + $0x128] sm:$0xf0]  ;;  %v1399_v54 = vor.u32 %v1600_v46, %v1396_v48  ;;  %v1324_v57 = vld [vmem:[%s2103_s1 + $0x18] sm:$0xf0] }
  0xb4   : > { %1046 = vmatpush.bf16.msrb.mxu1 %v1431_v6  ;;  %v1632_v51 = vld [vmem:[%s2103_s1 + $0x1a4] sm:$0xf]  ;;  %v1524_v52 = vld [vmem:[%s2103_s1 + $0x1a8] sm:$0xf0]  ;;  %v1463_v55 = vor.u32 %v1616_v49, %v1460_v50  ;;  %v1598_v58 = vld [vmem:[%s2103_s1 + $0x94] sm:$0xf]  ;;  %v1327_v4 = vor.u32 %v1582_v56, %v1324_v57 }
  0xb5   : > { %1060 = vmatpush.bf16.msrb.mxu2 %v1495_v7  ;;  %v1527_v59 = vor.u32 %v1632_v51, %v1524_v52  ;;  %v1388_v61 = vld [vmem:[%s2103_s1 + $0x98] sm:$0xf0]  ;;  %v1614_v62 = vld [vmem:[%s2103_s1 + $0x114] sm:$0xf]  ;;  %v1580_v8 = vld [vmem:[%s2103_s1 + $0x4] sm:$0xf] }
  0xb6   : > { %1074 = vmatpush.bf16.msrb.mxu3 %v1559_v11  ;;  %v1452_v63 = vld [vmem:[%s2103_s1 + $0x118] sm:$0xf0]  ;;  %v1630_v0 = vld [vmem:[%s2103_s1 + $0x194] sm:$0xf]  ;;  %v1391_v6 = vor.u32 %v1598_v58, %v1388_v61  ;;  %v1316_v9 = vld [vmem:[%s2103_s1 + $0x8] sm:$0xf0] }
  0xb7   : > { %1033 = vmatpush.bf16.msrb.mxu0 %v1359_v17  ;;  %v1516_v1 = vld [vmem:[%s2103_s1 + $0x198] sm:$0xf0]  ;;  %v1455_v7 = vor.u32 %v1614_v62, %v1452_v63  ;;  %v1596_v10 = vld [vmem:[%s2103_s1 + $0x84] sm:$0xf]  ;;  %v1380_v12 = vld [vmem:[%s2103_s1 + $0x88] sm:$0xf0]  ;;  %v1319_v17 = vor.u32 %v1580_v8, %v1316_v9 }
  0xb8   : > { %1047 = vmatpush.bf16.msrb.mxu1 %v1423_v18  ;;  %v1519_v11 = vor.u32 %v1630_v0, %v1516_v1  ;;  %v1612_v13 = vld [vmem:[%s2103_s1 + $0x104] sm:$0xf]  ;;  %v1444_v14 = vld [vmem:[%s2103_s1 + $0x108] sm:$0xf0]  ;;  %v1383_v18 = vor.u32 %v1596_v10, %v1380_v12  ;;  %v563_v27 = vld [vmem:[#allocation2 + $0x10] sm:$0xff]  ;;  %p1568_p5 = scmp.ne.s32.totalorder %s1804_s18, 8 }
  0xb9   : > { %1061 = vmatpush.bf16.msrb.mxu2 %v1487_v19  ;;  %v1628_v15 = vld [vmem:[%s2103_s1 + $0x184] sm:$0xf]  ;;  %v1508_v16 = vld [vmem:[%s2103_s1 + $0x188] sm:$0xf0]  ;;  %v1447_v19 = vor.u32 %v1612_v13, %v1444_v14  ;;  %v565_v34 = vld [vmem:[#allocation2 + $0x18] sm:$0xff] }
  0xba   : > { %1075 = vmatpush.bf16.msrb.mxu3 %v1551_v23  ;;  %v1511_v20 = vor.u32 %v1628_v15, %v1508_v16  ;;  %v566_v49 = vld [vmem:[#allocation2 + $0x8] sm:$0xff] }
  0xbb   : > { %1034 = vmatpush.bf16.msrb.mxu0 %v1351_v29 }
  0xbc   : > { %1048 = vmatpush.bf16.msrb.mxu1 %v1415_v30 }
  0xbd   : > { %1062 = vmatpush.bf16.msrb.mxu2 %v1479_v31 }
  0xbe   : > { %1076 = vmatpush.bf16.msrb.mxu3 %v1543_v35 }
  0xbf   : > { %1035 = vmatpush.bf16.msrb.mxu0 %v1343_v41  ;;  %v564_v41 = vld [vmem:[#allocation2] sm:$0xff] }
  0xc0   : > { %1049 = vmatpush.bf16.msrb.mxu1 %v1407_v42 }
  0xc1   : > { %1063 = vmatpush.bf16.msrb.mxu2 %v1471_v43 }
  0xc2   : > { %1077 = vmatpush.bf16.msrb.mxu3 %v1535_v47 }
  0xc3   : > { %1036 = vmatpush.bf16.msrb.mxu0 %v1335_v53 }
  0xc4   : > { %1050 = vmatpush.bf16.msrb.mxu1 %v1399_v54 }
  0xc5   : > { %1064 = vmatpush.bf16.msrb.mxu2 %v1463_v55 }
  0xc6   : > { %1078 = vmatpush.bf16.msrb.mxu3 %v1527_v59 }
  0xc7   : > { %1037 = vmatpush.bf16.msrb.mxu0 %v1327_v4 }
  0xc8   : > { %1051 = vmatpush.bf16.msrb.mxu1 %v1391_v6 }
  0xc9   : > { %1065 = vmatpush.bf16.msrb.mxu2 %v1455_v7 }
  0xca   : > { %1079 = vmatpush.bf16.msrb.mxu3 %v1519_v11 }
  0xcb   : > { %1038 = vmatpush.bf16.msrb.mxu0 %v1319_v17 }
  0xcc   : > { %1052 = vmatpush.bf16.msrb.mxu1 %v1383_v18 }
  0xcd   : > { %1066 = vmatpush.bf16.msrb.mxu2 %v1447_v19 }
  0xce   : > { %1080 = vmatpush.bf16.msrb.mxu3 %v1511_v20  ;;  %1039 = vmatmul.bf16.vlgmr.msrb.gmra.mxu0 %v2200_v3 }
  0xcf   : > { %1053 = vmatmul.bf16.vlgmr.msrb.gmra.mxu1 %v2202_v5 }
  0xd0   : > { %1067 = vmatmul.bf16.vlgmr.msrb.gmra.mxu2 %v2191_v60 }
  0xd1   : > { %1081 = vmatmul.bf16.vlgmr.msrb.gmra.mxu3 %v2198_v2 }
 0x12b   : > { %v984_v21 = vpop.f32.mrf.mxu0 }
 0x12c   : > { %v998_v22 = vpop.f32.mrf.mxu1 }
 0x12d   : > { %v999_v23 = vadd.f32 %v998_v22, %v984_v21 }
 0x133   : > { %v1012_v24 = vpop.f32.mrf.mxu2  ;;  %v986_v29 = vpop.f32.mrf.mxu0 }
 0x134   : > { %v1013_v25 = vadd.f32 %v1012_v24, %v999_v23  ;;  %v1026_v26 = vpop.f32.mrf.mxu3  ;;  %v1000_v30 = vpop.f32.mrf.mxu1 }
 0x135   : > { %v1001_v32 = vadd.f32 %v1000_v30, %v986_v29 }
 0x136   : > { %v1027_v28 = vadd.f32 %v1026_v26, %v1013_v25 }
 0x138   : > { %v1087_v31 = vadd.f32 %v1027_v28, %v563_v27 }
 0x13a   : > { %1091 = vst [vmem:[#allocation2 + $0x10] sm:$0xff] %v1087_v31 }
 0x13b   : > { %v1014_v3 = vpop.f32.mrf.mxu2 }
 0x13c   : > { %v1015_v33 = vadd.f32 %v1014_v3, %v1001_v32  ;;  %v1028_v5 = vpop.f32.mrf.mxu3 }
 0x13e   : > { %v1029_v60 = vadd.f32 %v1028_v5, %v1015_v33 }
 0x140   : > { %v1089_v35 = vadd.f32 %v1029_v60, %v565_v34 }
 0x142   : > { %1093 = vst [vmem:[#allocation2 + $0x18] sm:$0xff] %v1089_v35 }
 0x14b   : > { %v1040_v2 = vpop.f32.mrf.mxu0 }
 0x14c   : > { %v1054_v36 = vpop.f32.mrf.mxu1 }
 0x14d   : > { %v1055_v37 = vadd.f32 %v1054_v36, %v1040_v2 }
 0x153   : > { %v1068_v38 = vpop.f32.mrf.mxu2  ;;  %v1042_v43 = vpop.f32.mrf.mxu0 }
 0x154   : > { %v1069_v39 = vadd.f32 %v1068_v38, %v1055_v37  ;;  %v1082_v40 = vpop.f32.mrf.mxu3  ;;  %v1056_v44 = vpop.f32.mrf.mxu1 }
 0x155   : > { %v1057_v46 = vadd.f32 %v1056_v44, %v1042_v43 }
 0x156   : > { %v1083_v42 = vadd.f32 %v1082_v40, %v1069_v39 }
 0x158   : > { %v1088_v45 = vadd.f32 %v1083_v42, %v564_v41 }
 0x15a   : > { %1092 = vst [vmem:[#allocation2] sm:$0xff] %v1088_v45 }
 0x15b   : > { %v1070_v47 = vpop.f32.mrf.mxu2 }
 0x15c   : > { %v1071_v48 = vadd.f32 %v1070_v47, %v1057_v46  ;;  %v1084_v50 = vpop.f32.mrf.mxu3 }
 0x15e   : > { %v1085_v51 = vadd.f32 %v1084_v50, %v1071_v48  ;;  %1098 = sbr.rel (%p1568_p5) target bundleno = 369 (0x171), region = 101 }
 0x160   : > { %v1090_v52 = vadd.f32 %v1085_v51, %v566_v49 }
 0x162   : > { %1094 = vst [vmem:[#allocation2 + $0x8] sm:$0xff] %v1090_v52 }
 0x163   : > { %v1099_v53 = vld [vmem:[#allocation2 + $0x10] sm:$0xff]  ;;  %v1100_v54 = vld [vmem:[#allocation2] sm:$0xff]  ;;  %v1101_v58 = vld [vmem:[#allocation2 + $0x18] sm:$0xff] }
 0x164   : > { %v1103_v55 = vld [vmem:[%s551_s5] sm:$0x3] }
 0x165   : > { %v1105_v56 = vperm.slane %v1103_v55, 0  ;;  %v1106_v57 = vperm.slane %v1103_v55, 1 }
 0x167   : > { %v1109_v61 = vadd.f32 %v1105_v56, %v1099_v53  ;;  %v1110_v62 = vadd.f32 %v1106_v57, %v1100_v54  ;;  %v1111_v63 = vadd.f32 %v1105_v56, %v1101_v58 }
 0x169   : > { %v1102_v59 = vld [vmem:[#allocation2 + $0x8] sm:$0xff]  ;;  %v1113_v1 = vmax.f32 %v1109_v61, 0.0  ;;  %v1114_v4 = vmax.f32 %v1110_v62, 0.0  ;;  %v1115_v6 = vmax.f32 %v1111_v63, 0.0 }
 0x16a   : > { %v1112_v0 = vadd.f32 %v1106_v57, %v1102_v59 }
 0x16b   : > { %v1117_v8 = vpack.c.bf16 %v1114_v4, %v1113_v1 }
 0x16c   : > { %v1116_v7 = vmax.f32 %v1112_v0, 0.0 }
 0x16d   : > { %1119 = vst [vmem:[%s2105_s25] sm:$0xff] %v1117_v8 }
 0x16e   : > { %v1118_v9 = vpack.c.bf16 %v1116_v7, %v1115_v6 }
 0x170   : > { %1120 = vst [vmem:[%s2105_s25 + $0x8] sm:$0xff] %v1118_v9 }
 0x171 PF: > { %1127 = sbr.rel (!%p1937_p12) target bundleno = 377 (0x179), region = 105  ;;  %s1644_s14 = sshll.u32 (%p1937_p12), %s1808_s19, 3 }
 0x172   : > { %s1133_s0 = scalar_lea.vmem (%p1937_p12), %s2312_s3, %s1644_s14 }
 0x174   : > { %v1164_v10 = vld [vmem:[%s2105_s25] sm:$0xff] (%p1937_p12) }
 0x175   : > { %1165 = vst [vmem:[%s1133_s0] sm:$0xff] (%p1937_p12), %v1164_v10 }
 0x177   : > { %v1166_v11 = vld [vmem:[%s2105_s25 + $0x8] sm:$0xff] }
 0x178   : > { %1167 = vst [vmem:[%s1133_s0 + $0x10] sm:$0xff] %v1166_v11 }
 0x179 PF: > { %s13_s22 = sadd.s32 1, %s1820_s22   ;;  %s2322_s25 = sld [smem:[#allocation6_spill]] }
 0x17a   : > { %p10_p6 = scmp.ge.s32.totalorder %s13_s22, 20   ;;  %s2323_s12 = smov %s1784_s13 }
 0x17b   : > { %s2324_s13 = smov %s1935_s9  ;;  %s2325_s14 = smov %s1792_s15 }
 0x17c   : > { %s2326_s15 = smov %s1932_s8  ;;  %s2327_s16 = smov %s1800_s17 }
 0x17d   : > { %s2328_s17 = smov %s1918_s30  ;;  %s2329_s18 = smov %s1812_s20 }
 0x17e   : > { %s2330_s19 = smov %s1816_s21  ;;  %s2331_s20 = smov %s2334_s24 }
 0x17f   : > { %s2332_s21 = smov %s2322_s25  ;;  %12 = sbr.rel (!%p10_p6) target bundleno = 9 (0x9), region = 185 }

// kernel: _lambda_.26
= control target key start
LH: loop header
LB: loop body
LE: loop exit
PB: predicated region body
PF: predicated region fallthrough
CT: control target
= control target key end

     0   :  { %s2112_s0 = inlined_call_operand.vmem [shape: bf16[16,4608], index: 0, kind: input, shape index: {}]   ;;  %s2113_s1 = inlined_call_operand.hbm [shape: bf16[4608,512], index: 1, kind: input, shape index: {}]   ;;  %s2114_s2 = inlined_call_operand.hbm [shape: f32[1,512], index: 2, kind: input, shape index: {}]   ;;  %s2115_s3 = inlined_call_operand.vmem [shape: bf16[16,512], index: 3, kind: output, shape index: {}]  }
   0x1   :  { %2123 = sst [smem:[#allocation22_spill]] %s2112_s0 }
   0x2   :  { %2124 = sst [smem:[#allocation23_spill]] %s2115_s3 }
   0x3   :  { %8 = vsyncpa [#allocation5], 0 }
   0x4   :  { %10 = vsyncpa [#allocation5 + $0x1], 0 }
   0x5   :  { %11 = vsyncpa [#allocation7], 0 }
   0x6   :  { %13 = vsyncpa [#allocation7 + $0x1], 0  ;;  %s1725_s12 = smov 0   ;;  %s1727_s13 = smov 0  }
   0x7   :  { %s1729_s14 = smov 0   ;;  %s1731_s15 = smov 0  }
   0x8   :  { %s1733_s16 = smov 0   ;;  %s1735_s17 = smov 0  }
   0x9   :  { %s1737_s18 = smov 0   ;;  %s1739_s19 = smov 0  }
   0xa   :  { %s1741_s20 = smov 0   ;;  %s1743_s21 = smov 0  }
   0xb   :  { %s1745_s22 = smov 0   ;;  %s1747_s23 = smov 0  }
   0xc   :  { %s1749_s24 = smov 0  }
   0xd LB: > { %2125 = sst [smem:[#allocation11_spill]] %s1671_s17  ;;  %s1052_s25 = sadd.s32 4294967295, %s1699_s24   ;;  %s1699_s24 = sphi %s1749_s24, %s19_s24   ;;  %s1695_s23 = sphi %s1747_s23, %s2155_s23   ;;  %s1691_s22 = sphi %s1745_s22, %s2154_s22   ;;  %s1687_s21 = sphi %s1743_s21, %s2153_s21   ;;  %s1683_s20 = sphi %s1741_s20, %s2152_s20   ;;  %s1679_s19 = sphi %s1739_s19, %s2151_s19   ;;  %s1675_s18 = sphi %s1737_s18, %s2150_s18   ;;  %s1671_s17 = sphi %s1735_s17, %s2149_s17   ;;  %s1667_s16 = sphi %s1733_s16, %s2160_s16   ;;  %s1663_s15 = sphi %s1731_s15, %s2159_s15   ;;  %s1659_s14 = sphi %s1729_s14, %s2158_s14   ;;  %s1655_s13 = sphi %s1727_s13, %s2157_s13   ;;  %s1651_s12 = sphi %s1725_s12, %s2156_s12  }
   0xe   : > { %2126 = sst [smem:[#allocation12_spill]] %s1679_s19  ;;  %s31_s26 = sadd.s32 1, %s1691_s22 }
   0xf   : > { %2127 = sst [smem:[#allocation13_spill]] %s1687_s21  ;;  %p32_p0 = scmp.ge.s32.totalorder %s31_s26, 9 }
  0x10   : > { %2128 = sst [smem:[#allocation14_spill]] %s1691_s22  ;;  %s34_s27 = sadd.s32 1, %s1695_s23 }
  0x11   : > { %2129 = sst [smem:[#allocation15_spill]] %s1695_s23  ;;  %s47_s28 = sadd.s32 1, %s1679_s19 }
  0x12   : > { %p54_p1 = scmp.ne.s32.totalorder %s1679_s19, %s1675_s18  ;;  %s2162_s26 = smov (%p32_p0, %s31_s26), 0 }
  0x13   : > { %2130 = sst [smem:[#allocation16_spill]] %s2162_s26  ;;  %s2164_s27 = smov (!%p32_p0, %s34_s27), %s1695_s23 }
  0x14   : > { %s43_s29 = ssub.s32 %s1691_s22, %s2162_s26  ;;  %p55_p2 = scmp.eq.s32.totalorder %s1699_s24, 0 }
  0x15   : > { %p36_p3 = scmp.ge.s32.totalorder %s2164_s27, 2  ;;  %p45_p4 = scmp.eq.s32.totalorder %s43_s29, 0 }
  0x16   : > { %p1804_p5 = por %p55_p2, %p54_p1  ;;  %s75_s4 = sadd.s32 1, %s1671_s17 }
  0x17   : > { %s2166_s27 = smov (%p36_p3, %s2164_s27), 0  ;;  %p82_p6 = scmp.ne.s32.totalorder %s1671_s17, %s1667_s16 }
  0x18   : > { %2132 = sst [smem:[#allocation17_spill]] %s2166_s27  ;;  %s71_s6 = ssub.s32 %s1695_s23, %s2166_s27 }
  0x19   : > { %s1812_s5 = scalar_select %p45_p4, %s1679_s19, %s47_s28  }
  0x1a   : > { %s72_s7 = sor.u32 %s71_s6, %s43_s29  ;;  %p88_p7 = scmp.ne.s32.totalorder %s1667_s16, %s1663_s15 }
  0x1b   : > { %2133 = sst [smem:[#allocation18_spill]] %s1812_s5  ;;  %p73_p8 = scmp.eq.s32.totalorder %s72_s7, 0 }
  0x1c   : > { %p1822_p9 = por %p82_p6, %p55_p2  ;;  %p89_p10 = scmp.eq.s32.totalorder %s1052_s25, 0 }
  0x1d   : > { %p99_p11 = scmp.eq.s32.totalorder %s71_s6, 0  ;;  %s101_s11 = sadd.s32 1, %s1659_s14 }
  0x1e   : > { %s1829_s9 = scalar_select %p73_p8, %s1671_s17, %s75_s4  }
  0x1f   : > { %p1831_p12 = por %p89_p10, %p88_p7  ;;  %p108_p13 = scmp.ne.s32.totalorder %s1659_s14, %s1655_s13 }
  0x20   : > { %2135 = sst [smem:[#allocation19_spill]] %s1829_s9  ;;  %p114_p0 = scmp.ne.s32.totalorder %s1655_s13, %s1651_s12 }
  0x21   : > { %s1837_s28 = scalar_select %p99_p11, %s1659_s14, %s101_s11  }
  0x22   : > { %p140_p1 = scmp.eq.s32.totalorder %s1052_s25, 17  ;;  %p1847_p3 = por %p108_p13, %p55_p2 }
  0x23   : > { %2137 = sst [smem:[#allocation20_spill]] %s1837_s28  ;;  %p1851_p4 = por %p114_p0, %p89_p10 }
  0x24   : > { %p1855_p6 = por %p140_p1, %p108_p13  ;;  %p1055_p7 = scmp.ge.s32.totalorder %s1699_s24, 18 }
  0x26   : > { %s2140_s4 = scalar_select %p1855_p6, 1, 0 }
  0x27   : > { %162 = sbr.rel (%p1055_p7) target bundleno = 71 (0x47), region = 16 }
  0x28   : > { %2141 = sst [smem:[#allocation21_spill]] %s2140_s4 }
  0x2c   : > { %165 = sbr.rel (!%p1804_p5) target bundleno = 58 (0x3a), region = 20  ;;  %s167_s12 = sand.u32 (%p1804_p5), 1, %s1679_s19  }
  0x2d   : > { %s1350_s25 = sshll.u32 (%p1804_p5), %s1691_s22, 4  ;;  %s1056_s6 = sshll.u32 (%p1804_p5), %s167_s12, 5 }
  0x2e   : > { %s2142_s0 = sld [smem:[#allocation22_spill]] (%p1804_p5)  ;;  %s169_s26 = scalar_lea.vmem (%p1804_p5), [#allocation3], %s1056_s6 }
  0x34   : > { %s175_s27 = scalar_lea.vmem %s2142_s0, %s1350_s25 }
  0x35   : > { %v188_v0 = vld [vmem:[%s175_s27] sm:$0xff]  ;;  %v190_v1 = vld [vmem:[%s175_s27 + $0x8] sm:$0xff]  ;;  %v192_v2 = vld [vmem:[%s175_s27 + $0x90] sm:$0xff] }
  0x36   : > { %189 = vst [vmem:[%s169_s26] sm:$0xff] %v188_v0  ;;  %v194_v3 = vld [vmem:[%s175_s27 + $0x98] sm:$0xff] }
  0x37   : > { %191 = vst [vmem:[%s169_s26 + $0x8] sm:$0xff] %v190_v1 }
  0x38   : > { %193 = vst [vmem:[%s169_s26 + $0x10] sm:$0xff] %v192_v2 }
  0x39   : > { %195 = vst [vmem:[%s169_s26 + $0x18] sm:$0xff] %v194_v3 }
  0x3a PF: > { %s202_s30 = sand.u32 1, %s1671_s17   ;;  %s1061_s12 = sshll.u32 %s1695_s23, 1 }
  0x3b   : > { %s1059_s5 = sshll.u32 %s202_s30, 9  ;;  %s1351_s7 = sshll.u32 %s1691_s22, 8 }
  0x3c   : > { %s212_s25 = sadd.s32 %s1351_s7, %s1061_s12  ;;  %s206_s11 = scalar_lea.vmem [#allocation4], %s1059_s5 }
  0x3d   : > { %s217_s0 = sshll.u32 %s206_s11, 4  ;;  %s1063_s19 = sshll.u32 %s212_s25, 2  ;;  %s218_s0 = int_to_ptr.vmem [resolvable:$true] %s217_s0 }
  0x3e   : > { %s214_s9 = scalar_lea.hbm %s2113_s1, %s1063_s19  ;;  %s203_s28 = scalar_lea.sflag [#allocation5], %s202_s30 }
  0x3f   : > { %s215_s26 = sshll.u32 %s214_s9, 4  ;;  %s1701_s3 = smov 256   ;;  %s216_s26 = int_to_ptr.hbm [resolvable:$true] %s215_s26 }
  0x40   : > { %s1702_s17 = smov 128   ;;  %s1703_s21 = smov 8  }
  0x41   : > { %1421 = dma.hbm_to_vmem [thread:$0]  (%p1822_p9), %s216_s26, 8192, %s218_s0, %s203_s28, %s1701_s3, %s1702_s17, %s1703_s21  }
  0x42   : > { %s227_s23 = sand.u32 1, %s1659_s14   ;;  %s235_s5 = scalar_lea.hbm %s2114_s2, %s1061_s12 }
  0x43   : > { %s1064_s25 = sshll.u32 %s227_s23, 1  ;;  %s237_s11 = sshll.u32 %s235_s5, 4  ;;  %s238_s11 = int_to_ptr.hbm [resolvable:$true] %s237_s11 }
  0x44   : > { %s231_s4 = scalar_lea.vmem [#allocation6], %s1064_s25  ;;  %s228_s19 = scalar_lea.sflag [#allocation7], %s227_s23 }
  0x45   : > { %s239_s6 = sshll.u32 %s231_s4, 4  ;;  %s240_s6 = int_to_ptr.vmem [resolvable:$true] %s239_s6 }
  0x46   : > { %1422 = dma.hbm_to_vmem [thread:$0]  (%p1847_p3), %s238_s11, 32, %s240_s6, %s228_s19  }
  0x47 PF: > { %p1066_p2 = scmp.ge.s32.totalorder %s1699_s24, 1  ;;  %p244_p5 = scmp.lt.s32.totalorder %s1699_s24, 19 }
  0x49   : > { %p245_p8 = pnand %p1066_p2, %p244_p5 }
  0x4a   : > { %s251_s0 = sand.u32 (!%p245_p8), 1, %s1675_s18   ;;  %s257_s3 = sand.u32 (!%p245_p8), 1, %s1667_s16  }
  0x4b   : > { %248 = sbr.rel (%p245_p8) target bundleno = 336 (0x150), region = 51  ;;  %s1067_s17 = sshll.u32 (!%p245_p8), %s251_s0, 5 }
  0x4c   : > { %s1068_s21 = sshll.u32 (!%p245_p8), %s257_s3, 9  ;;  %s1885_s22 = scalar_lea.vmem (!%p245_p8), [#allocation3], %s1067_s17 }
  0x4d   : > { %s258_s8 = scalar_lea.sflag (!%p245_p8), [#allocation5], %s257_s3  ;;  %s1887_s23 = scalar_lea.vmem (!%p245_p8), [#allocation4], %s1068_s21 }
  0x50   : > { %1642 = dma.done.wait (%p1831_p12), %s258_s8, 8192  }
  0x51   : > { %1644 = vsyncadd (%p1831_p12), %s258_s8, 4294959104  ;;  %s267_s9 = sand.u32 1, %s1655_s13  }
  0x52   : > { %s1069_s28 = sshll.u32 %s267_s9, 1  ;;  %s268_s15 = scalar_lea.sflag [#allocation7], %s267_s9 }
  0x53   : > { %s1894_s4 = scalar_lea.vmem [#allocation6], %s1069_s28 }
  0x54   : > { %1646 = dma.done.wait (%p1851_p4), %s268_s15, 32  }
  0x55   : > { %1648 = vsyncadd (%p1851_p4), %s268_s15, 4294967264  ;;  %s1070_s18 = sshll.u32 %s267_s9, 4  ;;  %p1071_p9 = scmp.ne.s32.totalorder %s1683_s20, 0 }
  0x56   : > { %s1900_s30 = scalar_lea.vmem [#allocation8], %s1070_s18 }
  0x57   : > { %313 = sbr.rel (%p1071_p9) target bundleno = 97 (0x61), region = 67 }
  0x5c   : > { %v1704_v4 = vmov 0.0  }
  0x5d   : > { %314 = vst [vmem:[#allocation2 + $0x10] sm:$0xff] %v1704_v4 }
  0x5e   : > { %315 = vst [vmem:[#allocation2] sm:$0xff] %v1704_v4 }
  0x5f   : > { %316 = vst [vmem:[#allocation2 + $0x18] sm:$0xff] %v1704_v4 }
  0x60   : > { %317 = vst [vmem:[#allocation2 + $0x8] sm:$0xff] %v1704_v4 }
  0x61 PF: > { %v1146_v5 = vld [vmem:[%s1887_s23 + $0x70] sm:$0xf]  ;;  %v1371_v6 = vld [vmem:[%s1887_s23 + $0x74] sm:$0xf0]  ;;  %v1138_v16 = vld [vmem:[%s1887_s23 + $0x60] sm:$0xf] }
  0x62   : > { %v1210_v7 = vld [vmem:[%s1887_s23 + $0xf0] sm:$0xf]  ;;  %v1147_v8 = vor.u32 %v1371_v6, %v1146_v5  ;;  %v1387_v9 = vld [vmem:[%s1887_s23 + $0xf4] sm:$0xf0]  ;;  %v1369_v18 = vld [vmem:[%s1887_s23 + $0x64] sm:$0xf0] }
  0x63   : > { %v1274_v10 = vld [vmem:[%s1887_s23 + $0x170] sm:$0xf]  ;;  %v1403_v11 = vld [vmem:[%s1887_s23 + $0x174] sm:$0xf0]  ;;  %v1211_v12 = vor.u32 %v1387_v9, %v1210_v7  ;;  %v1202_v19 = vld [vmem:[%s1887_s23 + $0xe0] sm:$0xf]  ;;  %v1139_v21 = vor.u32 %v1369_v18, %v1138_v16 }
  0x64   : > { %v1275_v13 = vor.u32 %v1403_v11, %v1274_v10  ;;  %v1338_v14 = vld [vmem:[%s1887_s23 + $0x1f0] sm:$0xf]  ;;  %v1419_v15 = vld [vmem:[%s1887_s23 + $0x1f4] sm:$0xf0]  ;;  %730 = vmatpush.bf16.msra.mxu0 %v1147_v8  ;;  %v1385_v20 = vld [vmem:[%s1887_s23 + $0xe4] sm:$0xf0] }
  0x65   : > { %v1339_v17 = vor.u32 %v1419_v15, %v1338_v14  ;;  %744 = vmatpush.bf16.msra.mxu1 %v1211_v12  ;;  %v1203_v22 = vor.u32 %v1385_v20, %v1202_v19  ;;  %v1266_v23 = vld [vmem:[%s1887_s23 + $0x160] sm:$0xf]  ;;  %v1401_v24 = vld [vmem:[%s1887_s23 + $0x164] sm:$0xf0]  ;;  %v1130_v28 = vld [vmem:[%s1887_s23 + $0x50] sm:$0xf] }
  0x66   : > { %758 = vmatpush.bf16.msra.mxu2 %v1275_v13  ;;  %v1330_v25 = vld [vmem:[%s1887_s23 + $0x1e0] sm:$0xf]  ;;  %v1267_v26 = vor.u32 %v1401_v24, %v1266_v23  ;;  %v1417_v27 = vld [vmem:[%s1887_s23 + $0x1e4] sm:$0xf0]  ;;  %v1367_v29 = vld [vmem:[%s1887_s23 + $0x54] sm:$0xf0] }
  0x67   : > { %772 = vmatpush.bf16.msra.mxu3 %v1339_v17  ;;  %v1331_v30 = vor.u32 %v1417_v27, %v1330_v25  ;;  %v1194_v31 = vld [vmem:[%s1887_s23 + $0xd0] sm:$0xf]  ;;  %v1383_v32 = vld [vmem:[%s1887_s23 + $0xd4] sm:$0xf0]  ;;  %v1131_v34 = vor.u32 %v1367_v29, %v1130_v28  ;;  %v1122_v40 = vld [vmem:[%s1887_s23 + $0x40] sm:$0xf] }
  0x68   : > { %v1258_v33 = vld [vmem:[%s1887_s23 + $0x150] sm:$0xf]  ;;  %731 = vmatpush.bf16.msra.mxu0 %v1139_v21  ;;  %v1399_v35 = vld [vmem:[%s1887_s23 + $0x154] sm:$0xf0]  ;;  %v1195_v38 = vor.u32 %v1383_v32, %v1194_v31  ;;  %v1365_v41 = vld [vmem:[%s1887_s23 + $0x44] sm:$0xf0] }
  0x69   : > { %v1322_v36 = vld [vmem:[%s1887_s23 + $0x1d0] sm:$0xf]  ;;  %v1415_v37 = vld [vmem:[%s1887_s23 + $0x1d4] sm:$0xf0]  ;;  %745 = vmatpush.bf16.msra.mxu1 %v1203_v22  ;;  %v1259_v39 = vor.u32 %v1399_v35, %v1258_v33  ;;  %v1186_v42 = vld [vmem:[%s1887_s23 + $0xc0] sm:$0xf]  ;;  %v1123_v49 = vor.u32 %v1365_v41, %v1122_v40 }
  0x6a   : > { %759 = vmatpush.bf16.msra.mxu2 %v1267_v26  ;;  %v1323_v43 = vor.u32 %v1415_v37, %v1322_v36  ;;  %v1381_v44 = vld [vmem:[%s1887_s23 + $0xc4] sm:$0xf0]  ;;  %v1250_v45 = vld [vmem:[%s1887_s23 + $0x140] sm:$0xf]  ;;  %v1114_v52 = vld [vmem:[%s1887_s23 + $0x30] sm:$0xf] }
  0x6b   : > { %773 = vmatpush.bf16.msra.mxu3 %v1331_v30  ;;  %v1397_v46 = vld [vmem:[%s1887_s23 + $0x144] sm:$0xf0]  ;;  %v1314_v47 = vld [vmem:[%s1887_s23 + $0x1c0] sm:$0xf]  ;;  %v1187_v50 = vor.u32 %v1381_v44, %v1186_v42  ;;  %v1363_v53 = vld [vmem:[%s1887_s23 + $0x34] sm:$0xf0] }
  0x6c   : > { %v1413_v48 = vld [vmem:[%s1887_s23 + $0x1c4] sm:$0xf0]  ;;  %732 = vmatpush.bf16.msra.mxu0 %v1131_v34  ;;  %v1251_v51 = vor.u32 %v1397_v46, %v1250_v45  ;;  %v1178_v54 = vld [vmem:[%s1887_s23 + $0xb0] sm:$0xf]  ;;  %v1379_v56 = vld [vmem:[%s1887_s23 + $0xb4] sm:$0xf0]  ;;  %v1115_v61 = vor.u32 %v1363_v53, %v1114_v52 }
  0x6d   : > { %746 = vmatpush.bf16.msra.mxu1 %v1195_v38  ;;  %v1315_v55 = vor.u32 %v1413_v48, %v1314_v47  ;;  %v1242_v57 = vld [vmem:[%s1887_s23 + $0x130] sm:$0xf]  ;;  %v1395_v58 = vld [vmem:[%s1887_s23 + $0x134] sm:$0xf0]  ;;  %v1179_v62 = vor.u32 %v1379_v56, %v1178_v54  ;;  %v1106_v0 = vld [vmem:[%s1887_s23 + $0x20] sm:$0xf] }
  0x6e   : > { %760 = vmatpush.bf16.msra.mxu2 %v1259_v39  ;;  %v1306_v59 = vld [vmem:[%s1887_s23 + $0x1b0] sm:$0xf]  ;;  %v1411_v60 = vld [vmem:[%s1887_s23 + $0x1b4] sm:$0xf0]  ;;  %v1243_v63 = vor.u32 %v1395_v58, %v1242_v57  ;;  %v1361_v1 = vld [vmem:[%s1887_s23 + $0x24] sm:$0xf0] }
  0x6f   : > { %774 = vmatpush.bf16.msra.mxu3 %v1323_v43  ;;  %v1170_v2 = vld [vmem:[%s1887_s23 + $0xa0] sm:$0xf]  ;;  %v1307_v3 = vor.u32 %v1411_v60, %v1306_v59  ;;  %v1377_v4 = vld [vmem:[%s1887_s23 + $0xa4] sm:$0xf0]  ;;  %v1107_v9 = vor.u32 %v1361_v1, %v1106_v0  ;;  %v1098_v12 = vld [vmem:[%s1887_s23 + $0x10] sm:$0xf] }
  0x70   : > { %733 = vmatpush.bf16.msra.mxu0 %v1123_v49  ;;  %v1234_v5 = vld [vmem:[%s1887_s23 + $0x120] sm:$0xf]  ;;  %v1393_v6 = vld [vmem:[%s1887_s23 + $0x124] sm:$0xf0]  ;;  %v1171_v10 = vor.u32 %v1377_v4, %v1170_v2  ;;  %v1359_v13 = vld [vmem:[%s1887_s23 + $0x14] sm:$0xf0] }
  0x71   : > { %747 = vmatpush.bf16.msra.mxu1 %v1187_v50  ;;  %v1298_v7 = vld [vmem:[%s1887_s23 + $0x1a0] sm:$0xf]  ;;  %v1409_v8 = vld [vmem:[%s1887_s23 + $0x1a4] sm:$0xf0]  ;;  %v1235_v11 = vor.u32 %v1393_v6, %v1234_v5  ;;  %v1162_v14 = vld [vmem:[%s1887_s23 + $0x90] sm:$0xf]  ;;  %v1099_v22 = vor.u32 %v1359_v13, %v1098_v12 }
  0x72   : > { %761 = vmatpush.bf16.msra.mxu2 %v1251_v51  ;;  %v1299_v15 = vor.u32 %v1409_v8, %v1298_v7  ;;  %v1375_v16 = vld [vmem:[%s1887_s23 + $0x94] sm:$0xf0]  ;;  %v1226_v17 = vld [vmem:[%s1887_s23 + $0x110] sm:$0xf]  ;;  %v1090_v21 = vld [vmem:[%s1887_s23] sm:$0xf] }
  0x73   : > { %775 = vmatpush.bf16.msra.mxu3 %v1315_v55  ;;  %v1391_v18 = vld [vmem:[%s1887_s23 + $0x114] sm:$0xf0]  ;;  %v1290_v19 = vld [vmem:[%s1887_s23 + $0x190] sm:$0xf]  ;;  %v1357_v23 = vld [vmem:[%s1887_s23 + $0x4] sm:$0xf0]  ;;  %v1163_v26 = vor.u32 %v1375_v16, %v1162_v14 }
  0x74   : > { %734 = vmatpush.bf16.msra.mxu0 %v1115_v61  ;;  %v1407_v20 = vld [vmem:[%s1887_s23 + $0x194] sm:$0xf0]  ;;  %v1154_v24 = vld [vmem:[%s1887_s23 + $0x80] sm:$0xf]  ;;  %v1373_v25 = vld [vmem:[%s1887_s23 + $0x84] sm:$0xf0]  ;;  %v1227_v27 = vor.u32 %v1391_v18, %v1226_v17  ;;  %v1091_v38 = vor.u32 %v1357_v23, %v1090_v21 }
  0x75   : > { %748 = vmatpush.bf16.msra.mxu1 %v1179_v62  ;;  %v1218_v28 = vld [vmem:[%s1887_s23 + $0x100] sm:$0xf]  ;;  %v1389_v29 = vld [vmem:[%s1887_s23 + $0x104] sm:$0xf0]  ;;  %v1291_v31 = vor.u32 %v1407_v20, %v1290_v19  ;;  %v1370_v33 = vld [vmem:[%s1887_s23 + $0x74] sm:$0xf]  ;;  %v1155_v42 = vor.u32 %v1373_v25, %v1154_v24 }
  0x76   : > { %762 = vmatpush.bf16.msra.mxu2 %v1243_v63  ;;  %v1282_v30 = vld [vmem:[%s1887_s23 + $0x180] sm:$0xf]  ;;  %v1405_v32 = vld [vmem:[%s1887_s23 + $0x184] sm:$0xf0]  ;;  %v1148_v34 = vld [vmem:[%s1887_s23 + $0x78] sm:$0xf0]  ;;  %v1219_v43 = vor.u32 %v1389_v29, %v1218_v28 }
  0x77   : > { %776 = vmatpush.bf16.msra.mxu3 %v1307_v3  ;;  %v1386_v35 = vld [vmem:[%s1887_s23 + $0xf4] sm:$0xf]  ;;  %v1212_v36 = vld [vmem:[%s1887_s23 + $0xf8] sm:$0xf0]  ;;  %v1368_v44 = vld [vmem:[%s1887_s23 + $0x64] sm:$0xf]  ;;  %v1283_v48 = vor.u32 %v1405_v32, %v1282_v30  ;;  %v1151_v49 = vor.u32 %v1370_v33, %v1148_v34 }
  0x78   : > { %735 = vmatpush.bf16.msra.mxu0 %v1107_v9  ;;  %v1402_v37 = vld [vmem:[%s1887_s23 + $0x174] sm:$0xf]  ;;  %v1276_v39 = vld [vmem:[%s1887_s23 + $0x178] sm:$0xf0]  ;;  %v1140_v45 = vld [vmem:[%s1887_s23 + $0x68] sm:$0xf0]  ;;  %v1215_v54 = vor.u32 %v1386_v35, %v1212_v36 }
  0x79   : > { %749 = vmatpush.bf16.msra.mxu1 %v1171_v10  ;;  %v1418_v40 = vld [vmem:[%s1887_s23 + $0x1f4] sm:$0xf]  ;;  %v1340_v41 = vld [vmem:[%s1887_s23 + $0x1f8] sm:$0xf0]  ;;  %v1082_v46 = vld [vmem:[%s1885_s22 + $0x8] sm:$0xf]  ;;  %v1279_v55 = vor.u32 %v1402_v37, %v1276_v39  ;;  %v1143_v4 = vor.u32 %v1368_v44, %v1140_v45 }
  0x7a   : > { %763 = vmatpush.bf16.msra.mxu2 %v1235_v11  ;;  %v1355_v47 = vld [vmem:[%s1885_s22 + $0x14] sm:$0xf0]  ;;  %v1384_v50 = vld [vmem:[%s1887_s23 + $0xe4] sm:$0xf]  ;;  %v1204_v51 = vld [vmem:[%s1887_s23 + $0xe8] sm:$0xf0]  ;;  %v1343_v59 = vor.u32 %v1418_v40, %v1340_v41 }
  0x7b   : > { %777 = vmatpush.bf16.msra.mxu3 %v1299_v15  ;;  %v1400_v52 = vld [vmem:[%s1887_s23 + $0x164] sm:$0xf]  ;;  %v1268_v53 = vld [vmem:[%s1887_s23 + $0x168] sm:$0xf0]  ;;  %v1084_v57 = vld [vmem:[%s1885_s22 + $0x18] sm:$0xf0]  ;;  %v1986_v60 = vor.u32 %v1355_v47, %v1082_v46  ;;  %v1207_v6 = vor.u32 %v1384_v50, %v1204_v51 }
  0x7c   : > { %736 = vmatpush.bf16.msra.mxu0 %v1099_v22  ;;  %v1353_v56 = vld [vmem:[%s1885_s22 + $0xc] sm:$0xf]  ;;  %v1074_v58 = vld [vmem:[%s1885_s22] sm:$0xf]  ;;  %v1354_v61 = vld [vmem:[%s1885_s22 + $0xc] sm:$0xf0]  ;;  %v1271_v7 = vor.u32 %v1400_v52, %v1268_v53 }
  0x7d   : > { %750 = vmatpush.bf16.msra.mxu1 %v1163_v26  ;;  %v1352_v62 = vld [vmem:[%s1885_s22 + $0x4] sm:$0xf]  ;;  %v1076_v63 = vld [vmem:[%s1885_s22 + $0x10] sm:$0xf0]  ;;  %v1332_v1 = vld [vmem:[%s1887_s23 + $0x1e8] sm:$0xf0]  ;;  %v1993_v2 = vor.u32 %v1353_v56, %v1084_v57  ;;  %v1995_v3 = vor.u32 %v1354_v61, %v1074_v58 }
  0x7e   : > { %764 = vmatpush.bf16.msra.mxu2 %v1227_v27  ;;  %v1416_v0 = vld [vmem:[%s1887_s23 + $0x1e4] sm:$0xf]  ;;  %v1997_v5 = vor.u32 %v1352_v62, %v1076_v63  ;;  %v1366_v8 = vld [vmem:[%s1887_s23 + $0x54] sm:$0xf]  ;;  %v1132_v9 = vld [vmem:[%s1887_s23 + $0x58] sm:$0xf0] }
  0x7f   : > { %778 = vmatpush.bf16.msra.mxu3 %v1291_v31  ;;  %v1382_v10 = vld [vmem:[%s1887_s23 + $0xd4] sm:$0xf]  ;;  %v1335_v11 = vor.u32 %v1416_v0, %v1332_v1  ;;  %v1196_v12 = vld [vmem:[%s1887_s23 + $0xd8] sm:$0xf0]  ;;  %v1135_v17 = vor.u32 %v1366_v8, %v1132_v9  ;;  %v1364_v20 = vld [vmem:[%s1887_s23 + $0x44] sm:$0xf] }
  0x80   : > { %737 = vmatpush.bf16.msra.mxu0 %v1091_v38  ;;  %v1398_v13 = vld [vmem:[%s1887_s23 + $0x154] sm:$0xf]  ;;  %v1260_v14 = vld [vmem:[%s1887_s23 + $0x158] sm:$0xf0]  ;;  %v1199_v18 = vor.u32 %v1382_v10, %v1196_v12  ;;  %v1124_v21 = vld [vmem:[%s1887_s23 + $0x48] sm:$0xf0] }
  0x81   : > { %751 = vmatpush.bf16.msra.mxu1 %v1155_v42  ;;  %v1414_v15 = vld [vmem:[%s1887_s23 + $0x1d4] sm:$0xf]  ;;  %v1324_v16 = vld [vmem:[%s1887_s23 + $0x1d8] sm:$0xf0]  ;;  %v1263_v19 = vor.u32 %v1398_v13, %v1260_v14  ;;  %v1380_v22 = vld [vmem:[%s1887_s23 + $0xc4] sm:$0xf]  ;;  %v1127_v29 = vor.u32 %v1364_v20, %v1124_v21 }
  0x82   : > { %765 = vmatpush.bf16.msra.mxu2 %v1219_v43  ;;  %v1327_v23 = vor.u32 %v1414_v15, %v1324_v16  ;;  %v1188_v24 = vld [vmem:[%s1887_s23 + $0xc8] sm:$0xf0]  ;;  %v1396_v25 = vld [vmem:[%s1887_s23 + $0x144] sm:$0xf]  ;;  %v1362_v32 = vld [vmem:[%s1887_s23 + $0x34] sm:$0xf] }
  0x83   : > { %779 = vmatpush.bf16.msra.mxu3 %v1283_v48  ;;  %738 = vmatmul.bf16.vlgmr.msra.gmra.mxu0 %v1995_v3  ;;  %v1252_v26 = vld [vmem:[%s1887_s23 + $0x148] sm:$0xf0]  ;;  %v1412_v27 = vld [vmem:[%s1887_s23 + $0x1c4] sm:$0xf]  ;;  %v1191_v30 = vor.u32 %v1380_v22, %v1188_v24  ;;  %v1116_v33 = vld [vmem:[%s1887_s23 + $0x38] sm:$0xf0] }
  0x84   : > { %786 = vmatpush.bf16.msrb.mxu0 %v1151_v49  ;;  %752 = vmatmul.bf16.vlgmr.msra.gmra.mxu1 %v1997_v5  ;;  %v1316_v28 = vld [vmem:[%s1887_s23 + $0x1c8] sm:$0xf0]  ;;  %v1255_v31 = vor.u32 %v1396_v25, %v1252_v26  ;;  %v1378_v34 = vld [vmem:[%s1887_s23 + $0xb4] sm:$0xf]  ;;  %v1180_v36 = vld [vmem:[%s1887_s23 + $0xb8] sm:$0xf0]  ;;  %v1119_v41 = vor.u32 %v1362_v32, %v1116_v33 }
  0x85   : > { %800 = vmatpush.bf16.msrb.mxu1 %v1215_v54  ;;  %766 = vmatmul.bf16.vlgmr.msra.gmra.mxu2 %v1986_v60  ;;  %v1319_v35 = vor.u32 %v1412_v27, %v1316_v28  ;;  %v1394_v37 = vld [vmem:[%s1887_s23 + $0x134] sm:$0xf]  ;;  %v1244_v38 = vld [vmem:[%s1887_s23 + $0x138] sm:$0xf0]  ;;  %v1183_v42 = vor.u32 %v1378_v34, %v1180_v36  ;;  %v1360_v44 = vld [vmem:[%s1887_s23 + $0x24] sm:$0xf] }
  0x86   : > { %814 = vmatpush.bf16.msrb.mxu2 %v1279_v55  ;;  %780 = vmatmul.bf16.vlgmr.msra.gmra.mxu3 %v1993_v2  ;;  %v1410_v39 = vld [vmem:[%s1887_s23 + $0x1b4] sm:$0xf]  ;;  %v1308_v40 = vld [vmem:[%s1887_s23 + $0x1b8] sm:$0xf0]  ;;  %v1247_v43 = vor.u32 %v1394_v37, %v1244_v38  ;;  %v1108_v45 = vld [vmem:[%s1887_s23 + $0x28] sm:$0xf0] }
  0x87   : > { %828 = vmatpush.bf16.msrb.mxu3 %v1343_v59  ;;  %v1376_v46 = vld [vmem:[%s1887_s23 + $0xa4] sm:$0xf]  ;;  %v1311_v47 = vor.u32 %v1410_v39, %v1308_v40  ;;  %v1172_v48 = vld [vmem:[%s1887_s23 + $0xa8] sm:$0xf0]  ;;  %v1111_v53 = vor.u32 %v1360_v44, %v1108_v45  ;;  %v1358_v56 = vld [vmem:[%s1887_s23 + $0x14] sm:$0xf] }
  0x88   : > { %787 = vmatpush.bf16.msrb.mxu0 %v1143_v4  ;;  %v1392_v49 = vld [vmem:[%s1887_s23 + $0x124] sm:$0xf]  ;;  %v1236_v50 = vld [vmem:[%s1887_s23 + $0x128] sm:$0xf0]  ;;  %v1175_v54 = vor.u32 %v1376_v46, %v1172_v48  ;;  %v1100_v57 = vld [vmem:[%s1887_s23 + $0x18] sm:$0xf0] }
  0x89   : > { %801 = vmatpush.bf16.msrb.mxu1 %v1207_v6  ;;  %v1408_v51 = vld [vmem:[%s1887_s23 + $0x1a4] sm:$0xf]  ;;  %v1300_v52 = vld [vmem:[%s1887_s23 + $0x1a8] sm:$0xf0]  ;;  %v1239_v55 = vor.u32 %v1392_v49, %v1236_v50  ;;  %v1374_v58 = vld [vmem:[%s1887_s23 + $0x94] sm:$0xf]  ;;  %v1103_v4 = vor.u32 %v1358_v56, %v1100_v57 }
  0x8a   : > { %815 = vmatpush.bf16.msrb.mxu2 %v1271_v7  ;;  %v1303_v59 = vor.u32 %v1408_v51, %v1300_v52  ;;  %v1164_v61 = vld [vmem:[%s1887_s23 + $0x98] sm:$0xf0]  ;;  %v1390_v62 = vld [vmem:[%s1887_s23 + $0x114] sm:$0xf]  ;;  %v1356_v8 = vld [vmem:[%s1887_s23 + $0x4] sm:$0xf] }
  0x8b   : > { %829 = vmatpush.bf16.msrb.mxu3 %v1335_v11  ;;  %v1228_v63 = vld [vmem:[%s1887_s23 + $0x118] sm:$0xf0]  ;;  %v1406_v0 = vld [vmem:[%s1887_s23 + $0x194] sm:$0xf]  ;;  %v1167_v6 = vor.u32 %v1374_v58, %v1164_v61  ;;  %v1092_v9 = vld [vmem:[%s1887_s23 + $0x8] sm:$0xf0] }
  0x8c   : > { %788 = vmatpush.bf16.msrb.mxu0 %v1135_v17  ;;  %v1292_v1 = vld [vmem:[%s1887_s23 + $0x198] sm:$0xf0]  ;;  %v1231_v7 = vor.u32 %v1390_v62, %v1228_v63  ;;  %v1372_v10 = vld [vmem:[%s1887_s23 + $0x84] sm:$0xf]  ;;  %v1156_v12 = vld [vmem:[%s1887_s23 + $0x88] sm:$0xf0]  ;;  %v1095_v17 = vor.u32 %v1356_v8, %v1092_v9 }
  0x8d   : > { %802 = vmatpush.bf16.msrb.mxu1 %v1199_v18  ;;  %v1295_v11 = vor.u32 %v1406_v0, %v1292_v1  ;;  %v1388_v13 = vld [vmem:[%s1887_s23 + $0x104] sm:$0xf]  ;;  %v1220_v14 = vld [vmem:[%s1887_s23 + $0x108] sm:$0xf0]  ;;  %v1159_v18 = vor.u32 %v1372_v10, %v1156_v12  ;;  %v318_v27 = vld [vmem:[#allocation2 + $0x10] sm:$0xff]  ;;  %p1344_p10 = scmp.ne.s32.totalorder %s1683_s20, 8 }
  0x8e   : > { %816 = vmatpush.bf16.msrb.mxu2 %v1263_v19  ;;  %v1404_v15 = vld [vmem:[%s1887_s23 + $0x184] sm:$0xf]  ;;  %v1284_v16 = vld [vmem:[%s1887_s23 + $0x188] sm:$0xf0]  ;;  %v1223_v19 = vor.u32 %v1388_v13, %v1220_v14  ;;  %v320_v34 = vld [vmem:[#allocation2 + $0x18] sm:$0xff] }
  0x8f   : > { %830 = vmatpush.bf16.msrb.mxu3 %v1327_v23  ;;  %v1287_v20 = vor.u32 %v1404_v15, %v1284_v16  ;;  %v321_v49 = vld [vmem:[#allocation2 + $0x8] sm:$0xff] }
  0x90   : > { %789 = vmatpush.bf16.msrb.mxu0 %v1127_v29 }
  0x91   : > { %803 = vmatpush.bf16.msrb.mxu1 %v1191_v30 }
  0x92   : > { %817 = vmatpush.bf16.msrb.mxu2 %v1255_v31 }
  0x93   : > { %831 = vmatpush.bf16.msrb.mxu3 %v1319_v35 }
  0x94   : > { %790 = vmatpush.bf16.msrb.mxu0 %v1119_v41  ;;  %v319_v41 = vld [vmem:[#allocation2] sm:$0xff] }
  0x95   : > { %804 = vmatpush.bf16.msrb.mxu1 %v1183_v42 }
  0x96   : > { %818 = vmatpush.bf16.msrb.mxu2 %v1247_v43 }
  0x97   : > { %832 = vmatpush.bf16.msrb.mxu3 %v1311_v47 }
  0x98   : > { %791 = vmatpush.bf16.msrb.mxu0 %v1111_v53 }
  0x99   : > { %805 = vmatpush.bf16.msrb.mxu1 %v1175_v54 }
  0x9a   : > { %819 = vmatpush.bf16.msrb.mxu2 %v1239_v55 }
  0x9b   : > { %833 = vmatpush.bf16.msrb.mxu3 %v1303_v59 }
  0x9c   : > { %792 = vmatpush.bf16.msrb.mxu0 %v1103_v4 }
  0x9d   : > { %806 = vmatpush.bf16.msrb.mxu1 %v1167_v6 }
  0x9e   : > { %820 = vmatpush.bf16.msrb.mxu2 %v1231_v7 }
  0x9f   : > { %834 = vmatpush.bf16.msrb.mxu3 %v1295_v11 }
  0xa0   : > { %793 = vmatpush.bf16.msrb.mxu0 %v1095_v17 }
  0xa1   : > { %807 = vmatpush.bf16.msrb.mxu1 %v1159_v18 }
  0xa2   : > { %821 = vmatpush.bf16.msrb.mxu2 %v1223_v19 }
  0xa3   : > { %835 = vmatpush.bf16.msrb.mxu3 %v1287_v20  ;;  %794 = vmatmul.bf16.vlgmr.msrb.gmra.mxu0 %v1995_v3 }
  0xa4   : > { %808 = vmatmul.bf16.vlgmr.msrb.gmra.mxu1 %v1997_v5 }
  0xa5   : > { %822 = vmatmul.bf16.vlgmr.msrb.gmra.mxu2 %v1986_v60 }
  0xa6   : > { %836 = vmatmul.bf16.vlgmr.msrb.gmra.mxu3 %v1993_v2 }
 0x100   : > { %v739_v21 = vpop.f32.mrf.mxu0 }
 0x101   : > { %v753_v22 = vpop.f32.mrf.mxu1 }
 0x102   : > { %v754_v23 = vadd.f32 %v753_v22, %v739_v21 }
 0x108   : > { %v767_v24 = vpop.f32.mrf.mxu2  ;;  %v741_v29 = vpop.f32.mrf.mxu0 }
 0x109   : > { %v768_v25 = vadd.f32 %v767_v24, %v754_v23  ;;  %v781_v26 = vpop.f32.mrf.mxu3  ;;  %v755_v30 = vpop.f32.mrf.mxu1 }
 0x10a   : > { %v756_v32 = vadd.f32 %v755_v30, %v741_v29 }
 0x10b   : > { %v782_v28 = vadd.f32 %v781_v26, %v768_v25 }
 0x10d   : > { %v842_v31 = vadd.f32 %v782_v28, %v318_v27 }
 0x10f   : > { %846 = vst [vmem:[#allocation2 + $0x10] sm:$0xff] %v842_v31 }
 0x110   : > { %v769_v3 = vpop.f32.mrf.mxu2 }
 0x111   : > { %v770_v33 = vadd.f32 %v769_v3, %v756_v32  ;;  %v783_v5 = vpop.f32.mrf.mxu3 }
 0x113   : > { %v784_v60 = vadd.f32 %v783_v5, %v770_v33 }
 0x115   : > { %v844_v35 = vadd.f32 %v784_v60, %v320_v34 }
 0x117   : > { %848 = vst [vmem:[#allocation2 + $0x18] sm:$0xff] %v844_v35 }
 0x120   : > { %v795_v2 = vpop.f32.mrf.mxu0 }
 0x121   : > { %v809_v36 = vpop.f32.mrf.mxu1 }
 0x122   : > { %v810_v37 = vadd.f32 %v809_v36, %v795_v2 }
 0x128   : > { %v823_v38 = vpop.f32.mrf.mxu2  ;;  %v797_v43 = vpop.f32.mrf.mxu0 }
 0x129   : > { %v824_v39 = vadd.f32 %v823_v38, %v810_v37  ;;  %v837_v40 = vpop.f32.mrf.mxu3  ;;  %v811_v44 = vpop.f32.mrf.mxu1 }
 0x12a   : > { %v812_v46 = vadd.f32 %v811_v44, %v797_v43 }
 0x12b   : > { %v838_v42 = vadd.f32 %v837_v40, %v824_v39 }
 0x12d   : > { %v843_v45 = vadd.f32 %v838_v42, %v319_v41 }
 0x12f   : > { %847 = vst [vmem:[#allocation2] sm:$0xff] %v843_v45 }
 0x130   : > { %v825_v47 = vpop.f32.mrf.mxu2 }
 0x131   : > { %v826_v48 = vadd.f32 %v825_v47, %v812_v46  ;;  %v839_v50 = vpop.f32.mrf.mxu3 }
 0x133   : > { %v840_v51 = vadd.f32 %v839_v50, %v826_v48  ;;  %853 = sbr.rel (%p1344_p10) target bundleno = 326 (0x146), region = 71 }
 0x135   : > { %v845_v52 = vadd.f32 %v840_v51, %v321_v49 }
 0x137   : > { %849 = vst [vmem:[#allocation2 + $0x8] sm:$0xff] %v845_v52 }
 0x138   : > { %v854_v53 = vld [vmem:[#allocation2 + $0x10] sm:$0xff]  ;;  %v855_v54 = vld [vmem:[#allocation2] sm:$0xff]  ;;  %v856_v58 = vld [vmem:[#allocation2 + $0x18] sm:$0xff] }
 0x139   : > { %v858_v55 = vld [vmem:[%s1894_s4] sm:$0x3] }
 0x13a   : > { %v860_v56 = vperm.slane %v858_v55, 0  ;;  %v861_v57 = vperm.slane %v858_v55, 1 }
 0x13c   : > { %v864_v61 = vadd.f32 %v860_v56, %v854_v53  ;;  %v865_v62 = vadd.f32 %v861_v57, %v855_v54  ;;  %v866_v63 = vadd.f32 %v860_v56, %v856_v58 }
 0x13e   : > { %v857_v59 = vld [vmem:[#allocation2 + $0x8] sm:$0xff]  ;;  %v868_v1 = vmax.f32 %v864_v61, 0.0  ;;  %v869_v4 = vmax.f32 %v865_v62, 0.0  ;;  %v870_v6 = vmax.f32 %v866_v63, 0.0 }
 0x13f   : > { %v867_v0 = vadd.f32 %v861_v57, %v857_v59 }
 0x140   : > { %v872_v8 = vpack.c.bf16 %v869_v4, %v868_v1 }
 0x141   : > { %v871_v7 = vmax.f32 %v867_v0, 0.0 }
 0x142   : > { %874 = vst [vmem:[%s1900_s30] sm:$0xff] %v872_v8 }
 0x143   : > { %v873_v9 = vpack.c.bf16 %v871_v7, %v870_v6 }
 0x145   : > { %875 = vst [vmem:[%s1900_s30 + $0x8] sm:$0xff] %v873_v9 }
 0x146 PF: > { %882 = sbr.rel (!%p1855_p6) target bundleno = 336 (0x150), region = 75  ;;  %s2144_s10 = sld [smem:[#allocation13_spill]] (%p1855_p6) }
 0x147   : > { %s2145_s26 = sld [smem:[#allocation23_spill]] (%p1855_p6) }
 0x149   : > { %v919_v10 = vld [vmem:[%s1900_s30] sm:$0xff] (%p1855_p6) }
 0x14c   : > { %s1420_s29 = sshll.u32 %s2144_s10, 3  ;;  %v921_v11 = vld [vmem:[%s1900_s30 + $0x8] sm:$0xff] }
 0x14d   : > { %s888_s7 = scalar_lea.vmem %s2145_s26, %s1420_s29 }
 0x14e   : > { %920 = vst [vmem:[%s888_s7] sm:$0xff] %v919_v10 }
 0x14f   : > { %922 = vst [vmem:[%s888_s7 + $0x10] sm:$0xff] %v921_v11 }
 0x150 PF: > { %s19_s24 = sadd.s32 1, %s1699_s24   ;;  %s2147_s25 = sld [smem:[#allocation20_spill]] }
 0x151   : > { %p2068_p11 = scmp.ge.s32.totalorder %s19_s24, 20   ;;  %s2148_s11 = sld [smem:[#allocation11_spill]] }
 0x152   : > { %s2149_s17 = sld [smem:[#allocation19_spill]]  ;;  %s2156_s12 = smov %s1655_s13 }
 0x153   : > { %s2150_s18 = sld [smem:[#allocation12_spill]]  ;;  %s2157_s13 = smov %s1659_s14 }
 0x154   : > { %s2151_s19 = sld [smem:[#allocation18_spill]]  ;;  %s2159_s15 = smov %s1667_s16 }
 0x155   : > { %s2152_s20 = sld [smem:[#allocation14_spill]]  ;;  %18 = sbr.rel (!%p2068_p11) target bundleno = 13 (0xd), region = 162 }
 0x156   : > { %s2153_s21 = sld [smem:[#allocation15_spill]]  ;;  %s2158_s14 = smov %s2147_s25 }
 0x157   : > { %s2154_s22 = sld [smem:[#allocation16_spill]]  ;;  %s2160_s16 = smov %s2148_s11 }
 0x158   : > { %s2155_s23 = sld [smem:[#allocation17_spill]] }
 0x15a   :  { %938 = vsyncpa [#allocation5], 1 }
 0x15b   :  { %940 = vsyncpa [#allocation5 + $0x1], 1 }
 0x15c   :  { %941 = vsyncpa [#allocation7], 1 }
 0x15d   :  { %943 = vsyncpa [#allocation7 + $0x1], 1 }

// kernel: _lambda_.28
= control target key start
LH: loop header
LB: loop body
LE: loop exit
PB: predicated region body
PF: predicated region fallthrough
CT: control target
= control target key end

     0   :  { %8 = vsyncpa [#allocation4], 0  ;;  %s1795_s0 = inlined_call_operand.vmem [shape: bf16[16,512], index: 0, kind: input, shape index: {}]   ;;  %s1796_s1 = inlined_call_operand.hbm [shape: bf16[512,1024], index: 1, kind: input, shape index: {}]   ;;  %s1797_s2 = inlined_call_operand.vmem [shape: f32[1,1024], index: 2, kind: input, shape index: {}]   ;;  %s1798_s3 = inlined_call_operand.vmem [shape: bf16[16,1024], index: 3, kind: output, shape index: {}]  }
   0x1   :  { %10 = vsyncpa [#allocation4 + $0x1], 0  ;;  %s1523_s12 = smov 0   ;;  %s1525_s13 = smov 0  }
   0x2   :  { %s1527_s14 = smov 0   ;;  %s1529_s15 = smov 0  }
   0x3   :  { %s1531_s16 = smov 0   ;;  %s1533_s17 = smov 0  }
   0x4 LB: > { %s1001_s18 = sadd.s32 4294967295, %s1498_s17   ;;  %s31_s19 = sadd.s32 1, %s1494_s16  ;;  %s1498_s17 = sphi %s1533_s17, %s16_s17   ;;  %s1494_s16 = sphi %s1531_s16, %s1806_s16   ;;  %s1490_s15 = sphi %s1529_s15, %s1805_s15   ;;  %s1486_s14 = sphi %s1527_s14, %s1804_s14   ;;  %s1482_s13 = sphi %s1525_s13, %s1803_s13   ;;  %s1478_s12 = sphi %s1523_s12, %s1802_s12  }
   0x5   : > { %p33_p0 = scmp.ge.s32.totalorder %s31_s19, 4  ;;  %s72_s20 = sadd.s32 1, %s1486_s14 }
   0x6   : > { %p79_p1 = scmp.ne.s32.totalorder %s1486_s14, %s1482_s13  ;;  %p80_p2 = scmp.eq.s32.totalorder %s1498_s17, 0 }
   0x7   : > { %s1808_s19 = smov (%p33_p0, %s31_s19), 0  ;;  %p85_p4 = scmp.ne.s32.totalorder %s1482_s13, %s1478_s12 }
   0x8   : > { %p1559_p3 = por %p80_p2, %p79_p1  ;;  %s68_s22 = ssub.s32 %s1494_s16, %s1808_s19 }
   0x9   : > { %p86_p5 = scmp.eq.s32.totalorder %s1001_s18, 0  ;;  %p70_p6 = scmp.eq.s32.totalorder %s68_s22, 0 }
   0xa   : > { %p137_p7 = scmp.eq.s32.totalorder %s1001_s18, 3  ;;  %p1366_p10 = scmp.lt.s32.totalorder %s1498_s17, 4 }
   0xb   : > { %p1566_p8 = por %p86_p5, %p85_p4  ;;  %s178_s26 = sand.u32 1, %s1486_s14  }
   0xc   : > { %s1571_s24 = scalar_select %p70_p6, %s1486_s14, %s72_s20  }
   0xd   : > { %p1573_p9 = por %p137_p7, %p79_p1  ;;  %s1290_s27 = sshll.u32 %s1494_s16, 3 }
   0xe   : > { %s1006_s28 = sshll.u32 %s178_s26, 9  ;;  %s190_s4 = scalar_lea.hbm %s1796_s1, %s1290_s27 }
   0xf   : > { %s191_s5 = sshll.u32 %s190_s4, 4  ;;  %s182_s6 = scalar_lea.vmem [#allocation3], %s1006_s28  ;;  %s192_s5 = int_to_ptr.hbm [resolvable:$true] %s191_s5 }
  0x10   : > { %s193_s7 = sshll.u32 %s182_s6, 4  ;;  %p1363_p11 = pnand %p1366_p10, %p1559_p3  ;;  %s194_s7 = int_to_ptr.vmem [resolvable:$true] %s193_s7 }
  0x11   : > { %p1009_p12 = scmp.ge.s32.totalorder %s1498_s17, 1  ;;  %s179_s8 = scalar_lea.sflag [#allocation4], %s178_s26 }
  0x12   : > { %s1500_s9 = smov 512   ;;  %s1501_s10 = smov 128  }
  0x13   : > { %s1502_s11 = smov 8   ;;  %p209_p13 = scmp.lt.s32.totalorder %s1498_s17, 5 }
  0x14   : > { %1365 = dma.hbm_to_vmem [thread:$0]  (!%p1363_p11), %s192_s5, 8192, %s194_s7, %s179_s8, %s1500_s9, %s1501_s10, %s1502_s11  }
  0x15   : > { %p210_p0 = pnand %p1009_p12, %p209_p13 }
  0x16   : > { %s1588_s12 = sand.u32 (!%p210_p0), 1, %s1482_s13  }
  0x17   : > { %213 = sbr.rel (%p210_p0) target bundleno = 256 (0x100), region = 32  ;;  %s1010_s18 = sshll.u32 (!%p210_p0), %s1588_s12, 9 }
  0x18   : > { %s216_s20 = scalar_lea.sflag (!%p210_p0), [#allocation4], %s1588_s12  ;;  %s1592_s22 = scalar_lea.vmem (!%p210_p0), [#allocation3], %s1010_s18 }
  0x1c   : > { %1473 = dma.done.wait (%p1566_p8), %s216_s20, 8192  }
  0x1d   : > { %1475 = vsyncadd (%p1566_p8), %s216_s20, 4294959104  ;;  %v1087_v0 = vld [vmem:[%s1592_s22 + $0x70] sm:$0xf]  ;;  %v1310_v1 = vld [vmem:[%s1592_s22 + $0x74] sm:$0xf0]  ;;  %s1012_s20 = sshll.u32 %s1490_s15, 1 }
  0x1e   : > { %v1151_v2 = vld [vmem:[%s1592_s22 + $0xf0] sm:$0xf]  ;;  %v1088_v3 = vor.u32 %v1310_v1, %v1087_v0  ;;  %v1326_v4 = vld [vmem:[%s1592_s22 + $0xf4] sm:$0xf0]  ;;  %v1079_v11 = vld [vmem:[%s1592_s22 + $0x60] sm:$0xf] }
  0x1f   : > { %v1215_v5 = vld [vmem:[%s1592_s22 + $0x170] sm:$0xf]  ;;  %v1342_v6 = vld [vmem:[%s1592_s22 + $0x174] sm:$0xf0]  ;;  %v1152_v7 = vor.u32 %v1326_v4, %v1151_v2  ;;  %v1308_v13 = vld [vmem:[%s1592_s22 + $0x64] sm:$0xf0] }
  0x20   : > { %v1216_v8 = vor.u32 %v1342_v6, %v1215_v5  ;;  %v1279_v9 = vld [vmem:[%s1592_s22 + $0x1f0] sm:$0xf]  ;;  %v1358_v10 = vld [vmem:[%s1592_s22 + $0x1f4] sm:$0xf0]  ;;  %697 = vmatpush.bf16.msra.mxu0 %v1088_v3  ;;  %v1143_v14 = vld [vmem:[%s1592_s22 + $0xe0] sm:$0xf]  ;;  %v1080_v16 = vor.u32 %v1308_v13, %v1079_v11 }
  0x21   : > { %v1280_v12 = vor.u32 %v1358_v10, %v1279_v9  ;;  %v1324_v15 = vld [vmem:[%s1592_s22 + $0xe4] sm:$0xf0]  ;;  %711 = vmatpush.bf16.msra.mxu1 %v1152_v7  ;;  %v1207_v18 = vld [vmem:[%s1592_s22 + $0x160] sm:$0xf]  ;;  %v1071_v23 = vld [vmem:[%s1592_s22 + $0x50] sm:$0xf] }
  0x22   : > { %725 = vmatpush.bf16.msra.mxu2 %v1216_v8  ;;  %v1144_v17 = vor.u32 %v1324_v15, %v1143_v14  ;;  %v1340_v19 = vld [vmem:[%s1592_s22 + $0x164] sm:$0xf0]  ;;  %v1271_v20 = vld [vmem:[%s1592_s22 + $0x1e0] sm:$0xf]  ;;  %v1306_v24 = vld [vmem:[%s1592_s22 + $0x54] sm:$0xf0] }
  0x23   : > { %739 = vmatpush.bf16.msra.mxu3 %v1280_v12  ;;  %v1208_v21 = vor.u32 %v1340_v19, %v1207_v18  ;;  %v1356_v22 = vld [vmem:[%s1592_s22 + $0x1e4] sm:$0xf0]  ;;  %v1135_v26 = vld [vmem:[%s1592_s22 + $0xd0] sm:$0xf]  ;;  %v1322_v27 = vld [vmem:[%s1592_s22 + $0xd4] sm:$0xf0]  ;;  %v1072_v29 = vor.u32 %v1306_v24, %v1071_v23 }
  0x24   : > { %v1272_v25 = vor.u32 %v1356_v22, %v1271_v20  ;;  %v1199_v28 = vld [vmem:[%s1592_s22 + $0x150] sm:$0xf]  ;;  %698 = vmatpush.bf16.msra.mxu0 %v1080_v16  ;;  %v1338_v30 = vld [vmem:[%s1592_s22 + $0x154] sm:$0xf0]  ;;  %v1136_v33 = vor.u32 %v1322_v27, %v1135_v26  ;;  %v1063_v35 = vld [vmem:[%s1592_s22 + $0x40] sm:$0xf] }
  0x25   : > { %v1263_v31 = vld [vmem:[%s1592_s22 + $0x1d0] sm:$0xf]  ;;  %v1354_v32 = vld [vmem:[%s1592_s22 + $0x1d4] sm:$0xf0]  ;;  %712 = vmatpush.bf16.msra.mxu1 %v1144_v17  ;;  %v1200_v34 = vor.u32 %v1338_v30, %v1199_v28  ;;  %v1304_v36 = vld [vmem:[%s1592_s22 + $0x44] sm:$0xf0] }
  0x26   : > { %726 = vmatpush.bf16.msra.mxu2 %v1208_v21  ;;  %v1127_v37 = vld [vmem:[%s1592_s22 + $0xc0] sm:$0xf]  ;;  %v1264_v38 = vor.u32 %v1354_v32, %v1263_v31  ;;  %v1320_v39 = vld [vmem:[%s1592_s22 + $0xc4] sm:$0xf0]  ;;  %v1064_v44 = vor.u32 %v1304_v36, %v1063_v35  ;;  %v1055_v47 = vld [vmem:[%s1592_s22 + $0x30] sm:$0xf] }
  0x27   : > { %740 = vmatpush.bf16.msra.mxu3 %v1272_v25  ;;  %v1191_v40 = vld [vmem:[%s1592_s22 + $0x140] sm:$0xf]  ;;  %v1336_v41 = vld [vmem:[%s1592_s22 + $0x144] sm:$0xf0]  ;;  %v1128_v45 = vor.u32 %v1320_v39, %v1127_v37  ;;  %v1302_v48 = vld [vmem:[%s1592_s22 + $0x34] sm:$0xf0] }
  0x28   : > { %v1255_v42 = vld [vmem:[%s1592_s22 + $0x1c0] sm:$0xf]  ;;  %v1352_v43 = vld [vmem:[%s1592_s22 + $0x1c4] sm:$0xf0]  ;;  %699 = vmatpush.bf16.msra.mxu0 %v1072_v29  ;;  %v1192_v46 = vor.u32 %v1336_v41, %v1191_v40  ;;  %v1119_v49 = vld [vmem:[%s1592_s22 + $0xb0] sm:$0xf]  ;;  %v1056_v56 = vor.u32 %v1302_v48, %v1055_v47 }
  0x29   : > { %713 = vmatpush.bf16.msra.mxu1 %v1136_v33  ;;  %v1256_v50 = vor.u32 %v1352_v43, %v1255_v42  ;;  %v1318_v51 = vld [vmem:[%s1592_s22 + $0xb4] sm:$0xf0]  ;;  %v1183_v52 = vld [vmem:[%s1592_s22 + $0x130] sm:$0xf]  ;;  %v1047_v59 = vld [vmem:[%s1592_s22 + $0x20] sm:$0xf] }
  0x2a   : > { %727 = vmatpush.bf16.msra.mxu2 %v1200_v34  ;;  %v1334_v53 = vld [vmem:[%s1592_s22 + $0x134] sm:$0xf0]  ;;  %v1247_v54 = vld [vmem:[%s1592_s22 + $0x1b0] sm:$0xf]  ;;  %v1120_v57 = vor.u32 %v1318_v51, %v1119_v49  ;;  %v1300_v60 = vld [vmem:[%s1592_s22 + $0x24] sm:$0xf0] }
  0x2b   : > { %741 = vmatpush.bf16.msra.mxu3 %v1264_v38  ;;  %v1350_v55 = vld [vmem:[%s1592_s22 + $0x1b4] sm:$0xf0]  ;;  %v1184_v58 = vor.u32 %v1334_v53, %v1183_v52  ;;  %v1111_v61 = vld [vmem:[%s1592_s22 + $0xa0] sm:$0xf]  ;;  %v1316_v63 = vld [vmem:[%s1592_s22 + $0xa4] sm:$0xf0]  ;;  %v1048_v4 = vor.u32 %v1300_v60, %v1047_v59 }
  0x2c   : > { %700 = vmatpush.bf16.msra.mxu0 %v1064_v44  ;;  %v1248_v62 = vor.u32 %v1350_v55, %v1247_v54  ;;  %v1175_v0 = vld [vmem:[%s1592_s22 + $0x120] sm:$0xf]  ;;  %v1332_v1 = vld [vmem:[%s1592_s22 + $0x124] sm:$0xf0]  ;;  %v1112_v5 = vor.u32 %v1316_v63, %v1111_v61  ;;  %v1039_v7 = vld [vmem:[%s1592_s22 + $0x10] sm:$0xf] }
  0x2d   : > { %714 = vmatpush.bf16.msra.mxu1 %v1128_v45  ;;  %v1239_v2 = vld [vmem:[%s1592_s22 + $0x1a0] sm:$0xf]  ;;  %v1348_v3 = vld [vmem:[%s1592_s22 + $0x1a4] sm:$0xf0]  ;;  %v1176_v6 = vor.u32 %v1332_v1, %v1175_v0  ;;  %v1298_v8 = vld [vmem:[%s1592_s22 + $0x14] sm:$0xf0] }
  0x2e   : > { %728 = vmatpush.bf16.msra.mxu2 %v1192_v46  ;;  %v1103_v9 = vld [vmem:[%s1592_s22 + $0x90] sm:$0xf]  ;;  %v1240_v10 = vor.u32 %v1348_v3, %v1239_v2  ;;  %v1314_v11 = vld [vmem:[%s1592_s22 + $0x94] sm:$0xf0]  ;;  %v1031_v16 = vld [vmem:[%s1592_s22] sm:$0xf]  ;;  %v1040_v17 = vor.u32 %v1298_v8, %v1039_v7 }
  0x2f   : > { %742 = vmatpush.bf16.msra.mxu3 %v1256_v50  ;;  %v1167_v12 = vld [vmem:[%s1592_s22 + $0x110] sm:$0xf]  ;;  %v1330_v13 = vld [vmem:[%s1592_s22 + $0x114] sm:$0xf0]  ;;  %v1296_v18 = vld [vmem:[%s1592_s22 + $0x4] sm:$0xf0]  ;;  %v1104_v21 = vor.u32 %v1314_v11, %v1103_v9 }
  0x30   : > { %701 = vmatpush.bf16.msra.mxu0 %v1056_v56  ;;  %v1231_v14 = vld [vmem:[%s1592_s22 + $0x190] sm:$0xf]  ;;  %v1346_v15 = vld [vmem:[%s1592_s22 + $0x194] sm:$0xf0]  ;;  %v1095_v19 = vld [vmem:[%s1592_s22 + $0x80] sm:$0xf]  ;;  %v1168_v22 = vor.u32 %v1330_v13, %v1167_v12  ;;  %v1032_v33 = vor.u32 %v1296_v18, %v1031_v16 }
  0x31   : > { %715 = vmatpush.bf16.msra.mxu1 %v1120_v57  ;;  %v1312_v20 = vld [vmem:[%s1592_s22 + $0x84] sm:$0xf0]  ;;  %v1159_v23 = vld [vmem:[%s1592_s22 + $0x100] sm:$0xf]  ;;  %v1232_v26 = vor.u32 %v1346_v15, %v1231_v14  ;;  %v1309_v28 = vld [vmem:[%s1592_s22 + $0x74] sm:$0xf] }
  0x32   : > { %729 = vmatpush.bf16.msra.mxu2 %v1184_v58  ;;  %v1328_v24 = vld [vmem:[%s1592_s22 + $0x104] sm:$0xf0]  ;;  %v1223_v25 = vld [vmem:[%s1592_s22 + $0x180] sm:$0xf]  ;;  %v1089_v29 = vld [vmem:[%s1592_s22 + $0x78] sm:$0xf0]  ;;  %v1096_v37 = vor.u32 %v1312_v20, %v1095_v19 }
  0x33   : > { %743 = vmatpush.bf16.msra.mxu3 %v1248_v62  ;;  %v1344_v27 = vld [vmem:[%s1592_s22 + $0x184] sm:$0xf0]  ;;  %v1325_v30 = vld [vmem:[%s1592_s22 + $0xf4] sm:$0xf]  ;;  %v1153_v31 = vld [vmem:[%s1592_s22 + $0xf8] sm:$0xf0]  ;;  %v1160_v38 = vor.u32 %v1328_v24, %v1159_v23  ;;  %v1092_v44 = vor.u32 %v1309_v28, %v1089_v29 }
  0x34   : > { %702 = vmatpush.bf16.msra.mxu0 %v1048_v4  ;;  %v1341_v32 = vld [vmem:[%s1592_s22 + $0x174] sm:$0xf]  ;;  %v1217_v34 = vld [vmem:[%s1592_s22 + $0x178] sm:$0xf0]  ;;  %v1307_v39 = vld [vmem:[%s1592_s22 + $0x64] sm:$0xf]  ;;  %v1224_v43 = vor.u32 %v1344_v27, %v1223_v25  ;;  %v1156_v49 = vor.u32 %v1325_v30, %v1153_v31 }
  0x35   : > { %716 = vmatpush.bf16.msra.mxu1 %v1112_v5  ;;  %v1357_v35 = vld [vmem:[%s1592_s22 + $0x1f4] sm:$0xf]  ;;  %v1281_v36 = vld [vmem:[%s1592_s22 + $0x1f8] sm:$0xf0]  ;;  %v1081_v40 = vld [vmem:[%s1592_s22 + $0x68] sm:$0xf0]  ;;  %v1220_v50 = vor.u32 %v1341_v32, %v1217_v34 }
  0x36   : > { %730 = vmatpush.bf16.msra.mxu2 %v1176_v6  ;;  %v1023_v41 = vld [vmem:[%s1795_s0 + $0x8] sm:$0xf]  ;;  %v1294_v42 = vld [vmem:[%s1795_s0 + $0x14] sm:$0xf0]  ;;  %v1323_v45 = vld [vmem:[%s1592_s22 + $0xe4] sm:$0xf]  ;;  %v1284_v54 = vor.u32 %v1357_v35, %v1281_v36  ;;  %v1084_v63 = vor.u32 %v1307_v39, %v1081_v40 }
  0x37   : > { %744 = vmatpush.bf16.msra.mxu3 %v1240_v10  ;;  %v1145_v46 = vld [vmem:[%s1592_s22 + $0xe8] sm:$0xf0]  ;;  %v1339_v47 = vld [vmem:[%s1592_s22 + $0x164] sm:$0xf]  ;;  %v1025_v52 = vld [vmem:[%s1795_s0 + $0x18] sm:$0xf0]  ;;  %v1691_v55 = vor.u32 %v1294_v42, %v1023_v41 }
  0x38   : > { %703 = vmatpush.bf16.msra.mxu0 %v1040_v17  ;;  %v1209_v48 = vld [vmem:[%s1592_s22 + $0x168] sm:$0xf0]  ;;  %v1015_v53 = vld [vmem:[%s1795_s0] sm:$0xf]  ;;  %v1293_v56 = vld [vmem:[%s1795_s0 + $0xc] sm:$0xf0]  ;;  %v1148_v1 = vor.u32 %v1323_v45, %v1145_v46 }
  0x39   : > { %717 = vmatpush.bf16.msra.mxu1 %v1104_v21  ;;  %v1292_v51 = vld [vmem:[%s1795_s0 + $0xc] sm:$0xf]  ;;  %v1291_v57 = vld [vmem:[%s1795_s0 + $0x4] sm:$0xf]  ;;  %v1017_v58 = vld [vmem:[%s1795_s0 + $0x10] sm:$0xf0]  ;;  %v1706_v62 = vor.u32 %v1293_v56, %v1015_v53  ;;  %v1212_v2 = vor.u32 %v1339_v47, %v1209_v48 }
  0x3a   : > { %731 = vmatpush.bf16.msra.mxu2 %v1168_v22  ;;  %v1355_v59 = vld [vmem:[%s1592_s22 + $0x1e4] sm:$0xf]  ;;  %v1273_v60 = vld [vmem:[%s1592_s22 + $0x1e8] sm:$0xf0]  ;;  %v1704_v61 = vor.u32 %v1292_v51, %v1025_v52  ;;  %v1708_v0 = vor.u32 %v1291_v57, %v1017_v58  ;;  %v1305_v3 = vld [vmem:[%s1592_s22 + $0x54] sm:$0xf] }
  0x3b   : > { %745 = vmatpush.bf16.msra.mxu3 %v1232_v26  ;;  %v1073_v4 = vld [vmem:[%s1592_s22 + $0x58] sm:$0xf0]  ;;  %v1321_v5 = vld [vmem:[%s1592_s22 + $0xd4] sm:$0xf]  ;;  %v1276_v6 = vor.u32 %v1355_v59, %v1273_v60  ;;  %v1303_v15 = vld [vmem:[%s1592_s22 + $0x44] sm:$0xf] }
  0x3c   : > { %704 = vmatpush.bf16.msra.mxu0 %v1032_v33  ;;  %v1137_v7 = vld [vmem:[%s1592_s22 + $0xd8] sm:$0xf0]  ;;  %v1337_v8 = vld [vmem:[%s1592_s22 + $0x154] sm:$0xf]  ;;  %v1076_v12 = vor.u32 %v1305_v3, %v1073_v4  ;;  %v1065_v16 = vld [vmem:[%s1592_s22 + $0x48] sm:$0xf0] }
  0x3d   : > { %718 = vmatpush.bf16.msra.mxu1 %v1096_v37  ;;  %v1201_v9 = vld [vmem:[%s1592_s22 + $0x158] sm:$0xf0]  ;;  %v1353_v10 = vld [vmem:[%s1592_s22 + $0x1d4] sm:$0xf]  ;;  %v1140_v13 = vor.u32 %v1321_v5, %v1137_v7  ;;  %v1319_v17 = vld [vmem:[%s1592_s22 + $0xc4] sm:$0xf]  ;;  %v1068_v24 = vor.u32 %v1303_v15, %v1065_v16 }
  0x3e   : > { %732 = vmatpush.bf16.msra.mxu2 %v1160_v38  ;;  %v1265_v11 = vld [vmem:[%s1592_s22 + $0x1d8] sm:$0xf0]  ;;  %v1204_v14 = vor.u32 %v1337_v8, %v1201_v9  ;;  %v1129_v19 = vld [vmem:[%s1592_s22 + $0xc8] sm:$0xf0]  ;;  %v1335_v20 = vld [vmem:[%s1592_s22 + $0x144] sm:$0xf] }
  0x3f   : > { %746 = vmatpush.bf16.msra.mxu3 %v1224_v43  ;;  %705 = vmatmul.bf16.vlgmr.msra.gmra.mxu0 %v1706_v62  ;;  %v1268_v18 = vor.u32 %v1353_v10, %v1265_v11  ;;  %v1193_v21 = vld [vmem:[%s1592_s22 + $0x148] sm:$0xf0]  ;;  %v1351_v22 = vld [vmem:[%s1592_s22 + $0x1c4] sm:$0xf]  ;;  %v1132_v25 = vor.u32 %v1319_v17, %v1129_v19  ;;  %v1301_v27 = vld [vmem:[%s1592_s22 + $0x34] sm:$0xf] }
  0x40   : > { %753 = vmatpush.bf16.msrb.mxu0 %v1092_v44  ;;  %719 = vmatmul.bf16.vlgmr.msra.gmra.mxu1 %v1708_v0  ;;  %v1257_v23 = vld [vmem:[%s1592_s22 + $0x1c8] sm:$0xf0]  ;;  %v1196_v26 = vor.u32 %v1335_v20, %v1193_v21  ;;  %v1057_v28 = vld [vmem:[%s1592_s22 + $0x38] sm:$0xf0]  ;;  %v1317_v29 = vld [vmem:[%s1592_s22 + $0xb4] sm:$0xf] }
  0x41   : > { %767 = vmatpush.bf16.msrb.mxu1 %v1156_v49  ;;  %733 = vmatmul.bf16.vlgmr.msra.gmra.mxu2 %v1691_v55  ;;  %v1260_v30 = vor.u32 %v1351_v22, %v1257_v23  ;;  %v1121_v31 = vld [vmem:[%s1592_s22 + $0xb8] sm:$0xf0]  ;;  %v1333_v32 = vld [vmem:[%s1592_s22 + $0x134] sm:$0xf]  ;;  %v1060_v36 = vor.u32 %v1301_v27, %v1057_v28  ;;  %v1299_v39 = vld [vmem:[%s1592_s22 + $0x24] sm:$0xf] }
  0x42   : > { %781 = vmatpush.bf16.msrb.mxu2 %v1220_v50  ;;  %747 = vmatmul.bf16.vlgmr.msra.gmra.mxu3 %v1704_v61  ;;  %v1185_v33 = vld [vmem:[%s1592_s22 + $0x138] sm:$0xf0]  ;;  %v1349_v34 = vld [vmem:[%s1592_s22 + $0x1b4] sm:$0xf]  ;;  %v1124_v37 = vor.u32 %v1317_v29, %v1121_v31  ;;  %v1049_v40 = vld [vmem:[%s1592_s22 + $0x28] sm:$0xf0] }
  0x43   : > { %795 = vmatpush.bf16.msrb.mxu3 %v1284_v54  ;;  %v1249_v35 = vld [vmem:[%s1592_s22 + $0x1b8] sm:$0xf0]  ;;  %v1188_v38 = vor.u32 %v1333_v32, %v1185_v33  ;;  %v1315_v41 = vld [vmem:[%s1592_s22 + $0xa4] sm:$0xf]  ;;  %v1113_v43 = vld [vmem:[%s1592_s22 + $0xa8] sm:$0xf0]  ;;  %v1052_v48 = vor.u32 %v1299_v39, %v1049_v40 }
  0x44   : > { %754 = vmatpush.bf16.msrb.mxu0 %v1084_v63  ;;  %v1252_v42 = vor.u32 %v1349_v34, %v1249_v35  ;;  %v1331_v44 = vld [vmem:[%s1592_s22 + $0x124] sm:$0xf]  ;;  %v1177_v45 = vld [vmem:[%s1592_s22 + $0x128] sm:$0xf0]  ;;  %v1116_v49 = vor.u32 %v1315_v41, %v1113_v43  ;;  %v1297_v51 = vld [vmem:[%s1592_s22 + $0x14] sm:$0xf] }
  0x45   : > { %768 = vmatpush.bf16.msrb.mxu1 %v1148_v1  ;;  %v1347_v46 = vld [vmem:[%s1592_s22 + $0x1a4] sm:$0xf]  ;;  %v1241_v47 = vld [vmem:[%s1592_s22 + $0x1a8] sm:$0xf0]  ;;  %v1180_v50 = vor.u32 %v1331_v44, %v1177_v45  ;;  %v1041_v52 = vld [vmem:[%s1592_s22 + $0x18] sm:$0xf0] }
  0x46   : > { %782 = vmatpush.bf16.msrb.mxu2 %v1212_v2  ;;  %v1313_v53 = vld [vmem:[%s1592_s22 + $0x94] sm:$0xf]  ;;  %v1244_v54 = vor.u32 %v1347_v46, %v1241_v47  ;;  %v1105_v56 = vld [vmem:[%s1592_s22 + $0x98] sm:$0xf0]  ;;  %v1044_v63 = vor.u32 %v1297_v51, %v1041_v52  ;;  %v1295_v3 = vld [vmem:[%s1592_s22 + $0x4] sm:$0xf] }
  0x47   : > { %796 = vmatpush.bf16.msrb.mxu3 %v1276_v6  ;;  %v1329_v57 = vld [vmem:[%s1592_s22 + $0x114] sm:$0xf]  ;;  %v1169_v58 = vld [vmem:[%s1592_s22 + $0x118] sm:$0xf0]  ;;  %v1108_v1 = vor.u32 %v1313_v53, %v1105_v56  ;;  %v1033_v4 = vld [vmem:[%s1592_s22 + $0x8] sm:$0xf0] }
  0x48   : > { %755 = vmatpush.bf16.msrb.mxu0 %v1076_v12  ;;  %v1345_v59 = vld [vmem:[%s1592_s22 + $0x194] sm:$0xf]  ;;  %v1233_v60 = vld [vmem:[%s1592_s22 + $0x198] sm:$0xf0]  ;;  %v1172_v2 = vor.u32 %v1329_v57, %v1169_v58  ;;  %v1311_v5 = vld [vmem:[%s1592_s22 + $0x84] sm:$0xf]  ;;  %v1036_v12 = vor.u32 %v1295_v3, %v1033_v4 }
  0x49   : > { %769 = vmatpush.bf16.msrb.mxu1 %v1140_v13  ;;  %v1236_v6 = vor.u32 %v1345_v59, %v1233_v60  ;;  %v1097_v7 = vld [vmem:[%s1592_s22 + $0x88] sm:$0xf0]  ;;  %v1327_v8 = vld [vmem:[%s1592_s22 + $0x104] sm:$0xf]  ;;  %p271_p1 = scmp.lt.s32.totalorder %s1012_s20, 7  ;;  %s1011_s26 = sshll.u32 %s1588_s12, 4 }
  0x4a   : > { %783 = vmatpush.bf16.msrb.mxu2 %v1204_v14  ;;  %v1161_v9 = vld [vmem:[%s1592_s22 + $0x108] sm:$0xf0]  ;;  %v1343_v10 = vld [vmem:[%s1592_s22 + $0x184] sm:$0xf]  ;;  %v1100_v13 = vor.u32 %v1311_v5, %v1097_v7  ;;  %s255_s27 = scalar_lea.vmem [#allocation5], %s1011_s26  ;;  %s1359_s12 = sshll.u32 (%p1573_p9), %s1490_s15, 3 }
  0x4b   : > { %797 = vmatpush.bf16.msrb.mxu3 %v1268_v18  ;;  %v1225_v11 = vld [vmem:[%s1592_s22 + $0x188] sm:$0xf0]  ;;  %v1164_v14 = vor.u32 %v1327_v8, %v1161_v9  ;;  %s1810_s20 = smov (!%p271_p1, %s1012_s20), 7  ;;  %s854_s30 = scalar_lea.vmem (%p1573_p9), %s1798_s3, %s1359_s12 }
  0x4c   : > { %756 = vmatpush.bf16.msrb.mxu0 %v1068_v24  ;;  %v1228_v15 = vor.u32 %v1343_v10, %v1225_v11  ;;  %s273_s23 = scalar_lea.vmem %s1797_s2, %s1810_s20 }
  0x4d   : > { %770 = vmatpush.bf16.msrb.mxu1 %v1132_v25  ;;  %v824_v24 = vld [vmem:[%s273_s23] sm:$0x3] }
  0x4e   : > { %784 = vmatpush.bf16.msrb.mxu2 %v1196_v26  ;;  %v826_v27 = vperm.slane %v824_v24, 0  ;;  %v827_v32 = vperm.slane %v824_v24, 1 }
  0x4f   : > { %798 = vmatpush.bf16.msrb.mxu3 %v1260_v30 }
  0x50   : > { %757 = vmatpush.bf16.msrb.mxu0 %v1060_v36 }
  0x51   : > { %771 = vmatpush.bf16.msrb.mxu1 %v1124_v37 }
  0x52   : > { %785 = vmatpush.bf16.msrb.mxu2 %v1188_v38 }
  0x53   : > { %799 = vmatpush.bf16.msrb.mxu3 %v1252_v42 }
  0x54   : > { %758 = vmatpush.bf16.msrb.mxu0 %v1052_v48 }
  0x55   : > { %772 = vmatpush.bf16.msrb.mxu1 %v1116_v49 }
  0x56   : > { %786 = vmatpush.bf16.msrb.mxu2 %v1180_v50 }
  0x57   : > { %800 = vmatpush.bf16.msrb.mxu3 %v1244_v54 }
  0x58   : > { %759 = vmatpush.bf16.msrb.mxu0 %v1044_v63 }
  0x59   : > { %773 = vmatpush.bf16.msrb.mxu1 %v1108_v1 }
  0x5a   : > { %787 = vmatpush.bf16.msrb.mxu2 %v1172_v2 }
  0x5b   : > { %801 = vmatpush.bf16.msrb.mxu3 %v1236_v6 }
  0x5c   : > { %760 = vmatpush.bf16.msrb.mxu0 %v1036_v12 }
  0x5d   : > { %774 = vmatpush.bf16.msrb.mxu1 %v1100_v13 }
  0x5e   : > { %788 = vmatpush.bf16.msrb.mxu2 %v1164_v14 }
  0x5f   : > { %802 = vmatpush.bf16.msrb.mxu3 %v1228_v15  ;;  %761 = vmatmul.bf16.vlgmr.msrb.gmra.mxu0 %v1706_v62 }
  0x60   : > { %775 = vmatmul.bf16.vlgmr.msrb.gmra.mxu1 %v1708_v0 }
  0x61   : > { %789 = vmatmul.bf16.vlgmr.msrb.gmra.mxu2 %v1691_v55 }
  0x62   : > { %803 = vmatmul.bf16.vlgmr.msrb.gmra.mxu3 %v1704_v61 }
  0xbc   : > { %v706_v16 = vpop.f32.mrf.mxu0 }
  0xbd   : > { %v720_v17 = vpop.f32.mrf.mxu1 }
  0xbe   : > { %v721_v22 = vadd.f32 %v720_v17, %v706_v16 }
  0xc4   : > { %v734_v18 = vpop.f32.mrf.mxu2  ;;  %v708_v20 = vpop.f32.mrf.mxu0 }
  0xc5   : > { %v748_v19 = vpop.f32.mrf.mxu3  ;;  %v722_v21 = vpop.f32.mrf.mxu1  ;;  %v735_v61 = vadd.f32 %v734_v18, %v721_v22 }
  0xc6   : > { %v723_v28 = vadd.f32 %v722_v21, %v708_v20 }
  0xc7   : > { %v749_v26 = vadd.f32 %v748_v19, %v735_v61 }
  0xc9   : > { %v830_v33 = vadd.f32 %v826_v27, %v749_v26 }
  0xcb   : > { %v834_v39 = vmax.f32 %v830_v33, 0.0 }
  0xcc   : > { %v736_v23 = vpop.f32.mrf.mxu2 }
  0xcd   : > { %v750_v62 = vpop.f32.mrf.mxu3  ;;  %v737_v34 = vadd.f32 %v736_v23, %v723_v28 }
  0xcf   : > { %v751_v40 = vadd.f32 %v750_v62, %v737_v34 }
  0xd1   : > { %v832_v47 = vadd.f32 %v826_v27, %v751_v40 }
  0xd3   : > { %v836_v50 = vmax.f32 %v832_v47, 0.0 }
  0xdc   : > { %v762_v0 = vpop.f32.mrf.mxu0 }
  0xdd   : > { %v776_v55 = vpop.f32.mrf.mxu1 }
  0xde   : > { %v777_v25 = vadd.f32 %v776_v55, %v762_v0 }
  0xe4   : > { %v790_v29 = vpop.f32.mrf.mxu2  ;;  %v764_v36 = vpop.f32.mrf.mxu0 }
  0xe5   : > { %v791_v30 = vadd.f32 %v790_v29, %v777_v25  ;;  %v804_v31 = vpop.f32.mrf.mxu3  ;;  %v778_v37 = vpop.f32.mrf.mxu1 }
  0xe6   : > { %v779_v42 = vadd.f32 %v778_v37, %v764_v36 }
  0xe7   : > { %v805_v35 = vadd.f32 %v804_v31, %v791_v30 }
  0xe9   : > { %v831_v38 = vadd.f32 %v827_v32, %v805_v35 }
  0xeb   : > { %v835_v41 = vmax.f32 %v831_v38, 0.0 }
  0xec   : > { %v792_v43 = vpop.f32.mrf.mxu2 }
  0xed   : > { %v838_v44 = vpack.c.bf16 %v835_v41, %v834_v39  ;;  %v793_v45 = vadd.f32 %v792_v43, %v779_v42  ;;  %v806_v46 = vpop.f32.mrf.mxu3 }
  0xef   : > { %840 = vst [vmem:[%s255_s27] sm:$0xff] %v838_v44  ;;  %v807_v48 = vadd.f32 %v806_v46, %v793_v45 }
  0xf1   : > { %v833_v49 = vadd.f32 %v827_v32, %v807_v48 }
  0xf3   : > { %v837_v51 = vmax.f32 %v833_v49, 0.0  ;;  %848 = sbr.rel (!%p1573_p9) target bundleno = 256 (0x100), region = 48 }
  0xf5   : > { %v839_v52 = vpack.c.bf16 %v837_v51, %v836_v50 }
  0xf6   : > { %v885_v53 = vld [vmem:[%s255_s27] sm:$0xff] (%p1573_p9) }
  0xf7   : > { %841 = vst [vmem:[%s255_s27 + $0x8] sm:$0xff] %v839_v52 }
  0xf8   : > { %886 = vst [vmem:[%s854_s30] sm:$0xff] %v885_v53 }
  0xfe   : > { %v887_v54 = vld [vmem:[%s255_s27 + $0x8] sm:$0xff] }
  0xff   : > { %888 = vst [vmem:[%s854_s30 + $0x20] sm:$0xff] %v887_v54 }
 0x100 PF: > { %s16_s17 = sadd.s32 1, %s1498_s17   ;;  %s1802_s12 = smov %s1482_s13 }
 0x101   : > { %p13_p2 = scmp.ge.s32.totalorder %s16_s17, 6   ;;  %s1803_s13 = smov %s1486_s14 }
 0x102   : > { %s1804_s14 = smov %s1571_s24  ;;  %s1805_s15 = smov %s1494_s16 }
 0x103   : > { %s1806_s16 = smov %s1808_s19  ;;  %15 = sbr.rel (!%p13_p2) target bundleno = 4 (0x4), region = 124 }
 0x108   :  { %904 = vsyncpa [#allocation4], 1 }
 0x109   :  { %906 = vsyncpa [#allocation4 + $0x1], 1 }

// kernel: _lambda_.29
= control target key start
LH: loop header
LB: loop body
LE: loop exit
PB: predicated region body
PF: predicated region fallthrough
CT: control target
= control target key end

     0   :  { %12 = vsyncpa [#allocation3], 0  ;;  %s4256_s0 = inlined_call_operand.vmem [shape: bf16[8,1024], index: 0, kind: input, shape index: {}]   ;;  %s4257_s1 = inlined_call_operand.hbm [shape: bf16[1024,512], index: 1, kind: input, shape index: {}]   ;;  %s4258_s2 = inlined_call_operand.vmem [shape: f32[1,512], index: 2, kind: input, shape index: {}]   ;;  %s4259_s3 = inlined_call_operand.hbm [shape: bf16[512,128], index: 3, kind: input, shape index: {}]   ;;  %s4260_s4 = inlined_call_operand.hbm [shape: f32[1,128], index: 4, kind: input, shape index: {}]   ;;  %s4261_s5 = inlined_call_operand.vmem [shape: bf16[128,128], index: 5, kind: input, shape index: {}]   ;;  %s4262_s6 = inlined_call_operand.hbm [shape: f32[1,128], index: 6, kind: input, shape index: {}]   ;;  %s4263_s7 = inlined_call_operand.vmem [shape: f32[8,128], index: 7, kind: output, shape index: {}]  }
   0x1   :  { %13 = vsyncpa [#allocation5], 0  ;;  %s36_s26 = sshll.u32 %s4259_s3, 4  ;;  %s37_s26 = int_to_ptr.hbm [resolvable:$true] %s36_s26 }
   0x2   :  { %14 = vsyncpa [#allocation8], 0  ;;  %s4082_s27 = smov [#allocation4]   ;;  %s21_s8 = sshll.u32 %s4257_s1, 4  ;;  %s22_s8 = int_to_ptr.hbm [resolvable:$true] %s21_s8 }
   0x3   :  { %s38_s28 = sshll.u32 %s4082_s27, 4  ;;  %s4083_s9 = smov 64   ;;  %s39_s28 = int_to_ptr.vmem [resolvable:$true] %s38_s28 }
   0x4   :  { %s4084_s10 = smov 4   ;;  %s4085_s11 = smov [#allocation2]  }
   0x5   :  { %44 = dma.hbm_to_vmem [thread:$0]  %s37_s26, 4096, %s39_s28, [#allocation5], %s4083_s9, %s4083_s9, %s4084_s10  }
   0x6   :  { %s23_s12 = sshll.u32 %s4085_s11, 4  ;;  %s4086_s13 = smov 256   ;;  %s24_s12 = int_to_ptr.vmem [resolvable:$true] %s23_s12 }
   0x7   :  { %s4087_s14 = smov 16   ;;  %s50_s16 = sshll.u32 %s4260_s4, 4  ;;  %s51_s16 = int_to_ptr.hbm [resolvable:$true] %s50_s16 }
   0x8   :  { %29 = dma.hbm_to_vmem [thread:$0]  %s22_s8, 32768, %s24_s12, [#allocation3], %s4086_s13, %s4086_s13, %s4087_s14  }
   0x9   :  { %s4088_s17 = smov [#allocation6]   ;;  %s63_s20 = sshll.u32 %s4262_s6, 4  ;;  %s64_s20 = int_to_ptr.hbm [resolvable:$true] %s63_s20 }
   0xa   :  { %s52_s18 = sshll.u32 %s4088_s17, 4  ;;  %s4089_s21 = smov [#allocation7]   ;;  %s53_s18 = int_to_ptr.vmem [resolvable:$true] %s52_s18 }
   0xb   :  { %55 = dma.hbm_to_vmem [thread:$0]  %s51_s16, 16, %s53_s18, [#allocation5]  }
   0xc   :  { %s65_s22 = sshll.u32 %s4089_s21, 4  ;;  %s66_s22 = int_to_ptr.vmem [resolvable:$true] %s65_s22 }
   0xd   :  { %68 = dma.hbm_to_vmem [thread:$0]  %s64_s20, 16, %s66_s22, [#allocation8]  }
   0xe   :  { %4076 = dma.done.wait [#allocation3], 32768  }
   0xf   :  { %4077 = vsyncadd [#allocation3], 4294934528 }
  0x10   :  { %4078 = dma.done.wait [#allocation5], 4112  }
  0x11   :  { %4079 = vsyncadd [#allocation5], 4294963184 }
  0x12   :  { %4080 = dma.done.wait [#allocation8], 16  }
  0x13   :  { %4081 = vsyncadd [#allocation8], 4294967280  ;;  %v2604_v0 = vld [vmem:[#allocation2 + $0xe0] sm:$0xf]  ;;  %v3704_v1 = vld [vmem:[#allocation2 + $0xec] sm:$0xf0] }
  0x14   :  { %v2732_v2 = vld [vmem:[#allocation2 + $0x1e0] sm:$0xf]  ;;  %v2605_v3 = vor.u32 %v3704_v1, %v2604_v0  ;;  %v3736_v4 = vld [vmem:[#allocation2 + $0x1ec] sm:$0xf0] }
  0x15   :  { %v2860_v5 = vld [vmem:[#allocation2 + $0x2e0] sm:$0xf]  ;;  %v3768_v6 = vld [vmem:[#allocation2 + $0x2ec] sm:$0xf0]  ;;  %v2733_v7 = vor.u32 %v3736_v4, %v2732_v2 }
  0x16   :  { %v2861_v8 = vor.u32 %v3768_v6, %v2860_v5  ;;  %v2988_v9 = vld [vmem:[#allocation2 + $0x3e0] sm:$0xf]  ;;  %v3800_v10 = vld [vmem:[#allocation2 + $0x3ec] sm:$0xf0]  ;;  %1663 = vmatpush.bf16.msra.mxu0 %v2605_v3 }
  0x17   :  { %v2588_v11 = vld [vmem:[#allocation2 + $0xc0] sm:$0xf]  ;;  %v2989_v12 = vor.u32 %v3800_v10, %v2988_v9  ;;  %v3700_v13 = vld [vmem:[#allocation2 + $0xcc] sm:$0xf0]  ;;  %1676 = vmatpush.bf16.msra.mxu1 %v2733_v7 }
  0x18   :  { %v2716_v14 = vld [vmem:[#allocation2 + $0x1c0] sm:$0xf]  ;;  %v3732_v15 = vld [vmem:[#allocation2 + $0x1cc] sm:$0xf0]  ;;  %1689 = vmatpush.bf16.msra.mxu2 %v2861_v8  ;;  %v2589_v16 = vor.u32 %v3700_v13, %v2588_v11 }
  0x19   :  { %v2717_v17 = vor.u32 %v3732_v15, %v2716_v14  ;;  %v2844_v18 = vld [vmem:[#allocation2 + $0x2c0] sm:$0xf]  ;;  %v3764_v19 = vld [vmem:[#allocation2 + $0x2cc] sm:$0xf0]  ;;  %1702 = vmatpush.bf16.msra.mxu3 %v2989_v12 }
  0x1a   :  { %v2972_v20 = vld [vmem:[#allocation2 + $0x3c0] sm:$0xf]  ;;  %v2845_v21 = vor.u32 %v3764_v19, %v2844_v18  ;;  %v3796_v22 = vld [vmem:[#allocation2 + $0x3cc] sm:$0xf0]  ;;  %1664 = vmatpush.bf16.msra.mxu0 %v2589_v16 }
  0x1b   :  { %v2572_v23 = vld [vmem:[#allocation2 + $0xa0] sm:$0xf]  ;;  %v3696_v24 = vld [vmem:[#allocation2 + $0xac] sm:$0xf0]  ;;  %v2973_v25 = vor.u32 %v3796_v22, %v2972_v20  ;;  %1677 = vmatpush.bf16.msra.mxu1 %v2717_v17 }
  0x1c   :  { %v2700_v26 = vld [vmem:[#allocation2 + $0x1a0] sm:$0xf]  ;;  %v3728_v27 = vld [vmem:[#allocation2 + $0x1ac] sm:$0xf0]  ;;  %v2573_v29 = vor.u32 %v3696_v24, %v2572_v23  ;;  %1690 = vmatpush.bf16.msra.mxu2 %v2845_v21 }
  0x1d   :  { %v2828_v28 = vld [vmem:[#allocation2 + $0x2a0] sm:$0xf]  ;;  %v3760_v30 = vld [vmem:[#allocation2 + $0x2ac] sm:$0xf0]  ;;  %v2701_v33 = vor.u32 %v3728_v27, %v2700_v26  ;;  %1703 = vmatpush.bf16.msra.mxu3 %v2973_v25 }
  0x1e   :  { %v2956_v31 = vld [vmem:[#allocation2 + $0x3a0] sm:$0xf]  ;;  %v3792_v32 = vld [vmem:[#allocation2 + $0x3ac] sm:$0xf0]  ;;  %v2829_v34 = vor.u32 %v3760_v30, %v2828_v28  ;;  %1665 = vmatpush.bf16.msra.mxu0 %v2573_v29 }
  0x1f   :  { %v2556_v35 = vld [vmem:[#allocation2 + $0x80] sm:$0xf]  ;;  %v3692_v36 = vld [vmem:[#allocation2 + $0x8c] sm:$0xf0]  ;;  %v2957_v38 = vor.u32 %v3792_v32, %v2956_v31  ;;  %1678 = vmatpush.bf16.msra.mxu1 %v2701_v33 }
  0x20   :  { %v2684_v37 = vld [vmem:[#allocation2 + $0x180] sm:$0xf]  ;;  %v3724_v39 = vld [vmem:[#allocation2 + $0x18c] sm:$0xf0]  ;;  %v2557_v44 = vor.u32 %v3692_v36, %v2556_v35  ;;  %1691 = vmatpush.bf16.msra.mxu2 %v2829_v34 }
  0x21   :  { %v2812_v40 = vld [vmem:[#allocation2 + $0x280] sm:$0xf]  ;;  %v3756_v41 = vld [vmem:[#allocation2 + $0x28c] sm:$0xf0]  ;;  %v2685_v45 = vor.u32 %v3724_v39, %v2684_v37  ;;  %1704 = vmatpush.bf16.msra.mxu3 %v2957_v38 }
  0x22   :  { %v2940_v42 = vld [vmem:[#allocation2 + $0x380] sm:$0xf]  ;;  %v3788_v43 = vld [vmem:[#allocation2 + $0x38c] sm:$0xf0]  ;;  %v2813_v46 = vor.u32 %v3756_v41, %v2812_v40  ;;  %1666 = vmatpush.bf16.msra.mxu0 %v2557_v44 }
  0x23   :  { %v2540_v47 = vld [vmem:[#allocation2 + $0x60] sm:$0xf]  ;;  %v3688_v48 = vld [vmem:[#allocation2 + $0x6c] sm:$0xf0]  ;;  %v2941_v50 = vor.u32 %v3788_v43, %v2940_v42  ;;  %1679 = vmatpush.bf16.msra.mxu1 %v2685_v45 }
  0x24   :  { %v2668_v49 = vld [vmem:[#allocation2 + $0x160] sm:$0xf]  ;;  %v3720_v51 = vld [vmem:[#allocation2 + $0x16c] sm:$0xf0]  ;;  %v2541_v56 = vor.u32 %v3688_v48, %v2540_v47  ;;  %1692 = vmatpush.bf16.msra.mxu2 %v2813_v46 }
  0x25   :  { %v2796_v52 = vld [vmem:[#allocation2 + $0x260] sm:$0xf]  ;;  %v3752_v53 = vld [vmem:[#allocation2 + $0x26c] sm:$0xf0]  ;;  %v2669_v57 = vor.u32 %v3720_v51, %v2668_v49  ;;  %1705 = vmatpush.bf16.msra.mxu3 %v2941_v50 }
  0x26   :  { %v2924_v54 = vld [vmem:[#allocation2 + $0x360] sm:$0xf]  ;;  %v3784_v55 = vld [vmem:[#allocation2 + $0x36c] sm:$0xf0]  ;;  %v2797_v58 = vor.u32 %v3752_v53, %v2796_v52  ;;  %1667 = vmatpush.bf16.msra.mxu0 %v2541_v56 }
  0x27   :  { %v2524_v59 = vld [vmem:[#allocation2 + $0x40] sm:$0xf]  ;;  %v3684_v60 = vld [vmem:[#allocation2 + $0x4c] sm:$0xf0]  ;;  %v2925_v62 = vor.u32 %v3784_v55, %v2924_v54  ;;  %1680 = vmatpush.bf16.msra.mxu1 %v2669_v57 }
  0x28   :  { %v2652_v61 = vld [vmem:[#allocation2 + $0x140] sm:$0xf]  ;;  %v3716_v63 = vld [vmem:[#allocation2 + $0x14c] sm:$0xf0]  ;;  %v2525_v4 = vor.u32 %v3684_v60, %v2524_v59  ;;  %1693 = vmatpush.bf16.msra.mxu2 %v2797_v58 }
  0x29   :  { %v2780_v0 = vld [vmem:[#allocation2 + $0x240] sm:$0xf]  ;;  %v3748_v1 = vld [vmem:[#allocation2 + $0x24c] sm:$0xf0]  ;;  %v2653_v5 = vor.u32 %v3716_v63, %v2652_v61  ;;  %1706 = vmatpush.bf16.msra.mxu3 %v2925_v62 }
  0x2a   :  { %v2908_v2 = vld [vmem:[#allocation2 + $0x340] sm:$0xf]  ;;  %v3780_v3 = vld [vmem:[#allocation2 + $0x34c] sm:$0xf0]  ;;  %v2781_v6 = vor.u32 %v3748_v1, %v2780_v0  ;;  %1668 = vmatpush.bf16.msra.mxu0 %v2525_v4 }
  0x2b   :  { %v2508_v7 = vld [vmem:[#allocation2 + $0x20] sm:$0xf]  ;;  %v3680_v8 = vld [vmem:[#allocation2 + $0x2c] sm:$0xf0]  ;;  %v2909_v10 = vor.u32 %v3780_v3, %v2908_v2  ;;  %1681 = vmatpush.bf16.msra.mxu1 %v2653_v5  ;;  %v86_v2 = vld [vmem:[%s4256_s0 + $0x8] sm:$0xff] }
  0x2c   :  { %v2636_v9 = vld [vmem:[#allocation2 + $0x120] sm:$0xf]  ;;  %v3712_v11 = vld [vmem:[#allocation2 + $0x12c] sm:$0xf0]  ;;  %v2509_v16 = vor.u32 %v3680_v8, %v2508_v7  ;;  %1694 = vmatpush.bf16.msra.mxu2 %v2781_v6  ;;  %v361_v8 = vunpack.c.l.b16 %v86_v2 }
  0x2d   :  { %v2764_v12 = vld [vmem:[#allocation2 + $0x220] sm:$0xf]  ;;  %v3744_v13 = vld [vmem:[#allocation2 + $0x22c] sm:$0xf0]  ;;  %v2637_v19 = vor.u32 %v3712_v11, %v2636_v9  ;;  %1707 = vmatpush.bf16.msra.mxu3 %v2909_v10  ;;  %v362_v10 = vunpack.c.h.b16 %v86_v2 }
  0x2e   :  { %v2892_v14 = vld [vmem:[#allocation2 + $0x320] sm:$0xf]  ;;  %v3776_v15 = vld [vmem:[#allocation2 + $0x32c] sm:$0xf0]  ;;  %v2765_v20 = vor.u32 %v3744_v13, %v2764_v12  ;;  %1669 = vmatpush.bf16.msra.mxu0 %v2509_v16 }
  0x2f   :  { %v2492_v17 = vld [vmem:[#allocation2] sm:$0xf]  ;;  %v3676_v18 = vld [vmem:[#allocation2 + $0xc] sm:$0xf0]  ;;  %v2893_v24 = vor.u32 %v3776_v15, %v2892_v14  ;;  %1682 = vmatpush.bf16.msra.mxu1 %v2637_v19 }
  0x30   :  { %v2620_v21 = vld [vmem:[#allocation2 + $0x100] sm:$0xf]  ;;  %v3708_v22 = vld [vmem:[#allocation2 + $0x10c] sm:$0xf0]  ;;  %v2493_v31 = vor.u32 %v3676_v18, %v2492_v17  ;;  %1695 = vmatpush.bf16.msra.mxu2 %v2765_v20  ;;  %v4148_v18 = vpack.c.b16 %v361_v8, %v361_v8  ;;  %v4152_v20 = vpack.c.b16 %v362_v10, %v362_v10  ;;  %v3702_v8 = vld [vmem:[#allocation2 + $0xe4] sm:$0xf] }
  0x31   :  { %v2748_v23 = vld [vmem:[#allocation2 + $0x200] sm:$0xf]  ;;  %v3740_v25 = vld [vmem:[#allocation2 + $0x20c] sm:$0xf0]  ;;  %v2621_v35 = vor.u32 %v3708_v22, %v2620_v21  ;;  %1708 = vmatpush.bf16.msra.mxu3 %v2893_v24  ;;  %v3734_v10 = vld [vmem:[#allocation2 + $0x1e4] sm:$0xf] }
  0x32   :  { %v2876_v26 = vld [vmem:[#allocation2 + $0x300] sm:$0xf]  ;;  %v3772_v27 = vld [vmem:[#allocation2 + $0x30c] sm:$0xf0]  ;;  %v2749_v36 = vor.u32 %v3740_v25, %v2748_v23  ;;  %1670 = vmatpush.bf16.msra.mxu0 %v2493_v31 }
  0x33   :  { %v3116_v28 = vld [vmem:[#allocation2 + $0x4e0] sm:$0xf]  ;;  %v3832_v29 = vld [vmem:[#allocation2 + $0x4ec] sm:$0xf0]  ;;  %v2877_v39 = vor.u32 %v3772_v27, %v2876_v26  ;;  %1683 = vmatpush.bf16.msra.mxu1 %v2621_v35 }
  0x34   :  { %v3244_v30 = vld [vmem:[#allocation2 + $0x5e0] sm:$0xf]  ;;  %v3864_v32 = vld [vmem:[#allocation2 + $0x5ec] sm:$0xf0]  ;;  %v3117_v40 = vor.u32 %v3832_v29, %v3116_v28  ;;  %1696 = vmatpush.bf16.msra.mxu2 %v2749_v36 }
  0x35   :  { %v3372_v33 = vld [vmem:[#allocation2 + $0x6e0] sm:$0xf]  ;;  %v3896_v34 = vld [vmem:[#allocation2 + $0x6ec] sm:$0xf0]  ;;  %v3245_v41 = vor.u32 %v3864_v32, %v3244_v30  ;;  %1709 = vmatpush.bf16.msra.mxu3 %v2877_v39 }
  0x36   :  { %v3500_v37 = vld [vmem:[#allocation2 + $0x7e0] sm:$0xf]  ;;  %v3928_v38 = vld [vmem:[#allocation2 + $0x7ec] sm:$0xf0]  ;;  %v3373_v42 = vor.u32 %v3896_v34, %v3372_v33  ;;  %1715 = vmatpush.bf16.msrb.mxu0 %v3117_v40 }
  0x37   :  { %v3100_v43 = vld [vmem:[#allocation2 + $0x4c0] sm:$0xf]  ;;  %v3828_v44 = vld [vmem:[#allocation2 + $0x4cc] sm:$0xf0]  ;;  %v3501_v46 = vor.u32 %v3928_v38, %v3500_v37  ;;  %1728 = vmatpush.bf16.msrb.mxu1 %v3245_v41  ;;  %1697 = vmatmul.bf16.vlgmr.msra.gmra.mxu2 %v4148_v18 }
  0x38   :  { %v3228_v45 = vld [vmem:[#allocation2 + $0x5c0] sm:$0xf]  ;;  %v3860_v47 = vld [vmem:[#allocation2 + $0x5cc] sm:$0xf0]  ;;  %v3101_v52 = vor.u32 %v3828_v44, %v3100_v43  ;;  %1741 = vmatpush.bf16.msrb.mxu2 %v3373_v42  ;;  %1710 = vmatmul.bf16.vlgmr.msra.gmra.mxu3 %v4152_v20 }
  0x39   :  { %v3356_v48 = vld [vmem:[#allocation2 + $0x6c0] sm:$0xf]  ;;  %v3892_v49 = vld [vmem:[#allocation2 + $0x6cc] sm:$0xf0]  ;;  %v3229_v54 = vor.u32 %v3860_v47, %v3228_v45  ;;  %1754 = vmatpush.bf16.msrb.mxu3 %v3501_v46 }
  0x3a   :  { %v3484_v50 = vld [vmem:[#allocation2 + $0x7c0] sm:$0xf]  ;;  %v3924_v51 = vld [vmem:[#allocation2 + $0x7cc] sm:$0xf0]  ;;  %v3357_v55 = vor.u32 %v3892_v49, %v3356_v48  ;;  %1716 = vmatpush.bf16.msrb.mxu0 %v3101_v52 }
  0x3b   :  { %v3084_v53 = vld [vmem:[#allocation2 + $0x4a0] sm:$0xf]  ;;  %v3824_v56 = vld [vmem:[#allocation2 + $0x4ac] sm:$0xf0]  ;;  %v3485_v59 = vor.u32 %v3924_v51, %v3484_v50  ;;  %1729 = vmatpush.bf16.msrb.mxu1 %v3229_v54 }
  0x3c   :  { %v3212_v57 = vld [vmem:[#allocation2 + $0x5a0] sm:$0xf]  ;;  %v3856_v58 = vld [vmem:[#allocation2 + $0x5ac] sm:$0xf0]  ;;  %v3085_v0 = vor.u32 %v3824_v56, %v3084_v53  ;;  %1742 = vmatpush.bf16.msrb.mxu2 %v3357_v55 }
  0x3d   :  { %v3340_v60 = vld [vmem:[#allocation2 + $0x6a0] sm:$0xf]  ;;  %v3888_v61 = vld [vmem:[#allocation2 + $0x6ac] sm:$0xf0]  ;;  %v3213_v1 = vor.u32 %v3856_v58, %v3212_v57  ;;  %1755 = vmatpush.bf16.msrb.mxu3 %v3485_v59 }
  0x3e   :  { %v3468_v62 = vld [vmem:[#allocation2 + $0x7a0] sm:$0xf]  ;;  %v3920_v63 = vld [vmem:[#allocation2 + $0x7ac] sm:$0xf0]  ;;  %v3341_v4 = vor.u32 %v3888_v61, %v3340_v60  ;;  %1717 = vmatpush.bf16.msrb.mxu0 %v3085_v0 }
  0x3f   :  { %v85_v3 = vld [vmem:[%s4256_s0] sm:$0xff]  ;;  %v3820_v6 = vld [vmem:[#allocation2 + $0x48c] sm:$0xf0]  ;;  %v3469_v11 = vor.u32 %v3920_v63, %v3468_v62  ;;  %1730 = vmatpush.bf16.msrb.mxu1 %v3213_v1 }
  0x40   :  { %v3068_v5 = vld [vmem:[#allocation2 + $0x480] sm:$0xf]  ;;  %v359_v9 = vunpack.c.l.b16 %v85_v3  ;;  %v3852_v12 = vld [vmem:[#allocation2 + $0x58c] sm:$0xf0]  ;;  %v360_v15 = vunpack.c.h.b16 %v85_v3  ;;  %1743 = vmatpush.bf16.msrb.mxu2 %v3341_v4  ;;  %v88_v3 = vld [vmem:[%s4256_s0 + $0x18] sm:$0xff] }
  0x41   :  { %v3196_v7 = vld [vmem:[#allocation2 + $0x580] sm:$0xf]  ;;  %v3884_v14 = vld [vmem:[#allocation2 + $0x68c] sm:$0xf0]  ;;  %v3069_v21 = vor.u32 %v3820_v6, %v3068_v5  ;;  %1756 = vmatpush.bf16.msrb.mxu3 %v3469_v11 }
  0x42   :  { %v3324_v13 = vld [vmem:[#allocation2 + $0x680] sm:$0xf]  ;;  %v3916_v17 = vld [vmem:[#allocation2 + $0x78c] sm:$0xf0]  ;;  %v4150_v19 = vpack.c.b16 %v359_v9, %v359_v9  ;;  %v4154_v22 = vpack.c.b16 %v360_v15, %v360_v15  ;;  %v3197_v23 = vor.u32 %v3852_v12, %v3196_v7  ;;  %v2606_v9 = vld [vmem:[#allocation2 + $0xf0] sm:$0xf0]  ;;  %v365_v15 = vunpack.c.l.b16 %v88_v3 }
  0x43   :  { %v3452_v16 = vld [vmem:[#allocation2 + $0x780] sm:$0xf]  ;;  %v3325_v24 = vor.u32 %v3884_v14, %v3324_v13  ;;  %v3816_v26 = vld [vmem:[#allocation2 + $0x46c] sm:$0xf0]  ;;  %1718 = vmatpush.bf16.msrb.mxu0 %v3069_v21  ;;  %v2734_v12 = vld [vmem:[#allocation2 + $0x1f0] sm:$0xf0] }
  0x44   :  { %v3052_v25 = vld [vmem:[#allocation2 + $0x460] sm:$0xf]  ;;  %v3453_v28 = vor.u32 %v3916_v17, %v3452_v16  ;;  %v3848_v29 = vld [vmem:[#allocation2 + $0x56c] sm:$0xf0]  ;;  %1671 = vmatmul.bf16.vlgmr.msra.gmra.mxu0 %v4150_v19  ;;  %1684 = vmatmul.bf16.vlgmr.msra.gmra.mxu1 %v4154_v22  ;;  %v3766_v13 = vld [vmem:[#allocation2 + $0x2e4] sm:$0xf] }
  0x45   :  { %v3180_v27 = vld [vmem:[#allocation2 + $0x560] sm:$0xf]  ;;  %v3880_v31 = vld [vmem:[#allocation2 + $0x66c] sm:$0xf0]  ;;  %v3053_v34 = vor.u32 %v3816_v26, %v3052_v25  ;;  %1731 = vmatpush.bf16.msrb.mxu1 %v3197_v23  ;;  %1744 = vmatpush.bf16.msrb.mxu2 %v3325_v24  ;;  %v2862_v14 = vld [vmem:[#allocation2 + $0x2f0] sm:$0xf0]  ;;  %v366_v25 = vunpack.c.h.b16 %v88_v3 }
  0x46   :  { %v3308_v30 = vld [vmem:[#allocation2 + $0x660] sm:$0xf]  ;;  %v3912_v33 = vld [vmem:[#allocation2 + $0x76c] sm:$0xf0]  ;;  %v3181_v35 = vor.u32 %v3848_v29, %v3180_v27  ;;  %1757 = vmatpush.bf16.msrb.mxu3 %v3453_v28  ;;  %v3798_v21 = vld [vmem:[#allocation2 + $0x3e4] sm:$0xf]  ;;  %v2609_v27 = vor.u32 %v3702_v8, %v2606_v9  ;;  %v2737_v29 = vor.u32 %v3734_v10, %v2734_v12 }
  0x47   :  { %v3436_v32 = vld [vmem:[#allocation2 + $0x760] sm:$0xf]  ;;  %v3309_v36 = vor.u32 %v3880_v31, %v3308_v30  ;;  %v3812_v38 = vld [vmem:[#allocation2 + $0x44c] sm:$0xf0]  ;;  %1719 = vmatpush.bf16.msrb.mxu0 %v3053_v34  ;;  %v2990_v23 = vld [vmem:[#allocation2 + $0x3f0] sm:$0xf0]  ;;  %v2865_v30 = vor.u32 %v3766_v13, %v2862_v14 }
  0x48   :  { %v3036_v37 = vld [vmem:[#allocation2 + $0x440] sm:$0xf]  ;;  %v3437_v40 = vor.u32 %v3912_v33, %v3436_v32  ;;  %v3844_v41 = vld [vmem:[#allocation2 + $0x54c] sm:$0xf0]  ;;  %v3698_v31 = vld [vmem:[#allocation2 + $0xc4] sm:$0xf]  ;;  %v2993_v34 = vor.u32 %v3798_v21, %v2990_v23 }
  0x49   :  { %v3164_v39 = vld [vmem:[#allocation2 + $0x540] sm:$0xf]  ;;  %v3876_v43 = vld [vmem:[#allocation2 + $0x64c] sm:$0xf0]  ;;  %v3037_v46 = vor.u32 %v3812_v38, %v3036_v37  ;;  %1732 = vmatpush.bf16.msrb.mxu1 %v3181_v35  ;;  %1745 = vmatpush.bf16.msrb.mxu2 %v3309_v36  ;;  %v2590_v32 = vld [vmem:[#allocation2 + $0xd0] sm:$0xf0]  ;;  %v4166_v38 = vpack.c.b16 %v365_v15, %v365_v15 }
  0x4a   :  { %v3292_v42 = vld [vmem:[#allocation2 + $0x640] sm:$0xf]  ;;  %v3908_v45 = vld [vmem:[#allocation2 + $0x74c] sm:$0xf0]  ;;  %v3165_v47 = vor.u32 %v3844_v41, %v3164_v39  ;;  %1758 = vmatpush.bf16.msrb.mxu3 %v3437_v40  ;;  %v3730_v33 = vld [vmem:[#allocation2 + $0x1c4] sm:$0xf] }
  0x4b   :  { %v3420_v44 = vld [vmem:[#allocation2 + $0x740] sm:$0xf]  ;;  %v3293_v48 = vor.u32 %v3876_v43, %v3292_v42  ;;  %v3808_v50 = vld [vmem:[#allocation2 + $0x42c] sm:$0xf0]  ;;  %1720 = vmatpush.bf16.msrb.mxu0 %v3037_v46  ;;  %v2718_v35 = vld [vmem:[#allocation2 + $0x1d0] sm:$0xf0]  ;;  %v4170_v42 = vpack.c.b16 %v366_v25, %v366_v25  ;;  %v2593_v43 = vor.u32 %v3698_v31, %v2590_v32 }
  0x4c   :  { %v3020_v49 = vld [vmem:[#allocation2 + $0x420] sm:$0xf]  ;;  %v3421_v52 = vor.u32 %v3908_v45, %v3420_v44  ;;  %v3840_v53 = vld [vmem:[#allocation2 + $0x52c] sm:$0xf0]  ;;  %v3762_v36 = vld [vmem:[#allocation2 + $0x2c4] sm:$0xf]  ;;  %v2721_v45 = vor.u32 %v3730_v33, %v2718_v35 }
  0x4d   :  { %v3148_v51 = vld [vmem:[#allocation2 + $0x520] sm:$0xf]  ;;  %v3872_v55 = vld [vmem:[#allocation2 + $0x62c] sm:$0xf0]  ;;  %v3021_v59 = vor.u32 %v3808_v50, %v3020_v49  ;;  %1733 = vmatpush.bf16.msrb.mxu1 %v3165_v47  ;;  %1746 = vmatpush.bf16.msrb.mxu2 %v3293_v48  ;;  %v2846_v37 = vld [vmem:[#allocation2 + $0x2d0] sm:$0xf0] }
  0x4e   :  { %v3276_v54 = vld [vmem:[#allocation2 + $0x620] sm:$0xf]  ;;  %v3904_v57 = vld [vmem:[#allocation2 + $0x72c] sm:$0xf0]  ;;  %v3149_v63 = vor.u32 %v3840_v53, %v3148_v51  ;;  %1759 = vmatpush.bf16.msrb.mxu3 %v3421_v52  ;;  %v3794_v39 = vld [vmem:[#allocation2 + $0x3c4] sm:$0xf]  ;;  %v2849_v46 = vor.u32 %v3762_v36, %v2846_v37 }
  0x4f   :  { %v3404_v56 = vld [vmem:[#allocation2 + $0x720] sm:$0xf]  ;;  %v3804_v60 = vld [vmem:[#allocation2 + $0x40c] sm:$0xf0]  ;;  %v3277_v0 = vor.u32 %v3872_v55, %v3276_v54  ;;  %1721 = vmatpush.bf16.msrb.mxu0 %v3021_v59  ;;  %v2974_v40 = vld [vmem:[#allocation2 + $0x3d0] sm:$0xf0] }
  0x50   :  { %v3004_v58 = vld [vmem:[#allocation2 + $0x400] sm:$0xf]  ;;  %v3836_v62 = vld [vmem:[#allocation2 + $0x50c] sm:$0xf0]  ;;  %v3405_v4 = vor.u32 %v3904_v57, %v3404_v56  ;;  %v3694_v47 = vld [vmem:[#allocation2 + $0xa4] sm:$0xf]  ;;  %v2977_v50 = vor.u32 %v3794_v39, %v2974_v40 }
  0x51   :  { %v3132_v61 = vld [vmem:[#allocation2 + $0x500] sm:$0xf]  ;;  %v3868_v2 = vld [vmem:[#allocation2 + $0x60c] sm:$0xf0]  ;;  %v3005_v11 = vor.u32 %v3804_v60, %v3004_v58  ;;  %1734 = vmatpush.bf16.msrb.mxu1 %v3149_v63  ;;  %1747 = vmatpush.bf16.msrb.mxu2 %v3277_v0  ;;  %v2574_v48 = vld [vmem:[#allocation2 + $0xb0] sm:$0xf0] }
  0x52   :  { %v3260_v1 = vld [vmem:[#allocation2 + $0x600] sm:$0xf]  ;;  %v3900_v6 = vld [vmem:[#allocation2 + $0x70c] sm:$0xf0]  ;;  %v3133_v16 = vor.u32 %v3836_v62, %v3132_v61  ;;  %1760 = vmatpush.bf16.msrb.mxu3 %v3405_v4  ;;  %v3726_v49 = vld [vmem:[#allocation2 + $0x1a4] sm:$0xf]  ;;  %v2577_v56 = vor.u32 %v3694_v47, %v2574_v48 }
  0x53   :  { %v3388_v5 = vld [vmem:[#allocation2 + $0x700] sm:$0xf]  ;;  %v87_v7 = vld [vmem:[%s4256_s0 + $0x10] sm:$0xff]  ;;  %v3261_v17 = vor.u32 %v3868_v2, %v3260_v1  ;;  %1722 = vmatpush.bf16.msrb.mxu0 %v3005_v11  ;;  %v3758_v52 = vld [vmem:[#allocation2 + $0x2a4] sm:$0xf] }
  0x54   :  { %v363_v24 = vunpack.c.l.b16 %v87_v7  ;;  %v3389_v26 = vor.u32 %v3900_v6, %v3388_v5  ;;  %v364_v28 = vunpack.c.h.b16 %v87_v7  ;;  %v2702_v51 = vld [vmem:[#allocation2 + $0x1b0] sm:$0xf0]  ;;  %v3790_v54 = vld [vmem:[#allocation2 + $0x3a4] sm:$0xf] }
  0x55   :  { %1735 = vmatpush.bf16.msrb.mxu1 %v3133_v16  ;;  %1748 = vmatpush.bf16.msrb.mxu2 %v3261_v17  ;;  %v2830_v53 = vld [vmem:[#allocation2 + $0x2b0] sm:$0xf0]  ;;  %v2705_v57 = vor.u32 %v3726_v49, %v2702_v51  ;;  %v3690_v59 = vld [vmem:[#allocation2 + $0x84] sm:$0xf] }
  0x56   :  { %v4168_v41 = vpack.c.b16 %v363_v24, %v363_v24  ;;  %1761 = vmatpush.bf16.msrb.mxu3 %v3389_v26  ;;  %v4172_v44 = vpack.c.b16 %v364_v28, %v364_v28  ;;  %v2958_v55 = vld [vmem:[#allocation2 + $0x3b0] sm:$0xf0]  ;;  %v2833_v58 = vor.u32 %v3758_v52, %v2830_v53  ;;  %v3722_v61 = vld [vmem:[#allocation2 + $0x184] sm:$0xf] }
  0x57   :  { %1767 = vmatpush.bf16.msra.mxu0 %v2609_v27  ;;  %v2558_v60 = vld [vmem:[#allocation2 + $0x90] sm:$0xf0]  ;;  %v2961_v62 = vor.u32 %v3790_v54, %v2958_v55  ;;  %v3754_v0 = vld [vmem:[#allocation2 + $0x284] sm:$0xf] }
  0x58   :  { %1749 = vmatmul.bf16.vlgmr.msrb.gmra.mxu2 %v4166_v38  ;;  %1723 = vmatmul.bf16.vlgmr.msrb.gmra.mxu0 %v4168_v41  ;;  %v2686_v63 = vld [vmem:[#allocation2 + $0x190] sm:$0xf0]  ;;  %v3786_v2 = vld [vmem:[#allocation2 + $0x384] sm:$0xf]  ;;  %v2561_v4 = vor.u32 %v3690_v59, %v2558_v60 }
  0x59   :  { %1780 = vmatpush.bf16.msra.mxu1 %v2737_v29  ;;  %1793 = vmatpush.bf16.msra.mxu2 %v2865_v30  ;;  %v2814_v1 = vld [vmem:[#allocation2 + $0x290] sm:$0xf0]  ;;  %v2689_v5 = vor.u32 %v3722_v61, %v2686_v63  ;;  %v3686_v7 = vld [vmem:[#allocation2 + $0x64] sm:$0xf] }
  0x5a   :  { %1806 = vmatpush.bf16.msra.mxu3 %v2993_v34  ;;  %1736 = vmatmul.bf16.vlgmr.msrb.gmra.mxu1 %v4172_v44  ;;  %v2942_v3 = vld [vmem:[#allocation2 + $0x390] sm:$0xf0]  ;;  %v2817_v6 = vor.u32 %v3754_v0, %v2814_v1  ;;  %v3718_v9 = vld [vmem:[#allocation2 + $0x164] sm:$0xf] }
  0x5b   :  { %1762 = vmatmul.bf16.vlgmr.msrb.gmra.mxu3 %v4170_v42  ;;  %1768 = vmatpush.bf16.msra.mxu0 %v2593_v43  ;;  %v2542_v8 = vld [vmem:[#allocation2 + $0x70] sm:$0xf0]  ;;  %v2945_v10 = vor.u32 %v3786_v2, %v2942_v3  ;;  %v3750_v12 = vld [vmem:[#allocation2 + $0x264] sm:$0xf] }
  0x5c   :  { %v2670_v11 = vld [vmem:[#allocation2 + $0x170] sm:$0xf0]  ;;  %v3782_v14 = vld [vmem:[#allocation2 + $0x364] sm:$0xf]  ;;  %v2545_v16 = vor.u32 %v3686_v7, %v2542_v8 }
  0x5d   :  { %1781 = vmatpush.bf16.msra.mxu1 %v2721_v45  ;;  %1794 = vmatpush.bf16.msra.mxu2 %v2849_v46  ;;  %v2798_v13 = vld [vmem:[#allocation2 + $0x270] sm:$0xf0]  ;;  %v2673_v17 = vor.u32 %v3718_v9, %v2670_v11  ;;  %v3682_v23 = vld [vmem:[#allocation2 + $0x44] sm:$0xf] }
  0x5e   :  { %1807 = vmatpush.bf16.msra.mxu3 %v2977_v50  ;;  %v2926_v15 = vld [vmem:[#allocation2 + $0x370] sm:$0xf0]  ;;  %v2801_v21 = vor.u32 %v3750_v12, %v2798_v13  ;;  %v3714_v25 = vld [vmem:[#allocation2 + $0x144] sm:$0xf] }
  0x5f   :  { %1769 = vmatpush.bf16.msra.mxu0 %v2577_v56  ;;  %v2526_v24 = vld [vmem:[#allocation2 + $0x50] sm:$0xf0]  ;;  %v2929_v26 = vor.u32 %v3782_v14, %v2926_v15  ;;  %v3746_v28 = vld [vmem:[#allocation2 + $0x244] sm:$0xf] }
  0x60   :  { %v2654_v27 = vld [vmem:[#allocation2 + $0x150] sm:$0xf0]  ;;  %v3778_v30 = vld [vmem:[#allocation2 + $0x344] sm:$0xf]  ;;  %v2529_v32 = vor.u32 %v3682_v23, %v2526_v24 }
  0x61   :  { %1782 = vmatpush.bf16.msra.mxu1 %v2705_v57  ;;  %1795 = vmatpush.bf16.msra.mxu2 %v2833_v58  ;;  %v2782_v29 = vld [vmem:[#allocation2 + $0x250] sm:$0xf0]  ;;  %v2657_v33 = vor.u32 %v3714_v25, %v2654_v27  ;;  %v3678_v35 = vld [vmem:[#allocation2 + $0x24] sm:$0xf] }
  0x62   :  { %1808 = vmatpush.bf16.msra.mxu3 %v2961_v62  ;;  %v2910_v31 = vld [vmem:[#allocation2 + $0x350] sm:$0xf0]  ;;  %v2785_v34 = vor.u32 %v3746_v28, %v2782_v29  ;;  %v3710_v37 = vld [vmem:[#allocation2 + $0x124] sm:$0xf] }
  0x63   :  { %1770 = vmatpush.bf16.msra.mxu0 %v2561_v4  ;;  %v2510_v36 = vld [vmem:[#allocation2 + $0x30] sm:$0xf0]  ;;  %v2913_v39 = vor.u32 %v3778_v30, %v2910_v31  ;;  %v3742_v43 = vld [vmem:[#allocation2 + $0x224] sm:$0xf] }
  0x64   :  { %v2638_v40 = vld [vmem:[#allocation2 + $0x130] sm:$0xf0]  ;;  %v3774_v46 = vld [vmem:[#allocation2 + $0x324] sm:$0xf]  ;;  %v2513_v48 = vor.u32 %v3678_v35, %v2510_v36 }
  0x65   :  { %1783 = vmatpush.bf16.msra.mxu1 %v2689_v5  ;;  %1796 = vmatpush.bf16.msra.mxu2 %v2817_v6  ;;  %v2766_v45 = vld [vmem:[#allocation2 + $0x230] sm:$0xf0]  ;;  %v3674_v49 = vld [vmem:[#allocation2 + $0x4] sm:$0xf]  ;;  %v2641_v51 = vor.u32 %v3710_v37, %v2638_v40 }
  0x66   :  { %1809 = vmatpush.bf16.msra.mxu3 %v2945_v10  ;;  %v2894_v47 = vld [vmem:[#allocation2 + $0x330] sm:$0xf0]  ;;  %v2769_v52 = vor.u32 %v3742_v43, %v2766_v45  ;;  %v3706_v53 = vld [vmem:[#allocation2 + $0x104] sm:$0xf] }
  0x67   :  { %1771 = vmatpush.bf16.msra.mxu0 %v2545_v16  ;;  %v2494_v50 = vld [vmem:[#allocation2 + $0x10] sm:$0xf0]  ;;  %v3738_v55 = vld [vmem:[#allocation2 + $0x204] sm:$0xf]  ;;  %v2897_v56 = vor.u32 %v3774_v46, %v2894_v47 }
  0x68   :  { %v2622_v54 = vld [vmem:[#allocation2 + $0x110] sm:$0xf0]  ;;  %v3770_v58 = vld [vmem:[#allocation2 + $0x304] sm:$0xf]  ;;  %v2497_v63 = vor.u32 %v3674_v49, %v2494_v50 }
  0x69   :  { %1784 = vmatpush.bf16.msra.mxu1 %v2673_v17  ;;  %1797 = vmatpush.bf16.msra.mxu2 %v2801_v21  ;;  %v2750_v57 = vld [vmem:[#allocation2 + $0x210] sm:$0xf0]  ;;  %v3830_v60 = vld [vmem:[#allocation2 + $0x4e4] sm:$0xf]  ;;  %v2625_v3 = vor.u32 %v3706_v53, %v2622_v54 }
  0x6a   :  { %1810 = vmatpush.bf16.msra.mxu3 %v2929_v26  ;;  %v2878_v59 = vld [vmem:[#allocation2 + $0x310] sm:$0xf0]  ;;  %v3862_v62 = vld [vmem:[#allocation2 + $0x5e4] sm:$0xf]  ;;  %v2753_v4 = vor.u32 %v3738_v55, %v2750_v57 }
  0x6b   :  { %1772 = vmatpush.bf16.msra.mxu0 %v2529_v32  ;;  %v3118_v61 = vld [vmem:[#allocation2 + $0x4f0] sm:$0xf0]  ;;  %v3894_v1 = vld [vmem:[#allocation2 + $0x6e4] sm:$0xf]  ;;  %v2881_v7 = vor.u32 %v3770_v58, %v2878_v59 }
  0x6c   :  { %v3246_v0 = vld [vmem:[#allocation2 + $0x5f0] sm:$0xf0]  ;;  %v3926_v5 = vld [vmem:[#allocation2 + $0x7e4] sm:$0xf]  ;;  %v3121_v8 = vor.u32 %v3830_v60, %v3118_v61 }
  0x6d   :  { %1785 = vmatpush.bf16.msra.mxu1 %v2657_v33  ;;  %1798 = vmatpush.bf16.msra.mxu2 %v2785_v34  ;;  %v3374_v2 = vld [vmem:[#allocation2 + $0x6f0] sm:$0xf0]  ;;  %v3249_v9 = vor.u32 %v3862_v62, %v3246_v0  ;;  %v3826_v11 = vld [vmem:[#allocation2 + $0x4c4] sm:$0xf] }
  0x6e   :  { %1811 = vmatpush.bf16.msra.mxu3 %v2913_v39  ;;  %v3502_v6 = vld [vmem:[#allocation2 + $0x7f0] sm:$0xf0]  ;;  %v3377_v10 = vor.u32 %v3894_v1, %v3374_v2  ;;  %v3858_v13 = vld [vmem:[#allocation2 + $0x5c4] sm:$0xf] }
  0x6f   :  { %1773 = vmatpush.bf16.msra.mxu0 %v2513_v48  ;;  %v3102_v12 = vld [vmem:[#allocation2 + $0x4d0] sm:$0xf0]  ;;  %v3505_v14 = vor.u32 %v3926_v5, %v3502_v6  ;;  %v3890_v16 = vld [vmem:[#allocation2 + $0x6c4] sm:$0xf] }
  0x70   :  { %v3230_v15 = vld [vmem:[#allocation2 + $0x5d0] sm:$0xf0]  ;;  %v3922_v21 = vld [vmem:[#allocation2 + $0x7c4] sm:$0xf]  ;;  %v3105_v24 = vor.u32 %v3826_v11, %v3102_v12 }
  0x71   :  { %1786 = vmatpush.bf16.msra.mxu1 %v2641_v51  ;;  %1799 = vmatpush.bf16.msra.mxu2 %v2769_v52  ;;  %v3358_v17 = vld [vmem:[#allocation2 + $0x6d0] sm:$0xf0]  ;;  %v3233_v25 = vor.u32 %v3858_v13, %v3230_v15  ;;  %v3822_v27 = vld [vmem:[#allocation2 + $0x4a4] sm:$0xf] }
  0x72   :  { %1812 = vmatpush.bf16.msra.mxu3 %v2897_v56  ;;  %v3486_v23 = vld [vmem:[#allocation2 + $0x7d0] sm:$0xf0]  ;;  %v3361_v26 = vor.u32 %v3890_v16, %v3358_v17  ;;  %v3854_v29 = vld [vmem:[#allocation2 + $0x5a4] sm:$0xf] }
  0x73   :  { %1774 = vmatpush.bf16.msra.mxu0 %v2497_v63  ;;  %v3086_v28 = vld [vmem:[#allocation2 + $0x4b0] sm:$0xf0]  ;;  %v3489_v30 = vor.u32 %v3922_v21, %v3486_v23  ;;  %v3886_v32 = vld [vmem:[#allocation2 + $0x6a4] sm:$0xf] }
  0x74   :  { %v3214_v31 = vld [vmem:[#allocation2 + $0x5b0] sm:$0xf0]  ;;  %v3918_v34 = vld [vmem:[#allocation2 + $0x7a4] sm:$0xf]  ;;  %v3089_v36 = vor.u32 %v3822_v27, %v3086_v28 }
  0x75   :  { %1787 = vmatpush.bf16.msra.mxu1 %v2625_v3  ;;  %1800 = vmatpush.bf16.msra.mxu2 %v2753_v4  ;;  %v3342_v33 = vld [vmem:[#allocation2 + $0x6b0] sm:$0xf0]  ;;  %v3217_v37 = vor.u32 %v3854_v29, %v3214_v31  ;;  %v3818_v40 = vld [vmem:[#allocation2 + $0x484] sm:$0xf] }
  0x76   :  { %1813 = vmatpush.bf16.msra.mxu3 %v2881_v7  ;;  %v3470_v35 = vld [vmem:[#allocation2 + $0x7b0] sm:$0xf0]  ;;  %1775 = vmatmul.bf16.vlgmr.msra.gmra.mxu0 %v4150_v19  ;;  %v3345_v39 = vor.u32 %v3886_v32, %v3342_v33  ;;  %v3850_v45 = vld [vmem:[#allocation2 + $0x584] sm:$0xf] }
  0x77   :  { %1819 = vmatpush.bf16.msrb.mxu0 %v3121_v8  ;;  %v3070_v43 = vld [vmem:[#allocation2 + $0x490] sm:$0xf0]  ;;  %v3473_v46 = vor.u32 %v3918_v34, %v3470_v35  ;;  %v3882_v48 = vld [vmem:[#allocation2 + $0x684] sm:$0xf] }
  0x78   :  { %1801 = vmatmul.bf16.vlgmr.msra.gmra.mxu2 %v4148_v18  ;;  %1788 = vmatmul.bf16.vlgmr.msra.gmra.mxu1 %v4154_v22  ;;  %v3198_v47 = vld [vmem:[#allocation2 + $0x590] sm:$0xf0]  ;;  %v3914_v50 = vld [vmem:[#allocation2 + $0x784] sm:$0xf]  ;;  %v3073_v52 = vor.u32 %v3818_v40, %v3070_v43  ;;  %v2612_v43 = vld [vmem:[#allocation2 + $0xe8] sm:$0xf] }
  0x79   :  { %1832 = vmatpush.bf16.msrb.mxu1 %v3249_v9  ;;  %1845 = vmatpush.bf16.msrb.mxu2 %v3377_v10  ;;  %v3326_v49 = vld [vmem:[#allocation2 + $0x690] sm:$0xf0]  ;;  %v3201_v53 = vor.u32 %v3850_v45, %v3198_v47  ;;  %v3814_v55 = vld [vmem:[#allocation2 + $0x464] sm:$0xf]  ;;  %v3705_v45 = vld [vmem:[#allocation2 + $0xf4] sm:$0xf0] }
  0x7a   :  { %1858 = vmatpush.bf16.msrb.mxu3 %v3505_v14  ;;  %v3454_v51 = vld [vmem:[#allocation2 + $0x790] sm:$0xf0]  ;;  %v3329_v54 = vor.u32 %v3882_v48, %v3326_v49  ;;  %v3846_v57 = vld [vmem:[#allocation2 + $0x564] sm:$0xf]  ;;  %v3737_v48 = vld [vmem:[#allocation2 + $0x1f4] sm:$0xf0] }
  0x7b   :  { %1814 = vmatmul.bf16.vlgmr.msra.gmra.mxu3 %v4152_v20  ;;  %1820 = vmatpush.bf16.msrb.mxu0 %v3105_v24  ;;  %v3054_v56 = vld [vmem:[#allocation2 + $0x470] sm:$0xf0]  ;;  %v3457_v58 = vor.u32 %v3914_v50, %v3454_v51  ;;  %v3878_v60 = vld [vmem:[#allocation2 + $0x664] sm:$0xf]  ;;  %v2868_v49 = vld [vmem:[#allocation2 + $0x2e8] sm:$0xf] }
  0x7c   :  { %v3182_v59 = vld [vmem:[#allocation2 + $0x570] sm:$0xf0]  ;;  %v3910_v62 = vld [vmem:[#allocation2 + $0x764] sm:$0xf]  ;;  %v3057_v0 = vor.u32 %v3814_v55, %v3054_v56  ;;  %v3769_v50 = vld [vmem:[#allocation2 + $0x2f4] sm:$0xf0]  ;;  %v2613_v56 = vor.u32 %v3705_v45, %v2612_v43 }
  0x7d   :  { %1833 = vmatpush.bf16.msrb.mxu1 %v3233_v25  ;;  %1846 = vmatpush.bf16.msrb.mxu2 %v3361_v26  ;;  %v3310_v61 = vld [vmem:[#allocation2 + $0x670] sm:$0xf0]  ;;  %v3185_v1 = vor.u32 %v3846_v57, %v3182_v59  ;;  %v3810_v3 = vld [vmem:[#allocation2 + $0x444] sm:$0xf]  ;;  %v2596_v59 = vld [vmem:[#allocation2 + $0xc8] sm:$0xf] }
  0x7e   :  { %1859 = vmatpush.bf16.msrb.mxu3 %v3489_v30  ;;  %v3438_v63 = vld [vmem:[#allocation2 + $0x770] sm:$0xf0]  ;;  %v3313_v2 = vor.u32 %v3878_v60, %v3310_v61  ;;  %v3842_v5 = vld [vmem:[#allocation2 + $0x544] sm:$0xf]  ;;  %v3701_v60 = vld [vmem:[#allocation2 + $0xd4] sm:$0xf0] }
  0x7f   :  { %1821 = vmatpush.bf16.msrb.mxu0 %v3089_v36  ;;  %v3038_v4 = vld [vmem:[#allocation2 + $0x450] sm:$0xf0]  ;;  %v3441_v6 = vor.u32 %v3910_v62, %v3438_v63  ;;  %v3874_v8 = vld [vmem:[#allocation2 + $0x644] sm:$0xf]  ;;  %v2724_v61 = vld [vmem:[#allocation2 + $0x1c8] sm:$0xf] }
  0x80   :  { %v3166_v7 = vld [vmem:[#allocation2 + $0x550] sm:$0xf0]  ;;  %v3906_v10 = vld [vmem:[#allocation2 + $0x744] sm:$0xf]  ;;  %v3041_v12 = vor.u32 %v3810_v3, %v3038_v4  ;;  %v3733_v63 = vld [vmem:[#allocation2 + $0x1d4] sm:$0xf0]  ;;  %v2597_v4 = vor.u32 %v3701_v60, %v2596_v59 }
  0x81   :  { %1834 = vmatpush.bf16.msrb.mxu1 %v3217_v37  ;;  %1847 = vmatpush.bf16.msrb.mxu2 %v3345_v39  ;;  %v3294_v9 = vld [vmem:[#allocation2 + $0x650] sm:$0xf0]  ;;  %v3169_v13 = vor.u32 %v3842_v5, %v3166_v7  ;;  %v3806_v15 = vld [vmem:[#allocation2 + $0x424] sm:$0xf]  ;;  %v3797_v3 = vld [vmem:[#allocation2 + $0x3d4] sm:$0xf0]  ;;  %v2725_v5 = vor.u32 %v3733_v63, %v2724_v61 }
  0x82   :  { %1860 = vmatpush.bf16.msrb.mxu3 %v3473_v46  ;;  %v3422_v11 = vld [vmem:[#allocation2 + $0x750] sm:$0xf0]  ;;  %v3297_v14 = vor.u32 %v3874_v8, %v3294_v9  ;;  %v3838_v17 = vld [vmem:[#allocation2 + $0x524] sm:$0xf]  ;;  %v2740_v46 = vld [vmem:[#allocation2 + $0x1e8] sm:$0xf] }
  0x83   :  { %1822 = vmatpush.bf16.msrb.mxu0 %v3073_v52  ;;  %v3022_v16 = vld [vmem:[#allocation2 + $0x430] sm:$0xf0]  ;;  %v3425_v21 = vor.u32 %v3906_v10, %v3422_v11  ;;  %v3870_v24 = vld [vmem:[#allocation2 + $0x624] sm:$0xf]  ;;  %v2741_v57 = vor.u32 %v3737_v48, %v2740_v46  ;;  %v2580_v7 = vld [vmem:[#allocation2 + $0xa8] sm:$0xf] }
  0x84   :  { %v3150_v23 = vld [vmem:[#allocation2 + $0x530] sm:$0xf0]  ;;  %v3902_v26 = vld [vmem:[#allocation2 + $0x724] sm:$0xf]  ;;  %v3025_v28 = vor.u32 %v3806_v15, %v3022_v16  ;;  %v3697_v8 = vld [vmem:[#allocation2 + $0xb4] sm:$0xf0] }
  0x85   :  { %1835 = vmatpush.bf16.msrb.mxu1 %v3201_v53  ;;  %1848 = vmatpush.bf16.msrb.mxu2 %v3329_v54  ;;  %v3278_v25 = vld [vmem:[#allocation2 + $0x630] sm:$0xf0]  ;;  %v3802_v29 = vld [vmem:[#allocation2 + $0x404] sm:$0xf]  ;;  %v3153_v31 = vor.u32 %v3838_v17, %v3150_v23  ;;  %v2996_v53 = vld [vmem:[#allocation2 + $0x3e8] sm:$0xf]  ;;  %v2581_v16 = vor.u32 %v3697_v8, %v2580_v7 }
  0x86   :  { %1861 = vmatpush.bf16.msrb.mxu3 %v3457_v58  ;;  %v3406_v27 = vld [vmem:[#allocation2 + $0x730] sm:$0xf0]  ;;  %v3281_v32 = vor.u32 %v3870_v24, %v3278_v25  ;;  %v3834_v33 = vld [vmem:[#allocation2 + $0x504] sm:$0xf]  ;;  %v3801_v54 = vld [vmem:[#allocation2 + $0x3f4] sm:$0xf0]  ;;  %v2869_v58 = vor.u32 %v3769_v50, %v2868_v49 }
  0x87   :  { %1823 = vmatpush.bf16.msrb.mxu0 %v3057_v0  ;;  %v3006_v30 = vld [vmem:[#allocation2 + $0x410] sm:$0xf0]  ;;  %v3866_v35 = vld [vmem:[#allocation2 + $0x604] sm:$0xf]  ;;  %v3409_v36 = vor.u32 %v3902_v26, %v3406_v27  ;;  %v2997_v62 = vor.u32 %v3801_v54, %v2996_v53  ;;  %v2852_v0 = vld [vmem:[#allocation2 + $0x2c8] sm:$0xf] }
  0x88   :  { %v3134_v34 = vld [vmem:[#allocation2 + $0x510] sm:$0xf0]  ;;  %v3898_v39 = vld [vmem:[#allocation2 + $0x704] sm:$0xf]  ;;  %v3009_v47 = vor.u32 %v3802_v29, %v3006_v30  ;;  %v2708_v9 = vld [vmem:[#allocation2 + $0x1a8] sm:$0xf] }
  0x89   :  { %1836 = vmatpush.bf16.msrb.mxu1 %v3185_v1  ;;  %1849 = vmatpush.bf16.msrb.mxu2 %v3313_v2  ;;  %v3262_v37 = vld [vmem:[#allocation2 + $0x610] sm:$0xf0]  ;;  %v3137_v51 = vor.u32 %v3834_v33, %v3134_v34  ;;  %v3765_v1 = vld [vmem:[#allocation2 + $0x2d4] sm:$0xf0]  ;;  %v2980_v2 = vld [vmem:[#allocation2 + $0x3c8] sm:$0xf] }
  0x8a   :  { %1862 = vmatpush.bf16.msrb.mxu3 %v3441_v6  ;;  %v3390_v40 = vld [vmem:[#allocation2 + $0x710] sm:$0xf0]  ;;  %v3265_v52 = vor.u32 %v3866_v35, %v3262_v37  ;;  %v2853_v6 = vor.u32 %v3765_v1, %v2852_v0  ;;  %v2981_v10 = vor.u32 %v3797_v3, %v2980_v2  ;;  %v3729_v11 = vld [vmem:[#allocation2 + $0x1b4] sm:$0xf0]  ;;  %v2564_v23 = vld [vmem:[#allocation2 + $0x88] sm:$0xf] }
  0x8b   :  { %1824 = vmatpush.bf16.msrb.mxu0 %v3041_v12  ;;  %v3393_v55 = vor.u32 %v3898_v39, %v3390_v40  ;;  %v2836_v12 = vld [vmem:[#allocation2 + $0x2a8] sm:$0xf]  ;;  %v3793_v15 = vld [vmem:[#allocation2 + $0x3b4] sm:$0xf0]  ;;  %v2709_v17 = vor.u32 %v3729_v11, %v2708_v9 }
  0x8c   :  { %v3693_v24 = vld [vmem:[#allocation2 + $0x94] sm:$0xf0]  ;;  %v2692_v25 = vld [vmem:[#allocation2 + $0x188] sm:$0xf] }
  0x8d   :  { %1837 = vmatpush.bf16.msrb.mxu1 %v3169_v13  ;;  %1850 = vmatpush.bf16.msrb.mxu2 %v3297_v14  ;;  %v3761_v13 = vld [vmem:[#allocation2 + $0x2b4] sm:$0xf0]  ;;  %v2964_v14 = vld [vmem:[#allocation2 + $0x3a8] sm:$0xf] }
  0x8e   :  { %1863 = vmatpush.bf16.msrb.mxu3 %v3425_v21  ;;  %v2837_v21 = vor.u32 %v3761_v13, %v2836_v12  ;;  %v2965_v26 = vor.u32 %v3793_v15, %v2964_v14  ;;  %v3725_v27 = vld [vmem:[#allocation2 + $0x194] sm:$0xf0]  ;;  %v2948_v30 = vld [vmem:[#allocation2 + $0x388] sm:$0xf] }
  0x8f   :  { %1825 = vmatpush.bf16.msrb.mxu0 %v3025_v28  ;;  %v2820_v28 = vld [vmem:[#allocation2 + $0x288] sm:$0xf]  ;;  %v3757_v29 = vld [vmem:[#allocation2 + $0x294] sm:$0xf0]  ;;  %v2693_v33 = vor.u32 %v3725_v27, %v2692_v25 }
  0x90   :  { %v2821_v34 = vor.u32 %v3757_v29, %v2820_v28  ;;  %v2548_v35 = vld [vmem:[#allocation2 + $0x68] sm:$0xf]  ;;  %v3721_v40 = vld [vmem:[#allocation2 + $0x174] sm:$0xf0] }
  0x91   :  { %1838 = vmatpush.bf16.msrb.mxu1 %v3153_v31  ;;  %1851 = vmatpush.bf16.msrb.mxu2 %v3281_v32  ;;  %v3789_v31 = vld [vmem:[#allocation2 + $0x394] sm:$0xf0]  ;;  %v2565_v32 = vor.u32 %v3693_v24, %v2564_v23  ;;  %v2676_v37 = vld [vmem:[#allocation2 + $0x168] sm:$0xf] }
  0x92   :  { %1864 = vmatpush.bf16.msrb.mxu3 %v3409_v36  ;;  %v3689_v36 = vld [vmem:[#allocation2 + $0x74] sm:$0xf0]  ;;  %v2949_v39 = vor.u32 %v3789_v31, %v2948_v30  ;;  %v2804_v43 = vld [vmem:[#allocation2 + $0x268] sm:$0xf]  ;;  %v2677_v49 = vor.u32 %v3721_v40, %v2676_v37 }
  0x93   :  { %1826 = vmatpush.bf16.msrb.mxu0 %v3009_v47  ;;  %v3753_v45 = vld [vmem:[#allocation2 + $0x274] sm:$0xf0]  ;;  %v2932_v46 = vld [vmem:[#allocation2 + $0x368] sm:$0xf]  ;;  %v2549_v48 = vor.u32 %v3689_v36, %v2548_v35 }
  0x94   :  { %v3785_v47 = vld [vmem:[#allocation2 + $0x374] sm:$0xf0]  ;;  %v2805_v50 = vor.u32 %v3753_v45, %v2804_v43  ;;  %v2660_v53 = vld [vmem:[#allocation2 + $0x148] sm:$0xf] }
  0x95   :  { %1839 = vmatpush.bf16.msrb.mxu1 %v3137_v51  ;;  %1852 = vmatpush.bf16.msrb.mxu2 %v3265_v52  ;;  %v2532_v51 = vld [vmem:[#allocation2 + $0x48] sm:$0xf]  ;;  %v3685_v52 = vld [vmem:[#allocation2 + $0x54] sm:$0xf0]  ;;  %v2933_v54 = vor.u32 %v3785_v47, %v2932_v46 }
  0x96   :  { %1865 = vmatpush.bf16.msrb.mxu3 %v3393_v55  ;;  %1827 = vmatmul.bf16.vlgmr.msrb.gmra.mxu0 %v4168_v41  ;;  %v3717_v55 = vld [vmem:[#allocation2 + $0x154] sm:$0xf0]  ;;  %v2533_v60 = vor.u32 %v3685_v52, %v2532_v51  ;;  %v2516_v63 = vld [vmem:[#allocation2 + $0x28] sm:$0xf] }
  0x97   :  { %1871 = vmatpush.bf16.msra.mxu0 %v2613_v56  ;;  %v2788_v56 = vld [vmem:[#allocation2 + $0x248] sm:$0xf]  ;;  %v3781_v59 = vld [vmem:[#allocation2 + $0x354] sm:$0xf0]  ;;  %v2661_v61 = vor.u32 %v3717_v55, %v2660_v53 }
  0x98   :  { %1853 = vmatmul.bf16.vlgmr.msrb.gmra.mxu2 %v4166_v38  ;;  %1840 = vmatmul.bf16.vlgmr.msrb.gmra.mxu1 %v4172_v44  ;;  %v3681_v0 = vld [vmem:[#allocation2 + $0x34] sm:$0xf0]  ;;  %v2644_v1 = vld [vmem:[#allocation2 + $0x128] sm:$0xf] }
  0x99   :  { %1884 = vmatpush.bf16.msra.mxu1 %v2741_v57  ;;  %1897 = vmatpush.bf16.msra.mxu2 %v2869_v58  ;;  %v3749_v57 = vld [vmem:[#allocation2 + $0x254] sm:$0xf0]  ;;  %v2916_v58 = vld [vmem:[#allocation2 + $0x348] sm:$0xf]  ;;  %v2517_v8 = vor.u32 %v3681_v0, %v2516_v63 }
  0x9a   :  { %1910 = vmatpush.bf16.msra.mxu3 %v2997_v62  ;;  %v2789_v62 = vor.u32 %v3749_v57, %v2788_v56  ;;  %v2917_v2 = vor.u32 %v3781_v59, %v2916_v58  ;;  %v3713_v3 = vld [vmem:[#allocation2 + $0x134] sm:$0xf0]  ;;  %v2500_v9 = vld [vmem:[#allocation2 + $0x8] sm:$0xf] }
  0x9b   :  { %1866 = vmatmul.bf16.vlgmr.msrb.gmra.mxu3 %v4170_v42  ;;  %1872 = vmatpush.bf16.msra.mxu0 %v2597_v4  ;;  %v2772_v4 = vld [vmem:[#allocation2 + $0x228] sm:$0xf]  ;;  %v3777_v7 = vld [vmem:[#allocation2 + $0x334] sm:$0xf0]  ;;  %v2645_v11 = vor.u32 %v3713_v3, %v2644_v1 }
  0x9c   :  { %v2628_v13 = vld [vmem:[#allocation2 + $0x108] sm:$0xf]  ;;  %v3709_v14 = vld [vmem:[#allocation2 + $0x114] sm:$0xf0] }
  0x9d   :  { %1885 = vmatpush.bf16.msra.mxu1 %v2725_v5  ;;  %1898 = vmatpush.bf16.msra.mxu2 %v2853_v6  ;;  %v3745_v5 = vld [vmem:[#allocation2 + $0x234] sm:$0xf0]  ;;  %v2900_v6 = vld [vmem:[#allocation2 + $0x328] sm:$0xf]  ;;  %v2629_v31 = vor.u32 %v3709_v14, %v2628_v13 }
  0x9e   :  { %1911 = vmatpush.bf16.msra.mxu3 %v2981_v10  ;;  %v3677_v10 = vld [vmem:[#allocation2 + $0x14] sm:$0xf0]  ;;  %v2773_v12 = vor.u32 %v3745_v5, %v2772_v4  ;;  %v2756_v15 = vld [vmem:[#allocation2 + $0x208] sm:$0xf] }
  0x9f   :  { %1873 = vmatpush.bf16.msra.mxu0 %v2581_v16  ;;  %v2901_v16 = vor.u32 %v3777_v7, %v2900_v6  ;;  %v3773_v23 = vld [vmem:[#allocation2 + $0x314] sm:$0xf0]  ;;  %v3124_v24 = vld [vmem:[#allocation2 + $0x4e8] sm:$0xf]  ;;  %v2501_v27 = vor.u32 %v3677_v10, %v2500_v9 }
  0xa0   :  { %v3833_v25 = vld [vmem:[#allocation2 + $0x4f4] sm:$0xf0]  ;;  %v3380_v29 = vld [vmem:[#allocation2 + $0x6e8] sm:$0xf] }
  0xa1   :  { %1886 = vmatpush.bf16.msra.mxu1 %v2709_v17  ;;  %1899 = vmatpush.bf16.msra.mxu2 %v2837_v21  ;;  %v3741_v17 = vld [vmem:[#allocation2 + $0x214] sm:$0xf0]  ;;  %v2884_v21 = vld [vmem:[#allocation2 + $0x308] sm:$0xf]  ;;  %v3125_v36 = vor.u32 %v3833_v25, %v3124_v24 }
  0xa2   :  { %1912 = vmatpush.bf16.msra.mxu3 %v2965_v26  ;;  %v3252_v26 = vld [vmem:[#allocation2 + $0x5e8] sm:$0xf]  ;;  %v3865_v28 = vld [vmem:[#allocation2 + $0x5f4] sm:$0xf0]  ;;  %v2885_v35 = vor.u32 %v3773_v23, %v2884_v21 }
  0xa3   :  { %1874 = vmatpush.bf16.msra.mxu0 %v2565_v32  ;;  %v3897_v30 = vld [vmem:[#allocation2 + $0x6f4] sm:$0xf0]  ;;  %v2757_v32 = vor.u32 %v3741_v17, %v2756_v15  ;;  %v3253_v37 = vor.u32 %v3865_v28, %v3252_v26  ;;  %v3108_v40 = vld [vmem:[#allocation2 + $0x4c8] sm:$0xf]  ;;  %v4193_v26 = vld [vmem:[%s4258_s2] sm:$0xf] }
  0xa4   :  { %v3829_v43 = vld [vmem:[#allocation2 + $0x4d4] sm:$0xf0]  ;;  %v3236_v45 = vld [vmem:[#allocation2 + $0x5c8] sm:$0xf] }
  0xa5   :  { %1887 = vmatpush.bf16.msra.mxu1 %v2693_v33  ;;  %1900 = vmatpush.bf16.msra.mxu2 %v2821_v34  ;;  %v3508_v33 = vld [vmem:[#allocation2 + $0x7e8] sm:$0xf]  ;;  %v3929_v34 = vld [vmem:[#allocation2 + $0x7f4] sm:$0xf0]  ;;  %v3109_v52 = vor.u32 %v3829_v43, %v3108_v40 }
  0xa6   :  { %1913 = vmatpush.bf16.msra.mxu3 %v2949_v39  ;;  %v3381_v39 = vor.u32 %v3897_v30, %v3380_v29  ;;  %v3509_v46 = vor.u32 %v3929_v34, %v3508_v33  ;;  %v3861_v47 = vld [vmem:[#allocation2 + $0x5d4] sm:$0xf0]  ;;  %v3092_v55 = vld [vmem:[#allocation2 + $0x4a8] sm:$0xf] }
  0xa7   :  { %1875 = vmatpush.bf16.msra.mxu0 %v2549_v48  ;;  %v3364_v48 = vld [vmem:[#allocation2 + $0x6c8] sm:$0xf]  ;;  %v3925_v51 = vld [vmem:[#allocation2 + $0x7d4] sm:$0xf0]  ;;  %v3237_v53 = vor.u32 %v3861_v47, %v3236_v45 }
  0xa8   :  { %v3825_v56 = vld [vmem:[#allocation2 + $0x4b4] sm:$0xf0]  ;;  %v3220_v57 = vld [vmem:[#allocation2 + $0x5a8] sm:$0xf] }
  0xa9   :  { %1888 = vmatpush.bf16.msra.mxu1 %v2677_v49  ;;  %1901 = vmatpush.bf16.msra.mxu2 %v2805_v50  ;;  %v3893_v49 = vld [vmem:[#allocation2 + $0x6d4] sm:$0xf0]  ;;  %v3492_v50 = vld [vmem:[#allocation2 + $0x7c8] sm:$0xf]  ;;  %v3093_v0 = vor.u32 %v3825_v56, %v3092_v55 }
  0xaa   :  { %1914 = vmatpush.bf16.msra.mxu3 %v2933_v54  ;;  %v3365_v54 = vor.u32 %v3893_v49, %v3364_v48  ;;  %v3493_v58 = vor.u32 %v3925_v51, %v3492_v50  ;;  %v3857_v59 = vld [vmem:[#allocation2 + $0x5b4] sm:$0xf0]  ;;  %v3076_v3 = vld [vmem:[#allocation2 + $0x488] sm:$0xf] }
  0xab   :  { %1876 = vmatpush.bf16.msra.mxu0 %v2533_v60  ;;  %v3348_v60 = vld [vmem:[#allocation2 + $0x6a8] sm:$0xf]  ;;  %v3921_v63 = vld [vmem:[#allocation2 + $0x7b4] sm:$0xf0]  ;;  %v3221_v1 = vor.u32 %v3857_v59, %v3220_v57 }
  0xac   :  { %v3821_v4 = vld [vmem:[#allocation2 + $0x494] sm:$0xf0]  ;;  %v3204_v5 = vld [vmem:[#allocation2 + $0x588] sm:$0xf] }
  0xad   :  { %1889 = vmatpush.bf16.msra.mxu1 %v2661_v61  ;;  %1902 = vmatpush.bf16.msra.mxu2 %v2789_v62  ;;  %v3889_v61 = vld [vmem:[#allocation2 + $0x6b4] sm:$0xf0]  ;;  %v3476_v62 = vld [vmem:[#allocation2 + $0x7a8] sm:$0xf] }
  0xae   :  { %1915 = vmatpush.bf16.msra.mxu3 %v2917_v2  ;;  %v3349_v2 = vor.u32 %v3889_v61, %v3348_v60  ;;  %v3477_v6 = vor.u32 %v3921_v63, %v3476_v62  ;;  %v3853_v7 = vld [vmem:[#allocation2 + $0x594] sm:$0xf0]  ;;  %v3460_v10 = vld [vmem:[#allocation2 + $0x788] sm:$0xf] }
  0xaf   :  { %1877 = vmatpush.bf16.msra.mxu0 %v2517_v8  ;;  %v3332_v8 = vld [vmem:[#allocation2 + $0x688] sm:$0xf]  ;;  %v3885_v9 = vld [vmem:[#allocation2 + $0x694] sm:$0xf0]  ;;  %v3205_v14 = vor.u32 %v3853_v7, %v3204_v5 }
  0xb0   :  { %v3060_v13 = vld [vmem:[#allocation2 + $0x468] sm:$0xf]  ;;  %v3333_v15 = vor.u32 %v3885_v9, %v3332_v8  ;;  %v3849_v21 = vld [vmem:[#allocation2 + $0x574] sm:$0xf0] }
  0xb1   :  { %1890 = vmatpush.bf16.msra.mxu1 %v2645_v11  ;;  %1903 = vmatpush.bf16.msra.mxu2 %v2773_v12  ;;  %v3917_v11 = vld [vmem:[#allocation2 + $0x794] sm:$0xf0]  ;;  %v3077_v12 = vor.u32 %v3821_v4, %v3076_v3  ;;  %v3188_v17 = vld [vmem:[#allocation2 + $0x568] sm:$0xf] }
  0xb2   :  { %1916 = vmatpush.bf16.msra.mxu3 %v2901_v16  ;;  %v3817_v16 = vld [vmem:[#allocation2 + $0x474] sm:$0xf0]  ;;  %v3461_v23 = vor.u32 %v3917_v11, %v3460_v10  ;;  %v3316_v24 = vld [vmem:[#allocation2 + $0x668] sm:$0xf] }
  0xb3   :  { %1878 = vmatpush.bf16.msra.mxu0 %v2501_v27  ;;  %v3881_v25 = vld [vmem:[#allocation2 + $0x674] sm:$0xf0]  ;;  %v3444_v27 = vld [vmem:[#allocation2 + $0x768] sm:$0xf]  ;;  %v3061_v29 = vor.u32 %v3817_v16, %v3060_v13  ;;  %v3703_v13 = vld [vmem:[#allocation2 + $0xec] sm:$0xf] }
  0xb4   :  { %v3913_v28 = vld [vmem:[#allocation2 + $0x774] sm:$0xf0]  ;;  %v3044_v30 = vld [vmem:[#allocation2 + $0x448] sm:$0xf] }
  0xb5   :  { %1891 = vmatpush.bf16.msra.mxu1 %v2629_v31  ;;  %1904 = vmatpush.bf16.msra.mxu2 %v2757_v32  ;;  %v3189_v31 = vor.u32 %v3849_v21, %v3188_v17  ;;  %v3317_v32 = vor.u32 %v3881_v25, %v3316_v24  ;;  %v3813_v33 = vld [vmem:[#allocation2 + $0x454] sm:$0xf0]  ;;  %v3172_v34 = vld [vmem:[#allocation2 + $0x548] sm:$0xf]  ;;  %v2742_v17 = vld [vmem:[#allocation2 + $0x1f8] sm:$0xf0] }
  0xb6   :  { %1917 = vmatpush.bf16.msra.mxu3 %v2885_v35  ;;  %1879 = vmatmul.bf16.vlgmr.msra.gmra.mxu0 %v4150_v19  ;;  %v347_v35 = vperm.slane %v4193_v26, 0  ;;  %v3877_v40 = vld [vmem:[#allocation2 + $0x654] sm:$0xf0]  ;;  %v3428_v43 = vld [vmem:[#allocation2 + $0x748] sm:$0xf] }
  0xb7   :  { %1923 = vmatpush.bf16.msrb.mxu0 %v3125_v36  ;;  %v3445_v36 = vor.u32 %v3913_v28, %v3444_v27  ;;  %v3909_v45 = vld [vmem:[#allocation2 + $0x754] sm:$0xf0]  ;;  %v3028_v50 = vld [vmem:[#allocation2 + $0x428] sm:$0xf]  ;;  %v3767_v21 = vld [vmem:[#allocation2 + $0x2ec] sm:$0xf] }
  0xb8   :  { %1905 = vmatmul.bf16.vlgmr.msra.gmra.mxu2 %v4148_v18  ;;  %1892 = vmatmul.bf16.vlgmr.msra.gmra.mxu1 %v4154_v22  ;;  %v3809_v51 = vld [vmem:[#allocation2 + $0x434] sm:$0xf0]  ;;  %v3429_v55 = vor.u32 %v3909_v45, %v3428_v43  ;;  %v3284_v57 = vld [vmem:[#allocation2 + $0x628] sm:$0xf]  ;;  %v2726_v43 = vld [vmem:[#allocation2 + $0x1d8] sm:$0xf0] }
  0xb9   :  { %1936 = vmatpush.bf16.msrb.mxu1 %v3253_v37  ;;  %1949 = vmatpush.bf16.msrb.mxu2 %v3381_v39  ;;  %v3845_v37 = vld [vmem:[#allocation2 + $0x554] sm:$0xf0]  ;;  %v3300_v39 = vld [vmem:[#allocation2 + $0x648] sm:$0xf]  ;;  %v3029_v62 = vor.u32 %v3809_v51, %v3028_v50  ;;  %v3763_v45 = vld [vmem:[#allocation2 + $0x2cc] sm:$0xf] }
  0xba   :  { %1962 = vmatpush.bf16.msrb.mxu3 %v3509_v46  ;;  %v3045_v46 = vor.u32 %v3813_v33, %v3044_v30  ;;  %v3173_v48 = vor.u32 %v3845_v37, %v3172_v34  ;;  %v3301_v49 = vor.u32 %v3877_v40, %v3300_v39  ;;  %v3841_v56 = vld [vmem:[#allocation2 + $0x534] sm:$0xf0]  ;;  %v3412_v59 = vld [vmem:[#allocation2 + $0x728] sm:$0xf]  ;;  %v2998_v30 = vld [vmem:[#allocation2 + $0x3f8] sm:$0xf0] }
  0xbb   :  { %1918 = vmatmul.bf16.vlgmr.msra.gmra.mxu3 %v4152_v20  ;;  %1924 = vmatpush.bf16.msrb.mxu0 %v3109_v52  ;;  %v3156_v52 = vld [vmem:[#allocation2 + $0x528] sm:$0xf]  ;;  %v3905_v60 = vld [vmem:[#allocation2 + $0x734] sm:$0xf0]  ;;  %v2598_v37 = vld [vmem:[#allocation2 + $0xd8] sm:$0xf0] }
  0xbc   :  { %v3012_v63 = vld [vmem:[#allocation2 + $0x408] sm:$0xf]  ;;  %v3837_v4 = vld [vmem:[#allocation2 + $0x514] sm:$0xf0]  ;;  %v3413_v7 = vor.u32 %v3905_v60, %v3412_v59  ;;  %v3731_v39 = vld [vmem:[#allocation2 + $0x1cc] sm:$0xf] }
  0xbd   :  { %1937 = vmatpush.bf16.msrb.mxu1 %v3237_v53  ;;  %1950 = vmatpush.bf16.msrb.mxu2 %v3365_v54  ;;  %v3140_v3 = vld [vmem:[#allocation2 + $0x508] sm:$0xf]  ;;  %v3869_v8 = vld [vmem:[#allocation2 + $0x614] sm:$0xf0]  ;;  %v3759_v59 = vld [vmem:[#allocation2 + $0x2ac] sm:$0xf] }
  0xbe   :  { %1963 = vmatpush.bf16.msrb.mxu3 %v3493_v58  ;;  %v3873_v58 = vld [vmem:[#allocation2 + $0x634] sm:$0xf0]  ;;  %v3268_v5 = vld [vmem:[#allocation2 + $0x608] sm:$0xf]  ;;  %v3141_v27 = vor.u32 %v3837_v4, %v3140_v3  ;;  %v2838_v60 = vld [vmem:[#allocation2 + $0x2b8] sm:$0xf0] }
  0xbf   :  { %1925 = vmatpush.bf16.msrb.mxu0 %v3093_v0  ;;  %v3805_v0 = vld [vmem:[#allocation2 + $0x414] sm:$0xf0]  ;;  %v3396_v9 = vld [vmem:[#allocation2 + $0x708] sm:$0xf]  ;;  %v3269_v28 = vor.u32 %v3869_v8, %v3268_v5  ;;  %v2566_v3 = vld [vmem:[#allocation2 + $0x98] sm:$0xf0] }
  0xc0   :  { %v3901_v10 = vld [vmem:[#allocation2 + $0x714] sm:$0xf0]  ;;  %v3013_v16 = vor.u32 %v3805_v0, %v3012_v63  ;;  %v3723_v4 = vld [vmem:[#allocation2 + $0x18c] sm:$0xf]  ;;  %v2822_v8 = vld [vmem:[#allocation2 + $0x298] sm:$0xf0] }
  0xc1   :  { %1938 = vmatpush.bf16.msrb.mxu1 %v3221_v1  ;;  %1951 = vmatpush.bf16.msrb.mxu2 %v3349_v2  ;;  %v1672_v47 = vpop.f32.mrf.mxu0  ;;  %v1685_v54 = vpop.f32.mrf.mxu1  ;;  %v3157_v1 = vor.u32 %v3841_v56, %v3156_v52  ;;  %v3285_v2 = vor.u32 %v3873_v58, %v3284_v57  ;;  %v2729_v52 = vor.u32 %v3731_v39, %v2726_v43  ;;  %v3727_v56 = vld [vmem:[#allocation2 + $0x1ac] sm:$0xf]  ;;  %v2710_v58 = vld [vmem:[#allocation2 + $0x1b8] sm:$0xf0] }
  0xc2   :  { %1964 = vmatpush.bf16.msrb.mxu3 %v3477_v6  ;;  %v1673_v53 = vadd.f32 %v1672_v47, %v347_v35  ;;  %v1698_v6 = vpop.f32.mrf.mxu2  ;;  %v3795_v47 = vld [vmem:[#allocation2 + $0x3cc] sm:$0xf]  ;;  %v2713_v0 = vor.u32 %v3727_v56, %v2710_v58  ;;  %v2662_v43 = vld [vmem:[#allocation2 + $0x158] sm:$0xf0] }
  0xc3   :  { %1926 = vmatpush.bf16.msrb.mxu0 %v3077_v12  ;;  %v1711_v12 = vpop.f32.mrf.mxu3  ;;  %v3715_v39 = vld [vmem:[#allocation2 + $0x14c] sm:$0xf] }
  0xc4   :  { %v1686_v61 = vadd.f32 %v1685_v54, %v1673_v53  ;;  %v3695_v54 = vld [vmem:[#allocation2 + $0xac] sm:$0xf] }
  0xc5   :  { %1939 = vmatpush.bf16.msrb.mxu1 %v3205_v14  ;;  %1952 = vmatpush.bf16.msrb.mxu2 %v3333_v15  ;;  %v2614_v14 = vld [vmem:[#allocation2 + $0xf8] sm:$0xf0]  ;;  %v3735_v15 = vld [vmem:[#allocation2 + $0x1ec] sm:$0xf] }
  0xc6   :  { %1965 = vmatpush.bf16.msrb.mxu3 %v3461_v23  ;;  %v1699_v11 = vadd.f32 %v1698_v6, %v1686_v61  ;;  %v2870_v23 = vld [vmem:[#allocation2 + $0x2f8] sm:$0xf0]  ;;  %v2617_v33 = vor.u32 %v3703_v13, %v2614_v14  ;;  %v2745_v34 = vor.u32 %v3735_v15, %v2742_v17  ;;  %v3791_v61 = vld [vmem:[#allocation2 + $0x3ac] sm:$0xf] }
  0xc7   :  { %1927 = vmatpush.bf16.msrb.mxu0 %v3061_v29  ;;  %v3799_v29 = vld [vmem:[#allocation2 + $0x3ec] sm:$0xf]  ;;  %v2873_v35 = vor.u32 %v3767_v21, %v2870_v23  ;;  %v2694_v6 = vld [vmem:[#allocation2 + $0x198] sm:$0xf0] }
  0xc8   :  { %v4196_v24 = vadd.f32 %v1711_v12, %v1699_v11  ;;  %v3001_v40 = vor.u32 %v3799_v29, %v2998_v30  ;;  %v2697_v13 = vor.u32 %v3723_v4, %v2694_v6  ;;  %v3687_v15 = vld [vmem:[#allocation2 + $0x6c] sm:$0xf]  ;;  %v2806_v29 = vld [vmem:[#allocation2 + $0x278] sm:$0xf0] }
  0xc9   :  { %1940 = vmatpush.bf16.msrb.mxu1 %v3189_v31  ;;  %1953 = vmatpush.bf16.msrb.mxu2 %v3317_v32  ;;  %v1674_v25 = vpop.f32.mrf.mxu0  ;;  %v1687_v31 = vpop.f32.mrf.mxu1  ;;  %v3397_v32 = vor.u32 %v3901_v10, %v3396_v9  ;;  %v3787_v9 = vld [vmem:[#allocation2 + $0x38c] sm:$0xf]  ;;  %v2950_v10 = vld [vmem:[#allocation2 + $0x398] sm:$0xf0] }
  0xca   :  { %1966 = vmatpush.bf16.msrb.mxu3 %v3445_v36  ;;  %v3699_v36 = vld [vmem:[#allocation2 + $0xcc] sm:$0xf]  ;;  %v2953_v25 = vor.u32 %v3787_v9, %v2950_v10  ;;  %v2934_v31 = vld [vmem:[#allocation2 + $0x378] sm:$0xf0] }
  0xcb   :  { %1928 = vmatpush.bf16.msrb.mxu0 %v3045_v46  ;;  %v2854_v46 = vld [vmem:[#allocation2 + $0x2d8] sm:$0xf0]  ;;  %v2601_v50 = vor.u32 %v3699_v36, %v2598_v37  ;;  %v1713_v51 = vpop.f32.mrf.mxu3  ;;  %v3719_v17 = vld [vmem:[#allocation2 + $0x16c] sm:$0xf] }
  0xcc   :  { %v2857_v53 = vor.u32 %v3763_v45, %v2854_v46  ;;  %v3783_v30 = vld [vmem:[#allocation2 + $0x36c] sm:$0xf]  ;;  %v2534_v37 = vld [vmem:[#allocation2 + $0x58] sm:$0xf0] }
  0xcd   :  { %1941 = vmatpush.bf16.msrb.mxu1 %v3173_v48  ;;  %1954 = vmatpush.bf16.msrb.mxu2 %v3301_v49  ;;  %v2982_v48 = vld [vmem:[#allocation2 + $0x3d8] sm:$0xf0]  ;;  %v1700_v49 = vpop.f32.mrf.mxu2  ;;  %v3683_v36 = vld [vmem:[#allocation2 + $0x4c] sm:$0xf] }
  0xce   :  { %1967 = vmatpush.bf16.msrb.mxu3 %v3429_v55  ;;  %v2582_v55 = vld [vmem:[#allocation2 + $0xb8] sm:$0xf0]  ;;  %v2985_v57 = vor.u32 %v3795_v47, %v2982_v48  ;;  %v3747_v45 = vld [vmem:[#allocation2 + $0x24c] sm:$0xf]  ;;  %v2537_v51 = vor.u32 %v3683_v36, %v2534_v37 }
  0xcf   :  { %1929 = vmatpush.bf16.msrb.mxu0 %v3029_v62  ;;  %v2966_v62 = vld [vmem:[#allocation2 + $0x3b8] sm:$0xf0]  ;;  %v2585_v63 = vor.u32 %v3695_v54, %v2582_v55  ;;  %v3779_v49 = vld [vmem:[#allocation2 + $0x34c] sm:$0xf]  ;;  %v2665_v54 = vor.u32 %v3715_v39, %v2662_v43 }
  0xd0   :  { %v2969_v5 = vor.u32 %v3791_v61, %v2966_v62  ;;  %v2790_v46 = vld [vmem:[#allocation2 + $0x258] sm:$0xf0]  ;;  %v3679_v56 = vld [vmem:[#allocation2 + $0x2c] sm:$0xf] }
  0xd1   :  { %1942 = vmatpush.bf16.msrb.mxu1 %v3157_v1  ;;  %1955 = vmatpush.bf16.msrb.mxu2 %v3285_v2  ;;  %v2841_v1 = vor.u32 %v3759_v59, %v2838_v60  ;;  %v3691_v2 = vld [vmem:[#allocation2 + $0x8c] sm:$0xf]  ;;  %v2793_v55 = vor.u32 %v3747_v45, %v2790_v46  ;;  %v2646_v61 = vld [vmem:[#allocation2 + $0x138] sm:$0xf0] }
  0xd2   :  { %1968 = vmatpush.bf16.msrb.mxu3 %v3413_v7  ;;  %v3755_v7 = vld [vmem:[#allocation2 + $0x28c] sm:$0xf]  ;;  %v2569_v11 = vor.u32 %v3691_v2, %v2566_v3  ;;  %v2502_v4 = vld [vmem:[#allocation2 + $0x18] sm:$0xf0] }
  0xd3   :  { %1930 = vmatpush.bf16.msrb.mxu0 %v3013_v16  ;;  %v2825_v14 = vor.u32 %v3755_v7, %v2822_v8  ;;  %v2550_v16 = vld [vmem:[#allocation2 + $0x78] sm:$0xf0]  ;;  %v3711_v58 = vld [vmem:[#allocation2 + $0x12c] sm:$0xf] }
  0xd4   :  { %v3743_v62 = vld [vmem:[#allocation2 + $0x22c] sm:$0xf]  ;;  %v2630_v8 = vld [vmem:[#allocation2 + $0x118] sm:$0xf0] }
  0xd5   :  { %1943 = vmatpush.bf16.msrb.mxu1 %v3141_v27  ;;  %1956 = vmatpush.bf16.msrb.mxu2 %v3269_v28  ;;  %v1724_v12 = vpop.f32.mrf.mxu0  ;;  %v2678_v27 = vld [vmem:[#allocation2 + $0x178] sm:$0xf0]  ;;  %v3751_v28 = vld [vmem:[#allocation2 + $0x26c] sm:$0xf] }
  0xd6   :  { %1969 = vmatpush.bf16.msrb.mxu3 %v3397_v32  ;;  %1931 = vmatmul.bf16.vlgmr.msrb.gmra.mxu0 %v4168_v41  ;;  %v1725_v21 = vadd.f32 %v1724_v12, %v4196_v24  ;;  %v2937_v24 = vor.u32 %v3783_v30, %v2934_v31  ;;  %v3675_v3 = vld [vmem:[#allocation2 + $0xc] sm:$0xf]  ;;  %v2758_v12 = vld [vmem:[#allocation2 + $0x218] sm:$0xf0] }
  0xd7   :  { %1975 = vmatpush.bf16.msra.mxu0 %v2617_v33  ;;  %v1737_v23 = vpop.f32.mrf.mxu1  ;;  %v2553_v33 = vor.u32 %v3687_v15, %v2550_v16  ;;  %v3707_v7 = vld [vmem:[#allocation2 + $0x10c] sm:$0xf]  ;;  %v3110_v39 = vld [vmem:[#allocation2 + $0x4d8] sm:$0xf0] }
  0xd8   :  { %1957 = vmatmul.bf16.vlgmr.msrb.gmra.mxu2 %v4166_v38  ;;  %1944 = vmatmul.bf16.vlgmr.msrb.gmra.mxu1 %v4172_v44  ;;  %v1738_v32 = vadd.f32 %v1737_v23, %v1725_v21  ;;  %v3739_v9 = vld [vmem:[#allocation2 + $0x20c] sm:$0xf]  ;;  %v2505_v23 = vor.u32 %v3675_v3, %v2502_v4  ;;  %v3238_v43 = vld [vmem:[#allocation2 + $0x5d8] sm:$0xf0] }
  0xd9   :  { %1988 = vmatpush.bf16.msra.mxu1 %v2745_v34  ;;  %2001 = vmatpush.bf16.msra.mxu2 %v2873_v35  ;;  %v2681_v34 = vor.u32 %v3719_v17, %v2678_v27  ;;  %v2809_v35 = vor.u32 %v3751_v28, %v2806_v29  ;;  %v3831_v16 = vld [vmem:[#allocation2 + $0x4ec] sm:$0xf]  ;;  %v3126_v17 = vld [vmem:[#allocation2 + $0x4f8] sm:$0xf0]  ;;  %v2633_v29 = vor.u32 %v3707_v7, %v2630_v8 }
  0xda   :  { %2014 = vmatpush.bf16.msra.mxu3 %v3001_v40  ;;  %v3863_v21 = vld [vmem:[#allocation2 + $0x5ec] sm:$0xf]  ;;  %v3382_v28 = vld [vmem:[#allocation2 + $0x6f8] sm:$0xf0]  ;;  %v2761_v30 = vor.u32 %v3739_v9, %v2758_v12 }
  0xdb   :  { %1970 = vmatmul.bf16.vlgmr.msrb.gmra.mxu3 %v4170_v42  ;;  %1976 = vmatpush.bf16.msra.mxu0 %v2601_v50  ;;  %v1750_v40 = vpop.f32.mrf.mxu2  ;;  %v2918_v50 = vld [vmem:[#allocation2 + $0x358] sm:$0xf0]  ;;  %v3895_v27 = vld [vmem:[#allocation2 + $0x6ec] sm:$0xf] }
  0xdc   :  { %v1751_v47 = vadd.f32 %v1750_v40, %v1738_v32  ;;  %v2921_v60 = vor.u32 %v3779_v49, %v2918_v50  ;;  %v3927_v31 = vld [vmem:[#allocation2 + $0x7ec] sm:$0xf]  ;;  %v3510_v32 = vld [vmem:[#allocation2 + $0x7f8] sm:$0xf0]  ;;  %v3385_v36 = vor.u32 %v3895_v27, %v3382_v28 }
  0xdd   :  { %1989 = vmatpush.bf16.msra.mxu1 %v2729_v52  ;;  %2002 = vmatpush.bf16.msra.mxu2 %v2857_v53  ;;  %v1726_v53 = vpop.f32.mrf.mxu0  ;;  %v3827_v37 = vld [vmem:[#allocation2 + $0x4cc] sm:$0xf]  ;;  %v3366_v46 = vld [vmem:[#allocation2 + $0x6d8] sm:$0xf0] }
  0xde   :  { %2015 = vmatpush.bf16.msra.mxu3 %v2985_v57  ;;  %v1763_v48 = vpop.f32.mrf.mxu3  ;;  %v2518_v57 = vld [vmem:[#allocation2 + $0x38] sm:$0xf0]  ;;  %v3859_v40 = vld [vmem:[#allocation2 + $0x5cc] sm:$0xf]  ;;  %v3113_v49 = vor.u32 %v3827_v37, %v3110_v39 }
  0xdf   :  { %1977 = vmatpush.bf16.msra.mxu0 %v2585_v63  ;;  %v4203_v52 = vadd.f32 %v1763_v48, %v1751_v47  ;;  %v1739_v59 = vpop.f32.mrf.mxu1  ;;  %v2774_v63 = vld [vmem:[#allocation2 + $0x238] sm:$0xf0]  ;;  %v2521_v2 = vor.u32 %v3679_v56, %v2518_v57  ;;  %v3891_v45 = vld [vmem:[#allocation2 + $0x6cc] sm:$0xf]  ;;  %v3241_v50 = vor.u32 %v3859_v40, %v3238_v43 }
  0xe0   :  { %v2777_v6 = vor.u32 %v3743_v62, %v2774_v63  ;;  %v3923_v47 = vld [vmem:[#allocation2 + $0x7cc] sm:$0xf]  ;;  %v3494_v48 = vld [vmem:[#allocation2 + $0x7d8] sm:$0xf0] }
  0xe1   :  { %1990 = vmatpush.bf16.msra.mxu1 %v2713_v0  ;;  %2003 = vmatpush.bf16.msra.mxu2 %v2841_v1  ;;  %v3775_v0 = vld [vmem:[#allocation2 + $0x32c] sm:$0xf]  ;;  %v2902_v1 = vld [vmem:[#allocation2 + $0x338] sm:$0xf0]  ;;  %v3497_v56 = vor.u32 %v3923_v47, %v3494_v48 }
  0xe2   :  { %2016 = vmatpush.bf16.msra.mxu3 %v2969_v5  ;;  %v2649_v5 = vor.u32 %v3711_v58, %v2646_v61  ;;  %v3823_v53 = vld [vmem:[#allocation2 + $0x4ac] sm:$0xf]  ;;  %v3222_v57 = vld [vmem:[#allocation2 + $0x5b8] sm:$0xf0] }
  0xe3   :  { %1978 = vmatpush.bf16.msra.mxu0 %v2569_v11  ;;  %v1752_v10 = vpop.f32.mrf.mxu2  ;;  %v2905_v11 = vor.u32 %v3775_v0, %v2902_v1  ;;  %v3887_v58 = vld [vmem:[#allocation2 + $0x6ac] sm:$0xf]  ;;  %v3350_v59 = vld [vmem:[#allocation2 + $0x6b8] sm:$0xf0] }
  0xe4   :  { %v3478_v61 = vld [vmem:[#allocation2 + $0x7b8] sm:$0xf0]  ;;  %v3353_v0 = vor.u32 %v3887_v58, %v3350_v59  ;;  %v3819_v1 = vld [vmem:[#allocation2 + $0x48c] sm:$0xf]  ;;  %v348_v58 = vperm.slane %v4193_v26, 1 }
  0xe5   :  { %1991 = vmatpush.bf16.msra.mxu1 %v2697_v13  ;;  %2004 = vmatpush.bf16.msra.mxu2 %v2825_v14  ;;  %v3771_v13 = vld [vmem:[#allocation2 + $0x30c] sm:$0xf]  ;;  %v2886_v14 = vld [vmem:[#allocation2 + $0x318] sm:$0xf0] }
  0xe6   :  { %2017 = vmatpush.bf16.msra.mxu3 %v2953_v25  ;;  %v1765_v15 = vpop.f32.mrf.mxu3  ;;  %v3254_v25 = vld [vmem:[#allocation2 + $0x5f8] sm:$0xf0]  ;;  %v3915_v7 = vld [vmem:[#allocation2 + $0x78c] sm:$0xf] }
  0xe7   :  { %1979 = vmatpush.bf16.msra.mxu0 %v2553_v33  ;;  %v2889_v33 = vor.u32 %v3771_v13, %v2886_v14  ;;  %v3206_v4 = vld [vmem:[#allocation2 + $0x598] sm:$0xf0]  ;;  %v3815_v10 = vld [vmem:[#allocation2 + $0x46c] sm:$0xf] }
  0xe8   :  { %v3847_v12 = vld [vmem:[#allocation2 + $0x56c] sm:$0xf]  ;;  %v3190_v15 = vld [vmem:[#allocation2 + $0x578] sm:$0xf0] }
  0xe9   :  { %1992 = vmatpush.bf16.msra.mxu1 %v2681_v34  ;;  %2005 = vmatpush.bf16.msra.mxu2 %v2809_v35  ;;  %v3129_v34 = vor.u32 %v3831_v16, %v3126_v17  ;;  %v3257_v35 = vor.u32 %v3863_v21, %v3254_v25  ;;  %v3879_v16 = vld [vmem:[#allocation2 + $0x66c] sm:$0xf]  ;;  %v3318_v17 = vld [vmem:[#allocation2 + $0x678] sm:$0xf0]  ;;  %v3193_v27 = vor.u32 %v3847_v12, %v3190_v15  ;;  %v3936_v15 = vld [vmem:[#allocation4 + $0x30] sm:$0xff] }
  0xea   :  { %2018 = vmatpush.bf16.msra.mxu3 %v2937_v24  ;;  %v3513_v24 = vor.u32 %v3927_v31, %v3510_v32  ;;  %v3911_v21 = vld [vmem:[#allocation2 + $0x76c] sm:$0xf]  ;;  %v3321_v28 = vor.u32 %v3879_v16, %v3318_v17  ;;  %v3430_v40 = vld [vmem:[#allocation2 + $0x758] sm:$0xf0] }
  0xeb   :  { %1980 = vmatpush.bf16.msra.mxu0 %v2537_v51  ;;  %v3369_v51 = vor.u32 %v3891_v45, %v3366_v46  ;;  %v3843_v31 = vld [vmem:[#allocation2 + $0x54c] sm:$0xf]  ;;  %v3030_v48 = vld [vmem:[#allocation2 + $0x438] sm:$0xf0] }
  0xec   :  { %v3907_v39 = vld [vmem:[#allocation2 + $0x74c] sm:$0xf]  ;;  %v3945_v12 = vld [vmem:[#allocation4 + $0x78] sm:$0xff] }
  0xed   :  { %1993 = vmatpush.bf16.msra.mxu1 %v2665_v54  ;;  %2006 = vmatpush.bf16.msra.mxu2 %v2793_v55  ;;  %v3094_v54 = vld [vmem:[#allocation2 + $0x4b8] sm:$0xf0]  ;;  %v3855_v55 = vld [vmem:[#allocation2 + $0x5ac] sm:$0xf] }
  0xee   :  { %2019 = vmatpush.bf16.msra.mxu3 %v2921_v60  ;;  %v3919_v60 = vld [vmem:[#allocation2 + $0x7ac] sm:$0xf]  ;;  %v3097_v62 = vor.u32 %v3823_v53, %v3094_v54  ;;  %v3225_v63 = vor.u32 %v3855_v55, %v3222_v57  ;;  %v3158_v53 = vld [vmem:[#allocation2 + $0x538] sm:$0xf0] }
  0xef   :  { %1981 = vmatpush.bf16.msra.mxu0 %v2521_v2  ;;  %v3078_v2 = vld [vmem:[#allocation2 + $0x498] sm:$0xf0]  ;;  %v3481_v3 = vor.u32 %v3919_v60, %v3478_v61  ;;  %v3807_v47 = vld [vmem:[#allocation2 + $0x42c] sm:$0xf] }
  0xf0   :  { %v3871_v54 = vld [vmem:[#allocation2 + $0x62c] sm:$0xf]  ;;  %v3286_v55 = vld [vmem:[#allocation2 + $0x638] sm:$0xf0]  ;;  %v3033_v59 = vor.u32 %v3807_v47, %v3030_v48 }
  0xf1   :  { %1994 = vmatpush.bf16.msra.mxu1 %v2649_v5  ;;  %2007 = vmatpush.bf16.msra.mxu2 %v2777_v6  ;;  %v3883_v5 = vld [vmem:[#allocation2 + $0x68c] sm:$0xf]  ;;  %v3334_v6 = vld [vmem:[#allocation2 + $0x698] sm:$0xf0]  ;;  %v3289_v61 = vor.u32 %v3871_v54, %v3286_v55 }
  0xf2   :  { %2020 = vmatpush.bf16.msra.mxu3 %v2905_v11  ;;  %v3337_v9 = vor.u32 %v3883_v5, %v3334_v6  ;;  %v3062_v11 = vld [vmem:[#allocation2 + $0x478] sm:$0xf0]  ;;  %v3899_v6 = vld [vmem:[#allocation2 + $0x70c] sm:$0xf] }
  0xf3   :  { %1982 = vmatpush.bf16.msra.mxu0 %v2505_v23  ;;  %v4209_v8 = vpop.f32.mrf.mxu0  ;;  %v3446_v23 = vld [vmem:[#allocation2 + $0x778] sm:$0xf0]  ;;  %v3065_v25 = vor.u32 %v3815_v10, %v3062_v11 }
  0xf4   :  { %v3414_v57 = vld [vmem:[#allocation2 + $0x738] sm:$0xf0] }
  0xf5   :  { %1995 = vmatpush.bf16.msra.mxu1 %v2633_v29  ;;  %2008 = vmatpush.bf16.msra.mxu2 %v2761_v30  ;;  %v4211_v13 = vpop.f32.mrf.mxu1  ;;  %v3811_v29 = vld [vmem:[#allocation2 + $0x44c] sm:$0xf]  ;;  %v3046_v30 = vld [vmem:[#allocation2 + $0x458] sm:$0xf0] }
  0xf6   :  { %2021 = vmatpush.bf16.msra.mxu3 %v2889_v33  ;;  %1983 = vmatmul.bf16.vlgmr.msra.gmra.mxu0 %v4150_v19  ;;  %v3462_v19 = vld [vmem:[#allocation2 + $0x798] sm:$0xf0]  ;;  %v3449_v33 = vor.u32 %v3911_v21, %v3446_v23  ;;  %v3943_v23 = vld [vmem:[#allocation4 + $0x68] sm:$0xff] }
  0xf7   :  { %2027 = vmatpush.bf16.msrb.mxu0 %v3129_v34  ;;  %v3465_v14 = vor.u32 %v3915_v7, %v3462_v19  ;;  %v3174_v34 = vld [vmem:[#allocation2 + $0x558] sm:$0xf0]  ;;  %v1777_v19 = vadd.f32 %v4209_v8, %v348_v58  ;;  %v3944_v8 = vld [vmem:[#allocation4 + $0x70] sm:$0xff] }
  0xf8   :  { %2009 = vmatmul.bf16.vlgmr.msra.gmra.mxu2 %v4148_v18  ;;  %1996 = vmatmul.bf16.vlgmr.msra.gmra.mxu1 %v4154_v22  ;;  %v3851_v18 = vld [vmem:[#allocation2 + $0x58c] sm:$0xf]  ;;  %v3177_v45 = vor.u32 %v3843_v31, %v3174_v34  ;;  %v3398_v7 = vld [vmem:[#allocation2 + $0x718] sm:$0xf0]  ;;  %v3932_v34 = vld [vmem:[#allocation4 + $0x10] sm:$0xff] }
  0xf9   :  { %2040 = vmatpush.bf16.msrb.mxu1 %v3257_v35  ;;  %2053 = vmatpush.bf16.msrb.mxu2 %v3385_v36  ;;  %v3209_v22 = vor.u32 %v3851_v18, %v3206_v4  ;;  %v3875_v35 = vld [vmem:[#allocation2 + $0x64c] sm:$0xf]  ;;  %v3302_v36 = vld [vmem:[#allocation2 + $0x658] sm:$0xf0]  ;;  %v3401_v10 = vor.u32 %v3899_v6, %v3398_v7  ;;  %v3948_v58 = vld [vmem:[#allocation4 + $0x90] sm:$0xff] }
  0xfa   :  { %2066 = vmatpush.bf16.msrb.mxu3 %v3513_v24  ;;  %v3049_v24 = vor.u32 %v3811_v29, %v3046_v30  ;;  %v3305_v46 = vor.u32 %v3875_v35, %v3302_v36  ;;  %v3142_v18 = vld [vmem:[#allocation2 + $0x518] sm:$0xf0]  ;;  %v3952_v30 = vld [vmem:[#allocation4 + $0xb0] sm:$0xff] }
  0xfb   :  { %2022 = vmatmul.bf16.vlgmr.msra.gmra.mxu3 %v4152_v20  ;;  %2028 = vmatpush.bf16.msrb.mxu0 %v3113_v49  ;;  %v3081_v20 = vor.u32 %v3819_v1, %v3078_v2  ;;  %v4213_v32 = vpop.f32.mrf.mxu2  ;;  %v1778_v43 = vpop.f32.mrf.mxu0  ;;  %v3839_v49 = vld [vmem:[#allocation2 + $0x52c] sm:$0xf]  ;;  %v3270_v4 = vld [vmem:[#allocation2 + $0x618] sm:$0xf0] }
  0xfc   :  { %v3161_v60 = vor.u32 %v3839_v49, %v3158_v53  ;;  %v3937_v11 = vld [vmem:[#allocation4 + $0x38] sm:$0xff]  ;;  %v3931_v43 = vld [vmem:[#allocation4 + $0x8] sm:$0xff]  ;;  %v3938_v53 = vld [vmem:[#allocation4 + $0x40] sm:$0xff] }
  0xfd   :  { %2041 = vmatpush.bf16.msrb.mxu1 %v3241_v50  ;;  %2054 = vmatpush.bf16.msrb.mxu2 %v3369_v51  ;;  %v1791_v50 = vpop.f32.mrf.mxu1  ;;  %v3433_v51 = vor.u32 %v3907_v39, %v3430_v40  ;;  %v3953_v16 = vld [vmem:[#allocation4 + $0xb8] sm:$0xff]  ;;  %v3940_v39 = vld [vmem:[#allocation4 + $0x50] sm:$0xff] }
  0xfe   :  { %2067 = vmatpush.bf16.msrb.mxu3 %v3497_v56  ;;  %v4215_v37 = vpop.f32.mrf.mxu3  ;;  %v3903_v56 = vld [vmem:[#allocation2 + $0x72c] sm:$0xf]  ;;  %v3930_v50 = vld [vmem:[#allocation4] sm:$0xff] }
  0xff   :  { %2029 = vmatpush.bf16.msrb.mxu0 %v3097_v62  ;;  %v3803_v62 = vld [vmem:[#allocation2 + $0x40c] sm:$0xf]  ;;  %v3417_v2 = vor.u32 %v3903_v56, %v3414_v57 }
 0x101   :  { %2042 = vmatpush.bf16.msrb.mxu1 %v3225_v63  ;;  %2055 = vmatpush.bf16.msrb.mxu2 %v3353_v0  ;;  %v3014_v63 = vld [vmem:[#allocation2 + $0x418] sm:$0xf0]  ;;  %v3835_v0 = vld [vmem:[#allocation2 + $0x50c] sm:$0xf] }
 0x102   :  { %2068 = vmatpush.bf16.msrb.mxu3 %v3481_v3  ;;  %v3867_v3 = vld [vmem:[#allocation2 + $0x60c] sm:$0xf] }
 0x103   :  { %2030 = vmatpush.bf16.msrb.mxu0 %v3081_v20  ;;  %v1804_v1 = vpop.f32.mrf.mxu2  ;;  %v3017_v20 = vor.u32 %v3803_v62, %v3014_v63 }
 0x105   :  { %2043 = vmatpush.bf16.msrb.mxu1 %v3209_v22  ;;  %2056 = vmatpush.bf16.msrb.mxu2 %v3337_v9  ;;  %v3145_v22 = vor.u32 %v3835_v0, %v3142_v18  ;;  %v3273_v9 = vor.u32 %v3867_v3, %v3270_v4  ;;  %v3946_v0 = vld [vmem:[#allocation4 + $0x80] sm:$0xff] }
 0x106   :  { %2069 = vmatpush.bf16.msrb.mxu3 %v3465_v14  ;;  %v1817_v5 = vpop.f32.mrf.mxu3  ;;  %v1790_v14 = vadd.f32 %v4211_v13, %v1777_v19  ;;  %v3935_v13 = vld [vmem:[#allocation4 + $0x28] sm:$0xff] }
 0x107   :  { %2031 = vmatpush.bf16.msrb.mxu0 %v3065_v25  ;;  %v3934_v25 = vld [vmem:[#allocation4 + $0x20] sm:$0xff] }
 0x108   :  { %v1803_v17 = vadd.f32 %v4213_v32, %v1790_v14 }
 0x109   :  { %2044 = vmatpush.bf16.msrb.mxu1 %v3193_v27  ;;  %2057 = vmatpush.bf16.msrb.mxu2 %v3321_v28 }
 0x10a   :  { %2070 = vmatpush.bf16.msrb.mxu3 %v3449_v33  ;;  %v1816_v21 = vadd.f32 %v4215_v37, %v1803_v17  ;;  %v3951_v33 = vld [vmem:[#allocation4 + $0xa8] sm:$0xff]  ;;  %v3950_v37 = vld [vmem:[#allocation4 + $0xa0] sm:$0xff] }
 0x10b   :  { %2032 = vmatpush.bf16.msrb.mxu0 %v3049_v24 }
 0x10d   :  { %2045 = vmatpush.bf16.msrb.mxu1 %v3177_v45  ;;  %2058 = vmatpush.bf16.msrb.mxu2 %v3305_v46  ;;  %v3949_v45 = vld [vmem:[#allocation4 + $0x98] sm:$0xff]  ;;  %v3939_v46 = vld [vmem:[#allocation4 + $0x48] sm:$0xff] }
 0x10e   :  { %2071 = vmatpush.bf16.msrb.mxu3 %v3433_v51  ;;  %v2079_v51 = vmax.f32 %v4203_v52, 0.0  ;;  %v349_v52 = vperm.slane %v4193_v26, 2 }
 0x10f   :  { %2033 = vmatpush.bf16.msrb.mxu0 %v3033_v59 }
 0x110   :  { %v2083_v55 = vpack.c.bf16 %v2079_v51, %v2079_v51 }
 0x111   :  { %2046 = vmatpush.bf16.msrb.mxu1 %v3161_v60  ;;  %2059 = vmatpush.bf16.msrb.mxu2 %v3289_v61  ;;  %v3947_v61 = vld [vmem:[#allocation4 + $0x88] sm:$0xff] }
 0x112   :  { %2072 = vmatpush.bf16.msrb.mxu3 %v3417_v2 }
 0x113   :  { %2034 = vmatpush.bf16.msrb.mxu0 %v3017_v20  ;;  %v1828_v27 = vpop.f32.mrf.mxu0 }
 0x114   :  { %v1829_v28 = vadd.f32 %v1828_v27, %v1816_v21  ;;  %v3957_v27 = vld [vmem:[#allocation4 + $0xd8] sm:$0xff] }
 0x115   :  { %2047 = vmatpush.bf16.msrb.mxu1 %v3145_v22  ;;  %2060 = vmatpush.bf16.msrb.mxu2 %v3273_v9  ;;  %v1841_v29 = vpop.f32.mrf.mxu1 }
 0x116   :  { %2073 = vmatpush.bf16.msrb.mxu3 %v3401_v10  ;;  %2035 = vmatmul.bf16.vlgmr.msrb.gmra.mxu0 %v4168_v41  ;;  %v3942_v41 = vld [vmem:[#allocation4 + $0x60] sm:$0xff] }
 0x117   :  { %2347 = vmatpush.bf16.msra.mxu0 %v3937_v11  ;;  %v3961_v11 = vld [vmem:[#allocation4 + $0xf8] sm:$0xff] }
 0x118   :  { %2048 = vmatmul.bf16.vlgmr.msrb.gmra.mxu1 %v4172_v44  ;;  %2061 = vmatmul.bf16.vlgmr.msrb.gmra.mxu2 %v4166_v38  ;;  %v3933_v38 = vld [vmem:[#allocation4 + $0x18] sm:$0xff]  ;;  %v1842_v44 = vadd.f32 %v1841_v29, %v1829_v28 }
 0x119   :  { %2360 = vmatpush.bf16.msra.mxu1 %v3945_v12  ;;  %2074 = vmatmul.bf16.vlgmr.msrb.gmra.mxu3 %v4170_v42  ;;  %v3941_v42 = vld [vmem:[#allocation4 + $0x58] sm:$0xff] }
 0x11a   :  { %2373 = vmatpush.bf16.msra.mxu2 %v3953_v16  ;;  %2386 = vmatpush.bf16.msra.mxu3 %v3961_v11 }
 0x11b   :  { %2348 = vmatpush.bf16.msra.mxu0 %v3936_v15  ;;  %v1854_v31 = vpop.f32.mrf.mxu2  ;;  %v1830_v36 = vpop.f32.mrf.mxu0  ;;  %v3960_v15 = vld [vmem:[#allocation4 + $0xf0] sm:$0xff] }
 0x11c   :  { %v1855_v35 = vadd.f32 %v1854_v31, %v1842_v44  ;;  %v3954_v31 = vld [vmem:[#allocation4 + $0xc0] sm:$0xff] }
 0x11d   :  { %2361 = vmatpush.bf16.msra.mxu1 %v3944_v8  ;;  %v1843_v40 = vpop.f32.mrf.mxu1 }
 0x11e   :  { %2374 = vmatpush.bf16.msra.mxu2 %v3952_v30  ;;  %v1867_v32 = vpop.f32.mrf.mxu3  ;;  %2387 = vmatpush.bf16.msra.mxu3 %v3960_v15  ;;  %v3955_v30 = vld [vmem:[#allocation4 + $0xc8] sm:$0xff] }
 0x11f   :  { %2349 = vmatpush.bf16.msra.mxu0 %v3935_v13  ;;  %v1868_v24 = vadd.f32 %v1867_v32, %v1855_v35  ;;  %v3959_v13 = vld [vmem:[#allocation4 + $0xe8] sm:$0xff] }
 0x121   :  { %2362 = vmatpush.bf16.msra.mxu1 %v3943_v23  ;;  %v2080_v49 = vmax.f32 %v1868_v24, 0.0 }
 0x122   :  { %2375 = vmatpush.bf16.msra.mxu2 %v3951_v33  ;;  %2388 = vmatpush.bf16.msra.mxu3 %v3959_v13  ;;  %v350_v33 = vperm.slane %v4193_v26, 3 }
 0x123   :  { %2350 = vmatpush.bf16.msra.mxu0 %v3934_v25  ;;  %v1856_v47 = vpop.f32.mrf.mxu2  ;;  %v2084_v54 = vpack.c.bf16 %v2080_v49, %v2080_v49  ;;  %v3958_v25 = vld [vmem:[#allocation4 + $0xe0] sm:$0xff] }
 0x125   :  { %2363 = vmatpush.bf16.msra.mxu1 %v3942_v41  ;;  %v3956_v41 = vld [vmem:[#allocation4 + $0xd0] sm:$0xff] }
 0x126   :  { %2376 = vmatpush.bf16.msra.mxu2 %v3950_v37  ;;  %v1869_v48 = vpop.f32.mrf.mxu3  ;;  %2389 = vmatpush.bf16.msra.mxu3 %v3958_v25 }
 0x127   :  { %2351 = vmatpush.bf16.msra.mxu0 %v3933_v38 }
 0x129   :  { %2364 = vmatpush.bf16.msra.mxu1 %v3941_v42 }
 0x12a   :  { %2377 = vmatpush.bf16.msra.mxu2 %v3949_v45  ;;  %2390 = vmatpush.bf16.msra.mxu3 %v3957_v27 }
 0x12b   :  { %2352 = vmatpush.bf16.msra.mxu0 %v3932_v34 }
 0x12d   :  { %2365 = vmatpush.bf16.msra.mxu1 %v3940_v39 }
 0x12e   :  { %2378 = vmatpush.bf16.msra.mxu2 %v3948_v58  ;;  %2391 = vmatpush.bf16.msra.mxu3 %v3956_v41 }
 0x12f   :  { %2353 = vmatpush.bf16.msra.mxu0 %v3931_v43 }
 0x131   :  { %2366 = vmatpush.bf16.msra.mxu1 %v3939_v46 }
 0x132   :  { %2379 = vmatpush.bf16.msra.mxu2 %v3947_v61  ;;  %2392 = vmatpush.bf16.msra.mxu3 %v3955_v30 }
 0x133   :  { %2354 = vmatpush.bf16.msra.mxu0 %v3930_v50  ;;  %v1880_v56 = vpop.f32.mrf.mxu0 }
 0x134   :  { %v1881_v18 = vadd.f32 %v1880_v56, %v349_v52  ;;  %v3968_v52 = vld [vmem:[%s4261_s5 + $0x30] sm:$0xff] }
 0x135   :  { %2367 = vmatpush.bf16.msra.mxu1 %v3938_v53  ;;  %v1893_v57 = vpop.f32.mrf.mxu1 }
 0x136   :  { %2355 = vmatmul.bf16.vlgmr.msra.gmra.mxu0 %v2083_v55  ;;  %2380 = vmatpush.bf16.msra.mxu2 %v3946_v0  ;;  %v1894_v3 = vadd.f32 %v1893_v57, %v1881_v18  ;;  %v3978_v57 = vld [vmem:[#allocation6] ss:$0 sm:$0xff]  ;;  %v3969_v0 = vld [vmem:[%s4261_s5 + $0x38] sm:$0xff] }
 0x137   :  { %2393 = vmatpush.bf16.msra.mxu3 %v3954_v31  ;;  %2469 = vmatpush.bf16.msrb.mxu0 %v3969_v0  ;;  %v3965_v18 = vld [vmem:[%s4261_s5 + $0x18] sm:$0xff] }
 0x138   :  { %2368 = vmatmul.bf16.vlgmr.msra.gmra.mxu1 %v2084_v54 }
 0x13b   :  { %v1906_v59 = vpop.f32.mrf.mxu2  ;;  %v1882_v62 = vpop.f32.mrf.mxu0  ;;  %2470 = vmatpush.bf16.msrb.mxu0 %v3968_v52 }
 0x13c   :  { %v1907_v4 = vadd.f32 %v1906_v59, %v1894_v3  ;;  %v3964_v3 = vld [vmem:[%s4261_s5 + $0x10] sm:$0xff] }
 0x13d   :  { %v1895_v63 = vpop.f32.mrf.mxu1 }
 0x13e   :  { %v1919_v60 = vpop.f32.mrf.mxu3 }
 0x13f   :  { %v1920_v5 = vadd.f32 %v1919_v60, %v1907_v4 }
 0x143   :  { %v1908_v1 = vpop.f32.mrf.mxu2 }
 0x144   :  { %v3967_v1 = vld [vmem:[%s4261_s5 + $0x28] sm:$0xff] }
 0x145   :  { %2471 = vmatpush.bf16.msrb.mxu0 %v3967_v1 }
 0x146   :  { %v1921_v2 = vpop.f32.mrf.mxu3 }
 0x147   :  { %v3966_v2 = vld [vmem:[%s4261_s5 + $0x20] sm:$0xff] }
 0x149   :  { %2472 = vmatpush.bf16.msrb.mxu0 %v3966_v2 }
 0x14d   :  { %2473 = vmatpush.bf16.msrb.mxu0 %v3965_v18 }
 0x151   :  { %2474 = vmatpush.bf16.msrb.mxu0 %v3964_v3 }
 0x153   :  { %v1932_v6 = vpop.f32.mrf.mxu0 }
 0x154   :  { %v1933_v7 = vadd.f32 %v1932_v6, %v1920_v5  ;;  %v3963_v6 = vld [vmem:[%s4261_s5 + $0x8] sm:$0xff] }
 0x155   :  { %v1945_v19 = vpop.f32.mrf.mxu1  ;;  %2475 = vmatpush.bf16.msrb.mxu0 %v3963_v6 }
 0x156   :  { %v1946_v20 = vadd.f32 %v1945_v19, %v1933_v7  ;;  %v3962_v7 = vld [vmem:[%s4261_s5] sm:$0xff] }
 0x159   :  { %2476 = vmatpush.bf16.msrb.mxu0 %v3962_v7 }
 0x15b   :  { %v1958_v22 = vpop.f32.mrf.mxu2  ;;  %v1934_v14 = vpop.f32.mrf.mxu0 }
 0x15c   :  { %v1959_v9 = vadd.f32 %v1958_v22, %v1946_v20 }
 0x15d   :  { %v1947_v16 = vpop.f32.mrf.mxu1 }
 0x15e   :  { %v1971_v10 = vpop.f32.mrf.mxu3 }
 0x15f   :  { %v1972_v12 = vadd.f32 %v1971_v10, %v1959_v9 }
 0x161   :  { %v2081_v8 = vmax.f32 %v1972_v12, 0.0  ;;  %v3979_v12 = vld [vmem:[#allocation7] ss:$0 sm:$0xff] }
 0x163   :  { %v2085_v17 = vpack.c.bf16 %v2081_v8, %v2081_v8  ;;  %v1960_v21 = vpop.f32.mrf.mxu2 }
 0x165   :  { %2381 = vmatmul.bf16.vlgmr.msra.gmra.mxu2 %v2085_v17 }
 0x166   :  { %v1973_v23 = vpop.f32.mrf.mxu3 }
 0x173   :  { %v1984_v28 = vpop.f32.mrf.mxu0 }
 0x174   :  { %v1985_v36 = vadd.f32 %v1984_v28, %v350_v33 }
 0x175   :  { %v1997_v29 = vpop.f32.mrf.mxu1 }
 0x176   :  { %v1998_v37 = vadd.f32 %v1997_v29, %v1985_v36 }
 0x17b   :  { %v2010_v38 = vpop.f32.mrf.mxu2  ;;  %v1986_v42 = vpop.f32.mrf.mxu0 }
 0x17c   :  { %v2011_v39 = vadd.f32 %v2010_v38, %v1998_v37 }
 0x17d   :  { %v1999_v32 = vpop.f32.mrf.mxu1 }
 0x17e   :  { %v2023_v44 = vpop.f32.mrf.mxu3 }
 0x17f   :  { %v2024_v40 = vadd.f32 %v2023_v44, %v2011_v39 }
 0x183   :  { %v2012_v34 = vpop.f32.mrf.mxu2 }
 0x186   :  { %v2025_v35 = vpop.f32.mrf.mxu3 }
 0x193   :  { %v2036_v24 = vpop.f32.mrf.mxu0 }
 0x194   :  { %v2037_v45 = vadd.f32 %v2036_v24, %v2024_v40 }
 0x195   :  { %v2049_v43 = vpop.f32.mrf.mxu1 }
 0x196   :  { %v2050_v46 = vadd.f32 %v2049_v43, %v2037_v45 }
 0x19b   :  { %v2062_v47 = vpop.f32.mrf.mxu2  ;;  %v2038_v50 = vpop.f32.mrf.mxu0 }
 0x19c   :  { %v2063_v48 = vadd.f32 %v2062_v47, %v2050_v46  ;;  %v2075_v49 = vpop.f32.mrf.mxu3 }
 0x19d   :  { %v2051_v51 = vpop.f32.mrf.mxu1 }
 0x19e   :  { %v2076_v53 = vadd.f32 %v2075_v49, %v2063_v48 }
 0x1a0   :  { %v2082_v54 = vmax.f32 %v2076_v53, 0.0 }
 0x1a2   :  { %v2086_v55 = vpack.c.bf16 %v2082_v54, %v2082_v54 }
 0x1a3   :  { %v2064_v56 = vpop.f32.mrf.mxu2 }
 0x1a4   :  { %v2077_v26 = vpop.f32.mrf.mxu3  ;;  %2394 = vmatmul.bf16.vlgmr.msra.gmra.mxu3 %v2086_v55 }
 0x1b3   :  { %v2356_v58 = vpop.f32.mrf.mxu0 }
 0x1b4   :  { %v2357_v59 = vadd.f32 %v3978_v57, %v2356_v58 }
 0x1b5   :  { %v2369_v60 = vpop.f32.mrf.mxu1 }
 0x1b6   :  { %v2370_v61 = vadd.f32 %v2369_v60, %v2357_v59 }
 0x1bb   :  { %v2358_v62 = vpop.f32.mrf.mxu0 }
 0x1bd   :  { %v2371_v63 = vpop.f32.mrf.mxu1 }
 0x1e8   :  { %v2382_v4 = vpop.f32.mrf.mxu2 }
 0x1e9   :  { %v2383_v19 = vadd.f32 %v2382_v4, %v2370_v61 }
 0x1f0   :  { %v2384_v5 = vpop.f32.mrf.mxu2 }
 0x227   :  { %v2395_v20 = vpop.f32.mrf.mxu3 }
 0x228   :  { %v2396_v22 = vadd.f32 %v2395_v20, %v2383_v19 }
 0x22a   :  { %v2399_v9 = vmax.f32 %v2396_v22, 0.0 }
 0x22c   :  { %v2400_v10 = vpack.c.bf16 %v2399_v9, %v2399_v9 }
 0x22e   :  { %2477 = vmatmul.bf16.vlgmr.msrb.gmra.mxu0 %v2400_v10 }
 0x22f   :  { %v2397_v11 = vpop.f32.mrf.mxu3 }
 0x2ab   :  { %v2478_v14 = vpop.f32.mrf.mxu0 }
 0x2ac   :  { %v2479_v15 = vadd.f32 %v3979_v12, %v2478_v14 }
 0x2ae   :  { %2482 = vst [vmem:[%s4263_s7] sm:$0xff] %v2479_v15 }
 0x2b3   :  { %v2480_v16 = vpop.f32.mrf.mxu0 }
 0x2b4   :  { %2487 = vsyncpa [#allocation3], 1 }
 0x2b5   :  { %2488 = vsyncpa [#allocation5], 1 }
 0x2b6   :  { %2489 = vsyncpa [#allocation8], 1 }

</bundles_post_ra>
